<compile_context>
chip_gen: v6e
topology: v6e:2x2x1
jax: 0.10.0
libtpu: 0.0.40
codegen_flags: <defaults>
</compile_context>

<pallas_src>
import jax
import jax.numpy as jnp
from jax.experimental import pallas as pl
from jax.experimental.pallas import tpu as pltpu

NEG_SLOPE = 0.01   # nn.LeakyReLU default
BN_EPS = 1e-5      # nn.BatchNorm2d default


def _round_up(x, m):
    return (x + m - 1) // m * m


# ---------------------------------------------------------------------------
# Pallas kernel 1: GEMM + bias + LeakyReLU  (conv0 / conv1 as im2col GEMM)
# ---------------------------------------------------------------------------
def _gemm_bias_lrelu_kernel(a_ref, w_ref, b_ref, o_ref):
    # Reduction (K) axis is the last grid axis; the f32 output block doubles
    # as the accumulator (same output block index for every k step).
    @pl.when(pl.program_id(2) == 0)
    def _():
        o_ref[...] = jnp.zeros_like(o_ref)

    o_ref[...] += jnp.dot(a_ref[...], w_ref[...],
                          preferred_element_type=jnp.float32)

    @pl.when(pl.program_id(2) == pl.num_programs(2) - 1)
    def _():
        y = o_ref[...] + b_ref[...]
        o_ref[...] = jnp.where(y >= 0.0, y, NEG_SLOPE * y)     # LeakyReLU


def conv_gemm_lrelu(a, w_p, b_p):
    """LeakyReLU(a @ W + bias).

    a:   (M, K)  f32 im2col activations (cast to bf16 here).
    w_p: (Kp, N) pre-transposed / K-padded bf16 weight, N % 128 == 0.
    b_p: (1, N)  f32 bias.
    Returns (M, N) f32.
    """
    M, K = a.shape
    Kp, N = w_p.shape

    tm = _round_up(M, 16)            # bf16 sublane tile; M <= 208 -> one M block
    tn = min(512, N)
    tk = min(4096, Kp)               # full K in a single step for this model

    if (M, K) != (tm, Kp):
        a = jnp.pad(a, ((0, tm - M), (0, Kp - K)))
    a = a.astype(jnp.bfloat16)

    out = pl.pallas_call(
        _gemm_bias_lrelu_kernel,
        out_shape=jax.ShapeDtypeStruct((tm, N), jnp.float32),
        grid_spec=pltpu.PrefetchScalarGridSpec(
            num_scalar_prefetch=0,
            grid=(1, N // tn, Kp // tk),
            in_specs=[
                pl.BlockSpec((tm, tk), lambda i, j, k: (i, k)),
                pl.BlockSpec((tk, tn), lambda i, j, k: (k, j)),
                pl.BlockSpec((1, tn), lambda i, j, k: (0, j)),
            ],
            out_specs=pl.BlockSpec((tm, tn), lambda i, j, k: (i, j)),
        ),
        compiler_params=pltpu.CompilerParams(
            dimension_semantics=("parallel", "parallel", "arbitrary"),
            vmem_limit_bytes=32 * 1024 * 1024),
    )(a, w_p, b_p)
    return out[:M]


# ---------------------------------------------------------------------------
# Pallas kernel 2: fused head  (conv2..conv4 + pools + BNs + Flatten + Linear)
# ---------------------------------------------------------------------------
def _head_kernel(x_ref, w2_ref, b2_ref, s2_ref, t2_ref,
                 w3_ref, b3_ref, s3_ref, t3_ref,
                 w4_ref, b4_ref, wf_ref, bf_ref, o_ref):
    x = x_ref[...].astype(jnp.bfloat16)

    # conv2 (BN(256) pre-folded into w2/b2) + LeakyReLU + [pool*BN(512)] affine
    y = jnp.dot(x, w2_ref[...], preferred_element_type=jnp.float32) + b2_ref[...]
    y = jnp.where(y >= 0.0, y, NEG_SLOPE * y)
    y = y * s2_ref[...] + t2_ref[...]

    # conv3 (2x2 replication folded into w3) + LeakyReLU + [pool*BN(1024)]
    y = jnp.dot(y.astype(jnp.bfloat16), w3_ref[...],
                preferred_element_type=jnp.float32) + b3_ref[...]
    y = jnp.where(y >= 0.0, y, NEG_SLOPE * y)
    y = y * s3_ref[...] + t3_ref[...]

    # conv4 (replication folded) + LeakyReLU + AvgPool(2,1,1) == *0.25
    y = jnp.dot(y.astype(jnp.bfloat16), w4_ref[...],
                preferred_element_type=jnp.float32) + b4_ref[...]
    y = jnp.where(y >= 0.0, y, NEG_SLOPE * y)
    y = 0.25 * y

    # Flatten (NCHW, all 4 positions equal -> folded into wf) + Linear(8192->2)
    o_ref[...] = jnp.dot(y.astype(jnp.bfloat16), wf_ref[...],
                         preferred_element_type=jnp.float32) + bf_ref[...]


def head_fused(x, prep):
    """x: (n, 1024) f32 -- conv1's pooled 2x2x256 output, flattened (h,w,c)."""
    n = x.shape[0]
    m = _round_up(n, 8)
    if m != n:
        x = jnp.pad(x, ((0, m - n), (0, 0)))

    args = (x, prep["h_w2"], prep["h_b2"], prep["h_s2"], prep["h_t2"],
            prep["h_w3"], prep["h_b3"], prep["h_s3"], prep["h_t3"],
            prep["h_w4"], prep["h_b4"], prep["h_wf"], prep["h_bf"])

    out = pl.pallas_call(
        _head_kernel,
        out_shape=jax.ShapeDtypeStruct((m, 128), jnp.float32),
        grid_spec=pltpu.PrefetchScalarGridSpec(
            num_scalar_prefetch=0,
            grid=(1,),
            in_specs=[pl.BlockSpec(a.shape, lambda i: (0, 0)) for a in args],
            out_specs=pl.BlockSpec((m, 128), lambda i: (0, 0)),
        ),
        compiler_params=pltpu.CompilerParams(
            dimension_semantics=("arbitrary",),
            vmem_limit_bytes=32 * 1024 * 1024),
    )(*args)
    return out[:n, :2]


# ---------------------------------------------------------------------------
# XLA glue (tiny tensors; a Pallas launch here would be pure overhead)
# ---------------------------------------------------------------------------
def _im2col(x, kh, kw, stride, pad):
    """x: (N, H, W, C) NHWC -> ((N*oh*ow, kh*kw*C), oh, ow)."""
    if pad:
        x = jnp.pad(x, ((0, 0), (pad, pad), (pad, pad), (0, 0)))
    n, hp, wp, c = x.shape
    oh = (hp - kh) // stride + 1
    ow = (wp - kw) // stride + 1
    cols = []
    for i in range(kh):
        for j in range(kw):
            cols.append(x[:, i:i + stride * oh:stride, j:j + stride * ow:stride, :])
    patches = jnp.stack(cols, axis=3)                 # (n, oh, ow, kh*kw, c)
    return patches.reshape(n * oh * ow, kh * kw * c), oh, ow


def _avgpool2x2_s1(x):
    """AvgPool2d(kernel_size=2, stride=1, padding=0) on NHWC."""
    return 0.25 * (x[:, :-1, :-1] + x[:, :-1, 1:] + x[:, 1:, :-1] + x[:, 1:, 1:])


# ---------------------------------------------------------------------------
# Parameters: PyTorch-layout init + one-time TPU prep (outside jit)
# ---------------------------------------------------------------------------
def init_params(key, in_channels):
    """Deterministic synthetic parameters in PyTorch layouts."""
    conv_cfgs = [(in_channels, 128, 3), (128, 256, 3), (256, 512, 2),
                 (512, 1024, 2), (1024, 2048, 2)]
    params = {}
    for idx, (ic, oc, k) in enumerate(conv_cfgs):
        key, kw_key, kb_key = jax.random.split(key, 3)
        bound = 1.0 / float(ic * k * k) ** 0.5
        params[f"conv{idx}_w"] = jax.random.uniform(
            kw_key, (oc, ic, k, k), jnp.float32, -bound, bound)
        params[f"conv{idx}_b"] = jax.random.uniform(
            kb_key, (oc,), jnp.float32, -bound, bound)
    for idx, c in enumerate([256, 512, 1024]):        # BatchNorm2d defaults
        params[f"bn{idx}_gamma"] = jnp.ones((c,), jnp.float32)
        params[f"bn{idx}_beta"] = jnp.zeros((c,), jnp.float32)
        params[f"bn{idx}_mean"] = jnp.zeros((c,), jnp.float32)
        params[f"bn{idx}_var"] = jnp.ones((c,), jnp.float32)
    key, kw_key, kb_key = jax.random.split(key, 3)
    bound = 1.0 / 8192.0 ** 0.5
    params["fc_w"] = jax.random.uniform(kw_key, (2, 8192), jnp.float32, -bound, bound)
    params["fc_b"] = jax.random.uniform(kb_key, (2,), jnp.float32, -bound, bound)
    return params


def prepare_params(params):
    """One-time conversion of PyTorch-layout params into TPU GEMM-ready form.

    All transposes, K-padding, bf16 casts, BatchNorm folds and 2x2-replication
    folds happen here, OUTSIDE the jitted forward.
    """
    # TODO(synk): BatchNorm is folded in eval mode (running stats); PyTorch's
    # default train-mode batch statistics are not reproduced here.
    def gemm_weight(w):                                # (OC,IC,KH,KW) -> (K,OC)
        oc, ic, kh, kw = w.shape
        return jnp.transpose(w, (2, 3, 1, 0)).reshape(kh * kw * ic, oc)

    def bn_scale_shift(i):
        inv = params[f"bn{i}_gamma"] / jnp.sqrt(params[f"bn{i}_var"] + BN_EPS)
        return inv, params[f"bn{i}_beta"] - params[f"bn{i}_mean"] * inv

    prep = {}

    # conv0 / conv1 : standalone Pallas GEMM layers
    for li in (0, 1):
        wk = gemm_weight(params[f"conv{li}_w"])
        k, oc = wk.shape
        kp = _round_up(k, 128)
        if kp != k:
            wk = jnp.pad(wk, ((0, kp - k), (0, 0)))
        prep[f"c{li}_w"] = wk.astype(jnp.bfloat16)
        prep[f"c{li}_b"] = params[f"conv{li}_b"].reshape(1, oc).astype(jnp.float32)

    # Fused head: conv2..conv4 + Linear.  Every conv here sees a 2x2 input
    # whose 4 positions are identical, so AvgPool(2,1,1) == x0.25 broadcast.
    s0, t0 = bn_scale_shift(0)            # BatchNorm2d(256)
    s1, t1 = bn_scale_shift(1)            # BatchNorm2d(512)
    s2, t2 = bn_scale_shift(2)            # BatchNorm2d(1024)

    # conv2: fold BN(256) applied to its im2col input (2x2 x 256 = K 1024)
    w2 = gemm_weight(params["conv2_w"])                  # (1024, 512)
    s0_t, t0_t = jnp.tile(s0, 4), jnp.tile(t0, 4)
    prep["h_w2"] = (w2 * s0_t[:, None]).astype(jnp.bfloat16)
    prep["h_b2"] = (params["conv2_b"] +
                    jnp.dot(t0_t, w2, precision="highest")
                    ).reshape(1, -1).astype(jnp.float32)
    prep["h_s2"] = (0.25 * s1).reshape(1, -1).astype(jnp.float32)   # pool*BN(512)
    prep["h_t2"] = t1.reshape(1, -1).astype(jnp.float32)

    # conv3: 4 equal input position blocks -> sum the K blocks (2048 -> 512)
    w3 = gemm_weight(params["conv3_w"])                  # (2048, 1024)
    prep["h_w3"] = w3.reshape(4, 512, 1024).sum(axis=0).astype(jnp.bfloat16)
    prep["h_b3"] = params["conv3_b"].reshape(1, -1).astype(jnp.float32)
    prep["h_s3"] = (0.25 * s2).reshape(1, -1).astype(jnp.float32)   # pool*BN(1024)
    prep["h_t3"] = t2.reshape(1, -1).astype(jnp.float32)

    # conv4: same fold (4096 -> 1024); trailing pool == *0.25 (hardcoded in kernel)
    w4 = gemm_weight(params["conv4_w"])                  # (4096, 2048)
    prep["h_w4"] = w4.reshape(4, 1024, 2048).sum(axis=0).astype(jnp.bfloat16)
    prep["h_b4"] = params["conv4_b"].reshape(1, -1).astype(jnp.float32)

    # Linear(8192->2): NCHW flatten of an all-equal 2x2 -> sum groups of 4 rows
    wf = params["fc_w"].T.reshape(2048, 4, 2).sum(axis=1)   # (2048, 2)
    prep["h_wf"] = jnp.pad(wf, ((0, 0), (0, 126))).astype(jnp.bfloat16)  # lane pad
    prep["h_bf"] = jnp.pad(params["fc_b"], (0, 126)).reshape(1, 128).astype(jnp.float32)
    return prep


# ---------------------------------------------------------------------------
# Full forward pass (matches the nn.Sequential ordering)
# ---------------------------------------------------------------------------
def predict_real_max_min_v2(prep, x_nchw):
    n = x_nchw.shape[0]
    x = jnp.transpose(x_nchw, (0, 2, 3, 1)).astype(jnp.float32)   # NCHW -> NHWC

    # Stage 0: Conv(3x3, s3, p1) + LeakyReLU (Pallas) | AvgPool(2,1,0) (XLA)
    a, oh, ow = _im2col(x, 3, 3, 3, 1)
    y = conv_gemm_lrelu(a, prep["c0_w"], prep["c0_b"])
    y = _avgpool2x2_s1(y.reshape(n, oh, ow, -1))

    # Stage 1: Conv(3x3, s3, p0) + LeakyReLU (Pallas) | AvgPool(2,1,0) (XLA)
    a, oh, ow = _im2col(y, 3, 3, 3, 0)
    y = conv_gemm_lrelu(a, prep["c1_w"], prep["c1_b"])
    y = _avgpool2x2_s1(y.reshape(n, oh, ow, -1))
    # y: (n, 2, 2, 256); BN(256) is folded into the head's first weight.
    assert y.shape[1:] == (2, 2, 256), y.shape

    # Stages 2-4 + Flatten + Linear(8192->2): one fused Pallas launch.
    return head_fused(y.reshape(n, -1), prep)


if __name__ == "__main__":
    key = jax.random.PRNGKey(0)
    key, xkey = jax.random.split(key)
    in_channels = 3
    # 28x28 is the spatial size implied by Linear(in_features=8192): the final
    # 2048-channel feature map must be 2x2.
    x = jax.random.normal(xkey, (2, in_channels, 28, 28), jnp.float32)
    params = init_params(key, in_channels)
    prep = prepare_params(params)          # one-time, outside the jitted forward

    fwd = jax.jit(predict_real_max_min_v2)
    out = jax.block_until_ready(fwd(prep, x))
    assert out.shape == (2, 2), out.shape
    assert bool(jnp.all(jnp.isfinite(out)))
    print("KERNEL_OK")
</pallas_src>

<mosaic_0001>
module attributes {stable_mosaic.version = 11 : i64} {
  func.func @_gemm_bias_lrelu_kernel(%arg0: i32, %arg1: i32, %arg2: i32, %arg3: memref<208x128xbf16, #tpu.memory_space<vmem>>, %arg4: memref<128x128xbf16, #tpu.memory_space<vmem>>, %arg5: memref<1x128xf32, #tpu.memory_space<vmem>>, %arg6: memref<208x128xf32, #tpu.memory_space<vmem>>) attributes {dimension_semantics = [#tpu.dimension_semantics<parallel>, #tpu.dimension_semantics<parallel>, #tpu.dimension_semantics<arbitrary>], iteration_bounds = array<i64: 1, 1, 1>, scalar_prefetch = 0 : i64, scratch_operands = 0 : i64, tpu.core_type = #tpu.core_type<tc>, window_params = [{transform_indices = @transform_0, window_bounds = array<i64: 208, 128>}, {transform_indices = @transform_1, window_bounds = array<i64: 128, 128>}, {transform_indices = @transform_2, window_bounds = array<i64: 1, 128>}, {transform_indices = @transform_3, window_bounds = array<i64: 208, 128>}]} {
    %c0_i32 = arith.constant 0 : i32
    %0 = arith.cmpi eq, %arg2, %c0_i32 : i32
    %1 = arith.extui %0 : i1 to i32
    %c0_i32_0 = arith.constant 0 : i32
    %2 = arith.cmpi ne, %1, %c0_i32_0 : i32
    scf.if %2 {
      %cst_10 = arith.constant 0.000000e+00 : f32
      %12 = vector.broadcast %cst_10 : f32 to vector<208x128xf32>
      %c0_11 = arith.constant 0 : index
      %c0_12 = arith.constant 0 : index
      %13 = vector.load %arg6[%c0_11, %c0_12] : memref<208x128xf32, #tpu.memory_space<vmem>>, vector<208x128xf32>
      tpu.vector_store %arg6[%c0_11, %c0_12], %12 {strides = array<i32>} : memref<208x128xf32, #tpu.memory_space<vmem>>, vector<208x128xf32>,
    } else {
    }
    %c0 = arith.constant 0 : index
    %c0_1 = arith.constant 0 : index
    %3 = vector.load %arg6[%c0, %c0_1] : memref<208x128xf32, #tpu.memory_space<vmem>>, vector<208x128xf32>
    %c0_2 = arith.constant 0 : index
    %c0_3 = arith.constant 0 : index
    %4 = vector.load %arg3[%c0_2, %c0_3] : memref<208x128xbf16, #tpu.memory_space<vmem>>, vector<208x128xbf16>
    %c0_4 = arith.constant 0 : index
    %c0_5 = arith.constant 0 : index
    %5 = vector.load %arg4[%c0_4, %c0_5] : memref<128x128xbf16, #tpu.memory_space<vmem>>, vector<128x128xbf16>
    %cst = arith.constant dense<0.000000e+00> : vector<208x128xf32>
    %6 = tpu.matmul %4, %5, %cst {dimension_numbers = #tpu.dot_dimension_numbers<[1], [0], [0], [1], [0, 0, 1, 1], [], []>} : vector<208x128xbf16>, vector<128x128xbf16>, vector<208x128xf32> -> vector<208x128xf32>
    %7 = arith.addf %3, %6 : vector<208x128xf32>
    %c0_6 = arith.constant 0 : index
    %c0_7 = arith.constant 0 : index
    %8 = vector.load %arg6[%c0_6, %c0_7] : memref<208x128xf32, #tpu.memory_space<vmem>>, vector<208x128xf32>
    tpu.vector_store %arg6[%c0_6, %c0_7], %7 {strides = array<i32>} : memref<208x128xf32, #tpu.memory_space<vmem>>, vector<208x128xf32>,
    %c0_i32_8 = arith.constant 0 : i32
    %9 = arith.cmpi eq, %arg2, %c0_i32_8 : i32
    %10 = arith.extui %9 : i1 to i32
    %c0_i32_9 = arith.constant 0 : i32
    %11 = arith.cmpi ne, %10, %c0_i32_9 : i32
    scf.if %11 {
      %c0_10 = arith.constant 0 : index
      %c0_11 = arith.constant 0 : index
      %12 = vector.load %arg6[%c0_10, %c0_11] : memref<208x128xf32, #tpu.memory_space<vmem>>, vector<208x128xf32>
      %c0_12 = arith.constant 0 : index
      %c0_13 = arith.constant 0 : index
      %13 = vector.load %arg5[%c0_12, %c0_13] : memref<1x128xf32, #tpu.memory_space<vmem>>, vector<1x128xf32>
      %14 = vector.broadcast %13 : vector<1x128xf32> to vector<208x128xf32>
      %15 = arith.addf %12, %14 : vector<208x128xf32>
      %cst_14 = arith.constant 0.000000e+00 : f32
      %16 = vector.broadcast %cst_14 : f32 to vector<208x128xf32>
      %17 = arith.cmpf oge, %15, %16 : vector<208x128xf32>
      %cst_15 = arith.constant 0.00999999977 : f32
      %18 = vector.broadcast %cst_15 : f32 to vector<208x128xf32>
      %19 = arith.mulf %18, %15 : vector<208x128xf32>
      %20 = arith.select %17, %15, %19 : vector<208x128xi1>, vector<208x128xf32>
      %c0_16 = arith.constant 0 : index
      %c0_17 = arith.constant 0 : index
      %21 = vector.load %arg6[%c0_16, %c0_17] : memref<208x128xf32, #tpu.memory_space<vmem>>, vector<208x128xf32>
      tpu.vector_store %arg6[%c0_16, %c0_17], %20 {strides = array<i32>} : memref<208x128xf32, #tpu.memory_space<vmem>>, vector<208x128xf32>,
    } else {
    }
    return
  }
  func.func @transform_0(%arg0: i32, %arg1: i32, %arg2: i32) -> (i32, i32) {
    %c0_i32 = arith.constant 0 : i32
    return %arg0, %arg2 : i32, i32
  }
  func.func @transform_1(%arg0: i32, %arg1: i32, %arg2: i32) -> (i32, i32) {
    %c0_i32 = arith.constant 0 : i32
    return %arg2, %arg1 : i32, i32
  }
  func.func @transform_2(%arg0: i32, %arg1: i32, %arg2: i32) -> (i32, i32) {
    %c0_i32 = arith.constant 0 : i32
    %c0_i32_0 = arith.constant 0 : i32
    return %c0_i32, %arg1 : i32, i32
  }
  func.func @transform_3(%arg0: i32, %arg1: i32, %arg2: i32) -> (i32, i32) {
    %c0_i32 = arith.constant 0 : i32
    return %arg0, %arg1 : i32, i32
  }
}

module attributes {stable_mosaic.version = 11 : i64} {
  func.func @_gemm_bias_lrelu_kernel(%arg0: i32, %arg1: i32, %arg2: i32, %arg3: memref<32x1152xbf16, #tpu.memory_space<vmem>>, %arg4: memref<1152x256xbf16, #tpu.memory_space<vmem>>, %arg5: memref<1x256xf32, #tpu.memory_space<vmem>>, %arg6: memref<32x256xf32, #tpu.memory_space<vmem>>) attributes {dimension_semantics = [#tpu.dimension_semantics<parallel>, #tpu.dimension_semantics<parallel>, #tpu.dimension_semantics<arbitrary>], iteration_bounds = array<i64: 1, 1, 1>, scalar_prefetch = 0 : i64, scratch_operands = 0 : i64, tpu.core_type = #tpu.core_type<tc>, window_params = [{transform_indices = @transform_0, window_bounds = array<i64: 32, 1152>}, {transform_indices = @transform_1, window_bounds = array<i64: 1152, 256>}, {transform_indices = @transform_2, window_bounds = array<i64: 1, 256>}, {transform_indices = @transform_3, window_bounds = array<i64: 32, 256>}]} {
    %c0_i32 = arith.constant 0 : i32
    %0 = arith.cmpi eq, %arg2, %c0_i32 : i32
    %1 = arith.extui %0 : i1 to i32
    %c0_i32_0 = arith.constant 0 : i32
    %2 = arith.cmpi ne, %1, %c0_i32_0 : i32
    scf.if %2 {
      %cst_10 = arith.constant 0.000000e+00 : f32
      %12 = vector.broadcast %cst_10 : f32 to vector<32x256xf32>
      %c0_11 = arith.constant 0 : index
      %c0_12 = arith.constant 0 : index
      %13 = vector.load %arg6[%c0_11, %c0_12] : memref<32x256xf32, #tpu.memory_space<vmem>>, vector<32x256xf32>
      tpu.vector_store %arg6[%c0_11, %c0_12], %12 {strides = array<i32>} : memref<32x256xf32, #tpu.memory_space<vmem>>, vector<32x256xf32>,
    } else {
    }
    %c0 = arith.constant 0 : index
    %c0_1 = arith.constant 0 : index
    %3 = vector.load %arg6[%c0, %c0_1] : memref<32x256xf32, #tpu.memory_space<vmem>>, vector<32x256xf32>
    %c0_2 = arith.constant 0 : index
    %c0_3 = arith.constant 0 : index
    %4 = vector.load %arg3[%c0_2, %c0_3] : memref<32x1152xbf16, #tpu.memory_space<vmem>>, vector<32x1152xbf16>
    %c0_4 = arith.constant 0 : index
    %c0_5 = arith.constant 0 : index
    %5 = vector.load %arg4[%c0_4, %c0_5] : memref<1152x256xbf16, #tpu.memory_space<vmem>>, vector<1152x256xbf16>
    %cst = arith.constant dense<0.000000e+00> : vector<32x256xf32>
    %6 = tpu.matmul %4, %5, %cst {dimension_numbers = #tpu.dot_dimension_numbers<[1], [0], [0], [1], [0, 0, 1, 1], [], []>} : vector<32x1152xbf16>, vector<1152x256xbf16>, vector<32x256xf32> -> vector<32x256xf32>
    %7 = arith.addf %3, %6 : vector<32x256xf32>
    %c0_6 = arith.constant 0 : index
    %c0_7 = arith.constant 0 : index
    %8 = vector.load %arg6[%c0_6, %c0_7] : memref<32x256xf32, #tpu.memory_space<vmem>>, vector<32x256xf32>
    tpu.vector_store %arg6[%c0_6, %c0_7], %7 {strides = array<i32>} : memref<32x256xf32, #tpu.memory_space<vmem>>, vector<32x256xf32>,
    %c0_i32_8 = arith.constant 0 : i32
    %9 = arith.cmpi eq, %arg2, %c0_i32_8 : i32
    %10 = arith.extui %9 : i1 to i32
    %c0_i32_9 = arith.constant 0 : i32
    %11 = arith.cmpi ne, %10, %c0_i32_9 : i32
    scf.if %11 {
      %c0_10 = arith.constant 0 : index
      %c0_11 = arith.constant 0 : index
      %12 = vector.load %arg6[%c0_10, %c0_11] : memref<32x256xf32, #tpu.memory_space<vmem>>, vector<32x256xf32>
      %c0_12 = arith.constant 0 : index
      %c0_13 = arith.constant 0 : index
      %13 = vector.load %arg5[%c0_12, %c0_13] : memref<1x256xf32, #tpu.memory_space<vmem>>, vector<1x256xf32>
      %14 = vector.broadcast %13 : vector<1x256xf32> to vector<32x256xf32>
      %15 = arith.addf %12, %14 : vector<32x256xf32>
      %cst_14 = arith.constant 0.000000e+00 : f32
      %16 = vector.broadcast %cst_14 : f32 to vector<32x256xf32>
      %17 = arith.cmpf oge, %15, %16 : vector<32x256xf32>
      %cst_15 = arith.constant 0.00999999977 : f32
      %18 = vector.broadcast %cst_15 : f32 to vector<32x256xf32>
      %19 = arith.mulf %18, %15 : vector<32x256xf32>
      %20 = arith.select %17, %15, %19 : vector<32x256xi1>, vector<32x256xf32>
      %c0_16 = arith.constant 0 : index
      %c0_17 = arith.constant 0 : index
      %21 = vector.load %arg6[%c0_16, %c0_17] : memref<32x256xf32, #tpu.memory_space<vmem>>, vector<32x256xf32>
      tpu.vector_store %arg6[%c0_16, %c0_17], %20 {strides = array<i32>} : memref<32x256xf32, #tpu.memory_space<vmem>>, vector<32x256xf32>,
    } else {
    }
    return
  }
  func.func @transform_0(%arg0: i32, %arg1: i32, %arg2: i32) -> (i32, i32) {
    %c0_i32 = arith.constant 0 : i32
    return %arg0, %arg2 : i32, i32
  }
  func.func @transform_1(%arg0: i32, %arg1: i32, %arg2: i32) -> (i32, i32) {
    %c0_i32 = arith.constant 0 : i32
    return %arg2, %arg1 : i32, i32
  }
  func.func @transform_2(%arg0: i32, %arg1: i32, %arg2: i32) -> (i32, i32) {
    %c0_i32 = arith.constant 0 : i32
    %c0_i32_0 = arith.constant 0 : i32
    return %c0_i32, %arg1 : i32, i32
  }
  func.func @transform_3(%arg0: i32, %arg1: i32, %arg2: i32) -> (i32, i32) {
    %c0_i32 = arith.constant 0 : i32
    return %arg0, %arg1 : i32, i32
  }
}

module attributes {stable_mosaic.version = 11 : i64} {
  func.func @_head_kernel(%arg0: i32, %arg1: memref<8x1024xf32, #tpu.memory_space<vmem>>, %arg2: memref<1024x512xbf16, #tpu.memory_space<vmem>>, %arg3: memref<1x512xf32, #tpu.memory_space<vmem>>, %arg4: memref<1x512xf32, #tpu.memory_space<vmem>>, %arg5: memref<1x512xf32, #tpu.memory_space<vmem>>, %arg6: memref<512x1024xbf16, #tpu.memory_space<vmem>>, %arg7: memref<1x1024xf32, #tpu.memory_space<vmem>>, %arg8: memref<1x1024xf32, #tpu.memory_space<vmem>>, %arg9: memref<1x1024xf32, #tpu.memory_space<vmem>>, %arg10: memref<1024x2048xbf16, #tpu.memory_space<vmem>>, %arg11: memref<1x2048xf32, #tpu.memory_space<vmem>>, %arg12: memref<2048x128xbf16, #tpu.memory_space<vmem>>, %arg13: memref<1x128xf32, #tpu.memory_space<vmem>>, %arg14: memref<8x128xf32, #tpu.memory_space<vmem>>) attributes {dimension_semantics = [#tpu.dimension_semantics<arbitrary>], iteration_bounds = array<i64: 1>, scalar_prefetch = 0 : i64, scratch_operands = 0 : i64, tpu.core_type = #tpu.core_type<tc>, window_params = [{pipeline_mode = #tpu.pipeline_mode<synchronous>, transform_indices = @transform_0, window_bounds = array<i64: 8, 1024>}, {pipeline_mode = #tpu.pipeline_mode<synchronous>, transform_indices = @transform_1, window_bounds = array<i64: 1024, 512>}, {pipeline_mode = #tpu.pipeline_mode<synchronous>, transform_indices = @transform_2, window_bounds = array<i64: 1, 512>}, {pipeline_mode = #tpu.pipeline_mode<synchronous>, transform_indices = @transform_3, window_bounds = array<i64: 1, 512>}, {pipeline_mode = #tpu.pipeline_mode<synchronous>, transform_indices = @transform_4, window_bounds = array<i64: 1, 512>}, {pipeline_mode = #tpu.pipeline_mode<synchronous>, transform_indices = @transform_5, window_bounds = array<i64: 512, 1024>}, {pipeline_mode = #tpu.pipeline_mode<synchronous>, transform_indices = @transform_6, window_bounds = array<i64: 1, 1024>}, {pipeline_mode = #tpu.pipeline_mode<synchronous>, transform_indices = @transform_7, window_bounds = array<i64: 1, 1024>}, {pipeline_mode = #tpu.pipeline_mode<synchronous>, transform_indices = @transform_8, window_bounds = array<i64: 1, 1024>}, {pipeline_mode = #tpu.pipeline_mode<synchronous>, transform_indices = @transform_9, window_bounds = array<i64: 1024, 2048>}, {pipeline_mode = #tpu.pipeline_mode<synchronous>, transform_indices = @transform_10, window_bounds = array<i64: 1, 2048>}, {pipeline_mode = #tpu.pipeline_mode<synchronous>, transform_indices = @transform_11, window_bounds = array<i64: 2048, 128>}, {pipeline_mode = #tpu.pipeline_mode<synchronous>, transform_indices = @transform_12, window_bounds = array<i64: 1, 128>}, {pipeline_mode = #tpu.pipeline_mode<synchronous>, transform_indices = @transform_13, window_bounds = array<i64: 8, 128>}]} {
    %c0 = arith.constant 0 : index
    %c0_0 = arith.constant 0 : index
    %0 = vector.load %arg1[%c0, %c0_0] : memref<8x1024xf32, #tpu.memory_space<vmem>>, vector<8x1024xf32>
    %1 = arith.truncf %0 : vector<8x1024xf32> to vector<8x1024xbf16>
    %c0_1 = arith.constant 0 : index
    %c0_2 = arith.constant 0 : index
    %2 = vector.load %arg2[%c0_1, %c0_2] : memref<1024x512xbf16, #tpu.memory_space<vmem>>, vector<1024x512xbf16>
    %cst = arith.constant dense<0.000000e+00> : vector<8x512xf32>
    %3 = tpu.matmul %1, %2, %cst {dimension_numbers = #tpu.dot_dimension_numbers<[1], [0], [0], [1], [0, 0, 1, 1], [], []>} : vector<8x1024xbf16>, vector<1024x512xbf16>, vector<8x512xf32> -> vector<8x512xf32>
    %c0_3 = arith.constant 0 : index
    %c0_4 = arith.constant 0 : index
    %4 = vector.load %arg3[%c0_3, %c0_4] : memref<1x512xf32, #tpu.memory_space<vmem>>, vector<1x512xf32>
    %5 = vector.broadcast %4 : vector<1x512xf32> to vector<8x512xf32>
    %6 = arith.addf %3, %5 : vector<8x512xf32>
    %cst_5 = arith.constant 0.000000e+00 : f32
    %7 = vector.broadcast %cst_5 : f32 to vector<8x512xf32>
    %8 = arith.cmpf oge, %6, %7 : vector<8x512xf32>
    %cst_6 = arith.constant 0.00999999977 : f32
    %9 = vector.broadcast %cst_6 : f32 to vector<8x512xf32>
    %10 = arith.mulf %9, %6 : vector<8x512xf32>
    %11 = arith.select %8, %6, %10 : vector<8x512xi1>, vector<8x512xf32>
    %c0_7 = arith.constant 0 : index
    %c0_8 = arith.constant 0 : index
    %12 = vector.load %arg4[%c0_7, %c0_8] : memref<1x512xf32, #tpu.memory_space<vmem>>, vector<1x512xf32>
    %13 = vector.broadcast %12 : vector<1x512xf32> to vector<8x512xf32>
    %14 = arith.mulf %11, %13 : vector<8x512xf32>
    %c0_9 = arith.constant 0 : index
    %c0_10 = arith.constant 0 : index
    %15 = vector.load %arg5[%c0_9, %c0_10] : memref<1x512xf32, #tpu.memory_space<vmem>>, vector<1x512xf32>
    %16 = vector.broadcast %15 : vector<1x512xf32> to vector<8x512xf32>
    %17 = arith.addf %14, %16 : vector<8x512xf32>
    %18 = arith.truncf %17 : vector<8x512xf32> to vector<8x512xbf16>
    %c0_11 = arith.constant 0 : index
    %c0_12 = arith.constant 0 : index
    %19 = vector.load %arg6[%c0_11, %c0_12] : memref<512x1024xbf16, #tpu.memory_space<vmem>>, vector<512x1024xbf16>
    %cst_13 = arith.constant dense<0.000000e+00> : vector<8x1024xf32>
    %20 = tpu.matmul %18, %19, %cst_13 {dimension_numbers = #tpu.dot_dimension_numbers<[1], [0], [0], [1], [0, 0, 1, 1], [], []>} : vector<8x512xbf16>, vector<512x1024xbf16>, vector<8x1024xf32> -> vector<8x1024xf32>
    %c0_14 = arith.constant 0 : index
    %c0_15 = arith.constant 0 : index
    %21 = vector.load %arg7[%c0_14, %c0_15] : memref<1x1024xf32, #tpu.memory_space<vmem>>, vector<1x1024xf32>
    %22 = vector.broadcast %21 : vector<1x1024xf32> to vector<8x1024xf32>
    %23 = arith.addf %20, %22 : vector<8x1024xf32>
    %cst_16 = arith.constant 0.000000e+00 : f32
    %24 = vector.broadcast %cst_16 : f32 to vector<8x1024xf32>
    %25 = arith.cmpf oge, %23, %24 : vector<8x1024xf32>
    %cst_17 = arith.constant 0.00999999977 : f32
    %26 = vector.broadcast %cst_17 : f32 to vector<8x1024xf32>
    %27 = arith.mulf %26, %23 : vector<8x1024xf32>
    %28 = arith.select %25, %23, %27 : vector<8x1024xi1>, vector<8x1024xf32>
    %c0_18 = arith.constant 0 : index
    %c0_19 = arith.constant 0 : index
    %29 = vector.load %arg8[%c0_18, %c0_19] : memref<1x1024xf32, #tpu.memory_space<vmem>>, vector<1x1024xf32>
    %30 = vector.broadcast %29 : vector<1x1024xf32> to vector<8x1024xf32>
    %31 = arith.mulf %28, %30 : vector<8x1024xf32>
    %c0_20 = arith.constant 0 : index
    %c0_21 = arith.constant 0 : index
    %32 = vector.load %arg9[%c0_20, %c0_21] : memref<1x1024xf32, #tpu.memory_space<vmem>>, vector<1x1024xf32>
    %33 = vector.broadcast %32 : vector<1x1024xf32> to vector<8x1024xf32>
    %34 = arith.addf %31, %33 : vector<8x1024xf32>
    %35 = arith.truncf %34 : vector<8x1024xf32> to vector<8x1024xbf16>
    %c0_22 = arith.constant 0 : index
    %c0_23 = arith.constant 0 : index
    %36 = vector.load %arg10[%c0_22, %c0_23] : memref<1024x2048xbf16, #tpu.memory_space<vmem>>, vector<1024x2048xbf16>
    %cst_24 = arith.constant dense<0.000000e+00> : vector<8x2048xf32>
    %37 = tpu.matmul %35, %36, %cst_24 {dimension_numbers = #tpu.dot_dimension_numbers<[1], [0], [0], [1], [0, 0, 1, 1], [], []>} : vector<8x1024xbf16>, vector<1024x2048xbf16>, vector<8x2048xf32> -> vector<8x2048xf32>
    %c0_25 = arith.constant 0 : index
    %c0_26 = arith.constant 0 : index
    %38 = vector.load %arg11[%c0_25, %c0_26] : memref<1x2048xf32, #tpu.memory_space<vmem>>, vector<1x2048xf32>
    %39 = vector.broadcast %38 : vector<1x2048xf32> to vector<8x2048xf32>
    %40 = arith.addf %37, %39 : vector<8x2048xf32>
    %cst_27 = arith.constant 0.000000e+00 : f32
    %41 = vector.broadcast %cst_27 : f32 to vector<8x2048xf32>
    %42 = arith.cmpf oge, %40, %41 : vector<8x2048xf32>
    %cst_28 = arith.constant 0.00999999977 : f32
    %43 = vector.broadcast %cst_28 : f32 to vector<8x2048xf32>
    %44 = arith.mulf %43, %40 : vector<8x2048xf32>
    %45 = arith.select %42, %40, %44 : vector<8x2048xi1>, vector<8x2048xf32>
    %cst_29 = arith.constant 2.500000e-01 : f32
    %46 = vector.broadcast %cst_29 : f32 to vector<8x2048xf32>
    %47 = arith.mulf %46, %45 : vector<8x2048xf32>
    %48 = arith.truncf %47 : vector<8x2048xf32> to vector<8x2048xbf16>
    %c0_30 = arith.constant 0 : index
    %c0_31 = arith.constant 0 : index
    %49 = vector.load %arg12[%c0_30, %c0_31] : memref<2048x128xbf16, #tpu.memory_space<vmem>>, vector<2048x128xbf16>
    %cst_32 = arith.constant dense<0.000000e+00> : vector<8x128xf32>
    %50 = tpu.matmul %48, %49, %cst_32 {dimension_numbers = #tpu.dot_dimension_numbers<[1], [0], [0], [1], [0, 0, 1, 1], [], []>} : vector<8x2048xbf16>, vector<2048x128xbf16>, vector<8x128xf32> -> vector<8x128xf32>
    %c0_33 = arith.constant 0 : index
    %c0_34 = arith.constant 0 : index
    %51 = vector.load %arg13[%c0_33, %c0_34] : memref<1x128xf32, #tpu.memory_space<vmem>>, vector<1x128xf32>
    %52 = vector.broadcast %51 : vector<1x128xf32> to vector<8x128xf32>
    %53 = arith.addf %50, %52 : vector<8x128xf32>
    %c0_35 = arith.constant 0 : index
    %c0_36 = arith.constant 0 : index
    %54 = vector.load %arg14[%c0_35, %c0_36] : memref<8x128xf32, #tpu.memory_space<vmem>>, vector<8x128xf32>
    tpu.vector_store %arg14[%c0_35, %c0_36], %53 {strides = array<i32>} : memref<8x128xf32, #tpu.memory_space<vmem>>, vector<8x128xf32>,
    return
  }
  func.func @transform_0(%arg0: i32) -> (i32, i32) {
    %c0_i32 = arith.constant 0 : i32
    %c0_i32_0 = arith.constant 0 : i32
    %c0_i32_1 = arith.constant 0 : i32
    return %c0_i32, %c0_i32_0 : i32, i32
  }
  func.func @transform_1(%arg0: i32) -> (i32, i32) {
    %c0_i32 = arith.constant 0 : i32
    %c0_i32_0 = arith.constant 0 : i32
    %c0_i32_1 = arith.constant 0 : i32
    return %c0_i32, %c0_i32_0 : i32, i32
  }
  func.func @transform_2(%arg0: i32) -> (i32, i32) {
    %c0_i32 = arith.constant 0 : i32
    %c0_i32_0 = arith.constant 0 : i32
    %c0_i32_1 = arith.constant 0 : i32
    return %c0_i32, %c0_i32_0 : i32, i32
  }
  func.func @transform_3(%arg0: i32) -> (i32, i32) {
    %c0_i32 = arith.constant 0 : i32
    %c0_i32_0 = arith.constant 0 : i32
    %c0_i32_1 = arith.constant 0 : i32
    return %c0_i32, %c0_i32_0 : i32, i32
  }
  func.func @transform_4(%arg0: i32) -> (i32, i32) {
    %c0_i32 = arith.constant 0 : i32
    %c0_i32_0 = arith.constant 0 : i32
    %c0_i32_1 = arith.constant 0 : i32
    return %c0_i32, %c0_i32_0 : i32, i32
  }
  func.func @transform_5(%arg0: i32) -> (i32, i32) {
    %c0_i32 = arith.constant 0 : i32
    %c0_i32_0 = arith.constant 0 : i32
    %c0_i32_1 = arith.constant 0 : i32
    return %c0_i32, %c0_i32_0 : i32, i32
  }
  func.func @transform_6(%arg0: i32) -> (i32, i32) {
    %c0_i32 = arith.constant 0 : i32
    %c0_i32_0 = arith.constant 0 : i32
    %c0_i32_1 = arith.constant 0 : i32
    return %c0_i32, %c0_i32_0 : i32, i32
  }
  func.func @transform_7(%arg0: i32) -> (i32, i32) {
    %c0_i32 = arith.constant 0 : i32
    %c0_i32_0 = arith.constant 0 : i32
    %c0_i32_1 = arith.constant 0 : i32
    return %c0_i32, %c0_i32_0 : i32, i32
  }
  func.func @transform_8(%arg0: i32) -> (i32, i32) {
    %c0_i32 = arith.constant 0 : i32
    %c0_i32_0 = arith.constant 0 : i32
    %c0_i32_1 = arith.constant 0 : i32
    return %c0_i32, %c0_i32_0 : i32, i32
  }
  func.func @transform_9(%arg0: i32) -> (i32, i32) {
    %c0_i32 = arith.constant 0 : i32
    %c0_i32_0 = arith.constant 0 : i32
    %c0_i32_1 = arith.constant 0 : i32
    return %c0_i32, %c0_i32_0 : i32, i32
  }
  func.func @transform_10(%arg0: i32) -> (i32, i32) {
    %c0_i32 = arith.constant 0 : i32
    %c0_i32_0 = arith.constant 0 : i32
    %c0_i32_1 = arith.constant 0 : i32
    return %c0_i32, %c0_i32_0 : i32, i32
  }
  func.func @transform_11(%arg0: i32) -> (i32, i32) {
    %c0_i32 = arith.constant 0 : i32
    %c0_i32_0 = arith.constant 0 : i32
    %c0_i32_1 = arith.constant 0 : i32
    return %c0_i32, %c0_i32_0 : i32, i32
  }
  func.func @transform_12(%arg0: i32) -> (i32, i32) {
    %c0_i32 = arith.constant 0 : i32
    %c0_i32_0 = arith.constant 0 : i32
    %c0_i32_1 = arith.constant 0 : i32
    return %c0_i32, %c0_i32_0 : i32, i32
  }
  func.func @transform_13(%arg0: i32) -> (i32, i32) {
    %c0_i32 = arith.constant 0 : i32
    %c0_i32_0 = arith.constant 0 : i32
    %c0_i32_1 = arith.constant 0 : i32
    return %c0_i32, %c0_i32_0 : i32, i32
  }
}

</mosaic_0001>

<bundles_post_ra>
// kernel: predict_real_max_min_v2.3
= control target key start
LH: loop header
LB: loop body
LE: loop exit
PB: predicated region body
PF: predicated region fallthrough
CT: control target
= control target key end

     0   :  { %8 = vsyncpa [#allocation3], 0  ;;  %s1043_s0 = inlined_call_operand.vmem [shape: bf16[208,128], index: 0, kind: input, shape index: {}]   ;;  %s1044_s1 = inlined_call_operand.hbm [shape: bf16[128,128], index: 1, kind: input, shape index: {}]   ;;  %s1045_s2 = inlined_call_operand.hbm [shape: f32[1,128], index: 2, kind: input, shape index: {}]   ;;  %s1046_s3 = inlined_call_operand.vmem [shape: f32[208,128], index: 3, kind: output, shape index: {}]  }
   0x1   :  { %9 = vsyncpa [#allocation5], 0  ;;  %s824_s12 = smov [#allocation2]  }
   0x2   :  { %s17_s13 = sshll.u32 %s824_s12, 4  ;;  %s18_s13 = int_to_ptr.vmem [resolvable:$true] %s17_s13 }
   0x3   :  { %s788_s14 = scalar_lea.vmem %s18_s13, 1024  ;;  %p793_p1 = scmp.lt.s32.totalorder %s18_s13, %s18_s13 }
   0x4   :  { %p789_p0 = scmp.ne.s32.totalorder %s18_s13, %s788_s14  ;;  %p794_p2 = scmp.lt.s32.totalorder %s788_s14, %s788_s14 }
   0x6   :  { %p795_p3 = por %p794_p2, %p793_p1 }
   0x8   :  { %p796_p4 = pnand %p795_p3, %p789_p0 }
   0xa   :  { %799 = shalt.err (!%p796_p4)
}
   0xb   :  { %s825_s15 = smov 64   ;;  %s826_s16 = smov 4  }
   0xc   :  { %23 = dma.hbm_to_vmem [thread:$0]  %s1044_s1, 1024, %s18_s13, [#allocation3], %s825_s15, %s825_s15, %s826_s16  }
   0xd   :  { %s827_s19 = smov [#allocation4]  }
   0xe   :  { %s30_s20 = sshll.u32 %s827_s19, 4  ;;  %s31_s20 = int_to_ptr.vmem [resolvable:$true] %s30_s20 }
   0xf   :  { %s808_s21 = scalar_lea.vmem %s31_s20, 16  ;;  %s812_s22 = scalar_lea.vmem %s31_s20, 32 }
  0x10   :  { %p809_p5 = scmp.ne.s32.totalorder %s31_s20, %s808_s21  ;;  %p813_p6 = scmp.lt.s32.totalorder %s31_s20, %s31_s20 }
  0x11   :  { %p814_p7 = scmp.lt.s32.totalorder %s812_s22, %s808_s21 }
  0x13   :  { %p815_p8 = por %p814_p7, %p813_p6 }
  0x15   :  { %p816_p9 = pnand %p815_p8, %p809_p5 }
  0x17   :  { %819 = shalt.err (!%p816_p9)
}
  0x18   :  { %33 = dma.hbm_to_vmem [thread:$0]  %s1045_s2, 16, %s31_s20, [#allocation5]  }
  0x19   :  { %820 = dma.done.wait [#allocation3], 1024  }
  0x1a   :  { %821 = vsyncadd [#allocation3], 4294966272 }
  0x1b   :  { %822 = dma.done.wait [#allocation5], 16  }
  0x1c   :  { %823 = vsyncadd [#allocation5], 4294967280  ;;  %v828_v0 = vmov 0.0   ;;  %vm829_vm0 = vmmov 0   ;;  %v759_v1 = vld [vmem:[#allocation2 + $0x38] sm:$0xff]   ;;  %v760_v2 = vld [vmem:[#allocation2 + $0x30] sm:$0xff]  }
  0x1d   :  { %669 = vmatprep.subr.bf16.mxu0 %v828_v0  ;;  %737 = vmatprep.subr.bf16.mxu1 %v828_v0  ;;  %v761_v3 = vld [vmem:[#allocation2 + $0x28] sm:$0xff]   ;;  %v762_v4 = vld [vmem:[#allocation2 + $0x20] sm:$0xff]   ;;  %v763_v5 = vld [vmem:[#allocation2 + $0x18] sm:$0xff]  }
  0x1e   :  { %685 = vmatprep.mubr.msk.bf16.mxu0 %vm829_vm0, %v828_v0  ;;  %713 = vmatprep.mubr.msk.bf16.mxu1 %vm829_vm0, %v828_v0  ;;  %v764_v6 = vld [vmem:[#allocation2 + $0x10] sm:$0xff]   ;;  %v765_v7 = vld [vmem:[#allocation2 + $0x8] sm:$0xff]   ;;  %v766_v8 = vld [vmem:[#allocation2] sm:$0xff]  }
  0x1f   :  { %670 = vmatpush3.bf16.msra.mxu0 %v759_v1  ;;  %745 = vmatpush3.bf16.msra.mxu1 %v759_v1  ;;  %v767_v9 = vld [vmem:[%s1043_s0] sm:$0xff]   ;;  %v768_v10 = vld [vmem:[%s1043_s0 + $0x38] sm:$0xff]   ;;  %v769_v11 = vld [vmem:[%s1043_s0 + $0x8] sm:$0xff]  }
  0x20   :  { %671 = vmatprep.subr.bf16.mxu0 %v828_v0  ;;  %738 = vmatprep.subr.bf16.mxu1 %v828_v0  ;;  %v770_v12 = vld [vmem:[%s1043_s0 + $0x40] sm:$0xff]   ;;  %v771_v13 = vld [vmem:[%s1043_s0 + $0x10] sm:$0xff]   ;;  %v772_v14 = vld [vmem:[%s1043_s0 + $0x48] sm:$0xff]  }
  0x21   :  { %v773_v15 = vld [vmem:[%s1043_s0 + $0x18] sm:$0xff]   ;;  %v774_v16 = vld [vmem:[%s1043_s0 + $0x50] sm:$0xff]   ;;  %v775_v17 = vld [vmem:[%s1043_s0 + $0x20] sm:$0xff]  }
  0x22   :  { %v776_v18 = vld [vmem:[%s1043_s0 + $0x58] sm:$0xff]   ;;  %v777_v19 = vld [vmem:[%s1043_s0 + $0x28] sm:$0xff]   ;;  %v778_v20 = vld [vmem:[%s1043_s0 + $0x60] sm:$0xff]  }
  0x23   :  { %672 = vmatpush3.bf16.msra.mxu0 %v760_v2  ;;  %746 = vmatpush3.bf16.msra.mxu1 %v760_v2  ;;  %v779_v21 = vld [vmem:[%s1043_s0 + $0x30] sm:$0xff]   ;;  %v937_v23 = vld [vmem:[#allocation4] ss:$0 sm:$0xff] }
  0x24   :  { %673 = vmatprep.subr.bf16.mxu0 %v828_v0  ;;  %739 = vmatprep.subr.bf16.mxu1 %v828_v0 }
  0x27   :  { %674 = vmatpush3.bf16.msra.mxu0 %v761_v3  ;;  %747 = vmatpush3.bf16.msra.mxu1 %v761_v3 }
  0x28   :  { %675 = vmatprep.subr.bf16.mxu0 %v828_v0  ;;  %740 = vmatprep.subr.bf16.mxu1 %v828_v0 }
  0x2b   :  { %676 = vmatpush3.bf16.msra.mxu0 %v762_v4  ;;  %748 = vmatpush3.bf16.msra.mxu1 %v762_v4 }
  0x2c   :  { %677 = vmatprep.subr.bf16.mxu0 %v828_v0  ;;  %741 = vmatprep.subr.bf16.mxu1 %v828_v0 }
  0x2f   :  { %678 = vmatpush3.bf16.msra.mxu0 %v763_v5  ;;  %749 = vmatpush3.bf16.msra.mxu1 %v763_v5 }
  0x30   :  { %679 = vmatprep.subr.bf16.mxu0 %v828_v0  ;;  %742 = vmatprep.subr.bf16.mxu1 %v828_v0 }
  0x33   :  { %680 = vmatpush3.bf16.msra.mxu0 %v764_v6  ;;  %750 = vmatpush3.bf16.msra.mxu1 %v764_v6 }
  0x34   :  { %681 = vmatprep.subr.bf16.mxu0 %v828_v0  ;;  %743 = vmatprep.subr.bf16.mxu1 %v828_v0 }
  0x37   :  { %682 = vmatpush3.bf16.msra.mxu0 %v765_v7  ;;  %751 = vmatpush3.bf16.msra.mxu1 %v765_v7 }
  0x38   :  { %683 = vmatprep.subr.bf16.mxu0 %v828_v0  ;;  %744 = vmatprep.subr.bf16.mxu1 %v828_v0 }
  0x3b   :  { %684 = vmatpush3.bf16.msra.mxu0 %v766_v8  ;;  %752 = vmatpush3.bf16.msra.mxu1 %v766_v8 }
  0x3e   :  { %686 = vmatmul.mubr.bf16.vlgmr.msra.gmra.mxu0 %v767_v9  ;;  %714 = vmatmul.mubr.bf16.vlgmr.msra.gmra.mxu1 %v768_v10 }
  0x3f   :  { %689 = vmatprep.mubr.msk.bf16.mxu0 %vm829_vm0, %v828_v0  ;;  %717 = vmatprep.mubr.msk.bf16.mxu1 %vm829_vm0, %v828_v0 }
  0x46   :  { %690 = vmatmul.mubr.bf16.gmra.mxu0 %v769_v11  ;;  %718 = vmatmul.mubr.bf16.gmra.mxu1 %v770_v12 }
  0x47   :  { %693 = vmatprep.mubr.msk.bf16.mxu0 %vm829_vm0, %v828_v0  ;;  %721 = vmatprep.mubr.msk.bf16.mxu1 %vm829_vm0, %v828_v0 }
  0x4e   :  { %694 = vmatmul.mubr.bf16.gmra.mxu0 %v771_v13  ;;  %722 = vmatmul.mubr.bf16.gmra.mxu1 %v772_v14 }
  0x4f   :  { %697 = vmatprep.mubr.msk.bf16.mxu0 %vm829_vm0, %v828_v0  ;;  %725 = vmatprep.mubr.msk.bf16.mxu1 %vm829_vm0, %v828_v0 }
  0x56   :  { %698 = vmatmul.mubr.bf16.gmra.mxu0 %v773_v15  ;;  %726 = vmatmul.mubr.bf16.gmra.mxu1 %v774_v16 }
  0x57   :  { %701 = vmatprep.mubr.msk.bf16.mxu0 %vm829_vm0, %v828_v0  ;;  %729 = vmatprep.mubr.msk.bf16.mxu1 %vm829_vm0, %v828_v0 }
  0x5e   :  { %702 = vmatmul.mubr.bf16.gmra.mxu0 %v775_v17  ;;  %730 = vmatmul.mubr.bf16.gmra.mxu1 %v776_v18 }
  0x5f   :  { %705 = vmatprep.mubr.msk.bf16.mxu0 %vm829_vm0, %v828_v0  ;;  %733 = vmatprep.mubr.msk.bf16.mxu1 %vm829_vm0, %v828_v0 }
  0x66   :  { %706 = vmatmul.mubr.bf16.gmra.mxu0 %v777_v19  ;;  %734 = vmatmul.mubr.bf16.gmra.mxu1 %v778_v20 }
  0x67   :  { %709 = vmatprep.mubr.msk.bf16.mxu0 %vm829_vm0, %v828_v0 }
  0x6e   :  { %710 = vmatmul.mubr.bf16.gmra.mxu0 %v779_v21 }
  0xfe   :  { %v299_v22 = vpop.f32.mrf.mxu0  ;;  %v355_v24 = vpop.f32.mrf.mxu1 }
  0xff   :  { %v490_v27 = vadd.f32 %v937_v23, %v299_v22  ;;  %v504_v28 = vadd.f32 %v937_v23, %v355_v24 }
 0x100   :  { %v687_v25 = vpop.f32.mrf.mxu0  ;;  %v715_v26 = vpop.f32.mrf.mxu1 }
 0x101   :  { %vm516_vm1 = vcmp.ge.f32.partialorder %v490_v27, 0.0  ;;  %v542_v31 = vmul.f32 0.01, %v490_v27  ;;  %vm530_vm2 = vcmp.ge.f32.partialorder %v504_v28, 0.0  ;;  %v556_v32 = vmul.f32 0.01, %v504_v28 }
 0x102   :  { %v302_v29 = vpop.f32.mrf.mxu0  ;;  %v358_v30 = vpop.f32.mrf.mxu1 }
 0x103   :  { %v568_v35 = vsel %vm516_vm1, %v490_v27, %v542_v31  ;;  %v582_v36 = vsel %vm530_vm2, %v504_v28, %v556_v32  ;;  %v491_v37 = vadd.f32 %v937_v23, %v302_v29  ;;  %v505_v38 = vadd.f32 %v937_v23, %v358_v30 }
 0x104   :  { %v688_v33 = vpop.f32.mrf.mxu0  ;;  %v716_v34 = vpop.f32.mrf.mxu1  ;;  %594 = vst [vmem:[%s1046_s3] sm:$0xff] %v568_v35  ;;  %608 = vst [vmem:[%s1046_s3 + $0x70] sm:$0xff] %v582_v36 }
 0x105   :  { %vm517_vm3 = vcmp.ge.f32.partialorder %v491_v37, 0.0  ;;  %v543_v41 = vmul.f32 0.01, %v491_v37  ;;  %vm531_vm4 = vcmp.ge.f32.partialorder %v505_v38, 0.0  ;;  %v557_v42 = vmul.f32 0.01, %v505_v38 }
 0x106   :  { %v307_v39 = vpop.f32.mrf.mxu0  ;;  %v363_v40 = vpop.f32.mrf.mxu1 }
 0x107   :  { %v492_v45 = vadd.f32 %v937_v23, %v307_v39  ;;  %v506_v46 = vadd.f32 %v937_v23, %v363_v40  ;;  %v569_v47 = vsel %vm517_vm3, %v491_v37, %v543_v41  ;;  %v583_v48 = vsel %vm531_vm4, %v505_v38, %v557_v42 }
 0x108   :  { %v691_v43 = vpop.f32.mrf.mxu0  ;;  %v719_v44 = vpop.f32.mrf.mxu1  ;;  %595 = vst [vmem:[%s1046_s3 + $0x8] sm:$0xff] %v569_v47  ;;  %609 = vst [vmem:[%s1046_s3 + $0x78] sm:$0xff] %v583_v48 }
 0x109   :  { %vm518_vm5 = vcmp.ge.f32.partialorder %v492_v45, 0.0  ;;  %v544_v51 = vmul.f32 0.01, %v492_v45  ;;  %vm532_vm6 = vcmp.ge.f32.partialorder %v506_v46, 0.0  ;;  %v558_v52 = vmul.f32 0.01, %v506_v46 }
 0x10a   :  { %v310_v49 = vpop.f32.mrf.mxu0  ;;  %v366_v50 = vpop.f32.mrf.mxu1 }
 0x10b   :  { %v570_v55 = vsel %vm518_vm5, %v492_v45, %v544_v51  ;;  %v584_v56 = vsel %vm532_vm6, %v506_v46, %v558_v52  ;;  %v493_v57 = vadd.f32 %v937_v23, %v310_v49  ;;  %v507_v58 = vadd.f32 %v937_v23, %v366_v50 }
 0x10c   :  { %v692_v53 = vpop.f32.mrf.mxu0  ;;  %v720_v54 = vpop.f32.mrf.mxu1  ;;  %596 = vst [vmem:[%s1046_s3 + $0x10] sm:$0xff] %v570_v55  ;;  %610 = vst [vmem:[%s1046_s3 + $0x80] sm:$0xff] %v584_v56 }
 0x10d   :  { %vm519_vm7 = vcmp.ge.f32.partialorder %v493_v57, 0.0  ;;  %v545_v61 = vmul.f32 0.01, %v493_v57  ;;  %vm533_vm8 = vcmp.ge.f32.partialorder %v507_v58, 0.0  ;;  %v559_v62 = vmul.f32 0.01, %v507_v58 }
 0x10e   :  { %v315_v59 = vpop.f32.mrf.mxu0  ;;  %v371_v60 = vpop.f32.mrf.mxu1 }
 0x10f   :  { %v494_v1 = vadd.f32 %v937_v23, %v315_v59  ;;  %v508_v2 = vadd.f32 %v937_v23, %v371_v60  ;;  %v571_v3 = vsel %vm519_vm7, %v493_v57, %v545_v61  ;;  %v585_v4 = vsel %vm533_vm8, %v507_v58, %v559_v62 }
 0x110   :  { %v695_v63 = vpop.f32.mrf.mxu0  ;;  %v723_v0 = vpop.f32.mrf.mxu1  ;;  %597 = vst [vmem:[%s1046_s3 + $0x18] sm:$0xff] %v571_v3  ;;  %611 = vst [vmem:[%s1046_s3 + $0x88] sm:$0xff] %v585_v4 }
 0x111   :  { %vm520_vm9 = vcmp.ge.f32.partialorder %v494_v1, 0.0  ;;  %v546_v7 = vmul.f32 0.01, %v494_v1  ;;  %vm534_vm10 = vcmp.ge.f32.partialorder %v508_v2, 0.0  ;;  %v560_v8 = vmul.f32 0.01, %v508_v2 }
 0x112   :  { %v318_v5 = vpop.f32.mrf.mxu0  ;;  %v374_v6 = vpop.f32.mrf.mxu1 }
 0x113   :  { %v572_v11 = vsel %vm520_vm9, %v494_v1, %v546_v7  ;;  %v586_v12 = vsel %vm534_vm10, %v508_v2, %v560_v8  ;;  %v495_v13 = vadd.f32 %v937_v23, %v318_v5  ;;  %v509_v14 = vadd.f32 %v937_v23, %v374_v6 }
 0x114   :  { %v696_v9 = vpop.f32.mrf.mxu0  ;;  %v724_v10 = vpop.f32.mrf.mxu1  ;;  %598 = vst [vmem:[%s1046_s3 + $0x20] sm:$0xff] %v572_v11  ;;  %612 = vst [vmem:[%s1046_s3 + $0x90] sm:$0xff] %v586_v12 }
 0x115   :  { %vm521_vm11 = vcmp.ge.f32.partialorder %v495_v13, 0.0  ;;  %v547_v17 = vmul.f32 0.01, %v495_v13  ;;  %vm535_vm12 = vcmp.ge.f32.partialorder %v509_v14, 0.0  ;;  %v561_v18 = vmul.f32 0.01, %v509_v14 }
 0x116   :  { %v323_v15 = vpop.f32.mrf.mxu0  ;;  %v379_v16 = vpop.f32.mrf.mxu1 }
 0x117   :  { %v496_v21 = vadd.f32 %v937_v23, %v323_v15  ;;  %v510_v22 = vadd.f32 %v937_v23, %v379_v16  ;;  %v573_v24 = vsel %vm521_vm11, %v495_v13, %v547_v17  ;;  %v587_v25 = vsel %vm535_vm12, %v509_v14, %v561_v18 }
 0x118   :  { %v699_v19 = vpop.f32.mrf.mxu0  ;;  %v727_v20 = vpop.f32.mrf.mxu1  ;;  %599 = vst [vmem:[%s1046_s3 + $0x28] sm:$0xff] %v573_v24  ;;  %613 = vst [vmem:[%s1046_s3 + $0x98] sm:$0xff] %v587_v25 }
 0x119   :  { %vm522_vm13 = vcmp.ge.f32.partialorder %v496_v21, 0.0  ;;  %v548_v28 = vmul.f32 0.01, %v496_v21  ;;  %vm536_vm14 = vcmp.ge.f32.partialorder %v510_v22, 0.0  ;;  %v562_v29 = vmul.f32 0.01, %v510_v22 }
 0x11a   :  { %v326_v26 = vpop.f32.mrf.mxu0  ;;  %v382_v27 = vpop.f32.mrf.mxu1 }
 0x11b   :  { %v574_v32 = vsel %vm522_vm13, %v496_v21, %v548_v28  ;;  %v588_v33 = vsel %vm536_vm14, %v510_v22, %v562_v29  ;;  %v497_v34 = vadd.f32 %v937_v23, %v326_v26  ;;  %v511_v35 = vadd.f32 %v937_v23, %v382_v27 }
 0x11c   :  { %v700_v30 = vpop.f32.mrf.mxu0  ;;  %v728_v31 = vpop.f32.mrf.mxu1  ;;  %600 = vst [vmem:[%s1046_s3 + $0x30] sm:$0xff] %v574_v32  ;;  %614 = vst [vmem:[%s1046_s3 + $0xa0] sm:$0xff] %v588_v33 }
 0x11d   :  { %vm523_vm15 = vcmp.ge.f32.partialorder %v497_v34, 0.0  ;;  %v549_v38 = vmul.f32 0.01, %v497_v34  ;;  %vm537_vm0 = vcmp.ge.f32.partialorder %v511_v35, 0.0  ;;  %v563_v39 = vmul.f32 0.01, %v511_v35 }
 0x11e   :  { %v331_v36 = vpop.f32.mrf.mxu0  ;;  %v387_v37 = vpop.f32.mrf.mxu1 }
 0x11f   :  { %v498_v42 = vadd.f32 %v937_v23, %v331_v36  ;;  %v512_v43 = vadd.f32 %v937_v23, %v387_v37  ;;  %v575_v44 = vsel %vm523_vm15, %v497_v34, %v549_v38  ;;  %v589_v45 = vsel %vm537_vm0, %v511_v35, %v563_v39 }
 0x120   :  { %v703_v40 = vpop.f32.mrf.mxu0  ;;  %v731_v41 = vpop.f32.mrf.mxu1  ;;  %601 = vst [vmem:[%s1046_s3 + $0x38] sm:$0xff] %v575_v44  ;;  %615 = vst [vmem:[%s1046_s3 + $0xa8] sm:$0xff] %v589_v45 }
 0x121   :  { %vm524_vm1 = vcmp.ge.f32.partialorder %v498_v42, 0.0  ;;  %v550_v48 = vmul.f32 0.01, %v498_v42  ;;  %vm538_vm2 = vcmp.ge.f32.partialorder %v512_v43, 0.0  ;;  %v564_v49 = vmul.f32 0.01, %v512_v43 }
 0x122   :  { %v334_v46 = vpop.f32.mrf.mxu0  ;;  %v390_v47 = vpop.f32.mrf.mxu1 }
 0x123   :  { %v576_v52 = vsel %vm524_vm1, %v498_v42, %v550_v48  ;;  %v590_v53 = vsel %vm538_vm2, %v512_v43, %v564_v49  ;;  %v499_v54 = vadd.f32 %v937_v23, %v334_v46  ;;  %v513_v55 = vadd.f32 %v937_v23, %v390_v47 }
 0x124   :  { %v704_v50 = vpop.f32.mrf.mxu0  ;;  %v732_v51 = vpop.f32.mrf.mxu1  ;;  %602 = vst [vmem:[%s1046_s3 + $0x40] sm:$0xff] %v576_v52  ;;  %616 = vst [vmem:[%s1046_s3 + $0xb0] sm:$0xff] %v590_v53 }
 0x125   :  { %vm525_vm3 = vcmp.ge.f32.partialorder %v499_v54, 0.0  ;;  %v551_v58 = vmul.f32 0.01, %v499_v54  ;;  %vm539_vm4 = vcmp.ge.f32.partialorder %v513_v55, 0.0  ;;  %v565_v59 = vmul.f32 0.01, %v513_v55 }
 0x126   :  { %v339_v56 = vpop.f32.mrf.mxu0  ;;  %v395_v57 = vpop.f32.mrf.mxu1 }
 0x127   :  { %v500_v62 = vadd.f32 %v937_v23, %v339_v56  ;;  %v514_v63 = vadd.f32 %v937_v23, %v395_v57  ;;  %v577_v0 = vsel %vm525_vm3, %v499_v54, %v551_v58  ;;  %v591_v1 = vsel %vm539_vm4, %v513_v55, %v565_v59 }
 0x128   :  { %v707_v60 = vpop.f32.mrf.mxu0  ;;  %v735_v61 = vpop.f32.mrf.mxu1  ;;  %603 = vst [vmem:[%s1046_s3 + $0x48] sm:$0xff] %v577_v0  ;;  %617 = vst [vmem:[%s1046_s3 + $0xb8] sm:$0xff] %v591_v1 }
 0x129   :  { %vm526_vm5 = vcmp.ge.f32.partialorder %v500_v62, 0.0  ;;  %v552_v4 = vmul.f32 0.01, %v500_v62  ;;  %vm540_vm6 = vcmp.ge.f32.partialorder %v514_v63, 0.0  ;;  %v566_v5 = vmul.f32 0.01, %v514_v63 }
 0x12a   :  { %v342_v2 = vpop.f32.mrf.mxu0  ;;  %v398_v3 = vpop.f32.mrf.mxu1 }
 0x12b   :  { %v578_v8 = vsel %vm526_vm5, %v500_v62, %v552_v4  ;;  %v592_v9 = vsel %vm540_vm6, %v514_v63, %v566_v5  ;;  %v501_v10 = vadd.f32 %v937_v23, %v342_v2  ;;  %v515_v11 = vadd.f32 %v937_v23, %v398_v3 }
 0x12c   :  { %v708_v6 = vpop.f32.mrf.mxu0  ;;  %v736_v7 = vpop.f32.mrf.mxu1  ;;  %604 = vst [vmem:[%s1046_s3 + $0x50] sm:$0xff] %v578_v8  ;;  %618 = vst [vmem:[%s1046_s3 + $0xc0] sm:$0xff] %v592_v9 }
 0x12d   :  { %vm527_vm7 = vcmp.ge.f32.partialorder %v501_v10, 0.0  ;;  %v553_v13 = vmul.f32 0.01, %v501_v10  ;;  %vm541_vm8 = vcmp.ge.f32.partialorder %v515_v11, 0.0  ;;  %v567_v14 = vmul.f32 0.01, %v515_v11 }
 0x12e   :  { %v347_v12 = vpop.f32.mrf.mxu0 }
 0x12f   :  { %v502_v16 = vadd.f32 %v937_v23, %v347_v12  ;;  %v579_v17 = vsel %vm527_vm7, %v501_v10, %v553_v13  ;;  %v593_v18 = vsel %vm541_vm8, %v515_v11, %v567_v14 }
 0x130   :  { %v711_v15 = vpop.f32.mrf.mxu0  ;;  %605 = vst [vmem:[%s1046_s3 + $0x58] sm:$0xff] %v579_v17  ;;  %619 = vst [vmem:[%s1046_s3 + $0xc8] sm:$0xff] %v593_v18 }
 0x131   :  { %vm528_vm9 = vcmp.ge.f32.partialorder %v502_v16, 0.0  ;;  %v554_v20 = vmul.f32 0.01, %v502_v16 }
 0x132   :  { %v350_v19 = vpop.f32.mrf.mxu0 }
 0x133   :  { %v580_v22 = vsel %vm528_vm9, %v502_v16, %v554_v20  ;;  %v503_v24 = vadd.f32 %v937_v23, %v350_v19 }
 0x134   :  { %v712_v21 = vpop.f32.mrf.mxu0  ;;  %606 = vst [vmem:[%s1046_s3 + $0x60] sm:$0xff] %v580_v22 }
 0x135   :  { %vm529_vm10 = vcmp.ge.f32.partialorder %v503_v24, 0.0  ;;  %v555_v25 = vmul.f32 0.01, %v503_v24 }
 0x137   :  { %v581_v26 = vsel %vm529_vm10, %v503_v24, %v555_v25 }
 0x138   :  { %607 = vst [vmem:[%s1046_s3 + $0x68] sm:$0xff] %v581_v26 }
 0x139   :  { %624 = vsyncpa [#allocation3], 1 }
 0x13a   :  { %625 = vsyncpa [#allocation5], 1 }

// kernel: predict_real_max_min_v2.4
= control target key start
LH: loop header
LB: loop body
LE: loop exit
PB: predicated region body
PF: predicated region fallthrough
CT: control target
= control target key end

     0   :  { %8 = vsyncpa [#allocation3], 0  ;;  %s1966_s0 = inlined_call_operand.vmem [shape: bf16[32,1152], index: 0, kind: input, shape index: {}]   ;;  %s1967_s1 = inlined_call_operand.hbm [shape: bf16[1152,256], index: 1, kind: input, shape index: {}]   ;;  %s1968_s2 = inlined_call_operand.hbm [shape: f32[1,256], index: 2, kind: input, shape index: {}]   ;;  %s1969_s3 = inlined_call_operand.vmem [shape: f32[32,256], index: 3, kind: output, shape index: {}]  }
   0x1   :  { %9 = vsyncpa [#allocation5], 0  ;;  %s1857_s12 = smov [#allocation2]  }
   0x2   :  { %s17_s13 = sshll.u32 %s1857_s12, 4  ;;  %s18_s13 = int_to_ptr.vmem [resolvable:$true] %s17_s13 }
   0x3   :  { %s1821_s14 = scalar_lea.vmem %s18_s13, 18432  ;;  %p1826_p1 = scmp.lt.s32.totalorder %s18_s13, %s18_s13 }
   0x4   :  { %p1822_p0 = scmp.ne.s32.totalorder %s18_s13, %s1821_s14  ;;  %p1827_p2 = scmp.lt.s32.totalorder %s1821_s14, %s1821_s14 }
   0x6   :  { %p1828_p3 = por %p1827_p2, %p1826_p1 }
   0x8   :  { %p1829_p4 = pnand %p1828_p3, %p1822_p0 }
   0xa   :  { %1832 = shalt.err (!%p1829_p4)
}
   0xb   :  { %s1858_s15 = smov 128   ;;  %s1859_s16 = smov 8  }
   0xc   :  { %23 = dma.hbm_to_vmem [thread:$0]  %s1967_s1, 18432, %s18_s13, [#allocation3], %s1858_s15, %s1858_s15, %s1859_s16  }
   0xd   :  { %s1860_s19 = smov [#allocation4]  }
   0xe   :  { %s30_s20 = sshll.u32 %s1860_s19, 4  ;;  %s31_s20 = int_to_ptr.vmem [resolvable:$true] %s30_s20 }
   0xf   :  { %s1841_s21 = scalar_lea.vmem %s31_s20, 32  ;;  %p1846_p6 = scmp.lt.s32.totalorder %s31_s20, %s31_s20 }
  0x10   :  { %p1842_p5 = scmp.ne.s32.totalorder %s31_s20, %s1841_s21  ;;  %p1847_p7 = scmp.lt.s32.totalorder %s1841_s21, %s1841_s21 }
  0x12   :  { %p1848_p8 = por %p1847_p7, %p1846_p6 }
  0x14   :  { %p1849_p9 = pnand %p1848_p8, %p1842_p5 }
  0x16   :  { %1852 = shalt.err (!%p1849_p9)
}
  0x17   :  { %33 = dma.hbm_to_vmem [thread:$0]  %s1968_s2, 32, %s31_s20, [#allocation5]  }
  0x18   :  { %1853 = dma.done.wait [#allocation3], 18432  }
  0x19   :  { %1854 = vsyncadd [#allocation3], 4294948864 }
  0x1a   :  { %1855 = dma.done.wait [#allocation5], 32  }
  0x1b   :  { %1856 = vsyncadd [#allocation5], 4294967264  ;;  %v1571_v0 = vld [vmem:[#allocation2 + $0x74] ss:$8 sps:$4 sm:$0xff]   ;;  %v1575_v2 = vld [vmem:[#allocation2 + $0x70] ss:$8 sps:$4 sm:$0xff]  }
  0x1c   :  { %v1573_v1 = vld [vmem:[#allocation2 + $0x174] ss:$8 sps:$4 sm:$0xff]   ;;  %1037 = vmatprep.subr.bf16.mxu0 %v1571_v0  ;;  %v1576_v3 = vld [vmem:[#allocation2 + $0x170] ss:$8 sps:$4 sm:$0xff]   ;;  %v1577_v4 = vld [vmem:[#allocation2 + $0x64] ss:$8 sps:$4 sm:$0xff]  }
  0x1d   :  { %1090 = vmatprep.subr.bf16.mxu1 %v1573_v1  ;;  %1038 = vmatpush1.bf16.msra.mxu0 %v1575_v2  ;;  %v1579_v5 = vld [vmem:[#allocation2 + $0x164] ss:$8 sps:$4 sm:$0xff]   ;;  %v1581_v6 = vld [vmem:[#allocation2 + $0x60] ss:$8 sps:$4 sm:$0xff]   ;;  %v1583_v8 = vld [vmem:[#allocation2 + $0x54] ss:$8 sps:$4 sm:$0xff]  }
  0x1e   :  { %1091 = vmatpush1.bf16.msra.mxu1 %v1576_v3  ;;  %1039 = vmatprep.subr.bf16.mxu0 %v1577_v4  ;;  %v1582_v7 = vld [vmem:[#allocation2 + $0x160] ss:$8 sps:$4 sm:$0xff]   ;;  %v1585_v9 = vld [vmem:[#allocation2 + $0x154] ss:$8 sps:$4 sm:$0xff]   ;;  %v1587_v10 = vld [vmem:[#allocation2 + $0x50] ss:$8 sps:$4 sm:$0xff]  }
  0x1f   :  { %1092 = vmatprep.subr.bf16.mxu1 %v1579_v5  ;;  %v1588_v11 = vld [vmem:[#allocation2 + $0x150] ss:$8 sps:$4 sm:$0xff]   ;;  %v1589_v12 = vld [vmem:[#allocation2 + $0x44] ss:$8 sps:$4 sm:$0xff]   ;;  %v1593_v14 = vld [vmem:[#allocation2 + $0x40] ss:$8 sps:$4 sm:$0xff]  }
  0x20   :  { %v1591_v13 = vld [vmem:[#allocation2 + $0x144] ss:$8 sps:$4 sm:$0xff]   ;;  %v1594_v15 = vld [vmem:[#allocation2 + $0x140] ss:$8 sps:$4 sm:$0xff]   ;;  %v1595_v16 = vld [vmem:[#allocation2 + $0x34] ss:$8 sps:$4 sm:$0xff]  }
  0x21   :  { %1040 = vmatpush1.bf16.msra.mxu0 %v1581_v6  ;;  %v1597_v17 = vld [vmem:[#allocation2 + $0x134] ss:$8 sps:$4 sm:$0xff]   ;;  %v1599_v18 = vld [vmem:[#allocation2 + $0x30] ss:$8 sps:$4 sm:$0xff]   ;;  %v1601_v20 = vld [vmem:[#allocation2 + $0x24] ss:$8 sps:$4 sm:$0xff]  }
  0x22   :  { %1093 = vmatpush1.bf16.msra.mxu1 %v1582_v7  ;;  %1041 = vmatprep.subr.bf16.mxu0 %v1583_v8  ;;  %v1600_v19 = vld [vmem:[#allocation2 + $0x130] ss:$8 sps:$4 sm:$0xff]   ;;  %v1603_v21 = vld [vmem:[#allocation2 + $0x124] ss:$8 sps:$4 sm:$0xff]   ;;  %v1605_v22 = vld [vmem:[#allocation2 + $0x20] ss:$8 sps:$4 sm:$0xff]  }
  0x23   :  { %1094 = vmatprep.subr.bf16.mxu1 %v1585_v9  ;;  %v1606_v23 = vld [vmem:[#allocation2 + $0x120] ss:$8 sps:$4 sm:$0xff]   ;;  %v1607_v24 = vld [vmem:[#allocation2 + $0x14] ss:$8 sps:$4 sm:$0xff]   ;;  %v1611_v26 = vld [vmem:[#allocation2 + $0x10] ss:$8 sps:$4 sm:$0xff]  }
  0x24   :  { %v1609_v25 = vld [vmem:[#allocation2 + $0x114] ss:$8 sps:$4 sm:$0xff]   ;;  %v1612_v27 = vld [vmem:[#allocation2 + $0x110] ss:$8 sps:$4 sm:$0xff]   ;;  %v1613_v28 = vld [vmem:[#allocation2 + $0x4] ss:$8 sps:$4 sm:$0xff]  }
  0x25   :  { %1042 = vmatpush1.bf16.msra.mxu0 %v1587_v10  ;;  %v1615_v29 = vld [vmem:[#allocation2 + $0x104] ss:$8 sps:$4 sm:$0xff]   ;;  %v1617_v30 = vld [vmem:[#allocation2] ss:$8 sps:$4 sm:$0xff]   ;;  %v1619_v32 = vld [vmem:[#allocation2 + $0xf4] ss:$8 sps:$4 sm:$0xff]  }
  0x26   :  { %1095 = vmatpush1.bf16.msra.mxu1 %v1588_v11  ;;  %1043 = vmatprep.subr.bf16.mxu0 %v1589_v12  ;;  %v1618_v31 = vld [vmem:[#allocation2 + $0x100] ss:$8 sps:$4 sm:$0xff]   ;;  %v1621_v33 = vld [vmem:[#allocation2 + $0x1f4] ss:$8 sps:$4 sm:$0xff]   ;;  %v1623_v34 = vld [vmem:[#allocation2 + $0xf0] ss:$8 sps:$4 sm:$0xff]  }
  0x27   :  { %1096 = vmatprep.subr.bf16.mxu1 %v1591_v13  ;;  %v1624_v35 = vld [vmem:[#allocation2 + $0x1f0] ss:$8 sps:$4 sm:$0xff]   ;;  %v1625_v36 = vld [vmem:[#allocation2 + $0xe4] ss:$8 sps:$4 sm:$0xff]   ;;  %v1629_v38 = vld [vmem:[#allocation2 + $0xe0] ss:$8 sps:$4 sm:$0xff]  }
  0x28   :  { %v1627_v37 = vld [vmem:[#allocation2 + $0x1e4] ss:$8 sps:$4 sm:$0xff]   ;;  %v1630_v39 = vld [vmem:[#allocation2 + $0x1e0] ss:$8 sps:$4 sm:$0xff]   ;;  %v1631_v40 = vld [vmem:[#allocation2 + $0xd4] ss:$8 sps:$4 sm:$0xff]  }
  0x29   :  { %1044 = vmatpush1.bf16.msra.mxu0 %v1593_v14  ;;  %v1633_v41 = vld [vmem:[#allocation2 + $0x1d4] ss:$8 sps:$4 sm:$0xff]   ;;  %v1635_v42 = vld [vmem:[#allocation2 + $0xd0] ss:$8 sps:$4 sm:$0xff]   ;;  %v1637_v44 = vld [vmem:[#allocation2 + $0xc4] ss:$8 sps:$4 sm:$0xff]  }
  0x2a   :  { %1097 = vmatpush1.bf16.msra.mxu1 %v1594_v15  ;;  %1045 = vmatprep.subr.bf16.mxu0 %v1595_v16  ;;  %v1636_v43 = vld [vmem:[#allocation2 + $0x1d0] ss:$8 sps:$4 sm:$0xff]   ;;  %v1639_v45 = vld [vmem:[#allocation2 + $0x1c4] ss:$8 sps:$4 sm:$0xff]   ;;  %v1641_v46 = vld [vmem:[#allocation2 + $0xc0] ss:$8 sps:$4 sm:$0xff]  }
  0x2b   :  { %1098 = vmatprep.subr.bf16.mxu1 %v1597_v17  ;;  %v1642_v47 = vld [vmem:[#allocation2 + $0x1c0] ss:$8 sps:$4 sm:$0xff]   ;;  %v1643_v48 = vld [vmem:[#allocation2 + $0xb4] ss:$8 sps:$4 sm:$0xff]   ;;  %v1672_v51 = vld [vmem:[%s1966_s0 + $0xc] ss:$36 sps:$4 sm:$0xff]  }
  0x2c   :  { %v1669_v49 = vld [vmem:[%s1966_s0 + $0x4] ss:$36 sps:$4 sm:$0xff]   ;;  %v1645_v50 = vld [vmem:[#allocation2 + $0x1b4] ss:$8 sps:$4 sm:$0xff]   ;;  %v1647_v52 = vld [vmem:[#allocation2 + $0xb0] ss:$8 sps:$4 sm:$0xff]   ;;  %1122 = vmatprep.mubr.bf16.mxu1 %v1672_v51 }
  0x2d   :  { %1046 = vmatpush1.bf16.msra.mxu0 %v1599_v18  ;;  %1069 = vmatprep.mubr.bf16.mxu0 %v1669_v49  ;;  %v1648_v53 = vld [vmem:[#allocation2 + $0x1b0] ss:$8 sps:$4 sm:$0xff]   ;;  %v1649_v54 = vld [vmem:[#allocation2 + $0xa4] ss:$8 sps:$4 sm:$0xff]   ;;  %v1653_v56 = vld [vmem:[#allocation2 + $0xa0] ss:$8 sps:$4 sm:$0xff]  }
  0x2e   :  { %1099 = vmatpush1.bf16.msra.mxu1 %v1600_v19  ;;  %1047 = vmatprep.subr.bf16.mxu0 %v1601_v20  ;;  %v1651_v55 = vld [vmem:[#allocation2 + $0x1a4] ss:$8 sps:$4 sm:$0xff]   ;;  %v1654_v57 = vld [vmem:[#allocation2 + $0x1a0] ss:$8 sps:$4 sm:$0xff]   ;;  %v1655_v58 = vld [vmem:[#allocation2 + $0x94] ss:$8 sps:$4 sm:$0xff]  }
  0x2f   :  { %1100 = vmatprep.subr.bf16.mxu1 %v1603_v21  ;;  %v1657_v59 = vld [vmem:[#allocation2 + $0x194] ss:$8 sps:$4 sm:$0xff]   ;;  %v1659_v60 = vld [vmem:[#allocation2 + $0x90] ss:$8 sps:$4 sm:$0xff]   ;;  %v1661_v62 = vld [vmem:[#allocation2 + $0x84] ss:$8 sps:$4 sm:$0xff]  }
  0x30   :  { %v1660_v61 = vld [vmem:[#allocation2 + $0x190] ss:$8 sps:$4 sm:$0xff]   ;;  %v1663_v63 = vld [vmem:[#allocation2 + $0x184] ss:$8 sps:$4 sm:$0xff]   ;;  %v1665_v0 = vld [vmem:[#allocation2 + $0x80] ss:$8 sps:$4 sm:$0xff]  }
  0x31   :  { %1048 = vmatpush1.bf16.msra.mxu0 %v1605_v22  ;;  %v1666_v1 = vld [vmem:[#allocation2 + $0x180] ss:$8 sps:$4 sm:$0xff]   ;;  %v1675_v2 = vld [vmem:[#allocation2 + $0x274] ss:$8 sps:$4 sm:$0xff]   ;;  %v1673_v6 = vld [vmem:[#allocation2 + $0x270] ss:$8 sps:$4 sm:$0xff]  }
  0x32   :  { %1101 = vmatpush1.bf16.msra.mxu1 %v1606_v23  ;;  %1049 = vmatprep.subr.bf16.mxu0 %v1607_v24  ;;  %v1678_v3 = vld [vmem:[#allocation2 + $0x374] ss:$8 sps:$4 sm:$0xff]   ;;  %v1667_v4 = vld [vmem:[%s1966_s0] ss:$36 sps:$4 sm:$0xff]   ;;  %v1670_v5 = vld [vmem:[%s1966_s0 + $0x8] ss:$36 sps:$4 sm:$0xff]  }
  0x33   :  { %1102 = vmatprep.subr.bf16.mxu1 %v1609_v25  ;;  %v1676_v7 = vld [vmem:[#allocation2 + $0x370] ss:$8 sps:$4 sm:$0xff]   ;;  %v1681_v8 = vld [vmem:[#allocation2 + $0x264] ss:$8 sps:$4 sm:$0xff]   ;;  %v1679_v10 = vld [vmem:[#allocation2 + $0x260] ss:$8 sps:$4 sm:$0xff]  }
  0x34   :  { %v1684_v9 = vld [vmem:[#allocation2 + $0x364] ss:$8 sps:$4 sm:$0xff]   ;;  %v1682_v11 = vld [vmem:[#allocation2 + $0x360] ss:$8 sps:$4 sm:$0xff]   ;;  %v1687_v12 = vld [vmem:[#allocation2 + $0x254] ss:$8 sps:$4 sm:$0xff]  }
  0x35   :  { %1050 = vmatpush1.bf16.msra.mxu0 %v1611_v26  ;;  %v1690_v13 = vld [vmem:[#allocation2 + $0x354] ss:$8 sps:$4 sm:$0xff]   ;;  %v1685_v14 = vld [vmem:[#allocation2 + $0x250] ss:$8 sps:$4 sm:$0xff]   ;;  %v1693_v16 = vld [vmem:[#allocation2 + $0x244] ss:$8 sps:$4 sm:$0xff]  }
  0x36   :  { %1103 = vmatpush1.bf16.msra.mxu1 %v1612_v27  ;;  %1051 = vmatprep.subr.bf16.mxu0 %v1613_v28  ;;  %v1688_v15 = vld [vmem:[#allocation2 + $0x350] ss:$8 sps:$4 sm:$0xff]   ;;  %v1696_v17 = vld [vmem:[#allocation2 + $0x344] ss:$8 sps:$4 sm:$0xff]   ;;  %v1691_v18 = vld [vmem:[#allocation2 + $0x240] ss:$8 sps:$4 sm:$0xff]  }
  0x37   :  { %1104 = vmatprep.subr.bf16.mxu1 %v1615_v29  ;;  %v1694_v19 = vld [vmem:[#allocation2 + $0x340] ss:$8 sps:$4 sm:$0xff]   ;;  %v1699_v20 = vld [vmem:[#allocation2 + $0x234] ss:$8 sps:$4 sm:$0xff]   ;;  %v1697_v22 = vld [vmem:[#allocation2 + $0x230] ss:$8 sps:$4 sm:$0xff]  }
  0x38   :  { %v1702_v21 = vld [vmem:[#allocation2 + $0x334] ss:$8 sps:$4 sm:$0xff]   ;;  %v1700_v23 = vld [vmem:[#allocation2 + $0x330] ss:$8 sps:$4 sm:$0xff]   ;;  %v1705_v24 = vld [vmem:[#allocation2 + $0x224] ss:$8 sps:$4 sm:$0xff]  }
  0x39   :  { %1052 = vmatpush1.bf16.msra.mxu0 %v1617_v30  ;;  %v1708_v25 = vld [vmem:[#allocation2 + $0x324] ss:$8 sps:$4 sm:$0xff]   ;;  %v1753_v27 = vld [vmem:[%s1966_s0 + $0x54] ss:$36 sps:$4 sm:$0xff]   ;;  %v1703_v30 = vld [vmem:[#allocation2 + $0x220] ss:$8 sps:$4 sm:$0xff]  }
  0x3a   :  { %1105 = vmatpush1.bf16.msra.mxu1 %v1618_v31  ;;  %1053 = vmatprep.subr.bf16.mxu0 %v1619_v32  ;;  %v1751_v26 = vld [vmem:[%s1966_s0 + $0x4c] ss:$36 sps:$4 sm:$0xff]   ;;  %v1706_v31 = vld [vmem:[#allocation2 + $0x320] ss:$8 sps:$4 sm:$0xff]   ;;  %v1711_v32 = vld [vmem:[#allocation2 + $0x214] ss:$8 sps:$4 sm:$0xff]  }
  0x3b   :  { %1106 = vmatprep.subr.bf16.mxu1 %v1621_v33  ;;  %v1755_v28 = vld [vmem:[%s1966_s0 + $0x48] ss:$36 sps:$4 sm:$0xff]   ;;  %v1756_v29 = vld [vmem:[%s1966_s0 + $0x50] ss:$36 sps:$4 sm:$0xff]  }
  0x3c   :  { %v1714_v33 = vld [vmem:[#allocation2 + $0x314] ss:$8 sps:$4 sm:$0xff]   ;;  %v1730_v49 = vld [vmem:[#allocation2 + $0x3e0] ss:$8 sps:$4 sm:$0xff]  }
  0x3d   :  { %1054 = vmatpush2.bf16.msra.mxu0 %v1623_v34  ;;  %v1709_v34 = vld [vmem:[#allocation2 + $0x210] ss:$8 sps:$4 sm:$0xff]   ;;  %v1738_v51 = vld [vmem:[#allocation2 + $0x3d4] ss:$8 sps:$4 sm:$0xff]  }
  0x3e   :  { %1107 = vmatpush2.bf16.msra.mxu1 %v1624_v35  ;;  %1055 = vmatprep.subr.bf16.mxu0 %v1625_v36  ;;  %v1712_v35 = vld [vmem:[#allocation2 + $0x310] ss:$8 sps:$4 sm:$0xff]   ;;  %v1717_v36 = vld [vmem:[#allocation2 + $0x204] ss:$8 sps:$4 sm:$0xff]  }
  0x3f   :  { %1108 = vmatprep.subr.bf16.mxu1 %v1627_v37  ;;  %v1720_v37 = vld [vmem:[#allocation2 + $0x304] ss:$8 sps:$4 sm:$0xff]  }
  0x41   :  { %1056 = vmatpush2.bf16.msra.mxu0 %v1629_v38  ;;  %v1715_v38 = vld [vmem:[#allocation2 + $0x200] ss:$8 sps:$4 sm:$0xff]  }
  0x42   :  { %1109 = vmatpush2.bf16.msra.mxu1 %v1630_v39  ;;  %1057 = vmatprep.subr.bf16.mxu0 %v1631_v40  ;;  %v1718_v39 = vld [vmem:[#allocation2 + $0x300] ss:$8 sps:$4 sm:$0xff]   ;;  %v1723_v40 = vld [vmem:[#allocation2 + $0x2f4] ss:$8 sps:$4 sm:$0xff]  }
  0x43   :  { %1110 = vmatprep.subr.bf16.mxu1 %v1633_v41  ;;  %v1777_v41 = vld [vmem:[%s1966_s0 + $0x14] ss:$36 sps:$4 sm:$0xff]  }
  0x45   :  { %1058 = vmatpush2.bf16.msra.mxu0 %v1635_v42  ;;  %v1726_v42 = vld [vmem:[#allocation2 + $0x3f4] ss:$8 sps:$4 sm:$0xff]  }
  0x46   :  { %1111 = vmatpush2.bf16.msra.mxu1 %v1636_v43  ;;  %1059 = vmatprep.subr.bf16.mxu0 %v1637_v44  ;;  %v1780_v43 = vld [vmem:[%s1966_s0 + $0x1c] ss:$36 sps:$4 sm:$0xff]   ;;  %v1721_v44 = vld [vmem:[#allocation2 + $0x2f0] ss:$8 sps:$4 sm:$0xff]  }
  0x47   :  { %1112 = vmatprep.subr.bf16.mxu1 %v1639_v45  ;;  %v1724_v45 = vld [vmem:[#allocation2 + $0x3f0] ss:$8 sps:$4 sm:$0xff]  }
  0x49   :  { %1060 = vmatpush2.bf16.msra.mxu0 %v1641_v46  ;;  %v1729_v46 = vld [vmem:[#allocation2 + $0x2e4] ss:$8 sps:$4 sm:$0xff]  }
  0x4a   :  { %1113 = vmatpush2.bf16.msra.mxu1 %v1642_v47  ;;  %1061 = vmatprep.subr.bf16.mxu0 %v1643_v48  ;;  %v1732_v47 = vld [vmem:[#allocation2 + $0x3e4] ss:$8 sps:$4 sm:$0xff]   ;;  %v1727_v48 = vld [vmem:[#allocation2 + $0x2e0] ss:$8 sps:$4 sm:$0xff]  }
  0x4b   :  { %1114 = vmatprep.subr.bf16.mxu1 %v1645_v50  ;;  %v1735_v50 = vld [vmem:[#allocation2 + $0x2d4] ss:$8 sps:$4 sm:$0xff]  }
  0x4d   :  { %1062 = vmatpush2.bf16.msra.mxu0 %v1647_v52  ;;  %v1733_v52 = vld [vmem:[#allocation2 + $0x2d0] ss:$8 sps:$4 sm:$0xff]  }
  0x4e   :  { %1115 = vmatpush2.bf16.msra.mxu1 %v1648_v53  ;;  %1063 = vmatprep.subr.bf16.mxu0 %v1649_v54  ;;  %v1736_v53 = vld [vmem:[#allocation2 + $0x3d0] ss:$8 sps:$4 sm:$0xff]   ;;  %v1741_v54 = vld [vmem:[#allocation2 + $0x2c4] ss:$8 sps:$4 sm:$0xff]  }
  0x4f   :  { %1116 = vmatprep.subr.bf16.mxu1 %v1651_v55  ;;  %v1744_v55 = vld [vmem:[#allocation2 + $0x3c4] ss:$8 sps:$4 sm:$0xff]  }
  0x51   :  { %1064 = vmatpush2.bf16.msra.mxu0 %v1653_v56  ;;  %v1739_v56 = vld [vmem:[#allocation2 + $0x2c0] ss:$8 sps:$4 sm:$0xff]  }
  0x52   :  { %1117 = vmatpush2.bf16.msra.mxu1 %v1654_v57  ;;  %1065 = vmatprep.subr.bf16.mxu0 %v1655_v58  ;;  %v1742_v57 = vld [vmem:[#allocation2 + $0x3c0] ss:$8 sps:$4 sm:$0xff]   ;;  %v1747_v58 = vld [vmem:[#allocation2 + $0x2b4] ss:$8 sps:$4 sm:$0xff]  }
  0x53   :  { %1118 = vmatprep.subr.bf16.mxu1 %v1657_v59  ;;  %v1750_v59 = vld [vmem:[#allocation2 + $0x3b4] ss:$8 sps:$4 sm:$0xff]  }
  0x55   :  { %1066 = vmatpush2.bf16.msra.mxu0 %v1659_v60  ;;  %v1745_v60 = vld [vmem:[#allocation2 + $0x2b0] ss:$8 sps:$4 sm:$0xff]  }
  0x56   :  { %1119 = vmatpush2.bf16.msra.mxu1 %v1660_v61  ;;  %1067 = vmatprep.subr.bf16.mxu0 %v1661_v62  ;;  %v1748_v61 = vld [vmem:[#allocation2 + $0x3b0] ss:$8 sps:$4 sm:$0xff]   ;;  %v1759_v62 = vld [vmem:[#allocation2 + $0x2a4] ss:$8 sps:$4 sm:$0xff]  }
  0x57   :  { %1120 = vmatprep.subr.bf16.mxu1 %v1663_v63  ;;  %v1762_v63 = vld [vmem:[#allocation2 + $0x3a4] ss:$8 sps:$4 sm:$0xff]  }
  0x59   :  { %1068 = vmatpush2.bf16.msra.mxu0 %v1665_v0  ;;  %v1757_v0 = vld [vmem:[#allocation2 + $0x2a0] ss:$8 sps:$4 sm:$0xff]  }
  0x5a   :  { %1121 = vmatpush2.bf16.msra.mxu1 %v1666_v1  ;;  %1143 = vmatprep.subr.bf16.mxu0 %v1675_v2  ;;  %v1760_v1 = vld [vmem:[#allocation2 + $0x3a0] ss:$8 sps:$4 sm:$0xff]   ;;  %v1765_v2 = vld [vmem:[#allocation2 + $0x294] ss:$8 sps:$4 sm:$0xff]  }
  0x5b   :  { %1196 = vmatprep.subr.bf16.mxu1 %v1678_v3  ;;  %v1768_v3 = vld [vmem:[#allocation2 + $0x394] ss:$8 sps:$4 sm:$0xff]  }
  0x5c   :  { %1070 = vmatmul.mubr.bf16.vlgmr.msra.gmra.mxu0 %v1667_v4  ;;  %v1763_v4 = vld [vmem:[#allocation2 + $0x290] ss:$8 sps:$4 sm:$0xff]  }
  0x5d   :  { %1123 = vmatmul.mubr.bf16.vlgmr.msra.gmra.mxu1 %v1670_v5  ;;  %1144 = vmatpush1.bf16.msra.mxu0 %v1673_v6  ;;  %v1766_v5 = vld [vmem:[#allocation2 + $0x390] ss:$8 sps:$4 sm:$0xff]   ;;  %v1771_v6 = vld [vmem:[#allocation2 + $0x284] ss:$8 sps:$4 sm:$0xff]  }
  0x5e   :  { %1197 = vmatpush1.bf16.msra.mxu1 %v1676_v7  ;;  %1145 = vmatprep.subr.bf16.mxu0 %v1681_v8  ;;  %v1774_v7 = vld [vmem:[#allocation2 + $0x384] ss:$8 sps:$4 sm:$0xff]   ;;  %v1769_v8 = vld [vmem:[#allocation2 + $0x280] ss:$8 sps:$4 sm:$0xff]  }
  0x5f   :  { %1198 = vmatprep.subr.bf16.mxu1 %v1684_v9  ;;  %1079 = vmatprep.mubr.bf16.mxu0 %v1751_v26  ;;  %v1772_v9 = vld [vmem:[#allocation2 + $0x380] ss:$8 sps:$4 sm:$0xff]   ;;  %v1799_v26 = vld [vmem:[#allocation2 + $0x430] ss:$8 sps:$4 sm:$0xff]  }
  0x60   :  { %1132 = vmatprep.mubr.bf16.mxu1 %v1753_v27  ;;  %v1804_v27 = vld [vmem:[#allocation2 + $0x424] ss:$8 sps:$4 sm:$0xff]  }
  0x61   :  { %1146 = vmatpush1.bf16.msra.mxu0 %v1679_v10  ;;  %v1783_v10 = vld [vmem:[#allocation2 + $0x474] ss:$8 sps:$4 sm:$0xff]  }
  0x62   :  { %1199 = vmatpush1.bf16.msra.mxu1 %v1682_v11  ;;  %1147 = vmatprep.subr.bf16.mxu0 %v1687_v12  ;;  %v1775_v11 = vld [vmem:[%s1966_s0 + $0x10] ss:$36 sps:$4 sm:$0xff]   ;;  %v1778_v12 = vld [vmem:[%s1966_s0 + $0x18] ss:$36 sps:$4 sm:$0xff]  }
  0x63   :  { %1200 = vmatprep.subr.bf16.mxu1 %v1690_v13  ;;  %v1781_v13 = vld [vmem:[#allocation2 + $0x470] ss:$8 sps:$4 sm:$0xff]  }
  0x64   :  { %1080 = vmatmul.mubr.bf16.gmra.mxu0 %v1755_v28  ;;  %v1802_v28 = vld [vmem:[#allocation2 + $0x420] ss:$8 sps:$4 sm:$0xff]  }
  0x65   :  { %1148 = vmatpush1.bf16.msra.mxu0 %v1685_v14  ;;  %1133 = vmatmul.mubr.bf16.gmra.mxu1 %v1756_v29  ;;  %v1786_v14 = vld [vmem:[#allocation2 + $0x464] ss:$8 sps:$4 sm:$0xff]   ;;  %v1807_v29 = vld [vmem:[#allocation2 + $0x414] ss:$8 sps:$4 sm:$0xff]  }
  0x66   :  { %1201 = vmatpush1.bf16.msra.mxu1 %v1688_v15  ;;  %1149 = vmatprep.subr.bf16.mxu0 %v1693_v16  ;;  %v1787_v15 = vld [vmem:[%s1966_s0 + $0x5c] ss:$36 sps:$4 sm:$0xff]   ;;  %v1793_v16 = vld [vmem:[%s1966_s0 + $0x64] ss:$36 sps:$4 sm:$0xff]  }
  0x67   :  { %1202 = vmatprep.subr.bf16.mxu1 %v1696_v17  ;;  %1175 = vmatprep.mubr.bf16.mxu0 %v1777_v41  ;;  %v1784_v17 = vld [vmem:[#allocation2 + $0x460] ss:$8 sps:$4 sm:$0xff]  }
  0x68   :  { %1228 = vmatprep.mubr.bf16.mxu1 %v1780_v43 }
  0x69   :  { %1150 = vmatpush1.bf16.msra.mxu0 %v1691_v18  ;;  %v1792_v18 = vld [vmem:[#allocation2 + $0x454] ss:$8 sps:$4 sm:$0xff]  }
  0x6a   :  { %1203 = vmatpush1.bf16.msra.mxu1 %v1694_v19  ;;  %1151 = vmatprep.subr.bf16.mxu0 %v1699_v20  ;;  %v1789_v19 = vld [vmem:[%s1966_s0 + $0x58] ss:$36 sps:$4 sm:$0xff]   ;;  %v1795_v20 = vld [vmem:[%s1966_s0 + $0x60] ss:$36 sps:$4 sm:$0xff]  }
  0x6b   :  { %1204 = vmatprep.subr.bf16.mxu1 %v1702_v21  ;;  %v1790_v21 = vld [vmem:[#allocation2 + $0x450] ss:$8 sps:$4 sm:$0xff]  }
  0x6d   :  { %1152 = vmatpush1.bf16.msra.mxu0 %v1697_v22  ;;  %v1798_v22 = vld [vmem:[#allocation2 + $0x444] ss:$8 sps:$4 sm:$0xff]  }
  0x6e   :  { %1205 = vmatpush1.bf16.msra.mxu1 %v1700_v23  ;;  %1153 = vmatprep.subr.bf16.mxu0 %v1705_v24  ;;  %v1796_v23 = vld [vmem:[#allocation2 + $0x440] ss:$8 sps:$4 sm:$0xff]   ;;  %v1801_v24 = vld [vmem:[#allocation2 + $0x434] ss:$8 sps:$4 sm:$0xff]  }
  0x6f   :  { %1206 = vmatprep.subr.bf16.mxu1 %v1708_v25  ;;  %v1861_v25 = vmov 0  }
  0x71   :  { %1154 = vmatpush1.bf16.msra.mxu0 %v1703_v30  ;;  %v1805_v30 = vld [vmem:[#allocation2 + $0x410] ss:$8 sps:$4 sm:$0xff]  }
  0x72   :  { %1207 = vmatpush1.bf16.msra.mxu1 %v1706_v31  ;;  %1155 = vmatprep.subr.bf16.mxu0 %v1711_v32  ;;  %v1810_v31 = vld [vmem:[#allocation2 + $0x404] ss:$8 sps:$4 sm:$0xff]   ;;  %v1808_v32 = vld [vmem:[#allocation2 + $0x400] ss:$8 sps:$4 sm:$0xff]  }
  0x73   :  { %1208 = vmatprep.subr.bf16.mxu1 %v1714_v33  ;;  %v1811_v33 = vld [vmem:[%s1966_s0 + $0x20] ss:$36 sps:$4 sm:$0xff]  }
  0x75   :  { %1156 = vmatpush1.bf16.msra.mxu0 %v1709_v34  ;;  %v1812_v34 = vld [vmem:[%s1966_s0 + $0x68] ss:$36 sps:$4 sm:$0xff]  }
  0x76   :  { %1209 = vmatpush1.bf16.msra.mxu1 %v1712_v35  ;;  %1157 = vmatprep.subr.bf16.mxu0 %v1717_v36 }
  0x77   :  { %1210 = vmatprep.subr.bf16.mxu1 %v1720_v37 }
  0x79   :  { %1158 = vmatpush1.bf16.msra.mxu0 %v1715_v38 }
  0x7a   :  { %1211 = vmatpush1.bf16.msra.mxu1 %v1718_v39  ;;  %1159 = vmatprep.subr.bf16.mxu0 %v1723_v40 }
  0x7b   :  { %1212 = vmatprep.subr.bf16.mxu1 %v1726_v42 }
  0x7d   :  { %1160 = vmatpush2.bf16.msra.mxu0 %v1721_v44 }
  0x7e   :  { %1213 = vmatpush2.bf16.msra.mxu1 %v1724_v45  ;;  %1161 = vmatprep.subr.bf16.mxu0 %v1729_v46 }
  0x7f   :  { %1214 = vmatprep.subr.bf16.mxu1 %v1732_v47 }
  0x81   :  { %1162 = vmatpush2.bf16.msra.mxu0 %v1727_v48 }
  0x82   :  { %1215 = vmatpush2.bf16.msra.mxu1 %v1730_v49  ;;  %1163 = vmatprep.subr.bf16.mxu0 %v1735_v50 }
  0x83   :  { %1216 = vmatprep.subr.bf16.mxu1 %v1738_v51 }
  0x85   :  { %1164 = vmatpush2.bf16.msra.mxu0 %v1733_v52 }
  0x86   :  { %1217 = vmatpush2.bf16.msra.mxu1 %v1736_v53  ;;  %1165 = vmatprep.subr.bf16.mxu0 %v1741_v54 }
  0x87   :  { %1218 = vmatprep.subr.bf16.mxu1 %v1744_v55 }
  0x89   :  { %1166 = vmatpush2.bf16.msra.mxu0 %v1739_v56 }
  0x8a   :  { %1219 = vmatpush2.bf16.msra.mxu1 %v1742_v57  ;;  %1167 = vmatprep.subr.bf16.mxu0 %v1747_v58 }
  0x8b   :  { %1220 = vmatprep.subr.bf16.mxu1 %v1750_v59 }
  0x8d   :  { %1168 = vmatpush2.bf16.msra.mxu0 %v1745_v60 }
  0x8e   :  { %1221 = vmatpush2.bf16.msra.mxu1 %v1748_v61  ;;  %1169 = vmatprep.subr.bf16.mxu0 %v1759_v62  ;;  %v1331_v61 = vlaneseq }
  0x8f   :  { %1222 = vmatprep.subr.bf16.mxu1 %v1762_v63 }
  0x91   :  { %1170 = vmatpush2.bf16.msra.mxu0 %v1757_v0  ;;  %v1332_v0 = vshrl.u32 %v1331_v61, 7 }
  0x92   :  { %1223 = vmatpush2.bf16.msra.mxu1 %v1760_v1  ;;  %1171 = vmatprep.subr.bf16.mxu0 %v1765_v2 }
  0x93   :  { %1224 = vmatprep.subr.bf16.mxu1 %v1768_v3 }
  0x95   :  { %1172 = vmatpush2.bf16.msra.mxu0 %v1763_v4 }
  0x96   :  { %1225 = vmatpush2.bf16.msra.mxu1 %v1766_v5  ;;  %1173 = vmatprep.subr.bf16.mxu0 %v1771_v6  ;;  %v1333_v5 = vsub.s32 0, %v1332_v0 }
  0x97   :  { %1226 = vmatprep.subr.bf16.mxu1 %v1774_v7 }
  0x99   :  { %1174 = vmatpush2.bf16.msra.mxu0 %v1769_v8 }
  0x9a   :  { %1227 = vmatpush2.bf16.msra.mxu1 %v1772_v9  ;;  %1249 = vmatprep.subr.bf16.mxu0 %v1783_v10 }
  0x9b   :  { %1549 = vmatprep.subr.bf16.mxu1 %v1783_v10  ;;  %v1329_v10 = vld [vmem:[#allocation4] sm:$0x3] }
  0x9c   :  { %1176 = vmatmul.mubr.bf16.vlgmr.msra.gmra.mxu0 %v1775_v11 }
  0x9d   :  { %1229 = vmatmul.mubr.bf16.vlgmr.msra.gmra.mxu1 %v1778_v12  ;;  %1250 = vmatpush1.bf16.msra.mxu0 %v1781_v13 }
  0x9e   :  { %1557 = vmatpush1.bf16.msra.mxu1 %v1781_v13  ;;  %1251 = vmatprep.subr.bf16.mxu0 %v1786_v14 }
  0x9f   :  { %1550 = vmatprep.subr.bf16.mxu1 %v1786_v14  ;;  %1185 = vmatprep.mubr.bf16.mxu0 %v1787_v15 }
  0xa0   :  { %1238 = vmatprep.mubr.bf16.mxu1 %v1793_v16 }
  0xa1   :  { %1252 = vmatpush1.bf16.msra.mxu0 %v1784_v17 }
  0xa2   :  { %1558 = vmatpush1.bf16.msra.mxu1 %v1784_v17  ;;  %1253 = vmatprep.subr.bf16.mxu0 %v1792_v18 }
  0xa3   :  { %1551 = vmatprep.subr.bf16.mxu1 %v1792_v18 }
  0xa4   :  { %1186 = vmatmul.mubr.bf16.gmra.mxu0 %v1789_v19  ;;  %v1334_v19 = vrot.slane %v1329_v10, %v1333_v5 }
  0xa5   :  { %1239 = vmatmul.mubr.bf16.gmra.mxu1 %v1795_v20  ;;  %1254 = vmatpush1.bf16.msra.mxu0 %v1790_v21  ;;  %v1337_v20 = vsub.s32 1, %v1332_v0 }
  0xa6   :  { %1559 = vmatpush1.bf16.msra.mxu1 %v1790_v21  ;;  %1255 = vmatprep.subr.bf16.mxu0 %v1798_v22 }
  0xa7   :  { %1552 = vmatprep.subr.bf16.mxu1 %v1798_v22  ;;  %1281 = vmatprep.mubr.bf16.mxu0 %v1861_v25 }
  0xa8   :  { %1291 = vmatprep.mubr.bf16.mxu1 %v1861_v25 }
  0xa9   :  { %1256 = vmatpush1.bf16.msra.mxu0 %v1796_v23 }
  0xaa   :  { %1560 = vmatpush1.bf16.msra.mxu1 %v1796_v23  ;;  %1257 = vmatprep.subr.bf16.mxu0 %v1801_v24 }
  0xab   :  { %1553 = vmatprep.subr.bf16.mxu1 %v1801_v24 }
  0xad   :  { %1258 = vmatpush1.bf16.msra.mxu0 %v1799_v26 }
  0xae   :  { %1561 = vmatpush1.bf16.msra.mxu1 %v1799_v26  ;;  %1259 = vmatprep.subr.bf16.mxu0 %v1804_v27 }
  0xaf   :  { %1554 = vmatprep.subr.bf16.mxu1 %v1804_v27 }
  0xb1   :  { %1260 = vmatpush1.bf16.msra.mxu0 %v1802_v28 }
  0xb2   :  { %1562 = vmatpush1.bf16.msra.mxu1 %v1802_v28  ;;  %1261 = vmatprep.subr.bf16.mxu0 %v1807_v29 }
  0xb3   :  { %1555 = vmatprep.subr.bf16.mxu1 %v1807_v29 }
  0xb5   :  { %1262 = vmatpush1.bf16.msra.mxu0 %v1805_v30 }
  0xb6   :  { %1563 = vmatpush1.bf16.msra.mxu1 %v1805_v30  ;;  %1263 = vmatprep.subr.bf16.mxu0 %v1810_v31 }
  0xb7   :  { %1556 = vmatprep.subr.bf16.mxu1 %v1810_v31 }
  0xb9   :  { %1264 = vmatpush1.bf16.msra.mxu0 %v1808_v32 }
  0xba   :  { %1564 = vmatpush1.bf16.msra.mxu1 %v1808_v32 }
  0xbc   :  { %1282 = vmatmul.mubr.bf16.vlgmr.msra.gmra.mxu0 %v1811_v33 }
  0xbd   :  { %1292 = vmatmul.mubr.bf16.vlgmr.msra.gmra.mxu1 %v1812_v34 }
 0x11c   :  { %v1071_v35 = vpop.f32.mrf.mxu0 }
 0x11d   :  { %v1124_v36 = vpop.f32.mrf.mxu1 }
 0x11e   :  { %v1073_v37 = vpop.f32.mrf.mxu0  ;;  %v1125_v1 = vadd.f32 %v1124_v36, %v1071_v35 }
 0x11f   :  { %v1126_v38 = vpop.f32.mrf.mxu1 }
 0x120   :  { %v1075_v39 = vpop.f32.mrf.mxu0  ;;  %v1127_v6 = vadd.f32 %v1126_v38, %v1073_v37 }
 0x121   :  { %v1128_v40 = vpop.f32.mrf.mxu1 }
 0x122   :  { %v1077_v41 = vpop.f32.mrf.mxu0  ;;  %v1129_v13 = vadd.f32 %v1128_v40, %v1075_v39  ;;  %v1338_v39 = vrot.slane %v1329_v10, %v1337_v20 }
 0x123   :  { %v1130_v42 = vpop.f32.mrf.mxu1 }
 0x124   :  { %v1081_v43 = vpop.f32.mrf.mxu0  ;;  %v1131_v21 = vadd.f32 %v1130_v42, %v1077_v41 }
 0x125   :  { %v1134_v44 = vpop.f32.mrf.mxu1 }
 0x126   :  { %v1083_v45 = vpop.f32.mrf.mxu0  ;;  %v1135_v2 = vadd.f32 %v1134_v44, %v1081_v43 }
 0x127   :  { %v1136_v46 = vpop.f32.mrf.mxu1 }
 0x128   :  { %v1085_v47 = vpop.f32.mrf.mxu0  ;;  %v1137_v7 = vadd.f32 %v1136_v46, %v1083_v45 }
 0x129   :  { %v1138_v48 = vpop.f32.mrf.mxu1 }
 0x12a   :  { %v1087_v49 = vpop.f32.mrf.mxu0  ;;  %v1139_v14 = vadd.f32 %v1138_v48, %v1085_v47 }
 0x12b   :  { %v1140_v50 = vpop.f32.mrf.mxu1 }
 0x12c   :  { %v1141_v22 = vadd.f32 %v1140_v50, %v1087_v49 }
 0x15c   :  { %v1177_v51 = vpop.f32.mrf.mxu0 }
 0x15d   :  { %v1230_v52 = vpop.f32.mrf.mxu1  ;;  %v1178_v8 = vadd.f32 %v1177_v51, %v1125_v1 }
 0x15e   :  { %v1179_v53 = vpop.f32.mrf.mxu0 }
 0x15f   :  { %v1232_v54 = vpop.f32.mrf.mxu1  ;;  %v1180_v11 = vadd.f32 %v1179_v53, %v1127_v6  ;;  %v1231_v17 = vadd.f32 %v1230_v52, %v1178_v8 }
 0x160   :  { %v1181_v55 = vpop.f32.mrf.mxu0 }
 0x161   :  { %v1234_v56 = vpop.f32.mrf.mxu1  ;;  %v1182_v23 = vadd.f32 %v1181_v55, %v1129_v13  ;;  %v1233_v27 = vadd.f32 %v1232_v54, %v1180_v11 }
 0x162   :  { %v1183_v57 = vpop.f32.mrf.mxu0 }
 0x163   :  { %v1236_v58 = vpop.f32.mrf.mxu1  ;;  %v1184_v31 = vadd.f32 %v1183_v57, %v1131_v21  ;;  %v1235_v37 = vadd.f32 %v1234_v56, %v1182_v23 }
 0x164   :  { %v1187_v59 = vpop.f32.mrf.mxu0 }
 0x165   :  { %v1240_v60 = vpop.f32.mrf.mxu1  ;;  %v1188_v9 = vadd.f32 %v1187_v59, %v1135_v2  ;;  %v1237_v44 = vadd.f32 %v1236_v58, %v1184_v31 }
 0x166   :  { %v1189_v62 = vpop.f32.mrf.mxu0 }
 0x167   :  { %v1242_v63 = vpop.f32.mrf.mxu1  ;;  %v1190_v12 = vadd.f32 %v1189_v62, %v1137_v7  ;;  %v1241_v18 = vadd.f32 %v1240_v60, %v1188_v9 }
 0x168   :  { %v1191_v3 = vpop.f32.mrf.mxu0 }
 0x169   :  { %v1244_v4 = vpop.f32.mrf.mxu1  ;;  %v1192_v24 = vadd.f32 %v1191_v3, %v1139_v14  ;;  %v1243_v28 = vadd.f32 %v1242_v63, %v1190_v12 }
 0x16a   :  { %v1193_v15 = vpop.f32.mrf.mxu0 }
 0x16b   :  { %v1246_v16 = vpop.f32.mrf.mxu1  ;;  %v1194_v32 = vadd.f32 %v1193_v15, %v1141_v22  ;;  %v1245_v38 = vadd.f32 %v1244_v4, %v1192_v24 }
 0x16d   :  { %v1247_v45 = vadd.f32 %v1246_v16, %v1194_v32 }
 0x17c   :  { %v1283_v25 = vpop.f32.mrf.mxu0 }
 0x17d   :  { %v1293_v26 = vpop.f32.mrf.mxu1  ;;  %v1284_v29 = vadd.f32 %v1283_v25, %v1231_v17 }
 0x17e   :  { %v1294_v30 = vadd.f32 %v1293_v26, %v1241_v18  ;;  %v1285_v33 = vpop.f32.mrf.mxu0 }
 0x17f   :  { %v1295_v34 = vpop.f32.mrf.mxu1  ;;  %v1286_v35 = vadd.f32 %v1285_v33, %v1233_v27  ;;  %v1341_v42 = vadd.f32 %v1334_v19, %v1284_v29 }
 0x180   :  { %v1296_v36 = vadd.f32 %v1295_v34, %v1243_v28  ;;  %v1287_v40 = vpop.f32.mrf.mxu0  ;;  %v1345_v43 = vadd.f32 %v1334_v19, %v1294_v30 }
 0x181   :  { %v1297_v41 = vpop.f32.mrf.mxu1  ;;  %v1288_v46 = vadd.f32 %v1287_v40, %v1235_v37  ;;  %vm1349_vm0 = vcmp.ge.f32.partialorder %v1341_v42, 0.0  ;;  %v1357_v50 = vmul.f32 0.01, %v1341_v42  ;;  %v1342_v52 = vadd.f32 %v1338_v39, %v1286_v35 }
 0x182   :  { %v1298_v47 = vadd.f32 %v1297_v41, %v1245_v38  ;;  %v1289_v48 = vpop.f32.mrf.mxu0  ;;  %vm1353_vm1 = vcmp.ge.f32.partialorder %v1345_v43, 0.0  ;;  %v1361_v51 = vmul.f32 0.01, %v1345_v43  ;;  %v1346_v53 = vadd.f32 %v1338_v39, %v1296_v36 }
 0x183   :  { %v1299_v49 = vpop.f32.mrf.mxu1  ;;  %v1365_v54 = vsel %vm1349_vm0, %v1341_v42, %v1357_v50  ;;  %v1290_v56 = vadd.f32 %v1289_v48, %v1237_v44  ;;  %vm1350_vm2 = vcmp.ge.f32.partialorder %v1342_v52, 0.0  ;;  %v1358_v58 = vmul.f32 0.01, %v1342_v52 }
 0x184   :  { %v1369_v55 = vsel %vm1353_vm1, %v1345_v43, %v1361_v51  ;;  %v1300_v57 = vadd.f32 %v1299_v49, %v1247_v45  ;;  %1373 = vst [vmem:[%s1969_s3] sm:$0xff] %v1365_v54  ;;  %vm1354_vm3 = vcmp.ge.f32.partialorder %v1346_v53, 0.0  ;;  %v1362_v59 = vmul.f32 0.01, %v1346_v53 }
 0x185   :  { %1377 = vst [vmem:[%s1969_s3 + $0x20] sm:$0xff] %v1369_v55  ;;  %v1343_v60 = vadd.f32 %v1334_v19, %v1288_v46  ;;  %v1347_v61 = vadd.f32 %v1334_v19, %v1298_v47  ;;  %v1366_v62 = vsel %vm1350_vm2, %v1342_v52, %v1358_v58  ;;  %v1344_v2 = vadd.f32 %v1338_v39, %v1290_v56 }
 0x186   :  { %v1370_v63 = vsel %vm1354_vm3, %v1346_v53, %v1362_v59  ;;  %1374 = vst [vmem:[%s1969_s3 + $0x8] sm:$0xff] %v1366_v62  ;;  %v1348_v3 = vadd.f32 %v1338_v39, %v1300_v57 }
 0x187   :  { %1378 = vst [vmem:[%s1969_s3 + $0x28] sm:$0xff] %v1370_v63  ;;  %vm1351_vm4 = vcmp.ge.f32.partialorder %v1343_v60, 0.0  ;;  %v1359_v0 = vmul.f32 0.01, %v1343_v60  ;;  %vm1355_vm5 = vcmp.ge.f32.partialorder %v1347_v61, 0.0  ;;  %vm1352_vm6 = vcmp.ge.f32.partialorder %v1344_v2, 0.0 }
 0x188   :  { %v1363_v1 = vmul.f32 0.01, %v1347_v61  ;;  %v1360_v6 = vmul.f32 0.01, %v1344_v2  ;;  %vm1356_vm7 = vcmp.ge.f32.partialorder %v1348_v3, 0.0 }
 0x189   :  { %v1367_v4 = vsel %vm1351_vm4, %v1343_v60, %v1359_v0  ;;  %v1364_v7 = vmul.f32 0.01, %v1348_v3 }
 0x18a   :  { %v1371_v5 = vsel %vm1355_vm5, %v1347_v61, %v1363_v1  ;;  %1375 = vst [vmem:[%s1969_s3 + $0x10] sm:$0xff] %v1367_v4  ;;  %v1368_v8 = vsel %vm1352_vm6, %v1344_v2, %v1360_v6 }
 0x18b   :  { %1379 = vst [vmem:[%s1969_s3 + $0x30] sm:$0xff] %v1371_v5  ;;  %v1372_v9 = vsel %vm1356_vm7, %v1348_v3, %v1364_v7  ;;  %1376 = vst [vmem:[%s1969_s3 + $0x18] sm:$0xff] %v1368_v8 }
 0x18c   :  { %1380 = vst [vmem:[%s1969_s3 + $0x38] sm:$0xff] %v1372_v9 }
 0x18d   :  { %1385 = vsyncpa [#allocation3], 1 }
 0x18e   :  { %1386 = vsyncpa [#allocation5], 1 }

// kernel: predict_real_max_min_v2.5
= control target key start
LH: loop header
LB: loop body
LE: loop exit
PB: predicated region body
PF: predicated region fallthrough
CT: control target
= control target key end

     0   :  { %18 = vsyncpa [#allocation3], 0  ;;  %s19271_s0 = inlined_call_operand.vmem [shape: f32[8,1024], index: 0, kind: input, shape index: {}]   ;;  %s19272_s1 = inlined_call_operand.hbm [shape: bf16[1024,512], index: 1, kind: input, shape index: {}]   ;;  %s19273_s2 = inlined_call_operand.vmem [shape: f32[1,512], index: 2, kind: input, shape index: {}]   ;;  %s19274_s3 = inlined_call_operand.vmem [shape: f32[1,512], index: 3, kind: input, shape index: {}]   ;;  %s19275_s4 = inlined_call_operand.vmem [shape: f32[1,512], index: 4, kind: input, shape index: {}]   ;;  %s19276_s5 = inlined_call_operand.hbm [shape: bf16[512,1024], index: 5, kind: input, shape index: {}]   ;;  %s19277_s6 = inlined_call_operand.vmem [shape: f32[1,1024], index: 6, kind: input, shape index: {}]   ;;  %s19278_s7 = inlined_call_operand.vmem [shape: f32[1,1024], index: 7, kind: input, shape index: {}]   ;;  %s19279_s8 = inlined_call_operand.vmem [shape: f32[1,1024], index: 8, kind: input, shape index: {}]   ;;  %s19280_s9 = inlined_call_operand.vmem [shape: bf16[1024,2048], index: 9, kind: input, shape index: {}]   ;;  %s19281_s10 = inlined_call_operand.vmem [shape: f32[1,2048], index: 10, kind: input, shape index: {}]   ;;  %s19282_s11 = inlined_call_operand.hbm [shape: bf16[2048,128], index: 11, kind: input, shape index: {}]   ;;  %s19283_s12 = inlined_call_operand.vmem [shape: f32[1,128], index: 12, kind: input, shape index: {}]   ;;  %s19284_s13 = inlined_call_operand.vmem [shape: f32[8,128], index: 13, kind: output, shape index: {}]  }
   0x1   :  { %19 = vsyncpa [#allocation5], 0  ;;  %s15501_s25 = smov [#allocation4]  }
   0x2   :  { %s45_s26 = sshll.u32 %s15501_s25, 4  ;;  %s46_s26 = int_to_ptr.vmem [resolvable:$true] %s45_s26 }
   0x3   :  { %s15445_s27 = scalar_lea.vmem %s46_s26, 32768  ;;  %p15450_p1 = scmp.lt.s32.totalorder %s46_s26, %s46_s26 }
   0x4   :  { %p15446_p0 = scmp.ne.s32.totalorder %s46_s26, %s15445_s27  ;;  %p15451_p2 = scmp.lt.s32.totalorder %s15445_s27, %s15445_s27 }
   0x6   :  { %p15452_p3 = por %p15451_p2, %p15450_p1 }
   0x8   :  { %p15453_p4 = pnand %p15452_p3, %p15446_p0 }
   0xa   :  { %15456 = shalt.err (!%p15453_p4)
}
   0xb   :  { %s15502_s28 = smov 512   ;;  %s15503_s29 = smov 32  }
   0xc   :  { %51 = dma.hbm_to_vmem [thread:$0]  %s19276_s5, 32768, %s46_s26, [#allocation5], %s15502_s28, %s15502_s28, %s15503_s29  }
   0xd   :  { %s15504_s15 = smov [#allocation2]  }
   0xe   :  { %s27_s16 = sshll.u32 %s15504_s15, 4  ;;  %s28_s16 = int_to_ptr.vmem [resolvable:$true] %s27_s16 }
   0xf   :  { %s15465_s17 = scalar_lea.vmem %s28_s16, 32768  ;;  %p15470_p6 = scmp.lt.s32.totalorder %s28_s16, %s28_s16 }
  0x10   :  { %p15466_p5 = scmp.ne.s32.totalorder %s28_s16, %s15465_s17  ;;  %p15471_p7 = scmp.lt.s32.totalorder %s15465_s17, %s15465_s17 }
  0x12   :  { %p15472_p8 = por %p15471_p7, %p15470_p6 }
  0x14   :  { %p15473_p9 = pnand %p15472_p8, %p15466_p5 }
  0x16   :  { %15476 = shalt.err (!%p15473_p9)
}
  0x17   :  { %s15505_s18 = smov 256   ;;  %s15506_s19 = smov 16  }
  0x18   :  { %33 = dma.hbm_to_vmem [thread:$0]  %s19272_s1, 32768, %s28_s16, [#allocation3], %s15505_s18, %s15505_s18, %s15506_s19  }
  0x19   :  { %s15507_s22 = smov [#allocation6]  }
  0x1a   :  { %s67_s23 = sshll.u32 %s15507_s22, 4  ;;  %s68_s23 = int_to_ptr.vmem [resolvable:$true] %s67_s23 }
  0x1b   :  { %s15485_s5 = scalar_lea.vmem %s68_s23, 16384  ;;  %p15490_p11 = scmp.lt.s32.totalorder %s68_s23, %s68_s23 }
  0x1c   :  { %p15486_p10 = scmp.ne.s32.totalorder %s68_s23, %s15485_s5  ;;  %p15491_p12 = scmp.lt.s32.totalorder %s15485_s5, %s15485_s5 }
  0x1e   :  { %p15492_p13 = por %p15491_p12, %p15490_p11 }
  0x20   :  { %p15493_p0 = pnand %p15492_p13, %p15486_p10 }
  0x22   :  { %15496 = shalt.err (!%p15493_p0)
}
  0x23   :  { %s15508_s24 = smov 64   ;;  %s15509_s25 = smov 4  }
  0x24   :  { %73 = dma.hbm_to_vmem [thread:$0]  %s19282_s11, 16384, %s68_s23, [#allocation5], %s15508_s24, %s15508_s24, %s15509_s25  }
  0x25   :  { %15497 = dma.done.wait [#allocation3], 32768  }
  0x26   :  { %15498 = vsyncadd [#allocation3], 4294934528 }
  0x27   :  { %15499 = dma.done.wait [#allocation5], 49152  }
  0x28   :  { %15500 = vsyncadd [#allocation5], 4294918144  ;;  %v14922_v0 = vld [vmem:[#allocation2 + $0xe4] ss:$16 sps:$4 sm:$0xff]   ;;  %v14926_v2 = vld [vmem:[#allocation2 + $0xe0] ss:$16 sps:$4 sm:$0xff]  }
  0x29   :  { %v14924_v1 = vld [vmem:[#allocation2 + $0x2e4] ss:$16 sps:$4 sm:$0xff]   ;;  %1660 = vmatprep.subr.bf16.mxu0 %v14922_v0  ;;  %v14927_v3 = vld [vmem:[#allocation2 + $0x2e0] ss:$16 sps:$4 sm:$0xff]   ;;  %v87_v46 = vld [vmem:[%s19271_s0 + $0x8] sm:$0xff] }
  0x2a   :  { %1701 = vmatprep.subr.bf16.mxu1 %v14924_v1  ;;  %v14928_v4 = vld [vmem:[#allocation2 + $0xc4] ss:$16 sps:$4 sm:$0xff]   ;;  %1661 = vmatpush1.bf16.msra.mxu0 %v14926_v2  ;;  %v14932_v6 = vld [vmem:[#allocation2 + $0xc0] ss:$16 sps:$4 sm:$0xff]   ;;  %v15592_v49 = vpack.c.bf16 %v87_v46, %v87_v46  ;;  %v89_v50 = vld [vmem:[%s19271_s0 + $0x18] sm:$0xff] }
  0x2b   :  { %1702 = vmatpush1.bf16.msra.mxu1 %v14927_v3  ;;  %v14930_v5 = vld [vmem:[#allocation2 + $0x2c4] ss:$16 sps:$4 sm:$0xff]   ;;  %1662 = vmatprep.subr.bf16.mxu0 %v14928_v4  ;;  %v14933_v7 = vld [vmem:[#allocation2 + $0x2c0] ss:$16 sps:$4 sm:$0xff]   ;;  %v15597_v52 = vpack.c.bf16 %v89_v50, %v89_v50 }
  0x2c   :  { %1703 = vmatprep.subr.bf16.mxu1 %v14930_v5  ;;  %v14934_v8 = vld [vmem:[#allocation2 + $0xa4] ss:$16 sps:$4 sm:$0xff]   ;;  %v14938_v10 = vld [vmem:[#allocation2 + $0xa0] ss:$16 sps:$4 sm:$0xff]   ;;  %1692 = vmatprep.mubr.bf16.mxu0 %v15592_v49 }
  0x2d   :  { %v14936_v9 = vld [vmem:[#allocation2 + $0x2a4] ss:$16 sps:$4 sm:$0xff]   ;;  %v14939_v11 = vld [vmem:[#allocation2 + $0x2a0] ss:$16 sps:$4 sm:$0xff]   ;;  %1733 = vmatprep.mubr.bf16.mxu1 %v15597_v52 }
  0x2e   :  { %1663 = vmatpush1.bf16.msra.mxu0 %v14932_v6  ;;  %v14940_v12 = vld [vmem:[#allocation2 + $0x84] ss:$16 sps:$4 sm:$0xff]   ;;  %v14944_v14 = vld [vmem:[#allocation2 + $0x80] ss:$16 sps:$4 sm:$0xff]  }
  0x2f   :  { %1704 = vmatpush1.bf16.msra.mxu1 %v14933_v7  ;;  %1664 = vmatprep.subr.bf16.mxu0 %v14934_v8  ;;  %v14942_v13 = vld [vmem:[#allocation2 + $0x284] ss:$16 sps:$4 sm:$0xff]   ;;  %v14945_v15 = vld [vmem:[#allocation2 + $0x280] ss:$16 sps:$4 sm:$0xff]  }
  0x30   :  { %1705 = vmatprep.subr.bf16.mxu1 %v14936_v9  ;;  %v14946_v16 = vld [vmem:[#allocation2 + $0x64] ss:$16 sps:$4 sm:$0xff]   ;;  %v14950_v18 = vld [vmem:[#allocation2 + $0x60] ss:$16 sps:$4 sm:$0xff]  }
  0x31   :  { %v14948_v17 = vld [vmem:[#allocation2 + $0x264] ss:$16 sps:$4 sm:$0xff]   ;;  %v14951_v19 = vld [vmem:[#allocation2 + $0x260] ss:$16 sps:$4 sm:$0xff]  }
  0x32   :  { %1665 = vmatpush1.bf16.msra.mxu0 %v14938_v10  ;;  %v14952_v20 = vld [vmem:[#allocation2 + $0x44] ss:$16 sps:$4 sm:$0xff]   ;;  %v14956_v22 = vld [vmem:[#allocation2 + $0x40] ss:$16 sps:$4 sm:$0xff]  }
  0x33   :  { %1706 = vmatpush1.bf16.msra.mxu1 %v14939_v11  ;;  %1666 = vmatprep.subr.bf16.mxu0 %v14940_v12  ;;  %v14954_v21 = vld [vmem:[#allocation2 + $0x244] ss:$16 sps:$4 sm:$0xff]   ;;  %v14957_v23 = vld [vmem:[#allocation2 + $0x240] ss:$16 sps:$4 sm:$0xff]  }
  0x34   :  { %1707 = vmatprep.subr.bf16.mxu1 %v14942_v13  ;;  %v14958_v24 = vld [vmem:[#allocation2 + $0x24] ss:$16 sps:$4 sm:$0xff]   ;;  %v14962_v26 = vld [vmem:[#allocation2 + $0x20] ss:$16 sps:$4 sm:$0xff]  }
  0x35   :  { %v14960_v25 = vld [vmem:[#allocation2 + $0x224] ss:$16 sps:$4 sm:$0xff]   ;;  %v14963_v27 = vld [vmem:[#allocation2 + $0x220] ss:$16 sps:$4 sm:$0xff]  }
  0x36   :  { %1667 = vmatpush1.bf16.msra.mxu0 %v14944_v14  ;;  %v14964_v28 = vld [vmem:[#allocation2 + $0x4] ss:$16 sps:$4 sm:$0xff]   ;;  %v14968_v30 = vld [vmem:[#allocation2] ss:$16 sps:$4 sm:$0xff]  }
  0x37   :  { %1708 = vmatpush1.bf16.msra.mxu1 %v14945_v15  ;;  %1668 = vmatprep.subr.bf16.mxu0 %v14946_v16  ;;  %v14966_v29 = vld [vmem:[#allocation2 + $0x204] ss:$16 sps:$4 sm:$0xff]   ;;  %v14969_v31 = vld [vmem:[#allocation2 + $0x200] ss:$16 sps:$4 sm:$0xff]  }
  0x38   :  { %1709 = vmatprep.subr.bf16.mxu1 %v14948_v17  ;;  %v14970_v32 = vld [vmem:[#allocation2 + $0x1e4] ss:$16 sps:$4 sm:$0xff]   ;;  %v14974_v34 = vld [vmem:[#allocation2 + $0x1e0] ss:$16 sps:$4 sm:$0xff]  }
  0x39   :  { %v14972_v33 = vld [vmem:[#allocation2 + $0x3e4] ss:$16 sps:$4 sm:$0xff]   ;;  %v14975_v35 = vld [vmem:[#allocation2 + $0x3e0] ss:$16 sps:$4 sm:$0xff]  }
  0x3a   :  { %1669 = vmatpush1.bf16.msra.mxu0 %v14950_v18  ;;  %v14976_v36 = vld [vmem:[#allocation2 + $0x1c4] ss:$16 sps:$4 sm:$0xff]   ;;  %v14980_v38 = vld [vmem:[#allocation2 + $0x1c0] ss:$16 sps:$4 sm:$0xff]  }
  0x3b   :  { %1710 = vmatpush1.bf16.msra.mxu1 %v14951_v19  ;;  %1670 = vmatprep.subr.bf16.mxu0 %v14952_v20  ;;  %v14978_v37 = vld [vmem:[#allocation2 + $0x3c4] ss:$16 sps:$4 sm:$0xff]   ;;  %v14981_v39 = vld [vmem:[#allocation2 + $0x3c0] ss:$16 sps:$4 sm:$0xff]  }
  0x3c   :  { %1711 = vmatprep.subr.bf16.mxu1 %v14954_v21  ;;  %v14982_v40 = vld [vmem:[#allocation2 + $0x1a4] ss:$16 sps:$4 sm:$0xff]   ;;  %v14986_v42 = vld [vmem:[#allocation2 + $0x1a0] ss:$16 sps:$4 sm:$0xff]  }
  0x3d   :  { %v14984_v41 = vld [vmem:[#allocation2 + $0x3a4] ss:$16 sps:$4 sm:$0xff]   ;;  %v14987_v43 = vld [vmem:[#allocation2 + $0x3a0] ss:$16 sps:$4 sm:$0xff]  }
  0x3e   :  { %1671 = vmatpush1.bf16.msra.mxu0 %v14956_v22  ;;  %v14988_v44 = vld [vmem:[#allocation2 + $0x184] ss:$16 sps:$4 sm:$0xff]   ;;  %v14992_v47 = vld [vmem:[#allocation2 + $0x180] ss:$16 sps:$4 sm:$0xff]  }
  0x3f   :  { %1712 = vmatpush1.bf16.msra.mxu1 %v14957_v23  ;;  %1672 = vmatprep.subr.bf16.mxu0 %v14958_v24  ;;  %v14990_v45 = vld [vmem:[#allocation2 + $0x384] ss:$16 sps:$4 sm:$0xff]   ;;  %v14993_v48 = vld [vmem:[#allocation2 + $0x380] ss:$16 sps:$4 sm:$0xff]  }
  0x40   :  { %1713 = vmatprep.subr.bf16.mxu1 %v14960_v25  ;;  %v14994_v51 = vld [vmem:[#allocation2 + $0x164] ss:$16 sps:$4 sm:$0xff]   ;;  %v14998_v54 = vld [vmem:[#allocation2 + $0x160] ss:$16 sps:$4 sm:$0xff]  }
  0x41   :  { %v14996_v53 = vld [vmem:[#allocation2 + $0x364] ss:$16 sps:$4 sm:$0xff]   ;;  %v14999_v55 = vld [vmem:[#allocation2 + $0x360] ss:$16 sps:$4 sm:$0xff]  }
  0x42   :  { %1673 = vmatpush1.bf16.msra.mxu0 %v14962_v26  ;;  %v15000_v56 = vld [vmem:[#allocation2 + $0x144] ss:$16 sps:$4 sm:$0xff]   ;;  %v15004_v58 = vld [vmem:[#allocation2 + $0x140] ss:$16 sps:$4 sm:$0xff]  }
  0x43   :  { %1714 = vmatpush1.bf16.msra.mxu1 %v14963_v27  ;;  %1674 = vmatprep.subr.bf16.mxu0 %v14964_v28  ;;  %v15002_v57 = vld [vmem:[#allocation2 + $0x344] ss:$16 sps:$4 sm:$0xff]   ;;  %v15005_v59 = vld [vmem:[#allocation2 + $0x340] ss:$16 sps:$4 sm:$0xff]  }
  0x44   :  { %1715 = vmatprep.subr.bf16.mxu1 %v14966_v29  ;;  %v15006_v60 = vld [vmem:[#allocation2 + $0x124] ss:$16 sps:$4 sm:$0xff]   ;;  %v15010_v62 = vld [vmem:[#allocation2 + $0x120] ss:$16 sps:$4 sm:$0xff]  }
  0x45   :  { %v15008_v61 = vld [vmem:[#allocation2 + $0x324] ss:$16 sps:$4 sm:$0xff]   ;;  %v15011_v63 = vld [vmem:[#allocation2 + $0x320] ss:$16 sps:$4 sm:$0xff]  }
  0x46   :  { %1675 = vmatpush1.bf16.msra.mxu0 %v14968_v30  ;;  %v15012_v0 = vld [vmem:[#allocation2 + $0x104] ss:$16 sps:$4 sm:$0xff]   ;;  %v15016_v2 = vld [vmem:[#allocation2 + $0x100] ss:$16 sps:$4 sm:$0xff]  }
  0x47   :  { %1716 = vmatpush1.bf16.msra.mxu1 %v14969_v31  ;;  %1676 = vmatprep.subr.bf16.mxu0 %v14970_v32  ;;  %v15014_v1 = vld [vmem:[#allocation2 + $0x304] ss:$16 sps:$4 sm:$0xff]   ;;  %v15017_v3 = vld [vmem:[#allocation2 + $0x300] ss:$16 sps:$4 sm:$0xff]  }
  0x48   :  { %1717 = vmatprep.subr.bf16.mxu1 %v14972_v33  ;;  %v86_v4 = vld [vmem:[%s19271_s0] sm:$0xff]  ;;  %v88_v5 = vld [vmem:[%s19271_s0 + $0x10] sm:$0xff] }
  0x49   :  { %v15020_v6 = vld [vmem:[#allocation2 + $0x4e4] ss:$16 sps:$4 sm:$0xff]   ;;  %v15607_v8 = vpack.c.bf16 %v86_v4, %v86_v4  ;;  %v15609_v9 = vpack.c.bf16 %v88_v5, %v88_v5  ;;  %v15018_v10 = vld [vmem:[#allocation2 + $0x4e0] ss:$16 sps:$4 sm:$0xff]  }
  0x4a   :  { %1677 = vmatpush2.bf16.msra.mxu0 %v14974_v34  ;;  %v15023_v7 = vld [vmem:[#allocation2 + $0x6e4] ss:$16 sps:$4 sm:$0xff]   ;;  %v15021_v11 = vld [vmem:[#allocation2 + $0x6e0] ss:$16 sps:$4 sm:$0xff]   ;;  %v91_v34 = vld [vmem:[%s19271_s0 + $0x28] sm:$0xff] }
  0x4b   :  { %1718 = vmatpush2.bf16.msra.mxu1 %v14975_v35  ;;  %1678 = vmatprep.subr.bf16.mxu0 %v14976_v36  ;;  %v15026_v12 = vld [vmem:[#allocation2 + $0x4c4] ss:$16 sps:$4 sm:$0xff]   ;;  %v15024_v14 = vld [vmem:[#allocation2 + $0x4c0] ss:$16 sps:$4 sm:$0xff]  }
  0x4c   :  { %1719 = vmatprep.subr.bf16.mxu1 %v14978_v37  ;;  %v15029_v13 = vld [vmem:[#allocation2 + $0x6c4] ss:$16 sps:$4 sm:$0xff]   ;;  %v15027_v15 = vld [vmem:[#allocation2 + $0x6c0] ss:$16 sps:$4 sm:$0xff]   ;;  %v15616_v37 = vpack.c.bf16 %v91_v34, %v91_v34  ;;  %v15132_v34 = vld [vmem:[#allocation2 + $0x88] ss:$16 sps:$4 sm:$0xff]  }
  0x4d   :  { %v15032_v16 = vld [vmem:[#allocation2 + $0x4a4] ss:$16 sps:$4 sm:$0xff]   ;;  %v15030_v18 = vld [vmem:[#allocation2 + $0x4a0] ss:$16 sps:$4 sm:$0xff]  }
  0x4e   :  { %1679 = vmatpush2.bf16.msra.mxu0 %v14980_v38  ;;  %v15035_v17 = vld [vmem:[#allocation2 + $0x6a4] ss:$16 sps:$4 sm:$0xff]   ;;  %v15033_v19 = vld [vmem:[#allocation2 + $0x6a0] ss:$16 sps:$4 sm:$0xff]   ;;  %v93_v38 = vld [vmem:[%s19271_s0 + $0x38] sm:$0xff] }
  0x4f   :  { %1720 = vmatpush2.bf16.msra.mxu1 %v14981_v39  ;;  %1680 = vmatprep.subr.bf16.mxu0 %v14982_v40  ;;  %v15038_v20 = vld [vmem:[#allocation2 + $0x484] ss:$16 sps:$4 sm:$0xff]   ;;  %v15036_v22 = vld [vmem:[#allocation2 + $0x480] ss:$16 sps:$4 sm:$0xff]   ;;  %v15621_v40 = vpack.c.bf16 %v93_v38, %v93_v38  ;;  %v15143_v38 = vld [vmem:[#allocation2 + $0x26c] ss:$16 sps:$4 sm:$0xff]  }
  0x50   :  { %1721 = vmatprep.subr.bf16.mxu1 %v14984_v41  ;;  %v15041_v21 = vld [vmem:[#allocation2 + $0x684] ss:$16 sps:$4 sm:$0xff]   ;;  %v15039_v23 = vld [vmem:[#allocation2 + $0x680] ss:$16 sps:$4 sm:$0xff]  }
  0x51   :  { %v15044_v24 = vld [vmem:[#allocation2 + $0x464] ss:$16 sps:$4 sm:$0xff]   ;;  %v15042_v26 = vld [vmem:[#allocation2 + $0x460] ss:$16 sps:$4 sm:$0xff]  }
  0x52   :  { %1681 = vmatpush2.bf16.msra.mxu0 %v14986_v42  ;;  %v15047_v25 = vld [vmem:[#allocation2 + $0x664] ss:$16 sps:$4 sm:$0xff]   ;;  %v15045_v27 = vld [vmem:[#allocation2 + $0x660] ss:$16 sps:$4 sm:$0xff]  }
  0x53   :  { %1722 = vmatpush2.bf16.msra.mxu1 %v14987_v43  ;;  %1682 = vmatprep.subr.bf16.mxu0 %v14988_v44  ;;  %v15050_v28 = vld [vmem:[#allocation2 + $0x444] ss:$16 sps:$4 sm:$0xff]   ;;  %v15048_v30 = vld [vmem:[#allocation2 + $0x440] ss:$16 sps:$4 sm:$0xff]  }
  0x54   :  { %1723 = vmatprep.subr.bf16.mxu1 %v14990_v45  ;;  %v15053_v29 = vld [vmem:[#allocation2 + $0x644] ss:$16 sps:$4 sm:$0xff]   ;;  %v15051_v31 = vld [vmem:[#allocation2 + $0x640] ss:$16 sps:$4 sm:$0xff]  }
  0x55   :  { %v15056_v32 = vld [vmem:[#allocation2 + $0x424] ss:$16 sps:$4 sm:$0xff]   ;;  %v15054_v35 = vld [vmem:[#allocation2 + $0x420] ss:$16 sps:$4 sm:$0xff]  }
  0x56   :  { %1683 = vmatpush2.bf16.msra.mxu0 %v14992_v47  ;;  %v15059_v33 = vld [vmem:[#allocation2 + $0x624] ss:$16 sps:$4 sm:$0xff]   ;;  %v15057_v36 = vld [vmem:[#allocation2 + $0x620] ss:$16 sps:$4 sm:$0xff]  }
  0x57   :  { %1724 = vmatpush2.bf16.msra.mxu1 %v14993_v48  ;;  %1684 = vmatprep.subr.bf16.mxu0 %v14994_v51  ;;  %v15062_v39 = vld [vmem:[#allocation2 + $0x404] ss:$16 sps:$4 sm:$0xff]   ;;  %v15060_v42 = vld [vmem:[#allocation2 + $0x400] ss:$16 sps:$4 sm:$0xff]  }
  0x58   :  { %1725 = vmatprep.subr.bf16.mxu1 %v14996_v53  ;;  %v15065_v41 = vld [vmem:[#allocation2 + $0x604] ss:$16 sps:$4 sm:$0xff]   ;;  %v15063_v43 = vld [vmem:[#allocation2 + $0x600] ss:$16 sps:$4 sm:$0xff]  }
  0x59   :  { %v15068_v44 = vld [vmem:[#allocation2 + $0x5e4] ss:$16 sps:$4 sm:$0xff]   ;;  %v15066_v46 = vld [vmem:[#allocation2 + $0x5e0] ss:$16 sps:$4 sm:$0xff]  }
  0x5a   :  { %1685 = vmatpush2.bf16.msra.mxu0 %v14998_v54  ;;  %v15071_v45 = vld [vmem:[#allocation2 + $0x7e4] ss:$16 sps:$4 sm:$0xff]   ;;  %v15069_v47 = vld [vmem:[#allocation2 + $0x7e0] ss:$16 sps:$4 sm:$0xff]  }
  0x5b   :  { %1726 = vmatpush2.bf16.msra.mxu1 %v14999_v55  ;;  %1686 = vmatprep.subr.bf16.mxu0 %v15000_v56  ;;  %v15074_v48 = vld [vmem:[#allocation2 + $0x5c4] ss:$16 sps:$4 sm:$0xff]   ;;  %v15072_v51 = vld [vmem:[#allocation2 + $0x5c0] ss:$16 sps:$4 sm:$0xff]  }
  0x5c   :  { %1727 = vmatprep.subr.bf16.mxu1 %v15002_v57  ;;  %v15077_v50 = vld [vmem:[#allocation2 + $0x7c4] ss:$16 sps:$4 sm:$0xff]   ;;  %v15075_v53 = vld [vmem:[#allocation2 + $0x7c0] ss:$16 sps:$4 sm:$0xff]  }
  0x5d   :  { %v15080_v54 = vld [vmem:[#allocation2 + $0x5a4] ss:$16 sps:$4 sm:$0xff]   ;;  %v15078_v56 = vld [vmem:[#allocation2 + $0x5a0] ss:$16 sps:$4 sm:$0xff]  }
  0x5e   :  { %1687 = vmatpush2.bf16.msra.mxu0 %v15004_v58  ;;  %v15083_v55 = vld [vmem:[#allocation2 + $0x7a4] ss:$16 sps:$4 sm:$0xff]   ;;  %v15081_v57 = vld [vmem:[#allocation2 + $0x7a0] ss:$16 sps:$4 sm:$0xff]  }
  0x5f   :  { %1728 = vmatpush2.bf16.msra.mxu1 %v15005_v59  ;;  %1688 = vmatprep.subr.bf16.mxu0 %v15006_v60  ;;  %v15086_v58 = vld [vmem:[#allocation2 + $0x584] ss:$16 sps:$4 sm:$0xff]   ;;  %v15084_v60 = vld [vmem:[#allocation2 + $0x580] ss:$16 sps:$4 sm:$0xff]  }
  0x60   :  { %1729 = vmatprep.subr.bf16.mxu1 %v15008_v61  ;;  %v15089_v59 = vld [vmem:[#allocation2 + $0x784] ss:$16 sps:$4 sm:$0xff]   ;;  %v15087_v61 = vld [vmem:[#allocation2 + $0x780] ss:$16 sps:$4 sm:$0xff]  }
  0x61   :  { %v15096_v4 = vld [vmem:[#allocation2 + $0x540] ss:$16 sps:$4 sm:$0xff]  }
  0x62   :  { %1689 = vmatpush2.bf16.msra.mxu0 %v15010_v62  ;;  %v15092_v62 = vld [vmem:[#allocation2 + $0x564] ss:$16 sps:$4 sm:$0xff]   ;;  %v15099_v5 = vld [vmem:[#allocation2 + $0x740] ss:$16 sps:$4 sm:$0xff]  }
  0x63   :  { %1730 = vmatpush2.bf16.msra.mxu1 %v15011_v63  ;;  %1690 = vmatprep.subr.bf16.mxu0 %v15012_v0  ;;  %v15095_v63 = vld [vmem:[#allocation2 + $0x764] ss:$16 sps:$4 sm:$0xff]   ;;  %v15090_v0 = vld [vmem:[#allocation2 + $0x560] ss:$16 sps:$4 sm:$0xff]  }
  0x64   :  { %1731 = vmatprep.subr.bf16.mxu1 %v15014_v1  ;;  %v15093_v1 = vld [vmem:[#allocation2 + $0x760] ss:$16 sps:$4 sm:$0xff]  }
  0x66   :  { %1691 = vmatpush2.bf16.msra.mxu0 %v15016_v2  ;;  %v15098_v2 = vld [vmem:[#allocation2 + $0x544] ss:$16 sps:$4 sm:$0xff]  }
  0x67   :  { %1732 = vmatpush2.bf16.msra.mxu1 %v15017_v3  ;;  %1742 = vmatprep.subr.bf16.mxu0 %v15020_v6  ;;  %v15101_v3 = vld [vmem:[#allocation2 + $0x744] ss:$16 sps:$4 sm:$0xff]  }
  0x68   :  { %1783 = vmatprep.subr.bf16.mxu1 %v15023_v7  ;;  %v15104_v6 = vld [vmem:[#allocation2 + $0x524] ss:$16 sps:$4 sm:$0xff]  }
  0x69   :  { %1693 = vmatmul.mubr.bf16.vlgmr.msra.gmra.mxu0 %v15607_v8  ;;  %v15107_v7 = vld [vmem:[#allocation2 + $0x724] ss:$16 sps:$4 sm:$0xff]  }
  0x6a   :  { %1734 = vmatmul.mubr.bf16.vlgmr.msra.gmra.mxu1 %v15609_v9  ;;  %1743 = vmatpush1.bf16.msra.mxu0 %v15018_v10  ;;  %v15102_v10 = vld [vmem:[#allocation2 + $0x520] ss:$16 sps:$4 sm:$0xff]  }
  0x6b   :  { %1784 = vmatpush1.bf16.msra.mxu1 %v15021_v11  ;;  %1744 = vmatprep.subr.bf16.mxu0 %v15026_v12  ;;  %v15105_v11 = vld [vmem:[#allocation2 + $0x720] ss:$16 sps:$4 sm:$0xff]   ;;  %v15110_v12 = vld [vmem:[#allocation2 + $0x504] ss:$16 sps:$4 sm:$0xff]  }
  0x6c   :  { %1785 = vmatprep.subr.bf16.mxu1 %v15029_v13  ;;  %1774 = vmatprep.mubr.bf16.mxu0 %v15616_v37  ;;  %v15113_v13 = vld [vmem:[#allocation2 + $0x704] ss:$16 sps:$4 sm:$0xff]  }
  0x6d   :  { %1815 = vmatprep.mubr.bf16.mxu1 %v15621_v40 }
  0x6e   :  { %1745 = vmatpush1.bf16.msra.mxu0 %v15024_v14  ;;  %v15108_v14 = vld [vmem:[#allocation2 + $0x500] ss:$16 sps:$4 sm:$0xff]  }
  0x6f   :  { %1786 = vmatpush1.bf16.msra.mxu1 %v15027_v15  ;;  %1746 = vmatprep.subr.bf16.mxu0 %v15032_v16  ;;  %v15111_v15 = vld [vmem:[#allocation2 + $0x700] ss:$16 sps:$4 sm:$0xff]  }
  0x70   :  { %1787 = vmatprep.subr.bf16.mxu1 %v15035_v17  ;;  %v90_v16 = vld [vmem:[%s19271_s0 + $0x20] sm:$0xff]  ;;  %v92_v17 = vld [vmem:[%s19271_s0 + $0x30] sm:$0xff] }
  0x72   :  { %1747 = vmatpush1.bf16.msra.mxu0 %v15030_v18  ;;  %v15116_v18 = vld [vmem:[#allocation2 + $0xec] ss:$16 sps:$4 sm:$0xff]  }
  0x73   :  { %1788 = vmatpush1.bf16.msra.mxu1 %v15033_v19  ;;  %1748 = vmatprep.subr.bf16.mxu0 %v15038_v20  ;;  %v15119_v19 = vld [vmem:[#allocation2 + $0x2ec] ss:$16 sps:$4 sm:$0xff]   ;;  %v15631_v20 = vpack.c.bf16 %v90_v16, %v90_v16 }
  0x74   :  { %1789 = vmatprep.subr.bf16.mxu1 %v15041_v21  ;;  %v15633_v21 = vpack.c.bf16 %v92_v17, %v92_v17  ;;  %v15200_v16 = vld [vmem:[#allocation2 + $0x12c] ss:$16 sps:$4 sm:$0xff]  }
  0x75   :  { %v15203_v17 = vld [vmem:[#allocation2 + $0x32c] ss:$16 sps:$4 sm:$0xff]  }
  0x76   :  { %1749 = vmatpush1.bf16.msra.mxu0 %v15036_v22  ;;  %v15114_v22 = vld [vmem:[#allocation2 + $0xe8] ss:$16 sps:$4 sm:$0xff]  }
  0x77   :  { %1790 = vmatpush1.bf16.msra.mxu1 %v15039_v23  ;;  %1750 = vmatprep.subr.bf16.mxu0 %v15044_v24  ;;  %v15117_v23 = vld [vmem:[#allocation2 + $0x2e8] ss:$16 sps:$4 sm:$0xff]   ;;  %v15122_v24 = vld [vmem:[#allocation2 + $0xcc] ss:$16 sps:$4 sm:$0xff]  }
  0x78   :  { %1791 = vmatprep.subr.bf16.mxu1 %v15047_v25  ;;  %v15125_v25 = vld [vmem:[#allocation2 + $0x2cc] ss:$16 sps:$4 sm:$0xff]  }
  0x7a   :  { %1751 = vmatpush1.bf16.msra.mxu0 %v15042_v26  ;;  %v15120_v26 = vld [vmem:[#allocation2 + $0xc8] ss:$16 sps:$4 sm:$0xff]  }
  0x7b   :  { %1792 = vmatpush1.bf16.msra.mxu1 %v15045_v27  ;;  %1752 = vmatprep.subr.bf16.mxu0 %v15050_v28  ;;  %v15123_v27 = vld [vmem:[#allocation2 + $0x2c8] ss:$16 sps:$4 sm:$0xff]   ;;  %v15128_v28 = vld [vmem:[#allocation2 + $0xac] ss:$16 sps:$4 sm:$0xff]  }
  0x7c   :  { %1793 = vmatprep.subr.bf16.mxu1 %v15053_v29  ;;  %v15131_v29 = vld [vmem:[#allocation2 + $0x2ac] ss:$16 sps:$4 sm:$0xff]  }
  0x7e   :  { %1753 = vmatpush1.bf16.msra.mxu0 %v15048_v30  ;;  %v15126_v30 = vld [vmem:[#allocation2 + $0xa8] ss:$16 sps:$4 sm:$0xff]  }
  0x7f   :  { %1794 = vmatpush1.bf16.msra.mxu1 %v15051_v31  ;;  %1754 = vmatprep.subr.bf16.mxu0 %v15056_v32  ;;  %v15129_v31 = vld [vmem:[#allocation2 + $0x2a8] ss:$16 sps:$4 sm:$0xff]   ;;  %v15134_v32 = vld [vmem:[#allocation2 + $0x8c] ss:$16 sps:$4 sm:$0xff]  }
  0x80   :  { %1795 = vmatprep.subr.bf16.mxu1 %v15059_v33  ;;  %v15137_v33 = vld [vmem:[#allocation2 + $0x28c] ss:$16 sps:$4 sm:$0xff]  }
  0x82   :  { %1755 = vmatpush1.bf16.msra.mxu0 %v15054_v35  ;;  %v15135_v35 = vld [vmem:[#allocation2 + $0x288] ss:$16 sps:$4 sm:$0xff]  }
  0x83   :  { %1796 = vmatpush1.bf16.msra.mxu1 %v15057_v36  ;;  %1756 = vmatprep.subr.bf16.mxu0 %v15062_v39  ;;  %v15140_v36 = vld [vmem:[#allocation2 + $0x6c] ss:$16 sps:$4 sm:$0xff]   ;;  %v15138_v39 = vld [vmem:[#allocation2 + $0x68] ss:$16 sps:$4 sm:$0xff]  }
  0x84   :  { %1797 = vmatprep.subr.bf16.mxu1 %v15065_v41  ;;  %v15149_v41 = vld [vmem:[#allocation2 + $0x24c] ss:$16 sps:$4 sm:$0xff]  }
  0x86   :  { %1757 = vmatpush1.bf16.msra.mxu0 %v15060_v42  ;;  %v15144_v42 = vld [vmem:[#allocation2 + $0x48] ss:$16 sps:$4 sm:$0xff]  }
  0x87   :  { %1798 = vmatpush1.bf16.msra.mxu1 %v15063_v43  ;;  %1758 = vmatprep.subr.bf16.mxu0 %v15068_v44  ;;  %v15147_v43 = vld [vmem:[#allocation2 + $0x248] ss:$16 sps:$4 sm:$0xff]   ;;  %v15152_v44 = vld [vmem:[#allocation2 + $0x2c] ss:$16 sps:$4 sm:$0xff]  }
  0x88   :  { %1799 = vmatprep.subr.bf16.mxu1 %v15071_v45  ;;  %v15155_v45 = vld [vmem:[#allocation2 + $0x22c] ss:$16 sps:$4 sm:$0xff]  }
  0x8a   :  { %1759 = vmatpush2.bf16.msra.mxu0 %v15066_v46  ;;  %v15150_v46 = vld [vmem:[#allocation2 + $0x28] ss:$16 sps:$4 sm:$0xff]  }
  0x8b   :  { %1800 = vmatpush2.bf16.msra.mxu1 %v15069_v47  ;;  %1760 = vmatprep.subr.bf16.mxu0 %v15074_v48  ;;  %v15153_v47 = vld [vmem:[#allocation2 + $0x228] ss:$16 sps:$4 sm:$0xff]   ;;  %v15158_v48 = vld [vmem:[#allocation2 + $0xc] ss:$16 sps:$4 sm:$0xff]  }
  0x8c   :  { %1801 = vmatprep.subr.bf16.mxu1 %v15077_v50  ;;  %v15161_v50 = vld [vmem:[#allocation2 + $0x20c] ss:$16 sps:$4 sm:$0xff]  }
  0x8e   :  { %1761 = vmatpush2.bf16.msra.mxu0 %v15072_v51  ;;  %v15156_v51 = vld [vmem:[#allocation2 + $0x8] ss:$16 sps:$4 sm:$0xff]  }
  0x8f   :  { %1802 = vmatpush2.bf16.msra.mxu1 %v15075_v53  ;;  %1762 = vmatprep.subr.bf16.mxu0 %v15080_v54  ;;  %v15159_v53 = vld [vmem:[#allocation2 + $0x208] ss:$16 sps:$4 sm:$0xff]   ;;  %v15164_v54 = vld [vmem:[#allocation2 + $0x1ec] ss:$16 sps:$4 sm:$0xff]  }
  0x90   :  { %1803 = vmatprep.subr.bf16.mxu1 %v15083_v55  ;;  %v15167_v55 = vld [vmem:[#allocation2 + $0x3ec] ss:$16 sps:$4 sm:$0xff]  }
  0x92   :  { %1763 = vmatpush2.bf16.msra.mxu0 %v15078_v56  ;;  %v15162_v56 = vld [vmem:[#allocation2 + $0x1e8] ss:$16 sps:$4 sm:$0xff]  }
  0x93   :  { %1804 = vmatpush2.bf16.msra.mxu1 %v15081_v57  ;;  %1764 = vmatprep.subr.bf16.mxu0 %v15086_v58  ;;  %v15165_v57 = vld [vmem:[#allocation2 + $0x3e8] ss:$16 sps:$4 sm:$0xff]   ;;  %v15170_v58 = vld [vmem:[#allocation2 + $0x1cc] ss:$16 sps:$4 sm:$0xff]  }
  0x94   :  { %1805 = vmatprep.subr.bf16.mxu1 %v15089_v59  ;;  %v15173_v59 = vld [vmem:[#allocation2 + $0x3cc] ss:$16 sps:$4 sm:$0xff]  }
  0x96   :  { %1765 = vmatpush2.bf16.msra.mxu0 %v15084_v60  ;;  %v15168_v60 = vld [vmem:[#allocation2 + $0x1c8] ss:$16 sps:$4 sm:$0xff]  }
  0x97   :  { %1806 = vmatpush2.bf16.msra.mxu1 %v15087_v61  ;;  %1766 = vmatprep.subr.bf16.mxu0 %v15092_v62  ;;  %v15171_v61 = vld [vmem:[#allocation2 + $0x3c8] ss:$16 sps:$4 sm:$0xff]   ;;  %v15176_v62 = vld [vmem:[#allocation2 + $0x1ac] ss:$16 sps:$4 sm:$0xff]  }
  0x98   :  { %1807 = vmatprep.subr.bf16.mxu1 %v15095_v63  ;;  %v15179_v63 = vld [vmem:[#allocation2 + $0x3ac] ss:$16 sps:$4 sm:$0xff]  }
  0x9a   :  { %1767 = vmatpush2.bf16.msra.mxu0 %v15090_v0  ;;  %v15174_v0 = vld [vmem:[#allocation2 + $0x1a8] ss:$16 sps:$4 sm:$0xff]  }
  0x9b   :  { %1808 = vmatpush2.bf16.msra.mxu1 %v15093_v1  ;;  %1768 = vmatprep.subr.bf16.mxu0 %v15098_v2  ;;  %v15177_v1 = vld [vmem:[#allocation2 + $0x3a8] ss:$16 sps:$4 sm:$0xff]   ;;  %v15182_v2 = vld [vmem:[#allocation2 + $0x18c] ss:$16 sps:$4 sm:$0xff]  }
  0x9c   :  { %1809 = vmatprep.subr.bf16.mxu1 %v15101_v3  ;;  %v15185_v3 = vld [vmem:[#allocation2 + $0x38c] ss:$16 sps:$4 sm:$0xff]  }
  0x9e   :  { %1769 = vmatpush2.bf16.msra.mxu0 %v15096_v4  ;;  %v15180_v4 = vld [vmem:[#allocation2 + $0x188] ss:$16 sps:$4 sm:$0xff]  }
  0x9f   :  { %1810 = vmatpush2.bf16.msra.mxu1 %v15099_v5  ;;  %1770 = vmatprep.subr.bf16.mxu0 %v15104_v6  ;;  %v15183_v5 = vld [vmem:[#allocation2 + $0x388] ss:$16 sps:$4 sm:$0xff]   ;;  %v15188_v6 = vld [vmem:[#allocation2 + $0x16c] ss:$16 sps:$4 sm:$0xff]  }
  0xa0   :  { %1811 = vmatprep.subr.bf16.mxu1 %v15107_v7  ;;  %v15191_v7 = vld [vmem:[#allocation2 + $0x36c] ss:$16 sps:$4 sm:$0xff]  }
  0xa2   :  { %1771 = vmatpush2.bf16.msra.mxu0 %v15102_v10  ;;  %v15186_v10 = vld [vmem:[#allocation2 + $0x168] ss:$16 sps:$4 sm:$0xff]  }
  0xa3   :  { %1812 = vmatpush2.bf16.msra.mxu1 %v15105_v11  ;;  %1772 = vmatprep.subr.bf16.mxu0 %v15110_v12  ;;  %v15189_v11 = vld [vmem:[#allocation2 + $0x368] ss:$16 sps:$4 sm:$0xff]   ;;  %v15194_v12 = vld [vmem:[#allocation2 + $0x14c] ss:$16 sps:$4 sm:$0xff]  }
  0xa4   :  { %1813 = vmatprep.subr.bf16.mxu1 %v15113_v13  ;;  %v15197_v13 = vld [vmem:[#allocation2 + $0x34c] ss:$16 sps:$4 sm:$0xff]  }
  0xa6   :  { %1773 = vmatpush2.bf16.msra.mxu0 %v15108_v14  ;;  %v15192_v14 = vld [vmem:[#allocation2 + $0x148] ss:$16 sps:$4 sm:$0xff]  }
  0xa7   :  { %1814 = vmatpush2.bf16.msra.mxu1 %v15111_v15  ;;  %1824 = vmatprep.subr.bf16.mxu0 %v15116_v18  ;;  %v15195_v15 = vld [vmem:[#allocation2 + $0x348] ss:$16 sps:$4 sm:$0xff]  }
  0xa8   :  { %1865 = vmatprep.subr.bf16.mxu1 %v15119_v19  ;;  %v15198_v18 = vld [vmem:[#allocation2 + $0x128] ss:$16 sps:$4 sm:$0xff]  }
  0xa9   :  { %1775 = vmatmul.mubr.bf16.vlgmr.msra.gmra.mxu0 %v15631_v20  ;;  %v15201_v19 = vld [vmem:[#allocation2 + $0x328] ss:$16 sps:$4 sm:$0xff]  }
  0xaa   :  { %1816 = vmatmul.mubr.bf16.vlgmr.msra.gmra.mxu1 %v15633_v21  ;;  %1825 = vmatpush1.bf16.msra.mxu0 %v15114_v22  ;;  %v15206_v22 = vld [vmem:[#allocation2 + $0x10c] ss:$16 sps:$4 sm:$0xff]  }
  0xab   :  { %1866 = vmatpush1.bf16.msra.mxu1 %v15117_v23  ;;  %1826 = vmatprep.subr.bf16.mxu0 %v15122_v24  ;;  %v15209_v23 = vld [vmem:[#allocation2 + $0x30c] ss:$16 sps:$4 sm:$0xff]   ;;  %v15204_v24 = vld [vmem:[#allocation2 + $0x108] ss:$16 sps:$4 sm:$0xff]  }
  0xac   :  { %1867 = vmatprep.subr.bf16.mxu1 %v15125_v25  ;;  %1856 = vmatprep.mubr.bf16.mxu0 %v15592_v49  ;;  %v15141_v49 = vld [vmem:[#allocation2 + $0x268] ss:$16 sps:$4 sm:$0xff]  }
  0xad   :  { %1897 = vmatprep.mubr.bf16.mxu1 %v15597_v52  ;;  %v15146_v52 = vld [vmem:[#allocation2 + $0x4c] ss:$16 sps:$4 sm:$0xff]   ;;  %v15207_v25 = vld [vmem:[#allocation2 + $0x308] ss:$16 sps:$4 sm:$0xff]  }
  0xae   :  { %1827 = vmatpush1.bf16.msra.mxu0 %v15120_v26  ;;  %v15212_v26 = vld [vmem:[#allocation2 + $0x4ec] ss:$16 sps:$4 sm:$0xff]  }
  0xaf   :  { %1868 = vmatpush1.bf16.msra.mxu1 %v15123_v27  ;;  %1828 = vmatprep.subr.bf16.mxu0 %v15128_v28  ;;  %v15215_v27 = vld [vmem:[#allocation2 + $0x6ec] ss:$16 sps:$4 sm:$0xff]   ;;  %v15210_v28 = vld [vmem:[#allocation2 + $0x4e8] ss:$16 sps:$4 sm:$0xff]  }
  0xb0   :  { %1869 = vmatprep.subr.bf16.mxu1 %v15131_v29  ;;  %v15213_v29 = vld [vmem:[#allocation2 + $0x6e8] ss:$16 sps:$4 sm:$0xff]  }
  0xb2   :  { %1829 = vmatpush1.bf16.msra.mxu0 %v15126_v30  ;;  %v15218_v30 = vld [vmem:[#allocation2 + $0x4cc] ss:$16 sps:$4 sm:$0xff]  }
  0xb3   :  { %1870 = vmatpush1.bf16.msra.mxu1 %v15129_v31  ;;  %1830 = vmatprep.subr.bf16.mxu0 %v15134_v32  ;;  %v15221_v31 = vld [vmem:[#allocation2 + $0x6cc] ss:$16 sps:$4 sm:$0xff]   ;;  %v15216_v32 = vld [vmem:[#allocation2 + $0x4c8] ss:$16 sps:$4 sm:$0xff]  }
  0xb4   :  { %1871 = vmatprep.subr.bf16.mxu1 %v15137_v33  ;;  %v15219_v33 = vld [vmem:[#allocation2 + $0x6c8] ss:$16 sps:$4 sm:$0xff]  }
  0xb6   :  { %1831 = vmatpush1.bf16.msra.mxu0 %v15132_v34  ;;  %v15224_v34 = vld [vmem:[#allocation2 + $0x4ac] ss:$16 sps:$4 sm:$0xff]  }
  0xb7   :  { %1872 = vmatpush1.bf16.msra.mxu1 %v15135_v35  ;;  %1832 = vmatprep.subr.bf16.mxu0 %v15140_v36  ;;  %v15227_v35 = vld [vmem:[#allocation2 + $0x6ac] ss:$16 sps:$4 sm:$0xff]   ;;  %v15222_v36 = vld [vmem:[#allocation2 + $0x4a8] ss:$16 sps:$4 sm:$0xff]  }
  0xb8   :  { %1873 = vmatprep.subr.bf16.mxu1 %v15143_v38  ;;  %v15225_v38 = vld [vmem:[#allocation2 + $0x6a8] ss:$16 sps:$4 sm:$0xff]  }
  0xba   :  { %1833 = vmatpush1.bf16.msra.mxu0 %v15138_v39  ;;  %v15230_v39 = vld [vmem:[#allocation2 + $0x48c] ss:$16 sps:$4 sm:$0xff]  }
  0xbb   :  { %1874 = vmatpush1.bf16.msra.mxu1 %v15141_v49  ;;  %1834 = vmatprep.subr.bf16.mxu0 %v15146_v52  ;;  %v15233_v49 = vld [vmem:[#allocation2 + $0x68c] ss:$16 sps:$4 sm:$0xff]  }
  0xbc   :  { %1875 = vmatprep.subr.bf16.mxu1 %v15149_v41  ;;  %v15236_v52 = vld [vmem:[#allocation2 + $0x46c] ss:$16 sps:$4 sm:$0xff]  }
  0xbd   :  { %v15239_v41 = vld [vmem:[#allocation2 + $0x66c] ss:$16 sps:$4 sm:$0xff]  }
  0xbe   :  { %1835 = vmatpush1.bf16.msra.mxu0 %v15144_v42  ;;  %v15234_v42 = vld [vmem:[#allocation2 + $0x468] ss:$16 sps:$4 sm:$0xff]  }
  0xbf   :  { %1876 = vmatpush1.bf16.msra.mxu1 %v15147_v43  ;;  %1836 = vmatprep.subr.bf16.mxu0 %v15152_v44  ;;  %v15237_v43 = vld [vmem:[#allocation2 + $0x668] ss:$16 sps:$4 sm:$0xff]  }
  0xc0   :  { %1877 = vmatprep.subr.bf16.mxu1 %v15155_v45  ;;  %v15240_v44 = vld [vmem:[#allocation2 + $0x448] ss:$16 sps:$4 sm:$0xff]  }
  0xc1   :  { %v15243_v45 = vld [vmem:[#allocation2 + $0x648] ss:$16 sps:$4 sm:$0xff]  }
  0xc2   :  { %1837 = vmatpush1.bf16.msra.mxu0 %v15150_v46  ;;  %v15248_v46 = vld [vmem:[#allocation2 + $0x42c] ss:$16 sps:$4 sm:$0xff]  }
  0xc3   :  { %1878 = vmatpush1.bf16.msra.mxu1 %v15153_v47  ;;  %1838 = vmatprep.subr.bf16.mxu0 %v15158_v48  ;;  %v15251_v47 = vld [vmem:[#allocation2 + $0x62c] ss:$16 sps:$4 sm:$0xff]   ;;  %v15246_v48 = vld [vmem:[#allocation2 + $0x428] ss:$16 sps:$4 sm:$0xff]  }
  0xc4   :  { %1879 = vmatprep.subr.bf16.mxu1 %v15161_v50  ;;  %v15249_v50 = vld [vmem:[#allocation2 + $0x628] ss:$16 sps:$4 sm:$0xff]  }
  0xc6   :  { %1839 = vmatpush1.bf16.msra.mxu0 %v15156_v51  ;;  %v15254_v51 = vld [vmem:[#allocation2 + $0x40c] ss:$16 sps:$4 sm:$0xff]  }
  0xc7   :  { %1880 = vmatpush1.bf16.msra.mxu1 %v15159_v53  ;;  %1840 = vmatprep.subr.bf16.mxu0 %v15164_v54  ;;  %v15257_v53 = vld [vmem:[#allocation2 + $0x60c] ss:$16 sps:$4 sm:$0xff]   ;;  %v15252_v54 = vld [vmem:[#allocation2 + $0x408] ss:$16 sps:$4 sm:$0xff]  }
  0xc8   :  { %1881 = vmatprep.subr.bf16.mxu1 %v15167_v55  ;;  %v15255_v55 = vld [vmem:[#allocation2 + $0x608] ss:$16 sps:$4 sm:$0xff]  }
  0xca   :  { %1841 = vmatpush2.bf16.msra.mxu0 %v15162_v56  ;;  %v15260_v56 = vld [vmem:[#allocation2 + $0x5ec] ss:$16 sps:$4 sm:$0xff]  }
  0xcb   :  { %1882 = vmatpush2.bf16.msra.mxu1 %v15165_v57  ;;  %1842 = vmatprep.subr.bf16.mxu0 %v15170_v58  ;;  %v15263_v57 = vld [vmem:[#allocation2 + $0x7ec] ss:$16 sps:$4 sm:$0xff]   ;;  %v15258_v58 = vld [vmem:[#allocation2 + $0x5e8] ss:$16 sps:$4 sm:$0xff]  }
  0xcc   :  { %1883 = vmatprep.subr.bf16.mxu1 %v15173_v59  ;;  %v15261_v59 = vld [vmem:[#allocation2 + $0x7e8] ss:$16 sps:$4 sm:$0xff]  }
  0xce   :  { %1843 = vmatpush2.bf16.msra.mxu0 %v15168_v60  ;;  %v15266_v60 = vld [vmem:[#allocation2 + $0x5cc] ss:$16 sps:$4 sm:$0xff]  }
  0xcf   :  { %1884 = vmatpush2.bf16.msra.mxu1 %v15171_v61  ;;  %1844 = vmatprep.subr.bf16.mxu0 %v15176_v62  ;;  %v15269_v61 = vld [vmem:[#allocation2 + $0x7cc] ss:$16 sps:$4 sm:$0xff]   ;;  %v15264_v62 = vld [vmem:[#allocation2 + $0x5c8] ss:$16 sps:$4 sm:$0xff]  }
  0xd0   :  { %1885 = vmatprep.subr.bf16.mxu1 %v15179_v63  ;;  %v15267_v63 = vld [vmem:[#allocation2 + $0x7c8] ss:$16 sps:$4 sm:$0xff]  }
  0xd2   :  { %1845 = vmatpush2.bf16.msra.mxu0 %v15174_v0  ;;  %v15272_v0 = vld [vmem:[#allocation2 + $0x5ac] ss:$16 sps:$4 sm:$0xff]  }
  0xd3   :  { %1886 = vmatpush2.bf16.msra.mxu1 %v15177_v1  ;;  %1846 = vmatprep.subr.bf16.mxu0 %v15182_v2  ;;  %v15275_v1 = vld [vmem:[#allocation2 + $0x7ac] ss:$16 sps:$4 sm:$0xff]   ;;  %v15270_v2 = vld [vmem:[#allocation2 + $0x5a8] ss:$16 sps:$4 sm:$0xff]  }
  0xd4   :  { %1887 = vmatprep.subr.bf16.mxu1 %v15185_v3  ;;  %v15273_v3 = vld [vmem:[#allocation2 + $0x7a8] ss:$16 sps:$4 sm:$0xff]  }
  0xd6   :  { %1847 = vmatpush2.bf16.msra.mxu0 %v15180_v4  ;;  %v15278_v4 = vld [vmem:[#allocation2 + $0x58c] ss:$16 sps:$4 sm:$0xff]  }
  0xd7   :  { %1888 = vmatpush2.bf16.msra.mxu1 %v15183_v5  ;;  %1848 = vmatprep.subr.bf16.mxu0 %v15188_v6  ;;  %v15281_v5 = vld [vmem:[#allocation2 + $0x78c] ss:$16 sps:$4 sm:$0xff]   ;;  %v15276_v6 = vld [vmem:[#allocation2 + $0x588] ss:$16 sps:$4 sm:$0xff]  }
  0xd8   :  { %1889 = vmatprep.subr.bf16.mxu1 %v15191_v7  ;;  %v15279_v7 = vld [vmem:[#allocation2 + $0x788] ss:$16 sps:$4 sm:$0xff]  }
  0xda   :  { %1849 = vmatpush2.bf16.msra.mxu0 %v15186_v10  ;;  %v15284_v10 = vld [vmem:[#allocation2 + $0x56c] ss:$16 sps:$4 sm:$0xff]  }
  0xdb   :  { %1890 = vmatpush2.bf16.msra.mxu1 %v15189_v11  ;;  %1850 = vmatprep.subr.bf16.mxu0 %v15194_v12  ;;  %v15287_v11 = vld [vmem:[#allocation2 + $0x76c] ss:$16 sps:$4 sm:$0xff]   ;;  %v15282_v12 = vld [vmem:[#allocation2 + $0x568] ss:$16 sps:$4 sm:$0xff]  }
  0xdc   :  { %1891 = vmatprep.subr.bf16.mxu1 %v15197_v13  ;;  %v15285_v13 = vld [vmem:[#allocation2 + $0x768] ss:$16 sps:$4 sm:$0xff]  }
  0xde   :  { %1851 = vmatpush2.bf16.msra.mxu0 %v15192_v14  ;;  %v15290_v14 = vld [vmem:[#allocation2 + $0x54c] ss:$16 sps:$4 sm:$0xff]  }
  0xdf   :  { %1892 = vmatpush2.bf16.msra.mxu1 %v15195_v15  ;;  %1852 = vmatprep.subr.bf16.mxu0 %v15200_v16  ;;  %v15293_v15 = vld [vmem:[#allocation2 + $0x74c] ss:$16 sps:$4 sm:$0xff]   ;;  %v15288_v16 = vld [vmem:[#allocation2 + $0x548] ss:$16 sps:$4 sm:$0xff]  }
  0xe0   :  { %1893 = vmatprep.subr.bf16.mxu1 %v15203_v17  ;;  %v15291_v17 = vld [vmem:[#allocation2 + $0x748] ss:$16 sps:$4 sm:$0xff]  }
  0xe2   :  { %1853 = vmatpush2.bf16.msra.mxu0 %v15198_v18  ;;  %v15296_v18 = vld [vmem:[#allocation2 + $0x52c] ss:$16 sps:$4 sm:$0xff]  }
  0xe3   :  { %1894 = vmatpush2.bf16.msra.mxu1 %v15201_v19  ;;  %1854 = vmatprep.subr.bf16.mxu0 %v15206_v22  ;;  %v15299_v19 = vld [vmem:[#allocation2 + $0x72c] ss:$16 sps:$4 sm:$0xff]   ;;  %v15294_v22 = vld [vmem:[#allocation2 + $0x528] ss:$16 sps:$4 sm:$0xff]  }
  0xe4   :  { %1895 = vmatprep.subr.bf16.mxu1 %v15209_v23  ;;  %v15297_v23 = vld [vmem:[#allocation2 + $0x728] ss:$16 sps:$4 sm:$0xff]  }
  0xe6   :  { %1855 = vmatpush2.bf16.msra.mxu0 %v15204_v24  ;;  %v15302_v24 = vld [vmem:[#allocation2 + $0x50c] ss:$16 sps:$4 sm:$0xff]  }
  0xe7   :  { %1896 = vmatpush2.bf16.msra.mxu1 %v15207_v25  ;;  %1906 = vmatprep.subr.bf16.mxu0 %v15212_v26  ;;  %v15305_v25 = vld [vmem:[#allocation2 + $0x70c] ss:$16 sps:$4 sm:$0xff]   ;;  %v2112_v26 = vld [vmem:[#allocation4 + $0x1c0] sm:$0xff] }
  0xe8   :  { %1947 = vmatprep.subr.bf16.mxu1 %v15215_v27  ;;  %v2116_v27 = vld [vmem:[#allocation4 + $0x1e0] sm:$0xff] }
  0xe9   :  { %1857 = vmatmul.mubr.bf16.vlgmr.msra.gmra.mxu0 %v15607_v8  ;;  %v15228_v8 = vld [vmem:[#allocation2 + $0x488] ss:$16 sps:$4 sm:$0xff]  }
  0xea   :  { %1898 = vmatmul.mubr.bf16.vlgmr.msra.gmra.mxu1 %v15609_v9  ;;  %1907 = vmatpush1.bf16.msra.mxu0 %v15210_v28  ;;  %v15231_v9 = vld [vmem:[#allocation2 + $0x688] ss:$16 sps:$4 sm:$0xff]  }
  0xeb   :  { %1948 = vmatpush1.bf16.msra.mxu1 %v15213_v29  ;;  %1908 = vmatprep.subr.bf16.mxu0 %v15218_v30  ;;  %v15300_v28 = vld [vmem:[#allocation2 + $0x508] ss:$16 sps:$4 sm:$0xff]   ;;  %v13385_v30 = vcombine.high %v2112_v26, %v2116_v27 }
  0xec   :  { %1949 = vmatprep.subr.bf16.mxu1 %v15221_v31  ;;  %1938 = vmatprep.mubr.bf16.mxu0 %v15616_v37  ;;  %v15242_v37 = vld [vmem:[#allocation2 + $0x44c] ss:$16 sps:$4 sm:$0xff]   ;;  %v15303_v29 = vld [vmem:[#allocation2 + $0x708] ss:$16 sps:$4 sm:$0xff]   ;;  %v2104_v31 = vld [vmem:[#allocation4 + $0x180] sm:$0xff] }
  0xed   :  { %1979 = vmatprep.mubr.bf16.mxu1 %v15621_v40  ;;  %v15245_v40 = vld [vmem:[#allocation2 + $0x64c] ss:$16 sps:$4 sm:$0xff]  }
  0xee   :  { %1909 = vmatpush1.bf16.msra.mxu0 %v15216_v32  ;;  %v2108_v32 = vld [vmem:[#allocation4 + $0x1a0] sm:$0xff] }
  0xef   :  { %1950 = vmatpush1.bf16.msra.mxu1 %v15219_v33  ;;  %1910 = vmatprep.subr.bf16.mxu0 %v15224_v34  ;;  %v13384_v33 = vcombine.low %v2112_v26, %v2116_v27  ;;  %v13377_v34 = vcombine.high %v2104_v31, %v2108_v32  ;;  %v2208_v27 = vld [vmem:[#allocation4 + $0x4c0] sm:$0xff] }
  0xf0   :  { %1951 = vmatprep.subr.bf16.mxu1 %v15227_v35  ;;  %v2096_v35 = vld [vmem:[#allocation4 + $0x140] sm:$0xff] }
  0xf2   :  { %1911 = vmatpush1.bf16.msra.mxu0 %v15222_v36  ;;  %v2100_v36 = vld [vmem:[#allocation4 + $0x160] sm:$0xff] }
  0xf3   :  { %1952 = vmatpush1.bf16.msra.mxu1 %v15225_v38  ;;  %1912 = vmatprep.subr.bf16.mxu0 %v15230_v39 }
  0xf4   :  { %1953 = vmatprep.subr.bf16.mxu1 %v15233_v49  ;;  %v13376_v49 = vcombine.low %v2104_v31, %v2108_v32 }
  0xf6   :  { %1913 = vmatpush1.bf16.msra.mxu0 %v15228_v8 }
  0xf7   :  { %1954 = vmatpush1.bf16.msra.mxu1 %v15231_v9  ;;  %1914 = vmatprep.subr.bf16.mxu0 %v15236_v52  ;;  %v13369_v52 = vcombine.high %v2096_v35, %v2100_v36 }
  0xf8   :  { %1955 = vmatprep.subr.bf16.mxu1 %v15239_v41  ;;  %v2088_v41 = vld [vmem:[#allocation4 + $0x100] sm:$0xff] }
  0xfa   :  { %1915 = vmatpush1.bf16.msra.mxu0 %v15234_v42  ;;  %v2092_v42 = vld [vmem:[#allocation4 + $0x120] sm:$0xff] }
  0xfb   :  { %1956 = vmatpush1.bf16.msra.mxu1 %v15237_v43  ;;  %1916 = vmatprep.subr.bf16.mxu0 %v15242_v37 }
  0xfc   :  { %1957 = vmatprep.subr.bf16.mxu1 %v15245_v40  ;;  %v13368_v40 = vcombine.low %v2096_v35, %v2100_v36  ;;  %v2200_v35 = vld [vmem:[#allocation4 + $0x480] sm:$0xff] }
  0xfd   :  { %v2204_v36 = vld [vmem:[#allocation4 + $0x4a0] sm:$0xff] }
  0xfe   :  { %1917 = vmatpush1.bf16.msra.mxu0 %v15240_v44 }
  0xff   :  { %1958 = vmatpush1.bf16.msra.mxu1 %v15243_v45  ;;  %1918 = vmatprep.subr.bf16.mxu0 %v15248_v46  ;;  %v2080_v46 = vld [vmem:[#allocation4 + $0xc0] sm:$0xff] }
 0x100   :  { %1959 = vmatprep.subr.bf16.mxu1 %v15251_v47  ;;  %v13360_v47 = vcombine.low %v2088_v41, %v2092_v42 }
 0x102   :  { %1919 = vmatpush1.bf16.msra.mxu0 %v15246_v48 }
 0x103   :  { %1960 = vmatpush1.bf16.msra.mxu1 %v15249_v50  ;;  %1920 = vmatprep.subr.bf16.mxu0 %v15254_v51  ;;  %v2072_v50 = vld [vmem:[#allocation4 + $0x80] sm:$0xff] }
 0x104   :  { %1961 = vmatprep.subr.bf16.mxu1 %v15257_v53  ;;  %v2076_v51 = vld [vmem:[#allocation4 + $0xa0] sm:$0xff] }
 0x106   :  { %1921 = vmatpush1.bf16.msra.mxu0 %v15252_v54  ;;  %v13345_v54 = vcombine.high %v2072_v50, %v2076_v51 }
 0x107   :  { %1962 = vmatpush1.bf16.msra.mxu1 %v15255_v55  ;;  %1922 = vmatprep.subr.bf16.mxu0 %v15260_v56  ;;  %v2064_v55 = vld [vmem:[#allocation4 + $0x40] sm:$0xff] }
 0x108   :  { %1963 = vmatprep.subr.bf16.mxu1 %v15263_v57  ;;  %v2240_v56 = vld [vmem:[#allocation4 + $0x5c0] sm:$0xff] }
 0x109   :  { %v2244_v57 = vld [vmem:[#allocation4 + $0x5e0] sm:$0xff] }
 0x10a   :  { %1923 = vmatpush2.bf16.msra.mxu0 %v15258_v58  ;;  %v2068_v58 = vld [vmem:[#allocation4 + $0x60] sm:$0xff] }
 0x10b   :  { %1964 = vmatpush2.bf16.msra.mxu1 %v15261_v59  ;;  %1924 = vmatprep.subr.bf16.mxu0 %v15266_v60  ;;  %v13512_v59 = vcombine.low %v2240_v56, %v2244_v57  ;;  %v13513_v60 = vcombine.high %v2240_v56, %v2244_v57 }
 0x10c   :  { %1965 = vmatprep.subr.bf16.mxu1 %v15269_v61  ;;  %v13344_v61 = vcombine.low %v2072_v50, %v2076_v51  ;;  %v2184_v50 = vld [vmem:[#allocation4 + $0x400] sm:$0xff] }
 0x10d   :  { %v2188_v51 = vld [vmem:[#allocation4 + $0x420] sm:$0xff] }
 0x10e   :  { %1925 = vmatpush2.bf16.msra.mxu0 %v15264_v62  ;;  %v13337_v62 = vcombine.high %v2064_v55, %v2068_v58  ;;  %v13456_v56 = vcombine.low %v2184_v50, %v2188_v51  ;;  %v13457_v57 = vcombine.high %v2184_v50, %v2188_v51  ;;  %v15690_v51 = vld [vmem:[%s19275_s4] sm:$0xf] }
 0x10f   :  { %1966 = vmatpush2.bf16.msra.mxu1 %v15267_v63  ;;  %1926 = vmatprep.subr.bf16.mxu0 %v15272_v0  ;;  %v2056_v63 = vld [vmem:[#allocation4] sm:$0xff] }
 0x110   :  { %1967 = vmatprep.subr.bf16.mxu1 %v15275_v1  ;;  %v2232_v0 = vld [vmem:[#allocation4 + $0x580] sm:$0xff] }
 0x111   :  { %v2236_v1 = vld [vmem:[#allocation4 + $0x5a0] sm:$0xff] }
 0x112   :  { %1927 = vmatpush2.bf16.msra.mxu0 %v15270_v2  ;;  %v2060_v2 = vld [vmem:[#allocation4 + $0x20] sm:$0xff] }
 0x113   :  { %1968 = vmatpush2.bf16.msra.mxu1 %v15273_v3  ;;  %1928 = vmatprep.subr.bf16.mxu0 %v15278_v4  ;;  %v13504_v3 = vcombine.low %v2232_v0, %v2236_v1  ;;  %v13505_v4 = vcombine.high %v2232_v0, %v2236_v1  ;;  %v2132_v0 = vld [vmem:[#allocation4 + $0x260] sm:$0xff] }
 0x114   :  { %1969 = vmatprep.subr.bf16.mxu1 %v15281_v5  ;;  %v13336_v5 = vcombine.low %v2064_v55, %v2068_v58  ;;  %v2140_v55 = vld [vmem:[#allocation4 + $0x2a0] sm:$0xff] }
 0x116   :  { %1929 = vmatpush2.bf16.msra.mxu0 %v15276_v6  ;;  %v13329_v6 = vcombine.high %v2056_v63, %v2060_v2 }
 0x117   :  { %1970 = vmatpush2.bf16.msra.mxu1 %v15279_v7  ;;  %1930 = vmatprep.subr.bf16.mxu0 %v15284_v10  ;;  %v2176_v7 = vld [vmem:[#allocation4 + $0x3c0] sm:$0xff] }
 0x118   :  { %1971 = vmatprep.subr.bf16.mxu1 %v15287_v11  ;;  %v2224_v10 = vld [vmem:[#allocation4 + $0x540] sm:$0xff] }
 0x119   :  { %v2228_v11 = vld [vmem:[#allocation4 + $0x560] sm:$0xff] }
 0x11a   :  { %1931 = vmatpush2.bf16.msra.mxu0 %v15282_v12  ;;  %v2180_v12 = vld [vmem:[#allocation4 + $0x3e0] sm:$0xff] }
 0x11b   :  { %1972 = vmatpush2.bf16.msra.mxu1 %v15285_v13  ;;  %1932 = vmatprep.subr.bf16.mxu0 %v15290_v14  ;;  %v13496_v13 = vcombine.low %v2224_v10, %v2228_v11  ;;  %v13497_v14 = vcombine.high %v2224_v10, %v2228_v11  ;;  %v2120_v10 = vld [vmem:[#allocation4 + $0x200] sm:$0xff] }
 0x11c   :  { %1973 = vmatprep.subr.bf16.mxu1 %v15293_v15  ;;  %v13328_v15 = vcombine.low %v2056_v63, %v2060_v2  ;;  %v2128_v63 = vld [vmem:[#allocation4 + $0x240] sm:$0xff] }
 0x11d   :  { %v2124_v11 = vld [vmem:[#allocation4 + $0x220] sm:$0xff] }
 0x11e   :  { %1933 = vmatpush2.bf16.msra.mxu0 %v15288_v16  ;;  %v13449_v16 = vcombine.high %v2176_v7, %v2180_v12 }
 0x11f   :  { %1974 = vmatpush2.bf16.msra.mxu1 %v15291_v17  ;;  %1934 = vmatprep.subr.bf16.mxu0 %v15296_v18  ;;  %v2216_v17 = vld [vmem:[#allocation4 + $0x500] sm:$0xff] }
 0x120   :  { %1975 = vmatprep.subr.bf16.mxu1 %v15299_v19  ;;  %v2220_v18 = vld [vmem:[#allocation4 + $0x520] sm:$0xff] }
 0x121   :  { %v2168_v19 = vld [vmem:[#allocation4 + $0x380] sm:$0xff] }
 0x122   :  { %1935 = vmatpush2.bf16.msra.mxu0 %v15294_v22  ;;  %v2172_v22 = vld [vmem:[#allocation4 + $0x3a0] sm:$0xff] }
 0x123   :  { %1976 = vmatpush2.bf16.msra.mxu1 %v15297_v23  ;;  %1936 = vmatprep.subr.bf16.mxu0 %v15302_v24  ;;  %v13488_v23 = vcombine.low %v2216_v17, %v2220_v18  ;;  %v13489_v24 = vcombine.high %v2216_v17, %v2220_v18  ;;  %v13441_v26 = vcombine.high %v2168_v19, %v2172_v22  ;;  %v2288_v18 = vld [vmem:[#allocation4 + $0x740] sm:$0xff] }
 0x124   :  { %1977 = vmatprep.subr.bf16.mxu1 %v15305_v25  ;;  %v13448_v25 = vcombine.low %v2176_v7, %v2180_v12  ;;  %v13393_v17 = vcombine.high %v2120_v10, %v2124_v11 }
 0x126   :  { %1937 = vmatpush2.bf16.msra.mxu0 %v15300_v28  ;;  %v2212_v28 = vld [vmem:[#allocation4 + $0x4e0] sm:$0xff] }
 0x127   :  { %1978 = vmatpush2.bf16.msra.mxu1 %v15303_v29  ;;  %3634 = vmatprep.subr.bf16.mxu0 %v13385_v30  ;;  %v2160_v29 = vld [vmem:[#allocation4 + $0x340] sm:$0xff]  ;;  %v13480_v31 = vcombine.low %v2208_v27, %v2212_v28  ;;  %v13481_v32 = vcombine.high %v2208_v27, %v2212_v28  ;;  %v13392_v28 = vcombine.low %v2120_v10, %v2124_v11 }
 0x128   :  { %3675 = vmatprep.subr.bf16.mxu1 %v13513_v60  ;;  %v2164_v30 = vld [vmem:[#allocation4 + $0x360] sm:$0xff] }
 0x129   :  { %v15643_v38 = vpop.f32.mrf.mxu0  ;;  %1939 = vmatmul.mubr.bf16.vlgmr.msra.gmra.mxu0 %v15631_v20  ;;  %v13361_v20 = vcombine.high %v2088_v41, %v2092_v42  ;;  %v13472_v41 = vcombine.low %v2200_v35, %v2204_v36  ;;  %v13473_v42 = vcombine.high %v2200_v35, %v2204_v36  ;;  %v2304_v60 = vld [vmem:[#allocation4 + $0x7c0] sm:$0xff] }
 0x12a   :  { %v15645_v39 = vpop.f32.mrf.mxu1  ;;  %1980 = vmatmul.mubr.bf16.vlgmr.msra.gmra.mxu1 %v15633_v21  ;;  %3635 = vmatpush1.bf16.msra.mxu0 %v13384_v33  ;;  %v2084_v21 = vld [vmem:[#allocation4 + $0xe0] sm:$0xff]  ;;  %v13440_v33 = vcombine.low %v2168_v19, %v2172_v22 }
 0x12b   :  { %v15649_v8 = vpop.f32.mrf.mxu0  ;;  %3636 = vmatprep.subr.bf16.mxu0 %v13377_v34  ;;  %v13353_v48 = vcombine.high %v2080_v46, %v2084_v21  ;;  %v13352_v53 = vcombine.low %v2080_v46, %v2084_v21  ;;  %3676 = vmatpush1.bf16.msra.mxu1 %v13512_v59  ;;  %v13433_v34 = vcombine.high %v2160_v29, %v2164_v30  ;;  %v2292_v19 = vld [vmem:[#allocation4 + $0x760] sm:$0xff] }
 0x12c   :  { %v15651_v9 = vpop.f32.mrf.mxu1  ;;  %3677 = vmatprep.subr.bf16.mxu1 %v13505_v4  ;;  %v13401_v4 = vcombine.high %v2128_v63, %v2132_v0  ;;  %v2272_v36 = vld [vmem:[#allocation4 + $0x6c0] sm:$0xff] }
 0x12d   :  { %v1698_v43 = vpop.f32.mrf.mxu0  ;;  %v2248_v10 = vld [vmem:[#allocation4 + $0x600] sm:$0xff] }
 0x12e   :  { %v1739_v37 = vpop.f32.mrf.mxu1  ;;  %3637 = vmatpush1.bf16.msra.mxu0 %v13376_v49  ;;  %v2152_v49 = vld [vmem:[#allocation4 + $0x300] sm:$0xff]  ;;  %v13432_v43 = vcombine.low %v2160_v29, %v2164_v30 }
 0x12f   :  { %v1699_v44 = vpop.f32.mrf.mxu0  ;;  %3638 = vmatprep.subr.bf16.mxu0 %v13369_v52  ;;  %3678 = vmatpush1.bf16.msra.mxu1 %v13504_v3  ;;  %v2156_v52 = vld [vmem:[#allocation4 + $0x320] sm:$0xff] }
 0x130   :  { %v1740_v45 = vpop.f32.mrf.mxu1  ;;  %3679 = vmatprep.subr.bf16.mxu1 %v13497_v14  ;;  %v13425_v37 = vcombine.high %v2152_v49, %v2156_v52  ;;  %v2196_v44 = vld [vmem:[#allocation4 + $0x460] sm:$0xff] }
 0x131   :  { %v2144_v45 = vld [vmem:[#allocation4 + $0x2c0] sm:$0xff] }
 0x132   :  { %3639 = vmatpush1.bf16.msra.mxu0 %v13368_v40  ;;  %v2192_v40 = vld [vmem:[#allocation4 + $0x440] sm:$0xff] }
 0x133   :  { %3640 = vmatprep.subr.bf16.mxu0 %v13361_v20  ;;  %3680 = vmatpush1.bf16.msra.mxu1 %v13496_v13  ;;  %v2148_v20 = vld [vmem:[#allocation4 + $0x2e0] sm:$0xff]  ;;  %v13464_v46 = vcombine.low %v2192_v40, %v2196_v44  ;;  %v13465_v21 = vcombine.high %v2192_v40, %v2196_v44 }
 0x134   :  { %3681 = vmatprep.subr.bf16.mxu1 %v13489_v24  ;;  %v13416_v58 = vcombine.low %v2144_v45, %v2148_v20  ;;  %v15661_v14 = vld [vmem:[%s19273_s2] sm:$0xf]  ;;  %v15670_v24 = vld [vmem:[#allocation4 + $0x1e8] sm:$0xff] }
 0x135   :  { %v2280_v30 = vld [vmem:[#allocation4 + $0x700] sm:$0xff] }
 0x136   :  { %3641 = vmatpush1.bf16.msra.mxu0 %v13360_v47  ;;  %v13424_v47 = vcombine.low %v2152_v49, %v2156_v52  ;;  %v2276_v49 = vld [vmem:[#allocation4 + $0x6e0] sm:$0xff] }
 0x137   :  { %3642 = vmatprep.subr.bf16.mxu0 %v13353_v48  ;;  %3682 = vmatpush1.bf16.msra.mxu1 %v13488_v23  ;;  %v13417_v48 = vcombine.high %v2144_v45, %v2148_v20  ;;  %v15668_v23 = vld [vmem:[#allocation4 + $0x1c8] sm:$0xff]  ;;  %v2264_v20 = vld [vmem:[#allocation4 + $0x680] sm:$0xff] }
 0x138   :  { %3683 = vmatprep.subr.bf16.mxu1 %v13481_v32  ;;  %v13387_v29 = vcombine.high %v15668_v23, %v15670_v24  ;;  %v2252_v11 = vld [vmem:[#allocation4 + $0x620] sm:$0xff] }
 0x13a   :  { %3643 = vmatpush1.bf16.msra.mxu0 %v13352_v53  ;;  %v360_v53 = vlaneseq }
 0x13b   :  { %3644 = vmatprep.subr.bf16.mxu0 %v13345_v54  ;;  %3684 = vmatpush1.bf16.msra.mxu1 %v13480_v31  ;;  %v2136_v54 = vld [vmem:[#allocation4 + $0x280] sm:$0xff] }
 0x13c   :  { %3685 = vmatprep.subr.bf16.mxu1 %v13473_v42  ;;  %v13409_v59 = vcombine.high %v2136_v54, %v2140_v55  ;;  %v13408_v3 = vcombine.low %v2136_v54, %v2140_v55  ;;  %v2284_v31 = vld [vmem:[#allocation4 + $0x720] sm:$0xff] }
 0x13e   :  { %3645 = vmatpush1.bf16.msra.mxu0 %v13344_v61  ;;  %v2308_v61 = vld [vmem:[#allocation4 + $0x7e0] sm:$0xff] }
 0x13f   :  { %3646 = vmatprep.subr.bf16.mxu0 %v13337_v62  ;;  %3686 = vmatpush1.bf16.msra.mxu1 %v13472_v41  ;;  %v15653_v62 = vshrl.u32 %v360_v53, 7  ;;  %v13576_v1 = vcombine.low %v2304_v60, %v2308_v61  ;;  %v13577_v2 = vcombine.high %v2304_v60, %v2308_v61  ;;  %v13545_v41 = vcombine.high %v2272_v36, %v2276_v49  ;;  %v2260_v60 = vld [vmem:[#allocation4 + $0x660] sm:$0xff] }
 0x140   :  { %3687 = vmatprep.subr.bf16.mxu1 %v13465_v21 }
 0x141   :  { %v15656_v7 = vsub.s32 0, %v15653_v62 }
 0x142   :  { %3647 = vmatpush1.bf16.msra.mxu0 %v13336_v5  ;;  %v2296_v5 = vld [vmem:[#allocation4 + $0x780] sm:$0xff] }
 0x143   :  { %3648 = vmatprep.subr.bf16.mxu0 %v13329_v6  ;;  %3688 = vmatpush1.bf16.msra.mxu1 %v13464_v46  ;;  %v2300_v6 = vld [vmem:[#allocation4 + $0x7a0] sm:$0xff]  ;;  %v363_v22 = vrot.slane %v15661_v14, %v15656_v7 }
 0x144   :  { %3689 = vmatprep.subr.bf16.mxu1 %v13457_v57  ;;  %v13568_v12 = vcombine.low %v2296_v5, %v2300_v6  ;;  %v13569_v13 = vcombine.high %v2296_v5, %v2300_v6  ;;  %v2268_v46 = vld [vmem:[#allocation4 + $0x6a0] sm:$0xff] }
 0x145   :  { %v1695_v32 = vadd.f32 %v15643_v38, %v363_v22  ;;  %v15683_v38 = vld [vmem:[%s19274_s3] sm:$0xf]  ;;  %v13536_v53 = vcombine.low %v2264_v20, %v2268_v46 }
 0x146   :  { %3649 = vmatpush1.bf16.msra.mxu0 %v13328_v15  ;;  %v15664_v15 = vsub.s32 1, %v15653_v62 }
 0x147   :  { %3650 = vmatprep.subr.bf16.mxu0 %v13449_v16  ;;  %3690 = vmatpush1.bf16.msra.mxu1 %v13456_v56  ;;  %v13400_v16 = vcombine.low %v2128_v63, %v2132_v0  ;;  %v1736_v52 = vadd.f32 %v15645_v39, %v1695_v32  ;;  %v2031_v0 = vrot.slane %v15690_v51, %v15656_v7  ;;  %v2101_v32 = vld [vmem:[#allocation4 + $0x168] sm:$0xff] }
 0x148   :  { %3691 = vmatprep.subr.bf16.mxu1 %v13577_v2  ;;  %v367_v27 = vrot.slane %v15661_v14, %v15664_v15  ;;  %v2009_v56 = vrot.slane %v15683_v38, %v15664_v15  ;;  %v2035_v2 = vrot.slane %v15690_v51, %v15664_v15 }
 0x14a   :  { %3651 = vmatpush2.bf16.msra.mxu0 %v13448_v25  ;;  %v13560_v25 = vcombine.low %v2288_v18, %v2292_v19  ;;  %v1697_v35 = vadd.f32 %v15649_v8, %v367_v27  ;;  %v15704_v27 = vld [vmem:[#allocation4 + $0x5e8] sm:$0xff] }
 0x14b   :  { %3652 = vmatprep.subr.bf16.mxu0 %v13441_v26  ;;  %3692 = vmatpush2.bf16.msra.mxu1 %v13576_v1  ;;  %v13561_v26 = vcombine.high %v2288_v18, %v2292_v19  ;;  %v2105_v18 = vld [vmem:[#allocation4 + $0x188] sm:$0xff] }
 0x14c   :  { %3693 = vmatprep.subr.bf16.mxu1 %v13569_v13  ;;  %v1738_v40 = vadd.f32 %v15651_v9, %v1697_v35  ;;  %v13520_v13 = vcombine.low %v2248_v10, %v2252_v11  ;;  %v2109_v19 = vld [vmem:[#allocation4 + $0x1a8] sm:$0xff] }
 0x14d   :  { %v2093_v35 = vld [vmem:[#allocation4 + $0x128] sm:$0xff] }
 0x14e   :  { %3653 = vmatpush2.bf16.msra.mxu0 %v13440_v33  ;;  %v13552_v33 = vcombine.low %v2280_v30, %v2284_v31 }
 0x14f   :  { %3654 = vmatprep.subr.bf16.mxu0 %v13433_v34  ;;  %3694 = vmatpush2.bf16.msra.mxu1 %v13568_v12  ;;  %v13553_v34 = vcombine.high %v2280_v30, %v2284_v31  ;;  %v2097_v31 = vld [vmem:[#allocation4 + $0x148] sm:$0xff] }
 0x150   :  { %3695 = vmatprep.subr.bf16.mxu1 %v13561_v26  ;;  %v15702_v26 = vld [vmem:[#allocation4 + $0x5c8] sm:$0xff] }
 0x151   :  { %v13515_v30 = vcombine.high %v15702_v26, %v15704_v27 }
 0x152   :  { %3655 = vmatpush2.bf16.msra.mxu0 %v13432_v43 }
 0x153   :  { %3656 = vmatprep.subr.bf16.mxu0 %v13425_v37  ;;  %3696 = vmatpush2.bf16.msra.mxu1 %v13560_v25  ;;  %v13544_v37 = vcombine.low %v2272_v36, %v2276_v49  ;;  %v13386_v25 = vcombine.low %v15668_v23, %v15670_v24  ;;  %v13378_v23 = vcombine.low %v2105_v18, %v2109_v19 }
 0x154   :  { %3697 = vmatprep.subr.bf16.mxu1 %v13553_v34  ;;  %v13371_v24 = vcombine.high %v2097_v31, %v2101_v32  ;;  %v2089_v34 = vld [vmem:[#allocation4 + $0x108] sm:$0xff]  ;;  %v13370_v36 = vcombine.low %v2097_v31, %v2101_v32 }
 0x155   :  { %v13363_v49 = vcombine.high %v2089_v34, %v2093_v35 }
 0x156   :  { %3657 = vmatpush2.bf16.msra.mxu0 %v13424_v47  ;;  %v13537_v47 = vcombine.high %v2264_v20, %v2268_v46  ;;  %v2069_v20 = vld [vmem:[#allocation4 + $0x68] sm:$0xff] }
 0x157   :  { %3658 = vmatprep.subr.bf16.mxu0 %v13417_v48  ;;  %3698 = vmatpush2.bf16.msra.mxu1 %v13552_v33  ;;  %v2005_v48 = vrot.slane %v15683_v38, %v15656_v7  ;;  %v13514_v33 = vcombine.low %v15702_v26, %v15704_v27 }
 0x158   :  { %3699 = vmatprep.subr.bf16.mxu1 %v13545_v41  ;;  %v2085_v41 = vld [vmem:[#allocation4 + $0xe8] sm:$0xff] }
 0x15a   :  { %3659 = vmatpush2.bf16.msra.mxu0 %v13416_v58 }
 0x15b   :  { %3660 = vmatprep.subr.bf16.mxu0 %v13409_v59  ;;  %3700 = vmatpush2.bf16.msra.mxu1 %v13544_v37  ;;  %v2256_v59 = vld [vmem:[#allocation4 + $0x640] sm:$0xff]  ;;  %v2073_v37 = vld [vmem:[#allocation4 + $0x88] sm:$0xff] }
 0x15c   :  { %3701 = vmatprep.subr.bf16.mxu1 %v13537_v47  ;;  %v2061_v47 = vld [vmem:[#allocation4 + $0x28] sm:$0xff] }
 0x15e   :  { %3661 = vmatpush2.bf16.msra.mxu0 %v13408_v3  ;;  %v13528_v3 = vcombine.low %v2256_v59, %v2260_v60 }
 0x15f   :  { %3662 = vmatprep.subr.bf16.mxu0 %v13401_v4  ;;  %3702 = vmatpush2.bf16.msra.mxu1 %v13536_v53  ;;  %v13529_v4 = vcombine.high %v2256_v59, %v2260_v60  ;;  %v2181_v53 = vld [vmem:[#allocation4 + $0x3e8] sm:$0xff] }
 0x160   :  { %v2161_v60 = vld [vmem:[#allocation4 + $0x348] sm:$0xff] }
 0x161   :  { %3703 = vmatprep.subr.bf16.mxu1 %v13529_v4 }
 0x162   :  { %3663 = vmatpush2.bf16.msra.mxu0 %v13400_v16  ;;  %v13521_v16 = vcombine.high %v2248_v10, %v2252_v11 }
 0x163   :  { %3664 = vmatprep.subr.bf16.mxu0 %v13393_v17  ;;  %3704 = vmatpush2.bf16.msra.mxu1 %v13528_v3 }
 0x164   :  { %3705 = vmatprep.subr.bf16.mxu1 %v13521_v16 }
 0x166   :  { %3665 = vmatpush2.bf16.msra.mxu0 %v13392_v28 }
 0x167   :  { %3716 = vmatprep.subr.bf16.mxu0 %v13387_v29  ;;  %v13379_v29 = vcombine.high %v2105_v18, %v2109_v19  ;;  %3706 = vmatpush2.bf16.msra.mxu1 %v13520_v13  ;;  %v2141_v13 = vld [vmem:[#allocation4 + $0x2a8] sm:$0xff] }
 0x168   :  { %3757 = vmatprep.subr.bf16.mxu1 %v13515_v30 }
 0x169   :  { %v1776_v42 = vpop.f32.mrf.mxu0 }
 0x16a   :  { %v1817_v43 = vpop.f32.mrf.mxu1  ;;  %v1777_v44 = vadd.f32 %v1776_v42, %v1736_v52  ;;  %v2081_v52 = vld [vmem:[#allocation4 + $0xc8] sm:$0xff]  ;;  %v13362_v42 = vcombine.low %v2089_v34, %v2093_v35 }
 0x16b   :  { %v1778_v8 = vpop.f32.mrf.mxu0  ;;  %v2121_v35 = vld [vmem:[#allocation4 + $0x208] sm:$0xff] }
 0x16c   :  { %v1819_v45 = vpop.f32.mrf.mxu1  ;;  %v1818_v21 = vadd.f32 %v1817_v43, %v1777_v44  ;;  %v1779_v39 = vadd.f32 %v1778_v8, %v1738_v40  ;;  %v13355_v43 = vcombine.high %v2081_v52, %v2085_v41  ;;  %v2077_v40 = vld [vmem:[#allocation4 + $0xa8] sm:$0xff]  ;;  %v13354_v44 = vcombine.low %v2081_v52, %v2085_v41 }
 0x16d   :  { %v1780_v50 = vpop.f32.mrf.mxu0  ;;  %v13347_v8 = vcombine.high %v2073_v37, %v2077_v40  ;;  %v13346_v46 = vcombine.low %v2073_v37, %v2077_v40  ;;  %v2118_v37 = vld [vmem:[#allocation4 + $0x1f0] sm:$0xff] }
 0x16e   :  { %v1821_v9 = vpop.f32.mrf.mxu1  ;;  %vm1988_vm0 = vcmp.ge.f32.partialorder %v1818_v21, 0.0  ;;  %v1992_v54 = vmul.f32 0.01, %v1818_v21  ;;  %v1820_v55 = vadd.f32 %v1819_v45, %v1779_v39  ;;  %v2065_v45 = vld [vmem:[#allocation4 + $0x48] sm:$0xff] }
 0x16f   :  { %v1781_v57 = vpop.f32.mrf.mxu0  ;;  %v2057_v39 = vld [vmem:[#allocation4 + $0x8] sm:$0xff] }
 0x170   :  { %v1822_v58 = vpop.f32.mrf.mxu1  ;;  %v1996_v61 = vsel %vm1988_vm0, %v1818_v21, %v1992_v54  ;;  %vm1989_vm1 = vcmp.ge.f32.partialorder %v1820_v55, 0.0  ;;  %v1993_v63 = vmul.f32 0.01, %v1820_v55  ;;  %v13339_v21 = vcombine.high %v2065_v45, %v2069_v20  ;;  %v2177_v9 = vld [vmem:[#allocation4 + $0x3c8] sm:$0xff] }
 0x171   :  { %v2022_v1 = vmul.f32 %v2005_v48, %v1996_v61  ;;  %v13338_v48 = vcombine.low %v2065_v45, %v2069_v20  ;;  %v13331_v50 = vcombine.high %v2057_v39, %v2061_v47  ;;  %v13330_v54 = vcombine.low %v2057_v39, %v2061_v47  ;;  %v2173_v57 = vld [vmem:[#allocation4 + $0x3a8] sm:$0xff]  ;;  %v2110_v45 = vld [vmem:[#allocation4 + $0x1b0] sm:$0xff] }
 0x172   :  { %v1997_v5 = vsel %vm1989_vm1, %v1820_v55, %v1993_v63  ;;  %v13451_v55 = vcombine.high %v2177_v9, %v2181_v53  ;;  %v13450_v58 = vcombine.low %v2177_v9, %v2181_v53  ;;  %v2165_v61 = vld [vmem:[#allocation4 + $0x368] sm:$0xff]  ;;  %v2102_v39 = vld [vmem:[#allocation4 + $0x170] sm:$0xff] }
 0x173   :  { %v2023_v6 = vmul.f32 %v2009_v56, %v1997_v5  ;;  %v2048_v12 = vadd.f32 %v2031_v0, %v2022_v1  ;;  %v2169_v56 = vld [vmem:[#allocation4 + $0x388] sm:$0xff]  ;;  %v13435_v0 = vcombine.high %v2161_v60, %v2165_v61  ;;  %v13434_v3 = vcombine.low %v2161_v60, %v2165_v61  ;;  %v2094_v9 = vld [vmem:[#allocation4 + $0x130] sm:$0xff] }
 0x174   :  { %v13443_v59 = vcombine.high %v2169_v56, %v2173_v57  ;;  %v13442_v63 = vcombine.low %v2169_v56, %v2173_v57  ;;  %v2153_v1 = vld [vmem:[#allocation4 + $0x308] sm:$0xff]  ;;  %v2086_v56 = vld [vmem:[#allocation4 + $0xf0] sm:$0xff] }
 0x175   :  { %v2049_v17 = vadd.f32 %v2035_v2, %v2023_v6  ;;  %v15706_v28 = vpack.c.bf16 %v2048_v12, %v2048_v12  ;;  %v2157_v2 = vld [vmem:[#allocation4 + $0x328] sm:$0xff]  ;;  %v2078_v60 = vld [vmem:[#allocation4 + $0xb0] sm:$0xff] }
 0x176   :  { %v13427_v4 = vcombine.high %v2153_v1, %v2157_v2  ;;  %v2145_v5 = vld [vmem:[#allocation4 + $0x2c8] sm:$0xff]  ;;  %v13426_v10 = vcombine.low %v2153_v1, %v2157_v2  ;;  %v2070_v1 = vld [vmem:[#allocation4 + $0x70] sm:$0xff] }
 0x177   :  { %v15698_v22 = vpack.c.bf16 %v2049_v17, %v2049_v17  ;;  %v2149_v6 = vld [vmem:[#allocation4 + $0x2e8] sm:$0xff] }
 0x178   :  { %v13419_v11 = vcombine.high %v2145_v5, %v2149_v6  ;;  %v2137_v12 = vld [vmem:[#allocation4 + $0x288] sm:$0xff]  ;;  %v13418_v16 = vcombine.low %v2145_v5, %v2149_v6  ;;  %v2062_v5 = vld [vmem:[#allocation4 + $0x30] sm:$0xff] }
 0x179   :  { %3666 = vmatprep.mubr.bf16.mxu0 %v15698_v22  ;;  %v13411_v17 = vcombine.high %v2137_v12, %v2141_v13  ;;  %v13410_v32 = vcombine.low %v2137_v12, %v2141_v13  ;;  %v2182_v12 = vld [vmem:[#allocation4 + $0x3f0] sm:$0xff] }
 0x17a   :  { %3667 = vmatmul.mubr.bf16.vlgmr.msra.gmra.mxu0 %v15706_v28 }
 0x17b   :  { %3717 = vmatpush1.bf16.msra.mxu0 %v13386_v25  ;;  %3748 = vmatprep.mubr.bf16.mxu0 %v15698_v22  ;;  %v2129_v25 = vld [vmem:[#allocation4 + $0x248] sm:$0xff] }
 0x17c   :  { %3718 = vmatprep.subr.bf16.mxu0 %v13379_v29  ;;  %v2133_v29 = vld [vmem:[#allocation4 + $0x268] sm:$0xff] }
 0x17d   :  { %v13402_v41 = vcombine.low %v2129_v25, %v2133_v29 }
 0x17f   :  { %3719 = vmatpush1.bf16.msra.mxu0 %v13378_v23  ;;  %v13403_v23 = vcombine.high %v2129_v25, %v2133_v29  ;;  %v2174_v25 = vld [vmem:[#allocation4 + $0x3b0] sm:$0xff] }
 0x180   :  { %3720 = vmatprep.subr.bf16.mxu0 %v13371_v24 }
 0x183   :  { %3721 = vmatpush1.bf16.msra.mxu0 %v13370_v36  ;;  %v2125_v36 = vld [vmem:[#allocation4 + $0x228] sm:$0xff] }
 0x184   :  { %3722 = vmatprep.subr.bf16.mxu0 %v13363_v49  ;;  %v13394_v40 = vcombine.low %v2121_v35, %v2125_v36 }
 0x187   :  { %3723 = vmatpush1.bf16.msra.mxu0 %v13362_v42  ;;  %v13395_v42 = vcombine.high %v2121_v35, %v2125_v36  ;;  %v15726_v35 = vsub.s32 2, %v15653_v62 }
 0x188   :  { %3724 = vmatprep.subr.bf16.mxu0 %v13355_v43  ;;  %v2114_v43 = vld [vmem:[#allocation4 + $0x1d0] sm:$0xff] }
 0x189   :  { %v13388_v20 = vcombine.low %v2114_v43, %v2118_v37 }
 0x18b   :  { %3725 = vmatpush1.bf16.msra.mxu0 %v13354_v44  ;;  %v13389_v44 = vcombine.high %v2114_v43, %v2118_v37  ;;  %v371_v43 = vrot.slane %v15661_v14, %v15726_v35 }
 0x18c   :  { %3726 = vmatprep.subr.bf16.mxu0 %v13347_v8  ;;  %v2106_v8 = vld [vmem:[#allocation4 + $0x190] sm:$0xff] }
 0x18d   :  { %v13380_v47 = vcombine.low %v2106_v8, %v2110_v45 }
 0x18f   :  { %3727 = vmatpush1.bf16.msra.mxu0 %v13346_v46  ;;  %v13381_v46 = vcombine.high %v2106_v8, %v2110_v45 }
 0x190   :  { %3728 = vmatprep.subr.bf16.mxu0 %v13339_v21  ;;  %v2098_v21 = vld [vmem:[#allocation4 + $0x150] sm:$0xff] }
 0x191   :  { %v13372_v53 = vcombine.low %v2098_v21, %v2102_v39 }
 0x193   :  { %3729 = vmatpush1.bf16.msra.mxu0 %v13338_v48  ;;  %v13373_v48 = vcombine.high %v2098_v21, %v2102_v39  ;;  %v2138_v21 = vld [vmem:[#allocation4 + $0x290] sm:$0xff] }
 0x194   :  { %3730 = vmatprep.subr.bf16.mxu0 %v13331_v50  ;;  %v2090_v50 = vld [vmem:[#allocation4 + $0x110] sm:$0xff] }
 0x195   :  { %v13364_v57 = vcombine.low %v2090_v50, %v2094_v9  ;;  %v2142_v39 = vld [vmem:[#allocation4 + $0x2b0] sm:$0xff] }
 0x197   :  { %3731 = vmatpush1.bf16.msra.mxu0 %v13330_v54  ;;  %v13365_v54 = vcombine.high %v2090_v50, %v2094_v9  ;;  %v13413_v9 = vcombine.high %v2138_v21, %v2142_v39 }
 0x198   :  { %3732 = vmatprep.subr.bf16.mxu0 %v13451_v55  ;;  %v2082_v55 = vld [vmem:[#allocation4 + $0xd0] sm:$0xff] }
 0x199   :  { %v13356_v61 = vcombine.low %v2082_v55, %v2086_v56 }
 0x19b   :  { %3733 = vmatpush2.bf16.msra.mxu0 %v13450_v58  ;;  %v13357_v58 = vcombine.high %v2082_v55, %v2086_v56  ;;  %v2130_v55 = vld [vmem:[#allocation4 + $0x250] sm:$0xff] }
 0x19c   :  { %3734 = vmatprep.subr.bf16.mxu0 %v13443_v59  ;;  %v2074_v59 = vld [vmem:[#allocation4 + $0x90] sm:$0xff] }
 0x19d   :  { %v13348_v2 = vcombine.low %v2074_v59, %v2078_v60 }
 0x19f   :  { %3735 = vmatpush2.bf16.msra.mxu0 %v13442_v63  ;;  %v13349_v63 = vcombine.high %v2074_v59, %v2078_v60  ;;  %v13412_v59 = vcombine.low %v2138_v21, %v2142_v39  ;;  %v2099_v21 = vld [vmem:[#allocation4 + $0x158] sm:$0xff] }
 0x1a0   :  { %3736 = vmatprep.subr.bf16.mxu0 %v13435_v0  ;;  %v2066_v0 = vld [vmem:[#allocation4 + $0x50] sm:$0xff]  ;;  %v2103_v39 = vld [vmem:[#allocation4 + $0x178] sm:$0xff] }
 0x1a1   :  { %v13340_v6 = vcombine.low %v2066_v0, %v2070_v1  ;;  %v13374_v26 = vcombine.low %v2099_v21, %v2103_v39 }
 0x1a3   :  { %3737 = vmatpush2.bf16.msra.mxu0 %v13434_v3  ;;  %v13341_v3 = vcombine.high %v2066_v0, %v2070_v1  ;;  %v2122_v1 = vld [vmem:[#allocation4 + $0x210] sm:$0xff] }
 0x1a4   :  { %3738 = vmatprep.subr.bf16.mxu0 %v13427_v4  ;;  %v2058_v4 = vld [vmem:[#allocation4 + $0x10] sm:$0xff] }
 0x1a5   :  { %v13332_v13 = vcombine.low %v2058_v4, %v2062_v5 }
 0x1a7   :  { %3739 = vmatpush2.bf16.msra.mxu0 %v13426_v10  ;;  %v13333_v10 = vcombine.high %v2058_v4, %v2062_v5 }
 0x1a8   :  { %3740 = vmatprep.subr.bf16.mxu0 %v13419_v11  ;;  %v2178_v11 = vld [vmem:[#allocation4 + $0x3d0] sm:$0xff] }
 0x1a9   :  { %v15715_v18 = vpop.f32.mrf.mxu0  ;;  %v13452_v29 = vcombine.low %v2178_v11, %v2182_v12 }
 0x1aa   :  { %v15717_v19 = vpop.f32.mrf.mxu1 }
 0x1ab   :  { %3741 = vmatpush2.bf16.msra.mxu0 %v13418_v16  ;;  %v15719_v30 = vpop.f32.mrf.mxu0  ;;  %v13453_v16 = vcombine.high %v2178_v11, %v2182_v12  ;;  %v2039_v11 = vrot.slane %v15690_v51, %v15726_v35 }
 0x1ac   :  { %v15721_v31 = vpop.f32.mrf.mxu1  ;;  %3742 = vmatprep.subr.bf16.mxu0 %v13411_v17  ;;  %v2170_v17 = vld [vmem:[#allocation4 + $0x390] sm:$0xff] }
 0x1ad   :  { %v1862_v24 = vpop.f32.mrf.mxu0 }
 0x1ae   :  { %v1903_v34 = vpop.f32.mrf.mxu1  ;;  %v2166_v24 = vld [vmem:[#allocation4 + $0x370] sm:$0xff] }
 0x1af   :  { %3743 = vmatpush2.bf16.msra.mxu0 %v13410_v32  ;;  %v1863_v49 = vpop.f32.mrf.mxu0  ;;  %v13445_v32 = vcombine.high %v2170_v17, %v2174_v25  ;;  %v13444_v34 = vcombine.low %v2170_v17, %v2174_v25 }
 0x1b0   :  { %v1904_v52 = vpop.f32.mrf.mxu1  ;;  %3744 = vmatprep.subr.bf16.mxu0 %v13403_v23  ;;  %v2162_v23 = vld [vmem:[#allocation4 + $0x350] sm:$0xff] }
 0x1b1   :  { %v13437_v36 = vcombine.high %v2162_v23, %v2166_v24  ;;  %v2154_v49 = vld [vmem:[#allocation4 + $0x310] sm:$0xff] }
 0x1b2   :  { %v2158_v52 = vld [vmem:[#allocation4 + $0x330] sm:$0xff] }
 0x1b3   :  { %3745 = vmatpush2.bf16.msra.mxu0 %v13402_v41  ;;  %v15729_v41 = vsub.s32 3, %v15653_v62  ;;  %v13429_v37 = vcombine.high %v2154_v49, %v2158_v52  ;;  %v13428_v45 = vcombine.low %v2154_v49, %v2158_v52  ;;  %v2233_v52 = vld [vmem:[#allocation4 + $0x588] sm:$0xff] }
 0x1b4   :  { %3746 = vmatprep.subr.bf16.mxu0 %v13395_v42  ;;  %v13436_v42 = vcombine.low %v2162_v23, %v2166_v24 }
 0x1b5   :  { %v375_v8 = vrot.slane %v15661_v14, %v15729_v41  ;;  %v2134_v14 = vld [vmem:[#allocation4 + $0x270] sm:$0xff]  ;;  %v2043_v25 = vrot.slane %v15690_v51, %v15729_v41 }
 0x1b7   :  { %3747 = vmatpush2.bf16.msra.mxu0 %v13394_v40  ;;  %v2146_v40 = vld [vmem:[#allocation4 + $0x2d0] sm:$0xff] }
 0x1b8   :  { %3798 = vmatprep.subr.bf16.mxu0 %v13389_v44  ;;  %v2150_v44 = vld [vmem:[#allocation4 + $0x2f0] sm:$0xff] }
 0x1ba   :  { %3749 = vmatmul.mubr.bf16.vlgmr.msra.gmra.mxu0 %v15706_v28 }
 0x1bb   :  { %3799 = vmatpush1.bf16.msra.mxu0 %v13388_v20  ;;  %3830 = vmatprep.mubr.bf16.mxu0 %v15698_v22  ;;  %v1859_v20 = vadd.f32 %v15715_v18, %v371_v43  ;;  %v2107_v43 = vld [vmem:[#allocation4 + $0x198] sm:$0xff] }
 0x1bc   :  { %3800 = vmatprep.subr.bf16.mxu0 %v13381_v46  ;;  %v13421_v46 = vcombine.high %v2146_v40, %v2150_v44 }
 0x1bd   :  { %v1900_v50 = vadd.f32 %v15717_v19, %v1859_v20  ;;  %v2013_v19 = vrot.slane %v15683_v38, %v15726_v35 }
 0x1bf   :  { %3801 = vmatpush1.bf16.msra.mxu0 %v13380_v47  ;;  %v1861_v47 = vadd.f32 %v15719_v30, %v375_v8  ;;  %v13405_v30 = vcombine.high %v2130_v55, %v2134_v14  ;;  %v2225_v8 = vld [vmem:[#allocation4 + $0x548] sm:$0xff] }
 0x1c0   :  { %3802 = vmatprep.subr.bf16.mxu0 %v13373_v48  ;;  %v13420_v48 = vcombine.low %v2146_v40, %v2150_v44 }
 0x1c1   :  { %v1902_v56 = vadd.f32 %v15721_v31, %v1861_v47  ;;  %v2017_v31 = vrot.slane %v15683_v38, %v15729_v41 }
 0x1c3   :  { %3803 = vmatpush1.bf16.msra.mxu0 %v13372_v53 }
 0x1c4   :  { %3804 = vmatprep.subr.bf16.mxu0 %v13365_v54 }
 0x1c7   :  { %3805 = vmatpush1.bf16.msra.mxu0 %v13364_v57 }
 0x1c8   :  { %3806 = vmatprep.subr.bf16.mxu0 %v13357_v58 }
 0x1cb   :  { %3807 = vmatpush1.bf16.msra.mxu0 %v13356_v61 }
 0x1cc   :  { %3808 = vmatprep.subr.bf16.mxu0 %v13349_v63 }
 0x1cf   :  { %3809 = vmatpush1.bf16.msra.mxu0 %v13348_v2  ;;  %v2126_v2 = vld [vmem:[#allocation4 + $0x230] sm:$0xff] }
 0x1d0   :  { %3810 = vmatprep.subr.bf16.mxu0 %v13341_v3  ;;  %v13396_v24 = vcombine.low %v2122_v1, %v2126_v2 }
 0x1d3   :  { %3811 = vmatpush1.bf16.msra.mxu0 %v13340_v6 }
 0x1d4   :  { %3812 = vmatprep.subr.bf16.mxu0 %v13333_v10  ;;  %v13404_v10 = vcombine.low %v2130_v55, %v2134_v14  ;;  %v2091_v55 = vld [vmem:[#allocation4 + $0x118] sm:$0xff] }
 0x1d5   :  { %v2095_v14 = vld [vmem:[#allocation4 + $0x138] sm:$0xff] }
 0x1d7   :  { %3813 = vmatpush1.bf16.msra.mxu0 %v13332_v13 }
 0x1d8   :  { %3814 = vmatprep.subr.bf16.mxu0 %v13453_v16  ;;  %v13397_v16 = vcombine.high %v2122_v1, %v2126_v2  ;;  %v2079_v1 = vld [vmem:[#allocation4 + $0xb8] sm:$0xff] }
 0x1db   :  { %3815 = vmatpush2.bf16.msra.mxu0 %v13452_v29  ;;  %v2115_v29 = vld [vmem:[#allocation4 + $0x1d8] sm:$0xff] }
 0x1dc   :  { %3816 = vmatprep.subr.bf16.mxu0 %v13445_v32  ;;  %v2119_v32 = vld [vmem:[#allocation4 + $0x1f8] sm:$0xff] }
 0x1dd   :  { %v13390_v44 = vcombine.low %v2115_v29, %v2119_v32 }
 0x1df   :  { %3817 = vmatpush2.bf16.msra.mxu0 %v13444_v34  ;;  %v13391_v34 = vcombine.high %v2115_v29, %v2119_v32  ;;  %v2189_v29 = vld [vmem:[#allocation4 + $0x428] sm:$0xff]  ;;  %v2059_v32 = vld [vmem:[#allocation4 + $0x18] sm:$0xff] }
 0x1e0   :  { %3818 = vmatprep.subr.bf16.mxu0 %v13437_v36 }
 0x1e3   :  { %3819 = vmatpush2.bf16.msra.mxu0 %v13436_v42  ;;  %v2237_v42 = vld [vmem:[#allocation4 + $0x5a8] sm:$0xff] }
 0x1e4   :  { %3820 = vmatprep.subr.bf16.mxu0 %v13429_v37  ;;  %v2111_v37 = vld [vmem:[#allocation4 + $0x1b8] sm:$0xff]  ;;  %v13506_v47 = vcombine.low %v2233_v52, %v2237_v42 }
 0x1e5   :  { %v13383_v20 = vcombine.high %v2107_v43, %v2111_v37 }
 0x1e7   :  { %3821 = vmatpush2.bf16.msra.mxu0 %v13428_v45  ;;  %v13507_v45 = vcombine.high %v2233_v52, %v2237_v42  ;;  %v2309_v52 = vld [vmem:[#allocation4 + $0x7e8] sm:$0xff]  ;;  %v2179_v42 = vld [vmem:[#allocation4 + $0x3d8] sm:$0xff] }
 0x1e8   :  { %3822 = vmatprep.subr.bf16.mxu0 %v13421_v46  ;;  %v2229_v46 = vld [vmem:[#allocation4 + $0x568] sm:$0xff] }
 0x1e9   :  { %v1940_v53 = vpop.f32.mrf.mxu0 }
 0x1ea   :  { %v1981_v54 = vpop.f32.mrf.mxu1  ;;  %v1941_v57 = vadd.f32 %v1940_v53, %v1900_v50  ;;  %v13499_v50 = vcombine.high %v2225_v8, %v2229_v46  ;;  %v2217_v53 = vld [vmem:[#allocation4 + $0x508] sm:$0xff] }
 0x1eb   :  { %3823 = vmatpush2.bf16.msra.mxu0 %v13420_v48  ;;  %v1942_v18 = vpop.f32.mrf.mxu0  ;;  %v13382_v48 = vcombine.low %v2107_v43, %v2111_v37  ;;  %v2183_v43 = vld [vmem:[#allocation4 + $0x3f8] sm:$0xff] }
 0x1ec   :  { %v1983_v58 = vpop.f32.mrf.mxu1  ;;  %v1982_v60 = vadd.f32 %v1981_v54, %v1941_v57  ;;  %v1943_v61 = vadd.f32 %v1942_v18, %v1902_v56  ;;  %3824 = vmatprep.subr.bf16.mxu0 %v13413_v9  ;;  %v13375_v9 = vcombine.high %v2099_v21, %v2103_v39  ;;  %v2221_v54 = vld [vmem:[#allocation4 + $0x528] sm:$0xff]  ;;  %v13498_v56 = vcombine.low %v2225_v8, %v2229_v46  ;;  %v2083_v18 = vld [vmem:[#allocation4 + $0xd8] sm:$0xff] }
 0x1ed   :  { %v1944_v63 = vpop.f32.mrf.mxu0  ;;  %v13491_v27 = vcombine.high %v2217_v53, %v2221_v54  ;;  %v2209_v57 = vld [vmem:[#allocation4 + $0x4c8] sm:$0xff]  ;;  %v2171_v21 = vld [vmem:[#allocation4 + $0x398] sm:$0xff] }
 0x1ee   :  { %v1985_v0 = vpop.f32.mrf.mxu1  ;;  %vm1990_vm2 = vcmp.ge.f32.partialorder %v1982_v60, 0.0  ;;  %v1994_v3 = vmul.f32 0.01, %v1982_v60  ;;  %v1984_v4 = vadd.f32 %v1983_v58, %v1943_v61  ;;  %v2087_v58 = vld [vmem:[#allocation4 + $0xf8] sm:$0xff]  ;;  %v2205_v63 = vld [vmem:[#allocation4 + $0x4a8] sm:$0xff] }
 0x1ef   :  { %3825 = vmatpush2.bf16.msra.mxu0 %v13412_v59  ;;  %v1945_v5 = vpop.f32.mrf.mxu0  ;;  %v13490_v59 = vcombine.low %v2217_v53, %v2221_v54  ;;  %v2075_v0 = vld [vmem:[#allocation4 + $0x98] sm:$0xff]  ;;  %v2301_v46 = vld [vmem:[#allocation4 + $0x7a8] sm:$0xff] }
 0x1f0   :  { %v1986_v6 = vpop.f32.mrf.mxu1  ;;  %v1998_v12 = vsel %vm1990_vm2, %v1982_v60, %v1994_v3  ;;  %vm1991_vm3 = vcmp.ge.f32.partialorder %v1984_v4, 0.0  ;;  %v1995_v13 = vmul.f32 0.01, %v1984_v4  ;;  %3826 = vmatprep.subr.bf16.mxu0 %v13405_v30  ;;  %v13366_v60 = vcombine.low %v2091_v55, %v2095_v14  ;;  %v2193_v5 = vld [vmem:[#allocation4 + $0x448] sm:$0xff]  ;;  %v2175_v39 = vld [vmem:[#allocation4 + $0x3b8] sm:$0xff] }
 0x1f1   :  { %v2024_v17 = vmul.f32 %v2013_v19, %v1998_v12  ;;  %v13359_v30 = vcombine.high %v2083_v18, %v2087_v58  ;;  %v2201_v19 = vld [vmem:[#allocation4 + $0x488] sm:$0xff]  ;;  %v13358_v3 = vcombine.low %v2083_v18, %v2087_v58  ;;  %v2155_v18 = vld [vmem:[#allocation4 + $0x318] sm:$0xff] }
 0x1f2   :  { %v1999_v23 = vsel %vm1991_vm3, %v1984_v4, %v1995_v13  ;;  %v13475_v4 = vcombine.high %v2201_v19, %v2205_v63  ;;  %v2197_v6 = vld [vmem:[#allocation4 + $0x468] sm:$0xff]  ;;  %v13474_v12 = vcombine.low %v2201_v19, %v2205_v63  ;;  %v13350_v13 = vcombine.low %v2075_v0, %v2079_v1  ;;  %v2159_v58 = vld [vmem:[#allocation4 + $0x338] sm:$0xff] }
 0x1f3   :  { %v2025_v38 = vmul.f32 %v2017_v31, %v1999_v23  ;;  %3827 = vmatpush2.bf16.msra.mxu0 %v13404_v10  ;;  %v2050_v36 = vadd.f32 %v2039_v11, %v2024_v17  ;;  %v13351_v31 = vcombine.high %v2075_v0, %v2079_v1  ;;  %v2067_v10 = vld [vmem:[#allocation4 + $0x58] sm:$0xff]  ;;  %v2289_v53 = vld [vmem:[#allocation4 + $0x748] sm:$0xff] }
 0x1f4   :  { %3828 = vmatprep.subr.bf16.mxu0 %v13397_v16  ;;  %v2071_v11 = vld [vmem:[#allocation4 + $0x78] sm:$0xff]  ;;  %v13467_v16 = vcombine.high %v2193_v5, %v2197_v6  ;;  %v2293_v54 = vld [vmem:[#allocation4 + $0x768] sm:$0xff] }
 0x1f5   :  { %v2051_v49 = vadd.f32 %v2043_v25, %v2025_v38  ;;  %v15749_v51 = vpack.c.bf16 %v2050_v36, %v2050_v36  ;;  %v13343_v17 = vcombine.high %v2067_v10, %v2071_v11  ;;  %v2185_v25 = vld [vmem:[#allocation4 + $0x408] sm:$0xff]  ;;  %v2063_v23 = vld [vmem:[#allocation4 + $0x38] sm:$0xff]  ;;  %v13466_v38 = vcombine.low %v2193_v5, %v2197_v6 }
 0x1f6   :  { %v13335_v36 = vcombine.high %v2059_v32, %v2063_v23  ;;  %v13458_v37 = vcombine.low %v2185_v25, %v2189_v29  ;;  %v2273_v19 = vld [vmem:[#allocation4 + $0x6c8] sm:$0xff]  ;;  %v2147_v0 = vld [vmem:[#allocation4 + $0x2d8] sm:$0xff] }
 0x1f7   :  { %3829 = vmatpush2.bf16.msra.mxu0 %v13396_v24  ;;  %v15747_v40 = vpack.c.bf16 %v2051_v49, %v2051_v49  ;;  %v13342_v24 = vcombine.low %v2067_v10, %v2071_v11  ;;  %v2305_v49 = vld [vmem:[#allocation4 + $0x7c8] sm:$0xff]  ;;  %v2151_v1 = vld [vmem:[#allocation4 + $0x2f8] sm:$0xff] }
 0x1f8   :  { %3880 = vmatprep.subr.bf16.mxu0 %v13391_v34  ;;  %v13459_v34 = vcombine.high %v2185_v25, %v2189_v29  ;;  %v13579_v8 = vcombine.high %v2305_v49, %v2309_v52  ;;  %v2277_v63 = vld [vmem:[#allocation4 + $0x6e8] sm:$0xff]  ;;  %v2139_v10 = vld [vmem:[#allocation4 + $0x298] sm:$0xff] }
 0x1f9   :  { %3707 = vmatprep.mubr.bf16.mxu1 %v15747_v40  ;;  %v2265_v5 = vld [vmem:[#allocation4 + $0x688] sm:$0xff]  ;;  %v2143_v11 = vld [vmem:[#allocation4 + $0x2b8] sm:$0xff] }
 0x1fa   :  { %3831 = vmatmul.mubr.bf16.vlgmr.msra.gmra.mxu0 %v15706_v28  ;;  %3708 = vmatmul.mubr.bf16.vlgmr.msra.gmra.mxu1 %v15749_v51  ;;  %v2269_v6 = vld [vmem:[#allocation4 + $0x6a8] sm:$0xff] }
 0x1fb   :  { %3758 = vmatpush1.bf16.msra.mxu1 %v13514_v33  ;;  %3881 = vmatpush1.bf16.msra.mxu0 %v13390_v44  ;;  %v13367_v33 = vcombine.high %v2091_v55, %v2095_v14  ;;  %v13334_v44 = vcombine.low %v2059_v32, %v2063_v23  ;;  %v2163_v55 = vld [vmem:[#allocation4 + $0x358] sm:$0xff]  ;;  %v2257_v25 = vld [vmem:[#allocation4 + $0x648] sm:$0xff] }
 0x1fc   :  { %3912 = vmatprep.mubr.bf16.mxu0 %v15698_v22  ;;  %3789 = vmatprep.mubr.bf16.mxu1 %v15747_v40  ;;  %v2213_v22 = vld [vmem:[#allocation4 + $0x4e8] sm:$0xff]  ;;  %v2167_v14 = vld [vmem:[#allocation4 + $0x378] sm:$0xff] }
 0x1fd   :  { %3759 = vmatprep.subr.bf16.mxu1 %v13507_v45  ;;  %3882 = vmatprep.subr.bf16.mxu0 %v13383_v20  ;;  %v13483_v61 = vcombine.high %v2209_v57, %v2213_v22  ;;  %v13482_v2 = vcombine.low %v2209_v57, %v2213_v22  ;;  %v13455_v45 = vcombine.high %v2179_v42, %v2183_v43  ;;  %v2297_v20 = vld [vmem:[#allocation4 + $0x788] sm:$0xff]  ;;  %v2131_v32 = vld [vmem:[#allocation4 + $0x258] sm:$0xff] }
 0x1fe   :  { %v2281_v57 = vld [vmem:[#allocation4 + $0x708] sm:$0xff]  ;;  %v2135_v23 = vld [vmem:[#allocation4 + $0x278] sm:$0xff] }
 0x1ff   :  { %3760 = vmatpush1.bf16.msra.mxu1 %v13506_v47  ;;  %3883 = vmatpush1.bf16.msra.mxu0 %v13382_v48  ;;  %v13578_v47 = vcombine.low %v2305_v49, %v2309_v52  ;;  %v13454_v48 = vcombine.low %v2179_v42, %v2183_v43  ;;  %v2285_v22 = vld [vmem:[#allocation4 + $0x728] sm:$0xff]  ;;  %v2123_v42 = vld [vmem:[#allocation4 + $0x218] sm:$0xff] }
 0x200   :  { %3761 = vmatprep.subr.bf16.mxu1 %v13499_v50  ;;  %3884 = vmatprep.subr.bf16.mxu0 %v13375_v9  ;;  %v13571_v50 = vcombine.high %v2297_v20, %v2301_v46  ;;  %v13447_v9 = vcombine.high %v2171_v21, %v2175_v39  ;;  %v2261_v29 = vld [vmem:[#allocation4 + $0x668] sm:$0xff]  ;;  %v2127_v43 = vld [vmem:[#allocation4 + $0x238] sm:$0xff] }
 0x201   :  { %v2249_v49 = vld [vmem:[#allocation4 + $0x608] sm:$0xff] }
 0x202   :  { %v2253_v52 = vld [vmem:[#allocation4 + $0x628] sm:$0xff] }
 0x203   :  { %3762 = vmatpush1.bf16.msra.mxu1 %v13498_v56  ;;  %3885 = vmatpush1.bf16.msra.mxu0 %v13374_v26  ;;  %v13570_v56 = vcombine.low %v2297_v20, %v2301_v46  ;;  %v13446_v26 = vcombine.low %v2171_v21, %v2175_v39  ;;  %v2242_v20 = vld [vmem:[#allocation4 + $0x5d0] sm:$0xff]  ;;  %v4206_v21 = vld [vmem:[%s19280_s9 + $0x380] sm:$0xff] }
 0x204   :  { %3763 = vmatprep.subr.bf16.mxu1 %v13491_v27  ;;  %3886 = vmatprep.subr.bf16.mxu0 %v13367_v33  ;;  %v13563_v27 = vcombine.high %v2289_v53, %v2293_v54  ;;  %v13439_v33 = vcombine.high %v2163_v55, %v2167_v14  ;;  %v2246_v46 = vld [vmem:[#allocation4 + $0x5f0] sm:$0xff]  ;;  %v4214_v39 = vld [vmem:[%s19280_s9 + $0x3c0] sm:$0xff] }
 0x207   :  { %3764 = vmatpush1.bf16.msra.mxu1 %v13490_v59  ;;  %3887 = vmatpush1.bf16.msra.mxu0 %v13366_v60  ;;  %v13562_v59 = vcombine.low %v2289_v53, %v2293_v54  ;;  %v13438_v60 = vcombine.low %v2163_v55, %v2167_v14  ;;  %v2234_v53 = vld [vmem:[#allocation4 + $0x590] sm:$0xff]  ;;  %v4190_v55 = vld [vmem:[%s19280_s9 + $0x300] sm:$0xff] }
 0x208   :  { %3765 = vmatprep.subr.bf16.mxu1 %v13483_v61  ;;  %3888 = vmatprep.subr.bf16.mxu0 %v13359_v30  ;;  %v13555_v61 = vcombine.high %v2281_v57, %v2285_v22  ;;  %v13431_v30 = vcombine.high %v2155_v18, %v2159_v58  ;;  %v2238_v54 = vld [vmem:[#allocation4 + $0x5b0] sm:$0xff]  ;;  %v4198_v14 = vld [vmem:[%s19280_s9 + $0x340] sm:$0xff] }
 0x20b   :  { %3766 = vmatpush1.bf16.msra.mxu1 %v13482_v2  ;;  %3889 = vmatpush1.bf16.msra.mxu0 %v13358_v3  ;;  %v13554_v2 = vcombine.low %v2281_v57, %v2285_v22  ;;  %v13430_v3 = vcombine.low %v2155_v18, %v2159_v58  ;;  %v2230_v57 = vld [vmem:[#allocation4 + $0x570] sm:$0xff]  ;;  %v13681_v22 = vcombine.high %v4190_v55, %v4198_v14  ;;  %v4174_v58 = vld [vmem:[%s19280_s9 + $0x280] sm:$0xff] }
 0x20c   :  { %3767 = vmatprep.subr.bf16.mxu1 %v13475_v4  ;;  %3890 = vmatprep.subr.bf16.mxu0 %v13351_v31  ;;  %v13547_v4 = vcombine.high %v2273_v19, %v2277_v63  ;;  %v13423_v31 = vcombine.high %v2147_v0, %v2151_v1 }
 0x20f   :  { %3768 = vmatpush1.bf16.msra.mxu1 %v13474_v12  ;;  %3891 = vmatpush1.bf16.msra.mxu0 %v13350_v13  ;;  %v13546_v12 = vcombine.low %v2273_v19, %v2277_v63  ;;  %v13422_v13 = vcombine.low %v2147_v0, %v2151_v1  ;;  %v2218_v19 = vld [vmem:[#allocation4 + $0x510] sm:$0xff] }
 0x210   :  { %3769 = vmatprep.subr.bf16.mxu1 %v13467_v16  ;;  %3892 = vmatprep.subr.bf16.mxu0 %v13343_v17  ;;  %v13539_v16 = vcombine.high %v2265_v5, %v2269_v6  ;;  %v13415_v17 = vcombine.high %v2139_v10, %v2143_v11  ;;  %v2222_v63 = vld [vmem:[#allocation4 + $0x530] sm:$0xff] }
 0x213   :  { %3770 = vmatpush1.bf16.msra.mxu1 %v13466_v38  ;;  %3893 = vmatpush1.bf16.msra.mxu0 %v13342_v24  ;;  %v13538_v38 = vcombine.low %v2265_v5, %v2269_v6  ;;  %v13414_v24 = vcombine.low %v2139_v10, %v2143_v11  ;;  %v13493_v5 = vcombine.high %v2218_v19, %v2222_v63  ;;  %v2210_v10 = vld [vmem:[#allocation4 + $0x4d0] sm:$0xff] }
 0x214   :  { %3771 = vmatprep.subr.bf16.mxu1 %v13459_v34  ;;  %3894 = vmatprep.subr.bf16.mxu0 %v13335_v36  ;;  %v13531_v34 = vcombine.high %v2257_v25, %v2261_v29  ;;  %v13407_v36 = vcombine.high %v2131_v32, %v2135_v23  ;;  %v2214_v11 = vld [vmem:[#allocation4 + $0x4f0] sm:$0xff] }
 0x217   :  { %3772 = vmatpush1.bf16.msra.mxu1 %v13458_v37  ;;  %3895 = vmatpush1.bf16.msra.mxu0 %v13334_v44  ;;  %v13530_v37 = vcombine.low %v2257_v25, %v2261_v29  ;;  %v13406_v44 = vcombine.low %v2131_v32, %v2135_v23  ;;  %v13485_v25 = vcombine.high %v2210_v10, %v2214_v11  ;;  %v2202_v32 = vld [vmem:[#allocation4 + $0x490] sm:$0xff] }
 0x218   :  { %3773 = vmatprep.subr.bf16.mxu1 %v13579_v8  ;;  %3896 = vmatprep.subr.bf16.mxu0 %v13455_v45  ;;  %v13523_v8 = vcombine.high %v2249_v49, %v2253_v52  ;;  %v13399_v45 = vcombine.high %v2123_v42, %v2127_v43  ;;  %v2206_v23 = vld [vmem:[#allocation4 + $0x4b0] sm:$0xff] }
 0x21b   :  { %3774 = vmatpush2.bf16.msra.mxu1 %v13578_v47  ;;  %3897 = vmatpush2.bf16.msra.mxu0 %v13454_v48  ;;  %v13522_v47 = vcombine.low %v2249_v49, %v2253_v52  ;;  %v13398_v48 = vcombine.low %v2123_v42, %v2127_v43  ;;  %v13477_v49 = vcombine.high %v2202_v32, %v2206_v23  ;;  %v2194_v42 = vld [vmem:[#allocation4 + $0x450] sm:$0xff] }
 0x21c   :  { %3775 = vmatprep.subr.bf16.mxu1 %v13571_v50  ;;  %3898 = vmatprep.subr.bf16.mxu0 %v13447_v9  ;;  %v13517_v50 = vcombine.high %v2242_v20, %v2246_v46  ;;  %v13697_v9 = vcombine.high %v4206_v21, %v4214_v39  ;;  %v2198_v43 = vld [vmem:[#allocation4 + $0x470] sm:$0xff] }
 0x21f   :  { %3776 = vmatpush2.bf16.msra.mxu1 %v13570_v56  ;;  %3899 = vmatpush2.bf16.msra.mxu0 %v13446_v26  ;;  %v13516_v56 = vcombine.low %v2242_v20, %v2246_v46  ;;  %v13509_v26 = vcombine.high %v2234_v53, %v2238_v54  ;;  %v13469_v20 = vcombine.high %v2194_v42, %v2198_v43 }
 0x220   :  { %3777 = vmatprep.subr.bf16.mxu1 %v13563_v27  ;;  %3900 = vmatprep.subr.bf16.mxu0 %v13439_v33  ;;  %v13696_v27 = vcombine.low %v4206_v21, %v4214_v39  ;;  %v2226_v33 = vld [vmem:[#allocation4 + $0x550] sm:$0xff] }
 0x221   :  { %v2186_v21 = vld [vmem:[#allocation4 + $0x410] sm:$0xff] }
 0x222   :  { %v2190_v39 = vld [vmem:[#allocation4 + $0x430] sm:$0xff] }
 0x223   :  { %3778 = vmatpush2.bf16.msra.mxu1 %v13562_v59  ;;  %3901 = vmatpush2.bf16.msra.mxu0 %v13438_v60  ;;  %v4182_v59 = vld [vmem:[%s19280_s9 + $0x2c0] sm:$0xff]  ;;  %v13508_v60 = vcombine.low %v2234_v53, %v2238_v54  ;;  %v13461_v53 = vcombine.high %v2186_v21, %v2190_v39 }
 0x224   :  { %3779 = vmatprep.subr.bf16.mxu1 %v13555_v61  ;;  %3902 = vmatprep.subr.bf16.mxu0 %v13431_v30  ;;  %v13501_v30 = vcombine.high %v2226_v33, %v2230_v57  ;;  %v13665_v0 = vcombine.high %v4174_v58, %v4182_v59  ;;  %v13664_v6 = vcombine.low %v4174_v58, %v4182_v59  ;;  %v2298_v58 = vld [vmem:[#allocation4 + $0x790] sm:$0xff] }
 0x225   :  { %v2302_v59 = vld [vmem:[#allocation4 + $0x7b0] sm:$0xff] }
 0x227   :  { %3780 = vmatpush2.bf16.msra.mxu1 %v13554_v2  ;;  %3903 = vmatpush2.bf16.msra.mxu0 %v13430_v3  ;;  %v4158_v2 = vld [vmem:[%s19280_s9 + $0x200] sm:$0xff] }
 0x228   :  { %3781 = vmatprep.subr.bf16.mxu1 %v13547_v4  ;;  %3904 = vmatprep.subr.bf16.mxu0 %v13423_v31  ;;  %v4166_v3 = vld [vmem:[%s19280_s9 + $0x240] sm:$0xff]  ;;  %v13500_v4 = vcombine.low %v2226_v33, %v2230_v57  ;;  %v13460_v33 = vcombine.low %v2186_v21, %v2190_v39  ;;  %v2258_v39 = vld [vmem:[#allocation4 + $0x650] sm:$0xff] }
 0x229   :  { %v13648_v29 = vcombine.low %v4158_v2, %v4166_v3 }
 0x22b   :  { %3782 = vmatpush2.bf16.msra.mxu1 %v13546_v12  ;;  %3905 = vmatpush2.bf16.msra.mxu0 %v13422_v13  ;;  %v13649_v12 = vcombine.high %v4158_v2, %v4166_v3  ;;  %v4142_v13 = vld [vmem:[%s19280_s9 + $0x180] sm:$0xff]  ;;  %v2294_v2 = vld [vmem:[#allocation4 + $0x770] sm:$0xff] }
 0x22c   :  { %3783 = vmatprep.subr.bf16.mxu1 %v13539_v16  ;;  %3906 = vmatprep.subr.bf16.mxu0 %v13415_v17  ;;  %v4150_v16 = vld [vmem:[%s19280_s9 + $0x1c0] sm:$0xff]  ;;  %v13492_v17 = vcombine.low %v2218_v19, %v2222_v63  ;;  %v13573_v63 = vcombine.high %v2298_v58, %v2302_v59 }
 0x22d   :  { %v13632_v52 = vcombine.low %v4142_v13, %v4150_v16 }
 0x22f   :  { %3784 = vmatpush2.bf16.msra.mxu1 %v13538_v38  ;;  %3907 = vmatpush2.bf16.msra.mxu0 %v13414_v24  ;;  %v13633_v38 = vcombine.high %v4142_v13, %v4150_v16  ;;  %v4126_v24 = vld [vmem:[%s19280_s9 + $0x100] sm:$0xff] }
 0x230   :  { %3785 = vmatprep.subr.bf16.mxu1 %v13531_v34  ;;  %3908 = vmatprep.subr.bf16.mxu0 %v13407_v36  ;;  %v4134_v34 = vld [vmem:[%s19280_s9 + $0x140] sm:$0xff]  ;;  %v13484_v36 = vcombine.low %v2210_v10, %v2214_v11  ;;  %v2282_v11 = vld [vmem:[#allocation4 + $0x710] sm:$0xff] }
 0x231   :  { %v13616_v46 = vcombine.low %v4126_v24, %v4134_v34  ;;  %v4286_v16 = vld [vmem:[%s19280_s9 + $0x600] sm:$0xff] }
 0x233   :  { %3786 = vmatpush2.bf16.msra.mxu1 %v13530_v37  ;;  %3909 = vmatpush2.bf16.msra.mxu0 %v13406_v44  ;;  %v13617_v37 = vcombine.high %v4126_v24, %v4134_v34  ;;  %v4110_v44 = vld [vmem:[%s19280_s9 + $0x80] sm:$0xff] }
 0x234   :  { %3787 = vmatprep.subr.bf16.mxu1 %v13523_v8  ;;  %3910 = vmatprep.subr.bf16.mxu0 %v13399_v45  ;;  %v4118_v8 = vld [vmem:[%s19280_s9 + $0xc0] sm:$0xff]  ;;  %v13476_v45 = vcombine.low %v2202_v32, %v2206_v23  ;;  %v2274_v23 = vld [vmem:[#allocation4 + $0x6d0] sm:$0xff] }
 0x235   :  { %v13600_v54 = vcombine.low %v4110_v44, %v4118_v8  ;;  %v4270_v34 = vld [vmem:[%s19280_s9 + $0x580] sm:$0xff] }
 0x237   :  { %3788 = vmatpush2.bf16.msra.mxu1 %v13522_v47  ;;  %3911 = vmatpush2.bf16.msra.mxu0 %v13398_v48  ;;  %v13601_v47 = vcombine.high %v4110_v44, %v4118_v8  ;;  %v4094_v48 = vld [vmem:[%s19280_s9] sm:$0xff] }
 0x238   :  { %3839 = vmatprep.subr.bf16.mxu1 %v13517_v50  ;;  %10322 = vmatprep.subr.bf16.mxu0 %v13697_v9  ;;  %v4102_v50 = vld [vmem:[%s19280_s9 + $0x40] sm:$0xff]  ;;  %v13468_v9 = vcombine.low %v2194_v42, %v2198_v43  ;;  %v2266_v43 = vld [vmem:[#allocation4 + $0x690] sm:$0xff] }
 0x239   :  { %v4254_v8 = vld [vmem:[%s19280_s9 + $0x500] sm:$0xff] }
 0x23a   :  { %3790 = vmatmul.mubr.bf16.vlgmr.msra.gmra.mxu1 %v15749_v51  ;;  %3913 = vmatmul.mubr.bf16.vlgmr.msra.gmra.mxu0 %v15706_v28  ;;  %v15773_v18 = vpop.f32.mrf.mxu0  ;;  %v13680_v28 = vcombine.low %v4190_v55, %v4198_v14  ;;  %v2306_v55 = vld [vmem:[#allocation4 + $0x7d0] sm:$0xff] }
 0x23b   :  { %3840 = vmatpush1.bf16.msra.mxu1 %v13516_v56  ;;  %3871 = vmatprep.mubr.bf16.mxu1 %v15747_v40  ;;  %v2310_v14 = vld [vmem:[#allocation4 + $0x7f0] sm:$0xff]  ;;  %v13585_v56 = vcombine.high %v4094_v48, %v4102_v50 }
 0x23c   :  { %v15782_v61 = vpop.f32.mrf.mxu0  ;;  %3841 = vmatprep.subr.bf16.mxu1 %v13509_v26  ;;  %10323 = vmatpush1.bf16.msra.mxu0 %v13696_v27  ;;  %v4334_v26 = vld [vmem:[%s19280_s9 + $0x780] sm:$0xff]  ;;  %v13581_v57 = vcombine.high %v2306_v55, %v2310_v14  ;;  %v13580_v19 = vcombine.low %v2306_v55, %v2310_v14  ;;  %v2250_v14 = vld [vmem:[#allocation4 + $0x610] sm:$0xff] }
 0x23d   :  { %10324 = vmatprep.subr.bf16.mxu0 %v13681_v22  ;;  %v4342_v27 = vld [vmem:[%s19280_s9 + $0x7c0] sm:$0xff]  ;;  %v13584_v22 = vcombine.low %v4094_v48, %v4102_v50 }
 0x23e   :  { %v3672_v1 = vpop.f32.mrf.mxu0  ;;  %v4238_v50 = vld [vmem:[%s19280_s9 + $0x480] sm:$0xff] }
 0x23f   :  { %3842 = vmatpush1.bf16.msra.mxu1 %v13508_v60  ;;  %v13825_v60 = vcombine.high %v4334_v26, %v4342_v27  ;;  %v2290_v1 = vld [vmem:[#allocation4 + $0x750] sm:$0xff] }
 0x240   :  { %v3673_v31 = vpop.f32.mrf.mxu0  ;;  %3843 = vmatprep.subr.bf16.mxu1 %v13501_v30  ;;  %10325 = vmatpush1.bf16.msra.mxu0 %v13680_v28  ;;  %v4318_v30 = vld [vmem:[%s19280_s9 + $0x700] sm:$0xff] }
 0x241   :  { %10326 = vmatprep.subr.bf16.mxu0 %v13665_v0  ;;  %v4326_v28 = vld [vmem:[%s19280_s9 + $0x740] sm:$0xff]  ;;  %v13824_v0 = vcombine.low %v4334_v26, %v4342_v27 }
 0x242   :  { %v13809_v3 = vcombine.high %v4318_v30, %v4326_v28  ;;  %v4310_v31 = vld [vmem:[%s19280_s9 + $0x6c0] sm:$0xff]  ;;  %v13808_v10 = vcombine.low %v4318_v30, %v4326_v28 }
 0x243   :  { %3844 = vmatpush1.bf16.msra.mxu1 %v13500_v4  ;;  %v4302_v4 = vld [vmem:[%s19280_s9 + $0x680] sm:$0xff] }
 0x244   :  { %3845 = vmatprep.subr.bf16.mxu1 %v13493_v5  ;;  %10327 = vmatpush1.bf16.msra.mxu0 %v13664_v6  ;;  %v13572_v5 = vcombine.low %v2298_v58, %v2302_v59  ;;  %v13565_v6 = vcombine.high %v2290_v1, %v2294_v2  ;;  %v13793_v13 = vcombine.high %v4302_v4, %v4310_v31  ;;  %v4222_v27 = vld [vmem:[%s19280_s9 + $0x400] sm:$0xff]  ;;  %v2243_v59 = vld [vmem:[#allocation4 + $0x5d8] sm:$0xff] }
 0x245   :  { %10328 = vmatprep.subr.bf16.mxu0 %v13649_v12  ;;  %v2286_v12 = vld [vmem:[#allocation4 + $0x730] sm:$0xff]  ;;  %v13792_v32 = vcombine.low %v4302_v4, %v4310_v31  ;;  %v2227_v4 = vld [vmem:[#allocation4 + $0x558] sm:$0xff] }
 0x246   :  { %v2231_v31 = vld [vmem:[#allocation4 + $0x578] sm:$0xff] }
 0x247   :  { %3846 = vmatpush1.bf16.msra.mxu1 %v13492_v17  ;;  %v4294_v17 = vld [vmem:[%s19280_s9 + $0x640] sm:$0xff] }
 0x248   :  { %3847 = vmatprep.subr.bf16.mxu1 %v13485_v25  ;;  %10329 = vmatpush1.bf16.msra.mxu0 %v13648_v29  ;;  %v13564_v25 = vcombine.low %v2290_v1, %v2294_v2  ;;  %v13557_v29 = vcombine.high %v2282_v11, %v2286_v12  ;;  %v13777_v24 = vcombine.high %v4286_v16, %v4294_v17  ;;  %v2239_v1 = vld [vmem:[#allocation4 + $0x5b8] sm:$0xff] }
 0x249   :  { %10330 = vmatprep.subr.bf16.mxu0 %v13633_v38  ;;  %v2278_v38 = vld [vmem:[#allocation4 + $0x6f0] sm:$0xff]  ;;  %v13776_v42 = vcombine.low %v4286_v16, %v4294_v17  ;;  %v13502_v17 = vcombine.low %v2227_v4, %v2231_v31 }
 0x24b   :  { %3848 = vmatpush1.bf16.msra.mxu1 %v13484_v36  ;;  %v4278_v36 = vld [vmem:[%s19280_s9 + $0x5c0] sm:$0xff] }
 0x24c   :  { %3849 = vmatprep.subr.bf16.mxu1 %v13477_v49  ;;  %10331 = vmatpush1.bf16.msra.mxu0 %v13632_v52  ;;  %v13556_v49 = vcombine.low %v2282_v11, %v2286_v12  ;;  %v13549_v52 = vcombine.high %v2274_v23, %v2278_v38  ;;  %v13761_v44 = vcombine.high %v4270_v34, %v4278_v36  ;;  %v2219_v12 = vld [vmem:[#allocation4 + $0x518] sm:$0xff] }
 0x24d   :  { %10332 = vmatprep.subr.bf16.mxu0 %v13617_v37  ;;  %v2270_v37 = vld [vmem:[#allocation4 + $0x6b0] sm:$0xff]  ;;  %v13760_v21 = vcombine.low %v4270_v34, %v4278_v36  ;;  %v13503_v11 = vcombine.high %v2227_v4, %v2231_v31  ;;  %v2207_v34 = vld [vmem:[#allocation4 + $0x4b8] sm:$0xff]  ;;  %v15871_v36 = vld [vmem:[%s19280_s9 + $0x1380] sm:$0xff] }
 0x24e   :  { %v2259_v4 = vld [vmem:[#allocation4 + $0x658] sm:$0xff] }
 0x24f   :  { %3850 = vmatpush1.bf16.msra.mxu1 %v13476_v45  ;;  %v4262_v45 = vld [vmem:[%s19280_s9 + $0x540] sm:$0xff]  ;;  %v2263_v31 = vld [vmem:[#allocation4 + $0x678] sm:$0xff] }
 0x250   :  { %3851 = vmatprep.subr.bf16.mxu1 %v13469_v20  ;;  %10333 = vmatpush1.bf16.msra.mxu0 %v13616_v46  ;;  %v13548_v20 = vcombine.low %v2274_v23, %v2278_v38  ;;  %v13541_v46 = vcombine.high %v2266_v43, %v2270_v37  ;;  %v13745_v48 = vcombine.high %v4254_v8, %v4262_v45  ;;  %v2215_v23 = vld [vmem:[#allocation4 + $0x4f8] sm:$0xff] }
 0x251   :  { %10334 = vmatprep.subr.bf16.mxu0 %v13601_v47  ;;  %v2262_v47 = vld [vmem:[#allocation4 + $0x670] sm:$0xff]  ;;  %v13744_v55 = vcombine.low %v4254_v8, %v4262_v45  ;;  %v2199_v8 = vld [vmem:[#allocation4 + $0x478] sm:$0xff] }
 0x253   :  { %3852 = vmatpush1.bf16.msra.mxu1 %v13468_v9  ;;  %v4246_v9 = vld [vmem:[%s19280_s9 + $0x4c0] sm:$0xff] }
 0x254   :  { %3853 = vmatprep.subr.bf16.mxu1 %v13461_v53  ;;  %10335 = vmatpush1.bf16.msra.mxu0 %v13600_v54  ;;  %v13540_v53 = vcombine.low %v2266_v43, %v2270_v37  ;;  %v13533_v54 = vcombine.high %v2258_v39, %v2262_v47  ;;  %v13729_v26 = vcombine.high %v4238_v50, %v4246_v9 }
 0x255   :  { %10336 = vmatprep.subr.bf16.mxu0 %v13585_v56  ;;  %v2254_v56 = vld [vmem:[#allocation4 + $0x630] sm:$0xff]  ;;  %v13728_v58 = vcombine.low %v4238_v50, %v4246_v9  ;;  %v2311_v50 = vld [vmem:[#allocation4 + $0x7f8] sm:$0xff] }
 0x256   :  { %v13524_v28 = vcombine.low %v2250_v14, %v2254_v56 }
 0x257   :  { %3854 = vmatpush1.bf16.msra.mxu1 %v13460_v33  ;;  %v4230_v33 = vld [vmem:[%s19280_s9 + $0x440] sm:$0xff] }
 0x258   :  { %3855 = vmatprep.subr.bf16.mxu1 %v13581_v57  ;;  %10337 = vmatpush1.bf16.msra.mxu0 %v13584_v22  ;;  %v13532_v57 = vcombine.low %v2258_v39, %v2262_v47  ;;  %v13525_v22 = vcombine.high %v2250_v14, %v2254_v56  ;;  %v13713_v30 = vcombine.high %v4222_v27, %v4230_v33 }
 0x259   :  { %10338 = vmatprep.subr.bf16.mxu0 %v13825_v60  ;;  %v2247_v60 = vld [vmem:[#allocation4 + $0x5f8] sm:$0xff] }
 0x25a   :  { %v13518_v2 = vcombine.low %v2243_v59, %v2247_v60 }
 0x25b   :  { %3856 = vmatpush2.bf16.msra.mxu1 %v13580_v19  ;;  %v13519_v19 = vcombine.high %v2243_v59, %v2247_v60 }
 0x25c   :  { %3857 = vmatprep.subr.bf16.mxu1 %v13573_v63  ;;  %10339 = vmatpush2.bf16.msra.mxu0 %v13824_v0  ;;  %v13712_v63 = vcombine.low %v4222_v27, %v4230_v33  ;;  %v2235_v0 = vld [vmem:[#allocation4 + $0x598] sm:$0xff] }
 0x25d   :  { %10340 = vmatprep.subr.bf16.mxu0 %v13809_v3  ;;  %v13511_v3 = vcombine.high %v2235_v0, %v2239_v1  ;;  %v2295_v27 = vld [vmem:[#allocation4 + $0x778] sm:$0xff] }
 0x25f   :  { %3858 = vmatpush2.bf16.msra.mxu1 %v13572_v5 }
 0x260   :  { %3859 = vmatprep.subr.bf16.mxu1 %v13565_v6  ;;  %10341 = vmatpush2.bf16.msra.mxu0 %v13808_v10  ;;  %v13510_v6 = vcombine.low %v2235_v0, %v2239_v1  ;;  %v2267_v0 = vld [vmem:[#allocation4 + $0x698] sm:$0xff] }
 0x261   :  { %10342 = vmatprep.subr.bf16.mxu0 %v13793_v13  ;;  %v2223_v13 = vld [vmem:[#allocation4 + $0x538] sm:$0xff] }
 0x262   :  { %v13494_v38 = vcombine.low %v2219_v12, %v2223_v13  ;;  %v2271_v1 = vld [vmem:[#allocation4 + $0x6b8] sm:$0xff] }
 0x263   :  { %3860 = vmatpush2.bf16.msra.mxu1 %v13564_v25 }
 0x264   :  { %3861 = vmatprep.subr.bf16.mxu1 %v13557_v29  ;;  %10343 = vmatpush2.bf16.msra.mxu0 %v13792_v32  ;;  %v13495_v29 = vcombine.high %v2219_v12, %v2223_v13  ;;  %v2211_v32 = vld [vmem:[#allocation4 + $0x4d8] sm:$0xff] }
 0x265   :  { %10344 = vmatprep.subr.bf16.mxu0 %v13777_v24  ;;  %v13487_v24 = vcombine.high %v2211_v32, %v2215_v23  ;;  %v2251_v12 = vld [vmem:[#allocation4 + $0x618] sm:$0xff] }
 0x266   :  { %v2255_v13 = vld [vmem:[#allocation4 + $0x638] sm:$0xff] }
 0x267   :  { %3862 = vmatpush2.bf16.msra.mxu1 %v13556_v49  ;;  %v15876_v49 = vld [vmem:[%s19280_s9 + $0x13c0] sm:$0xff] }
 0x268   :  { %3863 = vmatprep.subr.bf16.mxu1 %v13549_v52  ;;  %10345 = vmatpush2.bf16.msra.mxu0 %v13776_v42  ;;  %v13486_v52 = vcombine.low %v2211_v32, %v2215_v23  ;;  %v14209_v42 = vcombine.high %v15871_v36, %v15876_v49  ;;  %v14208_v37 = vcombine.low %v15871_v36, %v15876_v49  ;;  %v15891_v32 = vld [vmem:[%s19277_s6] sm:$0xff] }
 0x269   :  { %10346 = vmatprep.subr.bf16.mxu0 %v13761_v44  ;;  %v2195_v44 = vld [vmem:[#allocation4 + $0x458] sm:$0xff]  ;;  %v13526_v23 = vcombine.low %v2251_v12, %v2255_v13  ;;  %v4350_v36 = vld [vmem:[%s19280_s9 + $0x800] sm:$0xff] }
 0x26a   :  { %v13470_v39 = vcombine.low %v2195_v44, %v2199_v8  ;;  %v4358_v49 = vld [vmem:[%s19280_s9 + $0x840] sm:$0xff] }
 0x26b   :  { %3864 = vmatpush2.bf16.msra.mxu1 %v13548_v20  ;;  %v13471_v20 = vcombine.high %v2195_v44, %v2199_v8  ;;  %v15907_v8 = vld [vmem:[%s19278_s7] sm:$0xff] }
 0x26c   :  { %3865 = vmatprep.subr.bf16.mxu1 %v13541_v46  ;;  %10347 = vmatpush2.bf16.msra.mxu0 %v13760_v21  ;;  %v2187_v46 = vld [vmem:[#allocation4 + $0x418] sm:$0xff] }
 0x26d   :  { %10348 = vmatprep.subr.bf16.mxu0 %v13745_v48  ;;  %v2191_v21 = vld [vmem:[#allocation4 + $0x438] sm:$0xff] }
 0x26e   :  { %v13463_v47 = vcombine.high %v2187_v46, %v2191_v21  ;;  %v2307_v48 = vld [vmem:[#allocation4 + $0x7d8] sm:$0xff]  ;;  %v13462_v9 = vcombine.low %v2187_v46, %v2191_v21 }
 0x26f   :  { %3866 = vmatpush2.bf16.msra.mxu1 %v13540_v53  ;;  %v13583_v53 = vcombine.high %v2307_v48, %v2311_v50  ;;  %v13582_v14 = vcombine.low %v2307_v48, %v2311_v50  ;;  %v3991_v50 = vrot.slane %v15907_v8, %v15656_v7 }
 0x270   :  { %3867 = vmatprep.subr.bf16.mxu1 %v13533_v54  ;;  %10349 = vmatpush2.bf16.msra.mxu0 %v13744_v55  ;;  %v2299_v54 = vld [vmem:[#allocation4 + $0x798] sm:$0xff] }
 0x271   :  { %10350 = vmatprep.subr.bf16.mxu0 %v13729_v26  ;;  %v2303_v55 = vld [vmem:[#allocation4 + $0x7b8] sm:$0xff] }
 0x272   :  { %v13575_v56 = vcombine.high %v2299_v54, %v2303_v55  ;;  %v2291_v26 = vld [vmem:[#allocation4 + $0x758] sm:$0xff]  ;;  %v13574_v33 = vcombine.low %v2299_v54, %v2303_v55 }
 0x273   :  { %3868 = vmatpush2.bf16.msra.mxu1 %v13532_v57  ;;  %v13567_v57 = vcombine.high %v2291_v26, %v2295_v27  ;;  %v13566_v59 = vcombine.low %v2291_v26, %v2295_v27  ;;  %v3995_v26 = vrot.slane %v15907_v8, %v15664_v15 }
 0x274   :  { %3869 = vmatprep.subr.bf16.mxu1 %v13525_v22  ;;  %10351 = vmatpush2.bf16.msra.mxu0 %v13728_v58  ;;  %v2283_v22 = vld [vmem:[#allocation4 + $0x718] sm:$0xff] }
 0x275   :  { %10352 = vmatprep.subr.bf16.mxu0 %v13713_v30  ;;  %v2287_v58 = vld [vmem:[#allocation4 + $0x738] sm:$0xff] }
 0x276   :  { %v13559_v60 = vcombine.high %v2283_v22, %v2287_v58  ;;  %v2275_v30 = vld [vmem:[#allocation4 + $0x6d8] sm:$0xff] }
 0x277   :  { %3870 = vmatpush2.bf16.msra.mxu1 %v13524_v28  ;;  %v2279_v28 = vld [vmem:[#allocation4 + $0x6f8] sm:$0xff] }
 0x278   :  { %3921 = vmatprep.subr.bf16.mxu1 %v13519_v19  ;;  %10353 = vmatpush2.bf16.msra.mxu0 %v13712_v63  ;;  %v13558_v19 = vcombine.low %v2283_v22, %v2287_v58  ;;  %v13551_v63 = vcombine.high %v2275_v30, %v2279_v28 }
 0x279   :  { %10404 = vmatprep.subr.bf16.mxu0 %v14209_v42 }
 0x27a   :  { %v15862_v5 = vpop.f32.mrf.mxu0  ;;  %3872 = vmatmul.mubr.bf16.vlgmr.msra.gmra.mxu1 %v15749_v51 }
 0x27b   :  { %3922 = vmatpush1.bf16.msra.mxu1 %v13518_v2  ;;  %3953 = vmatprep.mubr.bf16.mxu1 %v15747_v40  ;;  %v2203_v40 = vld [vmem:[#allocation4 + $0x498] sm:$0xff]  ;;  %v13550_v2 = vcombine.low %v2275_v30, %v2279_v28 }
 0x27c   :  { %v15866_v10 = vpop.f32.mrf.mxu0  ;;  %3923 = vmatprep.subr.bf16.mxu1 %v13511_v3  ;;  %v13479_v43 = vcombine.high %v2203_v40, %v2207_v34  ;;  %v13478_v45 = vcombine.low %v2203_v40, %v2207_v34  ;;  %v13543_v3 = vcombine.high %v2267_v0, %v2271_v1  ;;  %v4446_v40 = vld [vmem:[%s19280_s9 + $0xb00] sm:$0xff] }
 0x27d   :  { %v4454_v34 = vld [vmem:[%s19280_s9 + $0xb40] sm:$0xff] }
 0x27e   :  { %v3754_v16 = vpop.f32.mrf.mxu0  ;;  %v13936_v48 = vcombine.low %v4446_v40, %v4454_v34 }
 0x27f   :  { %3924 = vmatpush1.bf16.msra.mxu1 %v13510_v6  ;;  %v13542_v6 = vcombine.low %v2267_v0, %v2271_v1  ;;  %v13534_v16 = vcombine.low %v2259_v4, %v2263_v31  ;;  %v4398_v0 = vld [vmem:[%s19280_s9 + $0x980] sm:$0xff] }
 0x280   :  { %v3755_v25 = vpop.f32.mrf.mxu0  ;;  %3925 = vmatprep.subr.bf16.mxu1 %v13503_v11  ;;  %v13535_v11 = vcombine.high %v2259_v4, %v2263_v31  ;;  %v4406_v1 = vld [vmem:[%s19280_s9 + $0x9c0] sm:$0xff] }
 0x281   :  { %v4462_v25 = vld [vmem:[%s19280_s9 + $0xb80] sm:$0xff] }
 0x283   :  { %3926 = vmatpush1.bf16.msra.mxu1 %v13502_v17  ;;  %v13527_v17 = vcombine.high %v2251_v12, %v2255_v13  ;;  %v4710_v12 = vld [vmem:[%s19280_s9 + $0x1340] sm:$0xff] }
 0x284   :  { %3927 = vmatprep.subr.bf16.mxu1 %v13495_v29  ;;  %v4470_v29 = vld [vmem:[%s19280_s9 + $0xbc0] sm:$0xff] }
 0x285   :  { %v13952_v42 = vcombine.low %v4462_v25, %v4470_v29  ;;  %v4382_v13 = vld [vmem:[%s19280_s9 + $0x900] sm:$0xff] }
 0x287   :  { %3928 = vmatpush1.bf16.msra.mxu1 %v13494_v38  ;;  %v13953_v38 = vcombine.high %v4462_v25, %v4470_v29  ;;  %v15963_v25 = vld [vmem:[%s19280_s9 + $0x388] sm:$0xff] }
 0x288   :  { %3929 = vmatprep.subr.bf16.mxu1 %v13487_v24  ;;  %v2317_v24 = vrot.slane %v15891_v32, %v15656_v7 }
 0x28a   :  { %v3669_v44 = vadd.f32 %v15773_v18, %v2317_v24  ;;  %v15970_v24 = vld [vmem:[%s19280_s9 + $0x3c8] sm:$0xff] }
 0x28b   :  { %3930 = vmatpush1.bf16.msra.mxu1 %v13486_v52  ;;  %v2321_v52 = vrot.slane %v15891_v32, %v15664_v15 }
 0x28c   :  { %3931 = vmatprep.subr.bf16.mxu1 %v13479_v43  ;;  %v13937_v43 = vcombine.high %v4446_v40, %v4454_v34  ;;  %v4686_v34 = vld [vmem:[%s19280_s9 + $0x1280] sm:$0xff] }
 0x28d   :  { %v3671_v18 = vadd.f32 %v15782_v61, %v2321_v52  ;;  %v4414_v61 = vld [vmem:[%s19280_s9 + $0xa00] sm:$0xff] }
 0x28e   :  { %v4694_v52 = vld [vmem:[%s19280_s9 + $0x12c0] sm:$0xff] }
 0x28f   :  { %3932 = vmatpush1.bf16.msra.mxu1 %v13478_v45  ;;  %v4430_v45 = vld [vmem:[%s19280_s9 + $0xa80] sm:$0xff] }
 0x290   :  { %3933 = vmatprep.subr.bf16.mxu1 %v13471_v20  ;;  %v4438_v20 = vld [vmem:[%s19280_s9 + $0xac0] sm:$0xff] }
 0x291   :  { %v13921_v54 = vcombine.high %v4430_v45, %v4438_v20  ;;  %v13920_v58 = vcombine.low %v4430_v45, %v4438_v20 }
 0x293   :  { %3934 = vmatpush1.bf16.msra.mxu1 %v13470_v39 }
 0x294   :  { %3935 = vmatprep.subr.bf16.mxu1 %v13463_v47  ;;  %v15922_v47 = vld [vmem:[%s19279_s8] sm:$0xff] }
 0x297   :  { %3936 = vmatpush1.bf16.msra.mxu1 %v13462_v9 }
 0x298   :  { %3937 = vmatprep.subr.bf16.mxu1 %v13583_v53 }
 0x29b   :  { %3938 = vmatpush2.bf16.msra.mxu1 %v13582_v14  ;;  %v4422_v14 = vld [vmem:[%s19280_s9 + $0xa40] sm:$0xff] }
 0x29c   :  { %3939 = vmatprep.subr.bf16.mxu1 %v13575_v56  ;;  %v4041_v56 = vrot.slane %v15922_v47, %v15656_v7  ;;  %v13904_v4 = vcombine.low %v4414_v61, %v4422_v14 }
 0x29f   :  { %3940 = vmatpush2.bf16.msra.mxu1 %v13574_v33 }
 0x2a0   :  { %3941 = vmatprep.subr.bf16.mxu1 %v13567_v57 }
 0x2a3   :  { %3942 = vmatpush2.bf16.msra.mxu1 %v13566_v59 }
 0x2a4   :  { %3943 = vmatprep.subr.bf16.mxu1 %v13559_v60  ;;  %v4045_v60 = vrot.slane %v15922_v47, %v15664_v15 }
 0x2a7   :  { %3944 = vmatpush2.bf16.msra.mxu1 %v13558_v19  ;;  %v13905_v19 = vcombine.high %v4414_v61, %v4422_v14  ;;  %v4590_v61 = vld [vmem:[%s19280_s9 + $0xf80] sm:$0xff] }
 0x2a8   :  { %3945 = vmatprep.subr.bf16.mxu1 %v13551_v63  ;;  %v4598_v14 = vld [vmem:[%s19280_s9 + $0xfc0] sm:$0xff] }
 0x2ab   :  { %3946 = vmatpush2.bf16.msra.mxu1 %v13550_v2 }
 0x2ac   :  { %3947 = vmatprep.subr.bf16.mxu1 %v13543_v3 }
 0x2af   :  { %3948 = vmatpush2.bf16.msra.mxu1 %v13542_v6  ;;  %v13889_v6 = vcombine.high %v4398_v0, %v4406_v1 }
 0x2b0   :  { %3949 = vmatprep.subr.bf16.mxu1 %v13535_v11  ;;  %v4702_v11 = vld [vmem:[%s19280_s9 + $0x1300] sm:$0xff] }
 0x2b1   :  { %v14192_v45 = vcombine.low %v4702_v11, %v4710_v12 }
 0x2b3   :  { %3950 = vmatpush2.bf16.msra.mxu1 %v13534_v16  ;;  %v4390_v16 = vld [vmem:[%s19280_s9 + $0x940] sm:$0xff] }
 0x2b4   :  { %3951 = vmatprep.subr.bf16.mxu1 %v13527_v17  ;;  %v13873_v40 = vcombine.high %v4382_v13, %v4390_v16  ;;  %v13872_v20 = vcombine.low %v4382_v13, %v4390_v16  ;;  %v4542_v13 = vld [vmem:[%s19280_s9 + $0xe00] sm:$0xff] }
 0x2b5   :  { %v4550_v16 = vld [vmem:[%s19280_s9 + $0xe40] sm:$0xff] }
 0x2b7   :  { %3952 = vmatpush2.bf16.msra.mxu1 %v13526_v23  ;;  %v13888_v23 = vcombine.low %v4398_v0, %v4406_v1  ;;  %v4630_v0 = vld [vmem:[%s19280_s9 + $0x10c0] sm:$0xff] }
 0x2b8   :  { %10363 = vmatprep.subr.bf16.mxu1 %v13953_v38  ;;  %v14193_v38 = vcombine.high %v4702_v11, %v4710_v12  ;;  %v4558_v1 = vld [vmem:[%s19280_s9 + $0xe80] sm:$0xff] }
 0x2b9   :  { %v4606_v11 = vld [vmem:[%s19280_s9 + $0x1000] sm:$0xff] }
 0x2ba   :  { %v15915_v46 = vpop.f32.mrf.mxu0  ;;  %3954 = vmatmul.mubr.bf16.vlgmr.msra.gmra.mxu1 %v15749_v51  ;;  %v3709_v21 = vpop.f32.mrf.mxu1  ;;  %v4614_v12 = vld [vmem:[%s19280_s9 + $0x1040] sm:$0xff] }
 0x2bb   :  { %v3710_v39 = vadd.f32 %v3709_v21, %v3669_v44  ;;  %10364 = vmatpush1.bf16.msra.mxu1 %v13952_v42  ;;  %v13698_v42 = vcombine.low %v15963_v25, %v15970_v24  ;;  %v4374_v44 = vld [vmem:[%s19280_s9 + $0x8c0] sm:$0xff]  ;;  %v14177_v21 = vcombine.high %v4686_v34, %v4694_v52 }
 0x2bc   :  { %v15926_v9 = vpop.f32.mrf.mxu0  ;;  %v3711_v53 = vpop.f32.mrf.mxu1  ;;  %10365 = vmatprep.subr.bf16.mxu1 %v13937_v43  ;;  %v4366_v43 = vld [vmem:[%s19280_s9 + $0x880] sm:$0xff] }
 0x2bd   :  { %vm3962_vm4 = vcmp.ge.f32.partialorder %v3710_v39, 0.0  ;;  %v3970_v51 = vmul.f32 0.01, %v3710_v39  ;;  %v3712_v55 = vadd.f32 %v3711_v53, %v3671_v18  ;;  %v13857_v18 = vcombine.high %v4366_v43, %v4374_v44 }
 0x2be   :  { %v3836_v27 = vpop.f32.mrf.mxu0  ;;  %v3713_v33 = vpop.f32.mrf.mxu1 }
 0x2bf   :  { %v3978_v57 = vsel %vm3962_vm4, %v3710_v39, %v3970_v51  ;;  %vm3963_vm5 = vcmp.ge.f32.partialorder %v3712_v55, 0.0  ;;  %v3971_v22 = vmul.f32 0.01, %v3712_v55  ;;  %10366 = vmatpush1.bf16.msra.mxu1 %v13936_v48  ;;  %v4670_v39 = vld [vmem:[%s19280_s9 + $0x1200] sm:$0xff]  ;;  %v14081_v33 = vcombine.high %v4590_v61, %v4598_v14 }
 0x2c0   :  { %v4028_v59 = vmul.f32 %v3991_v50, %v3978_v57  ;;  %v3837_v30 = vpop.f32.mrf.mxu0  ;;  %v3714_v28 = vpop.f32.mrf.mxu1  ;;  %10367 = vmatprep.subr.bf16.mxu1 %v13921_v54  ;;  %v4678_v48 = vld [vmem:[%s19280_s9 + $0x1240] sm:$0xff]  ;;  %v13856_v50 = vcombine.low %v4366_v43, %v4374_v44  ;;  %v13841_v54 = vcombine.high %v4350_v36, %v4358_v49 }
 0x2c1   :  { %v3979_v63 = vsel %vm3963_vm5, %v3712_v55, %v3971_v22  ;;  %v14161_v53 = vcombine.high %v4670_v39, %v4678_v48  ;;  %v4654_v51 = vld [vmem:[%s19280_s9 + $0x1180] sm:$0xff]  ;;  %v14080_v30 = vcombine.low %v4590_v61, %v4598_v14 }
 0x2c2   :  { %v4029_v2 = vmul.f32 %v3995_v26, %v3979_v63  ;;  %v4078_v3 = vadd.f32 %v4041_v56, %v4028_v59  ;;  %v4662_v55 = vld [vmem:[%s19280_s9 + $0x11c0] sm:$0xff]  ;;  %v14160_v56 = vcombine.low %v4670_v39, %v4678_v48  ;;  %v13840_v26 = vcombine.low %v4350_v36, %v4358_v49 }
 0x2c3   :  { %10368 = vmatpush1.bf16.msra.mxu1 %v13920_v58  ;;  %v14145_v27 = vcombine.high %v4654_v51, %v4662_v55  ;;  %v4638_v57 = vld [vmem:[%s19280_s9 + $0x1100] sm:$0xff] }
 0x2c4   :  { %v4079_v31 = vadd.f32 %v4045_v60, %v4029_v2  ;;  %10369 = vmatprep.subr.bf16.mxu1 %v13905_v19  ;;  %v15965_v29 = vpack.c.bf16 %v4078_v3, %v4078_v3  ;;  %v4646_v22 = vld [vmem:[%s19280_s9 + $0x1140] sm:$0xff]  ;;  %v14144_v60 = vcombine.low %v4654_v51, %v4662_v55 }
 0x2c5   :  { %v4574_v58 = vld [vmem:[%s19280_s9 + $0xf00] sm:$0xff]  ;;  %v14129_v28 = vcombine.high %v4638_v57, %v4646_v22  ;;  %v14128_v3 = vcombine.low %v4638_v57, %v4646_v22 }
 0x2c6   :  { %v15958_v17 = vpack.c.bf16 %v4079_v31, %v4079_v31  ;;  %v4582_v59 = vld [vmem:[%s19280_s9 + $0xf40] sm:$0xff] }
 0x2c7   :  { %10370 = vmatpush1.bf16.msra.mxu1 %v13904_v4  ;;  %v14065_v19 = vcombine.high %v4574_v58, %v4582_v59  ;;  %v4622_v63 = vld [vmem:[%s19280_s9 + $0x1080] sm:$0xff]  ;;  %v14064_v4 = vcombine.low %v4574_v58, %v4582_v59 }
 0x2c8   :  { %10354 = vmatprep.mubr.bf16.mxu0 %v15958_v17  ;;  %10371 = vmatprep.subr.bf16.mxu1 %v13889_v6  ;;  %v4566_v2 = vld [vmem:[%s19280_s9 + $0xec0] sm:$0xff]  ;;  %v14113_v31 = vcombine.high %v4622_v63, %v4630_v0 }
 0x2c9   :  { %10355 = vmatmul.mubr.bf16.vlgmr.msra.gmra.mxu0 %v15965_v29  ;;  %v14049_v6 = vcombine.high %v4558_v1, %v4566_v2  ;;  %v4854_v43 = vld [vmem:[%s19280_s9 + $0x17c0] sm:$0xff] }
 0x2ca   :  { %10405 = vmatpush1.bf16.msra.mxu0 %v14208_v37  ;;  %v14176_v37 = vcombine.low %v4686_v34, %v4694_v52  ;;  %v14033_v34 = vcombine.high %v4542_v13, %v4550_v16  ;;  %v4846_v52 = vld [vmem:[%s19280_s9 + $0x1780] sm:$0xff] }
 0x2cb   :  { %10372 = vmatpush1.bf16.msra.mxu1 %v13888_v23  ;;  %10406 = vmatprep.subr.bf16.mxu0 %v14193_v38  ;;  %v14112_v23 = vcombine.low %v4622_v63, %v4630_v0  ;;  %v14048_v38 = vcombine.low %v4558_v1, %v4566_v2  ;;  %v4526_v44 = vld [vmem:[%s19280_s9 + $0xd80] sm:$0xff] }
 0x2cc   :  { %10373 = vmatprep.subr.bf16.mxu1 %v13873_v40  ;;  %v14097_v40 = vcombine.high %v4606_v11, %v4614_v12  ;;  %v4830_v48 = vld [vmem:[%s19280_s9 + $0x1700] sm:$0xff] }
 0x2cd   :  { %v4838_v36 = vld [vmem:[%s19280_s9 + $0x1740] sm:$0xff] }
 0x2ce   :  { %10407 = vmatpush1.bf16.msra.mxu0 %v14192_v45  ;;  %v4534_v45 = vld [vmem:[%s19280_s9 + $0xdc0] sm:$0xff] }
 0x2cf   :  { %10374 = vmatpush1.bf16.msra.mxu1 %v13872_v20  ;;  %10408 = vmatprep.subr.bf16.mxu0 %v14177_v21  ;;  %v14096_v20 = vcombine.low %v4606_v11, %v4614_v12  ;;  %v14032_v21 = vcombine.low %v4542_v13, %v4550_v16  ;;  %v14017_v39 = vcombine.high %v4526_v44, %v4534_v45  ;;  %v4510_v49 = vld [vmem:[%s19280_s9 + $0xd00] sm:$0xff] }
 0x2d0   :  { %10375 = vmatprep.subr.bf16.mxu1 %v13857_v18  ;;  %v14337_v18 = vcombine.high %v4846_v52, %v4854_v43  ;;  %v4814_v55 = vld [vmem:[%s19280_s9 + $0x1680] sm:$0xff]  ;;  %v2325_v16 = vrot.slane %v15891_v32, %v15726_v35 }
 0x2d1   :  { %v4822_v61 = vld [vmem:[%s19280_s9 + $0x16c0] sm:$0xff] }
 0x2d2   :  { %10409 = vmatpush1.bf16.msra.mxu0 %v14176_v37  ;;  %v4518_v37 = vld [vmem:[%s19280_s9 + $0xd40] sm:$0xff] }
 0x2d3   :  { %10376 = vmatpush1.bf16.msra.mxu1 %v13856_v50  ;;  %10410 = vmatprep.subr.bf16.mxu0 %v14161_v53  ;;  %v14336_v50 = vcombine.low %v4846_v52, %v4854_v43  ;;  %v14016_v53 = vcombine.low %v4526_v44, %v4534_v45  ;;  %v14001_v51 = vcombine.high %v4510_v49, %v4518_v37  ;;  %v4494_v14 = vld [vmem:[%s19280_s9 + $0xc80] sm:$0xff] }
 0x2d4   :  { %10377 = vmatprep.subr.bf16.mxu1 %v13841_v54  ;;  %v14321_v54 = vcombine.high %v4830_v48, %v4838_v36  ;;  %v4798_v22 = vld [vmem:[%s19280_s9 + $0x1600] sm:$0xff]  ;;  %v3751_v43 = vadd.f32 %v15862_v5, %v2325_v16 }
 0x2d5   :  { %v4806_v58 = vld [vmem:[%s19280_s9 + $0x1640] sm:$0xff] }
 0x2d6   :  { %10411 = vmatpush1.bf16.msra.mxu0 %v14160_v56  ;;  %v4502_v56 = vld [vmem:[%s19280_s9 + $0xcc0] sm:$0xff] }
 0x2d7   :  { %10378 = vmatpush1.bf16.msra.mxu1 %v13840_v26  ;;  %10412 = vmatprep.subr.bf16.mxu0 %v14145_v27  ;;  %v14320_v26 = vcombine.low %v4830_v48, %v4838_v36  ;;  %v14000_v27 = vcombine.low %v4510_v49, %v4518_v37  ;;  %v13985_v57 = vcombine.high %v4494_v14, %v4502_v56  ;;  %v4478_v59 = vld [vmem:[%s19280_s9 + $0xc00] sm:$0xff] }
 0x2d8   :  { %10379 = vmatprep.subr.bf16.mxu1 %v14081_v33  ;;  %v14305_v33 = vcombine.high %v4814_v55, %v4822_v61  ;;  %v4782_v0 = vld [vmem:[%s19280_s9 + $0x1580] sm:$0xff]  ;;  %v3999_v48 = vrot.slane %v15907_v8, %v15726_v35 }
 0x2d9   :  { %v4790_v1 = vld [vmem:[%s19280_s9 + $0x15c0] sm:$0xff] }
 0x2da   :  { %10413 = vmatpush1.bf16.msra.mxu0 %v14144_v60  ;;  %v4486_v60 = vld [vmem:[%s19280_s9 + $0xc40] sm:$0xff] }
 0x2db   :  { %10380 = vmatpush2.bf16.msra.mxu1 %v14080_v30  ;;  %10414 = vmatprep.subr.bf16.mxu0 %v14129_v28  ;;  %v14304_v30 = vcombine.low %v4814_v55, %v4822_v61  ;;  %v13984_v28 = vcombine.low %v4494_v14, %v4502_v56  ;;  %v13969_v63 = vcombine.high %v4478_v59, %v4486_v60  ;;  %v16108_v2 = vld [vmem:[%s19280_s9 + $0x1b80] sm:$0xff] }
 0x2dc   :  { %10381 = vmatprep.subr.bf16.mxu1 %v14065_v19  ;;  %v14289_v19 = vcombine.high %v4798_v22, %v4806_v58  ;;  %v4766_v11 = vld [vmem:[%s19280_s9 + $0x1500] sm:$0xff] }
 0x2dd   :  { %v4774_v12 = vld [vmem:[%s19280_s9 + $0x1540] sm:$0xff] }
 0x2de   :  { %10415 = vmatpush1.bf16.msra.mxu0 %v14128_v3  ;;  %v16113_v3 = vld [vmem:[%s19280_s9 + $0x1bc0] sm:$0xff] }
 0x2df   :  { %10382 = vmatpush2.bf16.msra.mxu1 %v14064_v4  ;;  %10416 = vmatprep.subr.bf16.mxu0 %v14113_v31  ;;  %v14288_v4 = vcombine.low %v4798_v22, %v4806_v58  ;;  %v13968_v31 = vcombine.low %v4478_v59, %v4486_v60  ;;  %v14465_v13 = vcombine.high %v16108_v2, %v16113_v3  ;;  %v4758_v52 = vld [vmem:[%s19280_s9 + $0x14c0] sm:$0xff] }
 0x2e0   :  { %10383 = vmatprep.subr.bf16.mxu1 %v14049_v6  ;;  %v14273_v6 = vcombine.high %v4782_v0, %v4790_v1  ;;  %v4734_v5 = vld [vmem:[%s19280_s9 + $0x1400] sm:$0xff] }
 0x2e1   :  { %v4742_v37 = vld [vmem:[%s19280_s9 + $0x1440] sm:$0xff] }
 0x2e2   :  { %10417 = vmatpush1.bf16.msra.mxu0 %v14112_v23  ;;  %v14272_v23 = vcombine.low %v4782_v0, %v4790_v1  ;;  %v14224_v60 = vcombine.low %v4734_v5, %v4742_v37  ;;  %v4966_v0 = vld [vmem:[%s19280_s9 + $0x1b40] sm:$0xff] }
 0x2e3   :  { %10384 = vmatpush2.bf16.msra.mxu1 %v14048_v38  ;;  %10418 = vmatprep.subr.bf16.mxu0 %v14097_v40  ;;  %v2329_v38 = vrot.slane %v15891_v32, %v15729_v41  ;;  %v14257_v40 = vcombine.high %v4766_v11, %v4774_v12 }
 0x2e4   :  { %10385 = vmatprep.subr.bf16.mxu1 %v14033_v34  ;;  %v4750_v34 = vld [vmem:[%s19280_s9 + $0x1480] sm:$0xff] }
 0x2e5   :  { %v14240_v61 = vcombine.low %v4750_v34, %v4758_v52 }
 0x2e6   :  { %10419 = vmatpush1.bf16.msra.mxu0 %v14096_v20  ;;  %v14256_v20 = vcombine.low %v4766_v11, %v4774_v12 }
 0x2e7   :  { %10386 = vmatpush2.bf16.msra.mxu1 %v14032_v21  ;;  %10420 = vmatprep.subr.bf16.mxu0 %v14337_v18  ;;  %v3753_v21 = vadd.f32 %v15866_v10, %v2329_v38  ;;  %v4926_v38 = vld [vmem:[%s19280_s9 + $0x1a00] sm:$0xff] }
 0x2e8   :  { %10387 = vmatprep.subr.bf16.mxu1 %v14017_v39  ;;  %v14241_v39 = vcombine.high %v4750_v34, %v4758_v52 }
 0x2ea   :  { %10421 = vmatpush2.bf16.msra.mxu0 %v14336_v50 }
 0x2eb   :  { %10388 = vmatpush2.bf16.msra.mxu1 %v14016_v53  ;;  %10422 = vmatprep.subr.bf16.mxu0 %v14321_v54  ;;  %v4049_v53 = vrot.slane %v15922_v47, %v15726_v35  ;;  %v4003_v54 = vrot.slane %v15907_v8, %v15729_v41 }
 0x2ec   :  { %10389 = vmatprep.subr.bf16.mxu1 %v14001_v51 }
 0x2ee   :  { %10423 = vmatpush2.bf16.msra.mxu0 %v14320_v26  ;;  %v14225_v26 = vcombine.high %v4734_v5, %v4742_v37  ;;  %v4878_v5 = vld [vmem:[%s19280_s9 + $0x1880] sm:$0xff] }
 0x2ef   :  { %10390 = vmatpush2.bf16.msra.mxu1 %v14000_v27  ;;  %10424 = vmatprep.subr.bf16.mxu0 %v14305_v33  ;;  %v4053_v33 = vrot.slane %v15922_v47, %v15729_v41  ;;  %v4886_v37 = vld [vmem:[%s19280_s9 + $0x18c0] sm:$0xff] }
 0x2f0   :  { %10391 = vmatprep.subr.bf16.mxu1 %v13985_v57 }
 0x2f2   :  { %10425 = vmatpush2.bf16.msra.mxu0 %v14304_v30 }
 0x2f3   :  { %10392 = vmatpush2.bf16.msra.mxu1 %v13984_v28  ;;  %10426 = vmatprep.subr.bf16.mxu0 %v14289_v19  ;;  %v13699_v28 = vcombine.high %v15963_v25, %v15970_v24  ;;  %v4143_v25 = vld [vmem:[%s19280_s9 + $0x188] sm:$0xff] }
 0x2f4   :  { %10393 = vmatprep.subr.bf16.mxu1 %v13969_v63  ;;  %v4958_v63 = vld [vmem:[%s19280_s9 + $0x1b00] sm:$0xff]  ;;  %v4151_v24 = vld [vmem:[%s19280_s9 + $0x1c8] sm:$0xff] }
 0x2f5   :  { %v14449_v12 = vcombine.high %v4958_v63, %v4966_v0  ;;  %v14448_v16 = vcombine.low %v4958_v63, %v4966_v0 }
 0x2f6   :  { %10427 = vmatpush2.bf16.msra.mxu0 %v14288_v4  ;;  %v14464_v4 = vcombine.low %v16108_v2, %v16113_v3  ;;  %v4942_v2 = vld [vmem:[%s19280_s9 + $0x1a80] sm:$0xff] }
 0x2f7   :  { %10394 = vmatpush2.bf16.msra.mxu1 %v13968_v31  ;;  %10428 = vmatprep.subr.bf16.mxu0 %v14273_v6  ;;  %v16168_v31 = vld [vmem:[%s19280_s9 + $0xb88] sm:$0xff]  ;;  %v4950_v3 = vld [vmem:[%s19280_s9 + $0x1ac0] sm:$0xff] }
 0x2f8   :  { %10445 = vmatprep.subr.bf16.mxu1 %v14465_v13  ;;  %v16173_v6 = vld [vmem:[%s19280_s9 + $0xbc8] sm:$0xff]  ;;  %v14432_v34 = vcombine.low %v4942_v2, %v4950_v3 }
 0x2f9   :  { %v13954_v13 = vcombine.low %v16168_v31, %v16173_v6 }
 0x2fa   :  { %v3791_v44 = vpop.f32.mrf.mxu1  ;;  %v16134_v45 = vpop.f32.mrf.mxu0  ;;  %10429 = vmatpush2.bf16.msra.mxu0 %v14272_v23  ;;  %v14433_v23 = vcombine.high %v4942_v2, %v4950_v3  ;;  %v16248_v2 = vsub.s32 4, %v15653_v62 }
 0x2fb   :  { %v3792_v18 = vadd.f32 %v3791_v44, %v3751_v43  ;;  %10430 = vmatprep.subr.bf16.mxu0 %v14257_v40  ;;  %v4934_v40 = vld [vmem:[%s19280_s9 + $0x1a40] sm:$0xff] }
 0x2fc   :  { %v3793_v36 = vpop.f32.mrf.mxu1  ;;  %v16139_v49 = vpop.f32.mrf.mxu0  ;;  %v14417_v52 = vcombine.high %v4926_v38, %v4934_v40  ;;  %v4910_v43 = vld [vmem:[%s19280_s9 + $0x1980] sm:$0xff] }
 0x2fd   :  { %vm3964_vm6 = vcmp.ge.f32.partialorder %v3792_v18, 0.0  ;;  %v3972_v50 = vmul.f32 0.01, %v3792_v18  ;;  %v3794_v10 = vadd.f32 %v3793_v36, %v3753_v21  ;;  %v4918_v44 = vld [vmem:[%s19280_s9 + $0x19c0] sm:$0xff] }
 0x2fe   :  { %v3795_v51 = vpop.f32.mrf.mxu1  ;;  %v3918_v55 = vpop.f32.mrf.mxu0  ;;  %10431 = vmatpush2.bf16.msra.mxu0 %v14256_v20  ;;  %v14416_v20 = vcombine.low %v4926_v38, %v4934_v40  ;;  %v14401_v21 = vcombine.high %v4910_v43, %v4918_v44  ;;  %v5022_v38 = vld [vmem:[%s19280_s9 + $0x1d00] sm:$0xff] }
 0x2ff   :  { %v3980_v14 = vsel %vm3964_vm6, %v3792_v18, %v3972_v50  ;;  %vm3965_vm7 = vcmp.ge.f32.partialorder %v3794_v10, 0.0  ;;  %v3973_v56 = vmul.f32 0.01, %v3794_v10  ;;  %10432 = vmatprep.subr.bf16.mxu0 %v14241_v39  ;;  %v4894_v18 = vld [vmem:[%s19280_s9 + $0x1900] sm:$0xff]  ;;  %v14368_v51 = vcombine.low %v4878_v5, %v4886_v37 }
 0x300   :  { %v4030_v27 = vmul.f32 %v3999_v48, %v3980_v14  ;;  %v3796_v57 = vpop.f32.mrf.mxu1  ;;  %v3919_v22 = vpop.f32.mrf.mxu0  ;;  %v4902_v39 = vld [vmem:[%s19280_s9 + $0x1940] sm:$0xff]  ;;  %v14400_v48 = vcombine.low %v4910_v43, %v4918_v44 }
 0x301   :  { %v3981_v58 = vsel %vm3965_vm7, %v3794_v10, %v3973_v56  ;;  %v14385_v36 = vcombine.high %v4894_v18, %v4902_v39  ;;  %v14384_v50 = vcombine.low %v4894_v18, %v4902_v39  ;;  %v14369_v10 = vcombine.high %v4878_v5, %v4886_v37  ;;  %v5110_v14 = vld [vmem:[%s19280_s9 + $0x1fc0] sm:$0xff] }
 0x302   :  { %v4031_v59 = vmul.f32 %v4003_v54, %v3981_v58  ;;  %10433 = vmatpush2.bf16.msra.mxu0 %v14240_v61  ;;  %v4080_v30 = vadd.f32 %v4049_v53, %v4030_v27  ;;  %v4862_v53 = vld [vmem:[%s19280_s9 + $0x1800] sm:$0xff] }
 0x303   :  { %10434 = vmatprep.subr.bf16.mxu0 %v14225_v26  ;;  %v4870_v54 = vld [vmem:[%s19280_s9 + $0x1840] sm:$0xff] }
 0x304   :  { %v4081_v19 = vadd.f32 %v4053_v33, %v4031_v59  ;;  %v16175_v11 = vpack.c.bf16 %v4080_v30, %v4080_v30  ;;  %v14353_v55 = vcombine.high %v4862_v53, %v4870_v54  ;;  %v5102_v61 = vld [vmem:[%s19280_s9 + $0x1f80] sm:$0xff]  ;;  %v14352_v56 = vcombine.low %v4862_v53, %v4870_v54 }
 0x305   :  { %v14593_v26 = vcombine.high %v5102_v61, %v5110_v14  ;;  %v5086_v27 = vld [vmem:[%s19280_s9 + $0x1f00] sm:$0xff]  ;;  %v14592_v57 = vcombine.low %v5102_v61, %v5110_v14 }
 0x306   :  { %v16161_v1 = vpack.c.bf16 %v4081_v19, %v4081_v19  ;;  %10435 = vmatpush2.bf16.msra.mxu0 %v14224_v60  ;;  %v5094_v33 = vld [vmem:[%s19280_s9 + $0x1f40] sm:$0xff] }
 0x307   :  { %10486 = vmatprep.subr.bf16.mxu0 %v13699_v28  ;;  %v14577_v22 = vcombine.high %v5086_v27, %v5094_v33  ;;  %v5070_v58 = vld [vmem:[%s19280_s9 + $0x1e80] sm:$0xff]  ;;  %v14576_v60 = vcombine.low %v5086_v27, %v5094_v33 }
 0x308   :  { %10395 = vmatprep.mubr.bf16.mxu1 %v16161_v1  ;;  %v5078_v59 = vld [vmem:[%s19280_s9 + $0x1ec0] sm:$0xff] }
 0x309   :  { %10396 = vmatmul.mubr.bf16.vlgmr.msra.gmra.mxu1 %v16175_v11  ;;  %v14561_v30 = vcombine.high %v5070_v58, %v5078_v59  ;;  %v5054_v28 = vld [vmem:[%s19280_s9 + $0x1e00] sm:$0xff]  ;;  %v14560_v63 = vcombine.low %v5070_v58, %v5078_v59 }
 0x30a   :  { %10446 = vmatpush1.bf16.msra.mxu1 %v14464_v4  ;;  %v5062_v19 = vld [vmem:[%s19280_s9 + $0x1e40] sm:$0xff] }
 0x30b   :  { %10447 = vmatprep.subr.bf16.mxu1 %v14449_v12  ;;  %v14545_v0 = vcombine.high %v5054_v28, %v5062_v19  ;;  %v5038_v4 = vld [vmem:[%s19280_s9 + $0x1d80] sm:$0xff]  ;;  %v14544_v3 = vcombine.low %v5054_v28, %v5062_v19  ;;  %v13955_v28 = vcombine.high %v16168_v31, %v16173_v6  ;;  %v4423_v31 = vld [vmem:[%s19280_s9 + $0xa48] sm:$0xff] }
 0x30c   :  { %v5046_v12 = vld [vmem:[%s19280_s9 + $0x1dc0] sm:$0xff]  ;;  %v4671_v6 = vld [vmem:[%s19280_s9 + $0x1208] sm:$0xff] }
 0x30d   :  { %v5030_v40 = vld [vmem:[%s19280_s9 + $0x1d40] sm:$0xff] }
 0x30e   :  { %10448 = vmatpush1.bf16.msra.mxu1 %v14448_v16  ;;  %v16251_v16 = vsub.s32 5, %v15653_v62  ;;  %v14513_v44 = vcombine.high %v5022_v38, %v5030_v40  ;;  %v4990_v53 = vld [vmem:[%s19280_s9 + $0x1c00] sm:$0xff] }
 0x30f   :  { %10449 = vmatprep.subr.bf16.mxu1 %v14433_v23  ;;  %v14529_v23 = vcombine.high %v5038_v4, %v5046_v12 }
 0x310   :  { %v2337_v43 = vrot.slane %v15891_v32, %v16251_v16 }
 0x312   :  { %10450 = vmatpush1.bf16.msra.mxu1 %v14432_v34  ;;  %v2333_v34 = vrot.slane %v15891_v32, %v16248_v2 }
 0x313   :  { %10451 = vmatprep.subr.bf16.mxu1 %v14417_v52  ;;  %v14528_v52 = vcombine.low %v5038_v4, %v5046_v12 }
 0x314   :  { %v3833_v18 = vadd.f32 %v15915_v46, %v2333_v34  ;;  %v4998_v46 = vld [vmem:[%s19280_s9 + $0x1c40] sm:$0xff] }
 0x315   :  { %v14481_v27 = vcombine.high %v4990_v53, %v4998_v46 }
 0x316   :  { %10452 = vmatpush1.bf16.msra.mxu1 %v14416_v20  ;;  %v5006_v20 = vld [vmem:[%s19280_s9 + $0x1c80] sm:$0xff] }
 0x317   :  { %10453 = vmatprep.subr.bf16.mxu1 %v14401_v21  ;;  %v5014_v21 = vld [vmem:[%s19280_s9 + $0x1cc0] sm:$0xff] }
 0x318   :  { %v14497_v37 = vcombine.high %v5006_v20, %v5014_v21  ;;  %v14496_v14 = vcombine.low %v5006_v20, %v5014_v21  ;;  %v13635_v21 = vcombine.high %v4143_v25, %v4151_v24 }
 0x31a   :  { %10454 = vmatpush1.bf16.msra.mxu1 %v14400_v48  ;;  %v14512_v48 = vcombine.low %v5022_v38, %v5030_v40  ;;  %v4183_v38 = vld [vmem:[%s19280_s9 + $0x2c8] sm:$0xff] }
 0x31b   :  { %10455 = vmatprep.subr.bf16.mxu1 %v14385_v36  ;;  %v3835_v36 = vadd.f32 %v15926_v9, %v2337_v43  ;;  %v4057_v9 = vrot.slane %v15922_v47, %v16248_v2  ;;  %v4167_v43 = vld [vmem:[%s19280_s9 + $0x248] sm:$0xff] }
 0x31e   :  { %10456 = vmatpush1.bf16.msra.mxu1 %v14384_v50  ;;  %v4007_v50 = vrot.slane %v15907_v8, %v16248_v2 }
 0x31f   :  { %10457 = vmatprep.subr.bf16.mxu1 %v14369_v10 }
 0x322   :  { %10458 = vmatpush1.bf16.msra.mxu1 %v14368_v51 }
 0x323   :  { %10459 = vmatprep.subr.bf16.mxu1 %v14353_v55  ;;  %v4011_v55 = vrot.slane %v15907_v8, %v16251_v16 }
 0x326   :  { %10460 = vmatpush1.bf16.msra.mxu1 %v14352_v56 }
 0x327   :  { %10461 = vmatprep.subr.bf16.mxu1 %v14593_v26 }
 0x32a   :  { %10462 = vmatpush2.bf16.msra.mxu1 %v14592_v57  ;;  %v4061_v57 = vrot.slane %v15922_v47, %v16251_v16 }
 0x32b   :  { %10463 = vmatprep.subr.bf16.mxu1 %v14577_v22 }
 0x32e   :  { %10464 = vmatpush2.bf16.msra.mxu1 %v14576_v60  ;;  %v14480_v60 = vcombine.low %v4990_v53, %v4998_v46  ;;  %v4095_v53 = vld [vmem:[%s19280_s9 + $0x8] sm:$0xff] }
 0x32f   :  { %10465 = vmatprep.subr.bf16.mxu1 %v14561_v30  ;;  %v4103_v46 = vld [vmem:[%s19280_s9 + $0x48] sm:$0xff] }
 0x332   :  { %10466 = vmatpush2.bf16.msra.mxu1 %v14560_v63  ;;  %v4191_v63 = vld [vmem:[%s19280_s9 + $0x308] sm:$0xff] }
 0x333   :  { %10467 = vmatprep.subr.bf16.mxu1 %v14545_v0  ;;  %v4199_v0 = vld [vmem:[%s19280_s9 + $0x348] sm:$0xff] }
 0x334   :  { %v13682_v40 = vcombine.low %v4191_v63, %v4199_v0 }
 0x336   :  { %10468 = vmatpush2.bf16.msra.mxu1 %v14544_v3  ;;  %v13683_v3 = vcombine.high %v4191_v63, %v4199_v0  ;;  %v4271_v63 = vld [vmem:[%s19280_s9 + $0x588] sm:$0xff] }
 0x337   :  { %10469 = vmatprep.subr.bf16.mxu1 %v14529_v23  ;;  %v4175_v23 = vld [vmem:[%s19280_s9 + $0x288] sm:$0xff] }
 0x338   :  { %v13667_v34 = vcombine.high %v4175_v23, %v4183_v38  ;;  %v4279_v0 = vld [vmem:[%s19280_s9 + $0x5c8] sm:$0xff] }
 0x33a   :  { %v3873_v39 = vpop.f32.mrf.mxu1  ;;  %10470 = vmatpush2.bf16.msra.mxu1 %v14528_v52  ;;  %v4159_v52 = vld [vmem:[%s19280_s9 + $0x208] sm:$0xff] }
 0x33b   :  { %v3874_v5 = vadd.f32 %v3873_v39, %v3833_v18  ;;  %10471 = vmatprep.subr.bf16.mxu1 %v14513_v44  ;;  %v13666_v44 = vcombine.low %v4175_v23, %v4183_v38  ;;  %v13651_v20 = vcombine.high %v4159_v52, %v4167_v43  ;;  %v4127_v18 = vld [vmem:[%s19280_s9 + $0x108] sm:$0xff]  ;;  %v16373_v38 = vsub.s32 7, %v15653_v62 }
 0x33c   :  { %v3875_v10 = vpop.f32.mrf.mxu1  ;;  %v4135_v39 = vld [vmem:[%s19280_s9 + $0x148] sm:$0xff] }
 0x33d   :  { %vm3966_vm8 = vcmp.ge.f32.partialorder %v3874_v5, 0.0  ;;  %v3974_v54 = vmul.f32 0.01, %v3874_v5  ;;  %v3876_v51 = vadd.f32 %v3875_v10, %v3835_v36  ;;  %v13619_v36 = vcombine.high %v4127_v18, %v4135_v39 }
 0x33e   :  { %v3877_v61 = vpop.f32.mrf.mxu1  ;;  %10472 = vmatpush2.bf16.msra.mxu1 %v14512_v48  ;;  %v13634_v48 = vcombine.low %v4143_v25, %v4151_v24  ;;  %v4239_v25 = vld [vmem:[%s19280_s9 + $0x488] sm:$0xff] }
 0x33f   :  { %v3982_v56 = vsel %vm3966_vm8, %v3874_v5, %v3974_v54  ;;  %vm3967_vm9 = vcmp.ge.f32.partialorder %v3876_v51, 0.0  ;;  %v3975_v26 = vmul.f32 0.01, %v3876_v51  ;;  %10473 = vmatprep.subr.bf16.mxu1 %v14497_v37  ;;  %v4111_v5 = vld [vmem:[%s19280_s9 + $0x88] sm:$0xff]  ;;  %v13586_v61 = vcombine.low %v4095_v53, %v4103_v46 }
 0x340   :  { %v4032_v33 = vmul.f32 %v4007_v50, %v3982_v56  ;;  %v3878_v22 = vpop.f32.mrf.mxu1  ;;  %v4119_v37 = vld [vmem:[%s19280_s9 + $0xc8] sm:$0xff]  ;;  %v13618_v50 = vcombine.low %v4127_v18, %v4135_v39 }
 0x341   :  { %v3983_v58 = vsel %vm3967_vm9, %v3876_v51, %v3975_v26  ;;  %v13603_v10 = vcombine.high %v4111_v5, %v4119_v37  ;;  %v13602_v54 = vcombine.low %v4111_v5, %v4119_v37  ;;  %v13587_v51 = vcombine.high %v4095_v53, %v4103_v46  ;;  %v4319_v56 = vld [vmem:[%s19280_s9 + $0x708] sm:$0xff] }
 0x342   :  { %v4033_v59 = vmul.f32 %v4011_v55, %v3983_v58  ;;  %10474 = vmatpush2.bf16.msra.mxu1 %v14496_v14  ;;  %v4082_v30 = vadd.f32 %v4057_v9, %v4032_v33  ;;  %v4335_v9 = vld [vmem:[%s19280_s9 + $0x788] sm:$0xff]  ;;  %v4019_v53 = vrot.slane %v15907_v8, %v16373_v38 }
 0x343   :  { %10475 = vmatprep.subr.bf16.mxu1 %v14481_v27  ;;  %v4343_v55 = vld [vmem:[%s19280_s9 + $0x7c8] sm:$0xff] }
 0x344   :  { %v4083_v19 = vadd.f32 %v4061_v57, %v4033_v59  ;;  %v16295_v12 = vpack.c.bf16 %v4082_v30, %v4082_v30  ;;  %v13827_v14 = vcombine.high %v4335_v9, %v4343_v55  ;;  %v4327_v26 = vld [vmem:[%s19280_s9 + $0x748] sm:$0xff]  ;;  %v13826_v27 = vcombine.low %v4335_v9, %v4343_v55 }
 0x345   :  { %v13811_v33 = vcombine.high %v4319_v56, %v4327_v26  ;;  %v4303_v57 = vld [vmem:[%s19280_s9 + $0x688] sm:$0xff]  ;;  %v13810_v58 = vcombine.low %v4319_v56, %v4327_v26 }
 0x346   :  { %v16293_v4 = vpack.c.bf16 %v4083_v19, %v4083_v19  ;;  %10476 = vmatpush2.bf16.msra.mxu1 %v14480_v60  ;;  %v4311_v22 = vld [vmem:[%s19280_s9 + $0x6c8] sm:$0xff] }
 0x347   :  { %10527 = vmatprep.subr.bf16.mxu1 %v13955_v28  ;;  %v13795_v59 = vcombine.high %v4303_v57, %v4311_v22  ;;  %v4287_v60 = vld [vmem:[%s19280_s9 + $0x608] sm:$0xff]  ;;  %v13794_v28 = vcombine.low %v4303_v57, %v4311_v22 }
 0x348   :  { %10436 = vmatprep.mubr.bf16.mxu0 %v16293_v4  ;;  %v4295_v30 = vld [vmem:[%s19280_s9 + $0x648] sm:$0xff] }
 0x349   :  { %10437 = vmatmul.mubr.bf16.vlgmr.msra.gmra.mxu0 %v16295_v12  ;;  %v13779_v19 = vcombine.high %v4287_v60, %v4295_v30  ;;  %v13778_v23 = vcombine.low %v4287_v60, %v4295_v30  ;;  %v4247_v24 = vld [vmem:[%s19280_s9 + $0x4c8] sm:$0xff] }
 0x34a   :  { %10487 = vmatpush1.bf16.msra.mxu0 %v13698_v42  ;;  %10518 = vmatprep.mubr.bf16.mxu0 %v15958_v17  ;;  %v13650_v42 = vcombine.low %v4159_v52, %v4167_v43  ;;  %v4263_v52 = vld [vmem:[%s19280_s9 + $0x548] sm:$0xff] }
 0x34b   :  { %10488 = vmatprep.subr.bf16.mxu0 %v13683_v3  ;;  %v16370_v3 = vsub.s32 6, %v15653_v62  ;;  %v4223_v37 = vld [vmem:[%s19280_s9 + $0x408] sm:$0xff] }
 0x34c   :  { %v4719_v26 = vld [vmem:[%s19280_s9 + $0x1388] sm:$0xff] }
 0x34d   :  { %v2341_v43 = vrot.slane %v15891_v32, %v16370_v3  ;;  %v4455_v60 = vld [vmem:[%s19280_s9 + $0xb48] sm:$0xff] }
 0x34e   :  { %10489 = vmatpush1.bf16.msra.mxu0 %v13682_v40  ;;  %v13763_v40 = vcombine.high %v4271_v63, %v4279_v0  ;;  %v4703_v30 = vld [vmem:[%s19280_s9 + $0x1308] sm:$0xff] }
 0x34f   :  { %10490 = vmatprep.subr.bf16.mxu0 %v13667_v34  ;;  %v4255_v34 = vld [vmem:[%s19280_s9 + $0x508] sm:$0xff] }
 0x350   :  { %v13747_v62 = vcombine.high %v4255_v34, %v4263_v52  ;;  %v13746_v18 = vcombine.low %v4255_v34, %v4263_v52  ;;  %v4439_v52 = vld [vmem:[%s19280_s9 + $0xac8] sm:$0xff] }
 0x352   :  { %10491 = vmatpush1.bf16.msra.mxu0 %v13666_v44  ;;  %v13762_v44 = vcombine.low %v4271_v63, %v4279_v0 }
 0x353   :  { %10492 = vmatprep.subr.bf16.mxu0 %v13651_v20  ;;  %v2345_v20 = vrot.slane %v15891_v32, %v16373_v38  ;;  %v13731_v32 = vcombine.high %v4239_v25, %v4247_v24 }
 0x355   :  { %v3917_v39 = vadd.f32 %v16139_v49, %v2345_v20  ;;  %v4065_v49 = vrot.slane %v15922_v47, %v16370_v3 }
 0x356   :  { %10493 = vmatpush1.bf16.msra.mxu0 %v13650_v42  ;;  %v3915_v42 = vadd.f32 %v16134_v45, %v2341_v43  ;;  %v4231_v45 = vld [vmem:[%s19280_s9 + $0x448] sm:$0xff] }
 0x357   :  { %10494 = vmatprep.subr.bf16.mxu0 %v13635_v21  ;;  %v13715_v55 = vcombine.high %v4223_v37, %v4231_v45  ;;  %v13714_v57 = vcombine.low %v4223_v37, %v4231_v45  ;;  %v4687_v43 = vld [vmem:[%s19280_s9 + $0x1288] sm:$0xff] }
 0x358   :  { %v4399_v45 = vld [vmem:[%s19280_s9 + $0x988] sm:$0xff] }
 0x35a   :  { %10495 = vmatpush1.bf16.msra.mxu0 %v13634_v48 }
 0x35b   :  { %10496 = vmatprep.subr.bf16.mxu0 %v13619_v36  ;;  %v4015_v36 = vrot.slane %v15907_v8, %v16370_v3  ;;  %v4727_v8 = vld [vmem:[%s19280_s9 + $0x13c8] sm:$0xff] }
 0x35c   :  { %v14210_v63 = vcombine.low %v4719_v26, %v4727_v8 }
 0x35e   :  { %10497 = vmatpush1.bf16.msra.mxu0 %v13618_v50 }
 0x35f   :  { %10498 = vmatprep.subr.bf16.mxu0 %v13603_v10 }
 0x362   :  { %10499 = vmatpush1.bf16.msra.mxu0 %v13602_v54  ;;  %v13730_v54 = vcombine.low %v4239_v25, %v4247_v24 }
 0x363   :  { %10500 = vmatprep.subr.bf16.mxu0 %v13587_v51 }
 0x366   :  { %10501 = vmatpush1.bf16.msra.mxu0 %v13586_v61 }
 0x367   :  { %10502 = vmatprep.subr.bf16.mxu0 %v13827_v14  ;;  %v4069_v14 = vrot.slane %v15922_v47, %v16373_v38  ;;  %v4447_v47 = vld [vmem:[%s19280_s9 + $0xb08] sm:$0xff] }
 0x36a   :  { %10503 = vmatpush2.bf16.msra.mxu0 %v13826_v27 }
 0x36b   :  { %10504 = vmatprep.subr.bf16.mxu0 %v13811_v33 }
 0x36e   :  { %10505 = vmatpush2.bf16.msra.mxu0 %v13810_v58  ;;  %v14211_v58 = vcombine.high %v4719_v26, %v4727_v8 }
 0x36f   :  { %10506 = vmatprep.subr.bf16.mxu0 %v13795_v59 }
 0x372   :  { %10507 = vmatpush2.bf16.msra.mxu0 %v13794_v28  ;;  %v4711_v28 = vld [vmem:[%s19280_s9 + $0x1348] sm:$0xff] }
 0x373   :  { %10508 = vmatprep.subr.bf16.mxu0 %v13779_v19  ;;  %v14195_v34 = vcombine.high %v4703_v30, %v4711_v28  ;;  %v14194_v25 = vcombine.low %v4703_v30, %v4711_v28  ;;  %v4351_v28 = vld [vmem:[%s19280_s9 + $0x808] sm:$0xff] }
 0x376   :  { %10509 = vmatpush2.bf16.msra.mxu0 %v13778_v23  ;;  %v4431_v23 = vld [vmem:[%s19280_s9 + $0xa88] sm:$0xff] }
 0x377   :  { %10510 = vmatprep.subr.bf16.mxu0 %v13763_v40  ;;  %v13939_v40 = vcombine.high %v4447_v47, %v4455_v60 }
 0x37a   :  { %10511 = vmatpush2.bf16.msra.mxu0 %v13762_v44  ;;  %v3955_v21 = vpop.f32.mrf.mxu1  ;;  %v4695_v44 = vld [vmem:[%s19280_s9 + $0x12c8] sm:$0xff] }
 0x37b   :  { %v3956_v48 = vadd.f32 %v3955_v21, %v3915_v42  ;;  %10512 = vmatprep.subr.bf16.mxu0 %v13747_v62  ;;  %v13938_v62 = vcombine.low %v4447_v47, %v4455_v60  ;;  %v13923_v42 = vcombine.high %v4431_v23, %v4439_v52  ;;  %v14179_v21 = vcombine.high %v4687_v43, %v4695_v44 }
 0x37c   :  { %v3957_v5 = vpop.f32.mrf.mxu1 }
 0x37d   :  { %vm3968_vm10 = vcmp.ge.f32.partialorder %v3956_v48, 0.0  ;;  %v3976_v50 = vmul.f32 0.01, %v3956_v48  ;;  %v3958_v10 = vadd.f32 %v3957_v5, %v3917_v39 }
 0x37e   :  { %10513 = vmatpush2.bf16.msra.mxu0 %v13746_v18  ;;  %v3959_v46 = vpop.f32.mrf.mxu1  ;;  %v4415_v18 = vld [vmem:[%s19280_s9 + $0xa08] sm:$0xff] }
 0x37f   :  { %v3984_v51 = vsel %vm3968_vm10, %v3956_v48, %v3976_v50  ;;  %vm3969_vm11 = vcmp.ge.f32.partialorder %v3958_v10, 0.0  ;;  %v3977_v9 = vmul.f32 0.01, %v3958_v10  ;;  %10514 = vmatprep.subr.bf16.mxu0 %v13731_v32  ;;  %v13922_v48 = vcombine.low %v4431_v23, %v4439_v52  ;;  %v4407_v50 = vld [vmem:[%s19280_s9 + $0x9c8] sm:$0xff] }
 0x380   :  { %v4034_v61 = vmul.f32 %v4015_v36, %v3984_v51  ;;  %v3960_v56 = vpop.f32.mrf.mxu1  ;;  %v14178_v32 = vcombine.low %v4687_v43, %v4695_v44  ;;  %v13907_v5 = vcombine.high %v4415_v18, %v4423_v31  ;;  %v4607_v23 = vld [vmem:[%s19280_s9 + $0x1008] sm:$0xff] }
 0x381   :  { %v3985_v27 = vsel %vm3969_vm11, %v3958_v10, %v3977_v9  ;;  %v4655_v10 = vld [vmem:[%s19280_s9 + $0x1188] sm:$0xff]  ;;  %v13890_v56 = vcombine.low %v4399_v45, %v4407_v50 }
 0x382   :  { %v4035_v33 = vmul.f32 %v4019_v53, %v3985_v27  ;;  %10515 = vmatpush2.bf16.msra.mxu0 %v13730_v54  ;;  %v4084_v22 = vadd.f32 %v4065_v49, %v4034_v61  ;;  %v4663_v49 = vld [vmem:[%s19280_s9 + $0x11c8] sm:$0xff]  ;;  %v13906_v53 = vcombine.low %v4415_v18, %v4423_v31  ;;  %v13891_v54 = vcombine.high %v4399_v45, %v4407_v50 }
 0x383   :  { %10516 = vmatprep.subr.bf16.mxu0 %v13715_v55  ;;  %v14147_v51 = vcombine.high %v4655_v10, %v4663_v49  ;;  %v4383_v9 = vld [vmem:[%s19280_s9 + $0x908] sm:$0xff]  ;;  %v14146_v26 = vcombine.low %v4655_v10, %v4663_v49 }
 0x384   :  { %v4085_v59 = vadd.f32 %v4069_v14, %v4035_v33  ;;  %v16427_v0 = vpack.c.bf16 %v4084_v22, %v4084_v22  ;;  %v4391_v55 = vld [vmem:[%s19280_s9 + $0x948] sm:$0xff] }
 0x385   :  { %v4639_v61 = vld [vmem:[%s19280_s9 + $0x1108] sm:$0xff]  ;;  %v13875_v8 = vcombine.high %v4383_v9, %v4391_v55 }
 0x386   :  { %v16425_v19 = vpack.c.bf16 %v4085_v59, %v4085_v59  ;;  %10517 = vmatpush2.bf16.msra.mxu0 %v13714_v57  ;;  %v4647_v14 = vld [vmem:[%s19280_s9 + $0x1148] sm:$0xff]  ;;  %v13874_v59 = vcombine.low %v4383_v9, %v4391_v55 }
 0x387   :  { %10568 = vmatprep.subr.bf16.mxu0 %v14211_v58  ;;  %v14131_v27 = vcombine.high %v4639_v61, %v4647_v14  ;;  %v4367_v33 = vld [vmem:[%s19280_s9 + $0x888] sm:$0xff]  ;;  %v14130_v47 = vcombine.low %v4639_v61, %v4647_v14 }
 0x388   :  { %10477 = vmatprep.mubr.bf16.mxu1 %v16425_v19  ;;  %v4375_v57 = vld [vmem:[%s19280_s9 + $0x8c8] sm:$0xff] }
 0x389   :  { %10519 = vmatmul.mubr.bf16.vlgmr.msra.gmra.mxu0 %v15965_v29  ;;  %10478 = vmatmul.mubr.bf16.vlgmr.msra.gmra.mxu1 %v16427_v0  ;;  %v16444_v20 = vpop.f32.mrf.mxu0  ;;  %v4623_v22 = vld [vmem:[%s19280_s9 + $0x1088] sm:$0xff]  ;;  %v13859_v60 = vcombine.high %v4367_v33, %v4375_v57 }
 0x38a   :  { %10528 = vmatpush1.bf16.msra.mxu1 %v13954_v13  ;;  %10569 = vmatpush1.bf16.msra.mxu0 %v14210_v63  ;;  %v4679_v13 = vld [vmem:[%s19280_s9 + $0x1248] sm:$0xff] }
 0x38b   :  { %10600 = vmatprep.mubr.bf16.mxu0 %v16293_v4  ;;  %10559 = vmatprep.mubr.bf16.mxu1 %v16161_v1  ;;  %v16451_v24 = vpop.f32.mrf.mxu0  ;;  %v14163_v37 = vcombine.high %v4671_v6, %v4679_v13  ;;  %v14162_v46 = vcombine.low %v4671_v6, %v4679_v13  ;;  %v4631_v58 = vld [vmem:[%s19280_s9 + $0x10c8] sm:$0xff] }
 0x38c   :  { %10529 = vmatprep.subr.bf16.mxu1 %v13939_v40  ;;  %10570 = vmatprep.subr.bf16.mxu0 %v14195_v34  ;;  %v14115_v30 = vcombine.high %v4623_v22, %v4631_v58  ;;  %v4359_v63 = vld [vmem:[%s19280_s9 + $0x848] sm:$0xff]  ;;  %v13858_v34 = vcombine.low %v4367_v33, %v4375_v57  ;;  %v14114_v52 = vcombine.low %v4623_v22, %v4631_v58 }
 0x38d   :  { %v10360_v39 = vpop.f32.mrf.mxu0  ;;  %v4615_v40 = vld [vmem:[%s19280_s9 + $0x1048] sm:$0xff]  ;;  %v13843_v43 = vcombine.high %v4351_v28, %v4359_v63  ;;  %v13842_v18 = vcombine.low %v4351_v28, %v4359_v63 }
 0x38e   :  { %10530 = vmatpush1.bf16.msra.mxu1 %v13938_v62  ;;  %10571 = vmatpush1.bf16.msra.mxu0 %v14194_v25  ;;  %v14099_v44 = vcombine.high %v4607_v23, %v4615_v40  ;;  %v4591_v62 = vld [vmem:[%s19280_s9 + $0xf88] sm:$0xff]  ;;  %v14098_v31 = vcombine.low %v4607_v23, %v4615_v40 }
 0x38f   :  { %v10361_v36 = vpop.f32.mrf.mxu0  ;;  %10531 = vmatprep.subr.bf16.mxu1 %v13923_v42  ;;  %10572 = vmatprep.subr.bf16.mxu0 %v14179_v21  ;;  %v4599_v25 = vld [vmem:[%s19280_s9 + $0xfc8] sm:$0xff] }
 0x390   :  { %v4847_v42 = vld [vmem:[%s19280_s9 + $0x1788] sm:$0xff]  ;;  %v14083_v6 = vcombine.high %v4591_v62, %v4599_v25 }
 0x391   :  { %v4855_v21 = vld [vmem:[%s19280_s9 + $0x17c8] sm:$0xff] }
 0x392   :  { %10532 = vmatpush1.bf16.msra.mxu1 %v13922_v48  ;;  %10573 = vmatpush1.bf16.msra.mxu0 %v14178_v32  ;;  %v14339_v13 = vcombine.high %v4847_v42, %v4855_v21  ;;  %v4575_v39 = vld [vmem:[%s19280_s9 + $0xf08] sm:$0xff] }
 0x393   :  { %10533 = vmatprep.subr.bf16.mxu1 %v13907_v5  ;;  %10574 = vmatprep.subr.bf16.mxu0 %v14163_v37  ;;  %v4583_v48 = vld [vmem:[%s19280_s9 + $0xf48] sm:$0xff]  ;;  %v14082_v5 = vcombine.low %v4591_v62, %v4599_v25  ;;  %v14338_v37 = vcombine.low %v4847_v42, %v4855_v21 }
 0x394   :  { %v4831_v32 = vld [vmem:[%s19280_s9 + $0x1708] sm:$0xff]  ;;  %v14067_v45 = vcombine.high %v4575_v39, %v4583_v48 }
 0x395   :  { %v4839_v36 = vld [vmem:[%s19280_s9 + $0x1748] sm:$0xff] }
 0x396   :  { %10534 = vmatpush1.bf16.msra.mxu1 %v13906_v53  ;;  %10575 = vmatpush1.bf16.msra.mxu0 %v14162_v46  ;;  %v14323_v50 = vcombine.high %v4831_v32, %v4839_v36  ;;  %v4559_v10 = vld [vmem:[%s19280_s9 + $0xe88] sm:$0xff] }
 0x397   :  { %10535 = vmatprep.subr.bf16.mxu1 %v13891_v54  ;;  %10576 = vmatprep.subr.bf16.mxu0 %v14147_v51  ;;  %v4567_v49 = vld [vmem:[%s19280_s9 + $0xec8] sm:$0xff]  ;;  %v14066_v54 = vcombine.low %v4575_v39, %v4583_v48  ;;  %v14322_v51 = vcombine.low %v4831_v32, %v4839_v36 }
 0x398   :  { %v4815_v53 = vld [vmem:[%s19280_s9 + $0x1688] sm:$0xff]  ;;  %v14051_v9 = vcombine.high %v4559_v10, %v4567_v49 }
 0x399   :  { %v4823_v46 = vld [vmem:[%s19280_s9 + $0x16c8] sm:$0xff] }
 0x39a   :  { %10536 = vmatpush1.bf16.msra.mxu1 %v13890_v56  ;;  %10577 = vmatpush1.bf16.msra.mxu0 %v14146_v26  ;;  %v14307_v55 = vcombine.high %v4815_v53, %v4823_v46  ;;  %v4543_v61 = vld [vmem:[%s19280_s9 + $0xe08] sm:$0xff] }
 0x39b   :  { %10537 = vmatprep.subr.bf16.mxu1 %v13875_v8  ;;  %10578 = vmatprep.subr.bf16.mxu0 %v14131_v27  ;;  %v4551_v14 = vld [vmem:[%s19280_s9 + $0xe48] sm:$0xff]  ;;  %v14050_v8 = vcombine.low %v4559_v10, %v4567_v49  ;;  %v14306_v27 = vcombine.low %v4815_v53, %v4823_v46 }
 0x39c   :  { %v4799_v56 = vld [vmem:[%s19280_s9 + $0x1608] sm:$0xff]  ;;  %v14035_v33 = vcombine.high %v4543_v61, %v4551_v14 }
 0x39d   :  { %v4807_v26 = vld [vmem:[%s19280_s9 + $0x1648] sm:$0xff] }
 0x39e   :  { %10538 = vmatpush1.bf16.msra.mxu1 %v13874_v59  ;;  %10579 = vmatpush1.bf16.msra.mxu0 %v14130_v47  ;;  %v14291_v57 = vcombine.high %v4799_v56, %v4807_v26  ;;  %v4527_v22 = vld [vmem:[%s19280_s9 + $0xd88] sm:$0xff] }
 0x39f   :  { %10539 = vmatprep.subr.bf16.mxu1 %v13859_v60  ;;  %10580 = vmatprep.subr.bf16.mxu0 %v14115_v30  ;;  %v4535_v58 = vld [vmem:[%s19280_s9 + $0xdc8] sm:$0xff]  ;;  %v14034_v60 = vcombine.low %v4543_v61, %v4551_v14  ;;  %v14290_v30 = vcombine.low %v4799_v56, %v4807_v26 }
 0x3a0   :  { %v4783_v59 = vld [vmem:[%s19280_s9 + $0x1588] sm:$0xff]  ;;  %v14019_v28 = vcombine.high %v4527_v22, %v4535_v58 }
 0x3a1   :  { %v4791_v47 = vld [vmem:[%s19280_s9 + $0x15c8] sm:$0xff] }
 0x3a2   :  { %10540 = vmatpush1.bf16.msra.mxu1 %v13858_v34  ;;  %10581 = vmatpush1.bf16.msra.mxu0 %v14114_v52  ;;  %v14275_v63 = vcombine.high %v4783_v59, %v4791_v47  ;;  %v4511_v23 = vld [vmem:[%s19280_s9 + $0xd08] sm:$0xff] }
 0x3a3   :  { %10541 = vmatprep.subr.bf16.mxu1 %v13843_v43  ;;  %10582 = vmatprep.subr.bf16.mxu0 %v14099_v44  ;;  %v4519_v40 = vld [vmem:[%s19280_s9 + $0xd48] sm:$0xff]  ;;  %v14018_v43 = vcombine.low %v4527_v22, %v4535_v58  ;;  %v14274_v44 = vcombine.low %v4783_v59, %v4791_v47 }
 0x3a4   :  { %v4767_v34 = vld [vmem:[%s19280_s9 + $0x1508] sm:$0xff]  ;;  %v14003_v62 = vcombine.high %v4511_v23, %v4519_v40 }
 0x3a5   :  { %v4775_v52 = vld [vmem:[%s19280_s9 + $0x1548] sm:$0xff] }
 0x3a6   :  { %10542 = vmatpush1.bf16.msra.mxu1 %v13842_v18  ;;  %10583 = vmatpush1.bf16.msra.mxu0 %v14098_v31  ;;  %v14259_v25 = vcombine.high %v4767_v34, %v4775_v52  ;;  %v4495_v42 = vld [vmem:[%s19280_s9 + $0xc88] sm:$0xff] }
 0x3a7   :  { %10543 = vmatprep.subr.bf16.mxu1 %v14083_v6  ;;  %10584 = vmatprep.subr.bf16.mxu0 %v14339_v13  ;;  %v4503_v21 = vld [vmem:[%s19280_s9 + $0xcc8] sm:$0xff]  ;;  %v14002_v6 = vcombine.low %v4511_v23, %v4519_v40  ;;  %v14258_v13 = vcombine.low %v4767_v34, %v4775_v52  ;;  %v4176_v40 = vld [vmem:[%s19280_s9 + $0x290] sm:$0xff] }
 0x3a8   :  { %v4751_v18 = vld [vmem:[%s19280_s9 + $0x1488] sm:$0xff]  ;;  %v13987_v39 = vcombine.high %v4495_v42, %v4503_v21 }
 0x3a9   :  { %v4759_v31 = vld [vmem:[%s19280_s9 + $0x14c8] sm:$0xff] }
 0x3aa   :  { %10544 = vmatpush2.bf16.msra.mxu1 %v14082_v5  ;;  %10585 = vmatpush2.bf16.msra.mxu0 %v14338_v37  ;;  %v14243_v48 = vcombine.high %v4751_v18, %v4759_v31  ;;  %v4479_v32 = vld [vmem:[%s19280_s9 + $0xc08] sm:$0xff] }
 0x3ab   :  { %10545 = vmatprep.subr.bf16.mxu1 %v14067_v45  ;;  %10586 = vmatprep.subr.bf16.mxu0 %v14323_v50  ;;  %v4487_v36 = vld [vmem:[%s19280_s9 + $0xc48] sm:$0xff]  ;;  %v13986_v45 = vcombine.low %v4495_v42, %v4503_v21  ;;  %v14242_v50 = vcombine.low %v4751_v18, %v4759_v31 }
 0x3ac   :  { %v4735_v5 = vld [vmem:[%s19280_s9 + $0x1408] sm:$0xff]  ;;  %v13971_v10 = vcombine.high %v4479_v32, %v4487_v36 }
 0x3ad   :  { %v4743_v37 = vld [vmem:[%s19280_s9 + $0x1448] sm:$0xff] }
 0x3ae   :  { %10546 = vmatpush2.bf16.msra.mxu1 %v14066_v54  ;;  %10587 = vmatpush2.bf16.msra.mxu0 %v14322_v51  ;;  %v14227_v49 = vcombine.high %v4735_v5, %v4743_v37  ;;  %v4975_v53 = vld [vmem:[%s19280_s9 + $0x1b88] sm:$0xff]  ;;  %v4208_v54 = vld [vmem:[%s19280_s9 + $0x390] sm:$0xff]  ;;  %v14226_v61 = vcombine.low %v4735_v5, %v4743_v37 }
 0x3af   :  { %10547 = vmatprep.subr.bf16.mxu1 %v14051_v9  ;;  %10588 = vmatprep.subr.bf16.mxu0 %v14307_v55  ;;  %v4983_v46 = vld [vmem:[%s19280_s9 + $0x1bc8] sm:$0xff]  ;;  %v4216_v51 = vld [vmem:[%s19280_s9 + $0x3d0] sm:$0xff]  ;;  %v5118_v9 = vld [vmem:[%s19281_s10] sm:$0xff]  ;;  %v13970_v55 = vcombine.low %v4479_v32, %v4487_v36 }
 0x3b0   :  { %v14467_v14 = vcombine.high %v4975_v53, %v4983_v46  ;;  %v13701_v56 = vcombine.high %v4208_v54, %v4216_v51  ;;  %v5125_v26 = vrot.slane %v5118_v9, %v15656_v7  ;;  %v5129_v22 = vrot.slane %v5118_v9, %v15664_v15  ;;  %v4935_v18 = vld [vmem:[%s19280_s9 + $0x1a48] sm:$0xff] }
 0x3b1   :  { %v14466_v58 = vcombine.low %v4975_v53, %v4983_v46  ;;  %v13700_v59 = vcombine.low %v4208_v54, %v4216_v51  ;;  %v4911_v37 = vld [vmem:[%s19280_s9 + $0x1988] sm:$0xff] }
 0x3b2   :  { %10548 = vmatpush2.bf16.msra.mxu1 %v14050_v8  ;;  %10589 = vmatpush2.bf16.msra.mxu0 %v14306_v27  ;;  %v4959_v8 = vld [vmem:[%s19280_s9 + $0x1b08] sm:$0xff]  ;;  %v10357_v47 = vadd.f32 %v16444_v20, %v5125_v26  ;;  %v4184_v20 = vld [vmem:[%s19280_s9 + $0x2d0] sm:$0xff]  ;;  %v10359_v34 = vadd.f32 %v16451_v24, %v5129_v22 }
 0x3b3   :  { %10549 = vmatprep.subr.bf16.mxu1 %v14035_v33  ;;  %10590 = vmatprep.subr.bf16.mxu0 %v14291_v57  ;;  %v4967_v27 = vld [vmem:[%s19280_s9 + $0x1b48] sm:$0xff]  ;;  %v4192_v33 = vld [vmem:[%s19280_s9 + $0x310] sm:$0xff]  ;;  %v13669_v21 = vcombine.high %v4176_v40, %v4184_v20  ;;  %v13668_v32 = vcombine.low %v4176_v40, %v4184_v20 }
 0x3b4   :  { %v4200_v57 = vld [vmem:[%s19280_s9 + $0x350] sm:$0xff]  ;;  %v4927_v24 = vld [vmem:[%s19280_s9 + $0x1a08] sm:$0xff] }
 0x3b5   :  { %v14419_v36 = vcombine.high %v4927_v24, %v4935_v18  ;;  %v4895_v51 = vld [vmem:[%s19280_s9 + $0x1908] sm:$0xff]  ;;  %v4120_v22 = vld [vmem:[%s19280_s9 + $0xd0] sm:$0xff] }
 0x3b6   :  { %10550 = vmatpush2.bf16.msra.mxu1 %v14034_v60  ;;  %10591 = vmatpush2.bf16.msra.mxu0 %v14290_v30  ;;  %v14451_v60 = vcombine.high %v4959_v8, %v4967_v27  ;;  %v13685_v30 = vcombine.high %v4192_v33, %v4200_v57  ;;  %v4903_v9 = vld [vmem:[%s19280_s9 + $0x1948] sm:$0xff] }
 0x3b7   :  { %10551 = vmatprep.subr.bf16.mxu1 %v14019_v28  ;;  %10592 = vmatprep.subr.bf16.mxu0 %v14275_v63  ;;  %v4943_v28 = vld [vmem:[%s19280_s9 + $0x1a88] sm:$0xff]  ;;  %v14387_v26 = vcombine.high %v4895_v51, %v4903_v9 }
 0x3b8   :  { %v4951_v63 = vld [vmem:[%s19280_s9 + $0x1ac8] sm:$0xff] }
 0x3ba   :  { %10552 = vmatpush2.bf16.msra.mxu1 %v14018_v43  ;;  %10593 = vmatpush2.bf16.msra.mxu0 %v14274_v44  ;;  %v14450_v43 = vcombine.low %v4959_v8, %v4967_v27  ;;  %v4879_v27 = vld [vmem:[%s19280_s9 + $0x1888] sm:$0xff] }
 0x3bb   :  { %10553 = vmatprep.subr.bf16.mxu1 %v14003_v62  ;;  %10594 = vmatprep.subr.bf16.mxu0 %v14259_v25  ;;  %v13684_v62 = vcombine.low %v4192_v33, %v4200_v57  ;;  %v14435_v25 = vcombine.high %v4943_v28, %v4951_v63  ;;  %v4887_v33 = vld [vmem:[%s19280_s9 + $0x18c8] sm:$0xff]  ;;  %v4112_v57 = vld [vmem:[%s19280_s9 + $0x90] sm:$0xff] }
 0x3bc   :  { %v14370_v40 = vcombine.low %v4879_v27, %v4887_v33  ;;  %v13604_v20 = vcombine.low %v4112_v57, %v4120_v22 }
 0x3be   :  { %10554 = vmatpush2.bf16.msra.mxu1 %v14002_v6  ;;  %10595 = vmatpush2.bf16.msra.mxu0 %v14258_v13  ;;  %v4160_v6 = vld [vmem:[%s19280_s9 + $0x210] sm:$0xff] }
 0x3bf   :  { %10555 = vmatprep.subr.bf16.mxu1 %v13987_v39  ;;  %10596 = vmatprep.subr.bf16.mxu0 %v14243_v48  ;;  %v4168_v13 = vld [vmem:[%s19280_s9 + $0x250] sm:$0xff]  ;;  %v14434_v39 = vcombine.low %v4943_v28, %v4951_v63  ;;  %v4871_v28 = vld [vmem:[%s19280_s9 + $0x1848] sm:$0xff] }
 0x3c0   :  { %v13653_v5 = vcombine.high %v4160_v6, %v4168_v13  ;;  %v13652_v53 = vcombine.low %v4160_v6, %v4168_v13  ;;  %v4096_v63 = vld [vmem:[%s19280_s9 + $0x10] sm:$0xff]  ;;  %v5087_v13 = vld [vmem:[%s19280_s9 + $0x1f08] sm:$0xff] }
 0x3c2   :  { %10556 = vmatpush2.bf16.msra.mxu1 %v13986_v45  ;;  %10597 = vmatpush2.bf16.msra.mxu0 %v14242_v50  ;;  %v4919_v45 = vld [vmem:[%s19280_s9 + $0x19c8] sm:$0xff]  ;;  %v4144_v50 = vld [vmem:[%s19280_s9 + $0x190] sm:$0xff] }
 0x3c3   :  { %10557 = vmatprep.subr.bf16.mxu1 %v13971_v10  ;;  %10598 = vmatprep.subr.bf16.mxu0 %v14227_v49  ;;  %v4152_v10 = vld [vmem:[%s19280_s9 + $0x1d0] sm:$0xff]  ;;  %v14418_v49 = vcombine.low %v4927_v24, %v4935_v18  ;;  %v14403_v46 = vcombine.high %v4911_v37, %v4919_v45 }
 0x3c4   :  { %v13637_v54 = vcombine.high %v4144_v50, %v4152_v10 }
 0x3c6   :  { %10558 = vmatpush2.bf16.msra.mxu1 %v13970_v55  ;;  %10599 = vmatpush2.bf16.msra.mxu0 %v14226_v61  ;;  %v4128_v55 = vld [vmem:[%s19280_s9 + $0x110] sm:$0xff] }
 0x3c7   :  { %10609 = vmatprep.subr.bf16.mxu1 %v14467_v14  ;;  %10650 = vmatprep.subr.bf16.mxu0 %v13701_v56  ;;  %v4136_v61 = vld [vmem:[%s19280_s9 + $0x150] sm:$0xff]  ;;  %v14402_v14 = vcombine.low %v4911_v37, %v4919_v45  ;;  %v13636_v56 = vcombine.low %v4144_v50, %v4152_v10  ;;  %v5071_v50 = vld [vmem:[%s19280_s9 + $0x1e88] sm:$0xff] }
 0x3c8   :  { %v13621_v8 = vcombine.high %v4128_v55, %v4136_v61  ;;  %v5079_v10 = vld [vmem:[%s19280_s9 + $0x1ec8] sm:$0xff] }
 0x3c9   :  { %10560 = vmatmul.mubr.bf16.vlgmr.msra.gmra.mxu1 %v16175_v11  ;;  %10601 = vmatmul.mubr.bf16.vlgmr.msra.gmra.mxu0 %v16295_v12  ;;  %v10397_v23 = vpop.f32.mrf.mxu1 }
 0x3ca   :  { %v16654_v52 = vadd.f32 %v10397_v23, %v10357_v47  ;;  %10610 = vmatpush1.bf16.msra.mxu1 %v14466_v58  ;;  %10641 = vmatprep.mubr.bf16.mxu1 %v16425_v19  ;;  %v14386_v58 = vcombine.low %v4895_v51, %v4903_v9  ;;  %v14371_v47 = vcombine.high %v4879_v27, %v4887_v33  ;;  %v4104_v23 = vld [vmem:[%s19280_s9 + $0x50] sm:$0xff] }
 0x3cb   :  { %10651 = vmatpush1.bf16.msra.mxu0 %v13700_v59  ;;  %10682 = vmatprep.mubr.bf16.mxu0 %v15958_v17  ;;  %v10399_v44 = vpop.f32.mrf.mxu1  ;;  %v13620_v59 = vcombine.low %v4128_v55, %v4136_v61  ;;  %v13588_v18 = vcombine.low %v4096_v63, %v4104_v23  ;;  %v14563_v51 = vcombine.high %v5071_v50, %v5079_v10  ;;  %v5055_v55 = vld [vmem:[%s19280_s9 + $0x1e08] sm:$0xff] }
 0x3cc   :  { %v16658_v42 = vadd.f32 %v10399_v44, %v10359_v34  ;;  %10611 = vmatprep.subr.bf16.mxu1 %v14451_v60  ;;  %10652 = vmatprep.subr.bf16.mxu0 %v13685_v30  ;;  %v13605_v60 = vcombine.high %v4112_v57, %v4120_v22  ;;  %v4863_v30 = vld [vmem:[%s19280_s9 + $0x1808] sm:$0xff] }
 0x3cd   :  { %v10401_v31 = vpop.f32.mrf.mxu1  ;;  %v14355_v34 = vcombine.high %v4863_v30, %v4871_v28  ;;  %v5103_v44 = vld [vmem:[%s19280_s9 + $0x1f88] sm:$0xff]  ;;  %v14354_v24 = vcombine.low %v4863_v30, %v4871_v28 }
 0x3ce   :  { %10612 = vmatpush1.bf16.msra.mxu1 %v14450_v43  ;;  %v13589_v43 = vcombine.high %v4096_v63, %v4104_v23  ;;  %v5063_v61 = vld [vmem:[%s19280_s9 + $0x1e48] sm:$0xff] }
 0x3cf   :  { %10653 = vmatpush1.bf16.msra.mxu0 %v13684_v62  ;;  %v10402_v48 = vpop.f32.mrf.mxu1  ;;  %10613 = vmatprep.subr.bf16.mxu1 %v14435_v25  ;;  %v5111_v62 = vld [vmem:[%s19280_s9 + $0x1fc8] sm:$0xff]  ;;  %v4336_v25 = vld [vmem:[%s19280_s9 + $0x790] sm:$0xff]  ;;  %v14547_v27 = vcombine.high %v5055_v55, %v5063_v61 }
 0x3d0   :  { %10654 = vmatprep.subr.bf16.mxu0 %v13669_v21  ;;  %v4344_v21 = vld [vmem:[%s19280_s9 + $0x7d0] sm:$0xff]  ;;  %v14595_v31 = vcombine.high %v5103_v44, %v5111_v62  ;;  %v5039_v57 = vld [vmem:[%s19280_s9 + $0x1d88] sm:$0xff] }
 0x3d1   :  { %v13829_v6 = vcombine.high %v4336_v25, %v4344_v21  ;;  %v4320_v48 = vld [vmem:[%s19280_s9 + $0x710] sm:$0xff]  ;;  %v5047_v22 = vld [vmem:[%s19280_s9 + $0x1dc8] sm:$0xff] }
 0x3d2   :  { %10614 = vmatpush1.bf16.msra.mxu1 %v14434_v39  ;;  %v5095_v39 = vld [vmem:[%s19280_s9 + $0x1f48] sm:$0xff]  ;;  %v14531_v30 = vcombine.high %v5039_v57, %v5047_v22 }
 0x3d3   :  { %10655 = vmatpush1.bf16.msra.mxu0 %v13668_v32  ;;  %10615 = vmatprep.subr.bf16.mxu1 %v14419_v36  ;;  %v4328_v32 = vld [vmem:[%s19280_s9 + $0x750] sm:$0xff]  ;;  %v14594_v36 = vcombine.low %v5103_v44, %v5111_v62  ;;  %v14579_v37 = vcombine.high %v5087_v13, %v5095_v39  ;;  %v5023_v63 = vld [vmem:[%s19280_s9 + $0x1d08] sm:$0xff] }
 0x3d4   :  { %10656 = vmatprep.subr.bf16.mxu0 %v13653_v5  ;;  %v13828_v5 = vcombine.low %v4336_v25, %v4344_v21  ;;  %v13813_v45 = vcombine.high %v4320_v48, %v4328_v32  ;;  %v5031_v23 = vld [vmem:[%s19280_s9 + $0x1d48] sm:$0xff] }
 0x3d5   :  { %v14515_v44 = vcombine.high %v5023_v63, %v5031_v23  ;;  %v5007_v25 = vld [vmem:[%s19280_s9 + $0x1c88] sm:$0xff] }
 0x3d6   :  { %10616 = vmatpush1.bf16.msra.mxu1 %v14418_v49  ;;  %v4304_v49 = vld [vmem:[%s19280_s9 + $0x690] sm:$0xff]  ;;  %v5015_v21 = vld [vmem:[%s19280_s9 + $0x1cc8] sm:$0xff] }
 0x3d7   :  { %10657 = vmatpush1.bf16.msra.mxu0 %v13652_v53  ;;  %10617 = vmatprep.subr.bf16.mxu1 %v14403_v46  ;;  %v4312_v53 = vld [vmem:[%s19280_s9 + $0x6d0] sm:$0xff]  ;;  %v14578_v46 = vcombine.low %v5087_v13, %v5095_v39  ;;  %v14499_v13 = vcombine.high %v5007_v25, %v5015_v21 }
 0x3d8   :  { %10658 = vmatprep.subr.bf16.mxu0 %v13637_v54  ;;  %v13812_v54 = vcombine.low %v4320_v48, %v4328_v32  ;;  %v13797_v9 = vcombine.high %v4304_v49, %v4312_v53  ;;  %v4991_v48 = vld [vmem:[%s19280_s9 + $0x1c08] sm:$0xff] }
 0x3d9   :  { %v4999_v32 = vld [vmem:[%s19280_s9 + $0x1c48] sm:$0xff] }
 0x3da   :  { %10618 = vmatpush1.bf16.msra.mxu1 %v14402_v14  ;;  %v4288_v14 = vld [vmem:[%s19280_s9 + $0x610] sm:$0xff] }
 0x3db   :  { %10659 = vmatpush1.bf16.msra.mxu0 %v13636_v56  ;;  %10619 = vmatprep.subr.bf16.mxu1 %v14387_v26  ;;  %v4296_v56 = vld [vmem:[%s19280_s9 + $0x650] sm:$0xff]  ;;  %v14562_v26 = vcombine.low %v5071_v50, %v5079_v10  ;;  %v14483_v50 = vcombine.high %v4991_v48, %v4999_v32 }
 0x3dc   :  { %10660 = vmatprep.subr.bf16.mxu0 %v13621_v8  ;;  %v13796_v8 = vcombine.low %v4304_v49, %v4312_v53  ;;  %v13781_v33 = vcombine.high %v4288_v14, %v4296_v56  ;;  %v4464_v49 = vld [vmem:[%s19280_s9 + $0xb90] sm:$0xff] }
 0x3dd   :  { %v4472_v53 = vld [vmem:[%s19280_s9 + $0xbd0] sm:$0xff] }
 0x3de   :  { %10620 = vmatpush1.bf16.msra.mxu1 %v14386_v58  ;;  %v4272_v58 = vld [vmem:[%s19280_s9 + $0x590] sm:$0xff] }
 0x3df   :  { %10661 = vmatpush1.bf16.msra.mxu0 %v13620_v59  ;;  %10621 = vmatprep.subr.bf16.mxu1 %v14371_v47  ;;  %v4280_v59 = vld [vmem:[%s19280_s9 + $0x5d0] sm:$0xff]  ;;  %v14546_v47 = vcombine.low %v5055_v55, %v5063_v61  ;;  %v13957_v55 = vcombine.high %v4464_v49, %v4472_v53 }
 0x3e0   :  { %10662 = vmatprep.subr.bf16.mxu0 %v13605_v60  ;;  %v13780_v60 = vcombine.low %v4288_v14, %v4296_v56  ;;  %v13765_v28 = vcombine.high %v4272_v58, %v4280_v59  ;;  %v4448_v14 = vld [vmem:[%s19280_s9 + $0xb10] sm:$0xff] }
 0x3e1   :  { %v4456_v56 = vld [vmem:[%s19280_s9 + $0xb50] sm:$0xff] }
 0x3e2   :  { %10622 = vmatpush1.bf16.msra.mxu1 %v14370_v40  ;;  %v4256_v40 = vld [vmem:[%s19280_s9 + $0x510] sm:$0xff] }
 0x3e3   :  { %10663 = vmatpush1.bf16.msra.mxu0 %v13604_v20  ;;  %10623 = vmatprep.subr.bf16.mxu1 %v14355_v34  ;;  %v4264_v20 = vld [vmem:[%s19280_s9 + $0x550] sm:$0xff]  ;;  %v14530_v34 = vcombine.low %v5039_v57, %v5047_v22  ;;  %v13941_v57 = vcombine.high %v4448_v14, %v4456_v56 }
 0x3e4   :  { %10664 = vmatprep.subr.bf16.mxu0 %v13589_v43  ;;  %v13764_v43 = vcombine.low %v4272_v58, %v4280_v59  ;;  %v13749_v62 = vcombine.high %v4256_v40, %v4264_v20  ;;  %v4432_v22 = vld [vmem:[%s19280_s9 + $0xa90] sm:$0xff] }
 0x3e5   :  { %v4440_v58 = vld [vmem:[%s19280_s9 + $0xad0] sm:$0xff] }
 0x3e6   :  { %10624 = vmatpush1.bf16.msra.mxu1 %v14354_v24  ;;  %v4240_v24 = vld [vmem:[%s19280_s9 + $0x490] sm:$0xff] }
 0x3e7   :  { %10665 = vmatpush1.bf16.msra.mxu0 %v13588_v18  ;;  %10625 = vmatprep.subr.bf16.mxu1 %v14595_v31  ;;  %v4248_v18 = vld [vmem:[%s19280_s9 + $0x4d0] sm:$0xff]  ;;  %v14514_v31 = vcombine.low %v5023_v63, %v5031_v23  ;;  %v13940_v63 = vcombine.low %v4448_v14, %v4456_v56 }
 0x3e8   :  { %10666 = vmatprep.subr.bf16.mxu0 %v13829_v6  ;;  %v13748_v6 = vcombine.low %v4256_v40, %v4264_v20  ;;  %v13733_v39 = vcombine.high %v4240_v24, %v4248_v18  ;;  %v13925_v20 = vcombine.high %v4432_v22, %v4440_v58  ;;  %v4624_v14 = vld [vmem:[%s19280_s9 + $0x1090] sm:$0xff] }
 0x3e9   :  { %v4632_v56 = vld [vmem:[%s19280_s9 + $0x10d0] sm:$0xff] }
 0x3ea   :  { %10626 = vmatpush2.bf16.msra.mxu1 %v14594_v36  ;;  %v4224_v36 = vld [vmem:[%s19280_s9 + $0x410] sm:$0xff] }
 0x3eb   :  { %10667 = vmatpush2.bf16.msra.mxu0 %v13828_v5  ;;  %10627 = vmatprep.subr.bf16.mxu1 %v14579_v37  ;;  %v4232_v5 = vld [vmem:[%s19280_s9 + $0x450] sm:$0xff]  ;;  %v14498_v37 = vcombine.low %v5007_v25, %v5015_v21  ;;  %v13924_v21 = vcombine.low %v4432_v22, %v4440_v58 }
 0x3ec   :  { %10668 = vmatprep.subr.bf16.mxu0 %v13813_v45  ;;  %v13732_v45 = vcombine.low %v4240_v24, %v4248_v18  ;;  %v13717_v10 = vcombine.high %v4224_v36, %v4232_v5  ;;  %v4672_v25 = vld [vmem:[%s19280_s9 + $0x1210] sm:$0xff] }
 0x3ed   :  { %v4360_v22 = vld [vmem:[%s19280_s9 + $0x850] sm:$0xff] }
 0x3ee   :  { %10628 = vmatpush2.bf16.msra.mxu1 %v14578_v46  ;;  %v4720_v46 = vld [vmem:[%s19280_s9 + $0x1390] sm:$0xff] }
 0x3ef   :  { %10669 = vmatpush2.bf16.msra.mxu0 %v13812_v54  ;;  %10629 = vmatprep.subr.bf16.mxu1 %v14563_v51  ;;  %v4728_v54 = vld [vmem:[%s19280_s9 + $0x13d0] sm:$0xff]  ;;  %v14482_v51 = vcombine.low %v4991_v48, %v4999_v32 }
 0x3f0   :  { %10670 = vmatprep.subr.bf16.mxu0 %v13797_v9  ;;  %v13716_v9 = vcombine.low %v4224_v36, %v4232_v5  ;;  %v14213_v61 = vcombine.high %v4720_v46, %v4728_v54  ;;  %v4656_v48 = vld [vmem:[%s19280_s9 + $0x1190] sm:$0xff] }
 0x3f1   :  { %v4664_v32 = vld [vmem:[%s19280_s9 + $0x11d0] sm:$0xff] }
 0x3f2   :  { %10630 = vmatpush2.bf16.msra.mxu1 %v14562_v26  ;;  %v13956_v26 = vcombine.low %v4464_v49, %v4472_v53  ;;  %v4640_v49 = vld [vmem:[%s19280_s9 + $0x1110] sm:$0xff] }
 0x3f3   :  { %10671 = vmatpush2.bf16.msra.mxu0 %v13796_v8  ;;  %10631 = vmatprep.subr.bf16.mxu1 %v14547_v27  ;;  %v4704_v8 = vld [vmem:[%s19280_s9 + $0x1310] sm:$0xff] }
 0x3f4   :  { %10672 = vmatprep.subr.bf16.mxu0 %v13781_v33  ;;  %v4712_v27 = vld [vmem:[%s19280_s9 + $0x1350] sm:$0xff]  ;;  %v14212_v33 = vcombine.low %v4720_v46, %v4728_v54  ;;  %v14148_v54 = vcombine.low %v4656_v48, %v4664_v32 }
 0x3f5   :  { %v14196_v40 = vcombine.low %v4704_v8, %v4712_v27  ;;  %v4648_v53 = vld [vmem:[%s19280_s9 + $0x1150] sm:$0xff] }
 0x3f6   :  { %10632 = vmatpush2.bf16.msra.mxu1 %v14546_v47  ;;  %v14197_v47 = vcombine.high %v4704_v8, %v4712_v27  ;;  %v14132_v8 = vcombine.low %v4640_v49, %v4648_v53  ;;  %v4608_v58 = vld [vmem:[%s19280_s9 + $0x1010] sm:$0xff] }
 0x3f7   :  { %10673 = vmatpush2.bf16.msra.mxu0 %v13780_v60  ;;  %10633 = vmatprep.subr.bf16.mxu1 %v14531_v30  ;;  %v4688_v60 = vld [vmem:[%s19280_s9 + $0x1290] sm:$0xff] }
 0x3f8   :  { %10674 = vmatprep.subr.bf16.mxu0 %v13765_v28  ;;  %v4696_v30 = vld [vmem:[%s19280_s9 + $0x12d0] sm:$0xff] }
 0x3f9   :  { %v14180_v18 = vcombine.low %v4688_v60, %v4696_v30 }
 0x3fa   :  { %10634 = vmatpush2.bf16.msra.mxu1 %v14530_v34 }
 0x3fb   :  { %10675 = vmatpush2.bf16.msra.mxu0 %v13764_v43  ;;  %10635 = vmatprep.subr.bf16.mxu1 %v14515_v44  ;;  %v14181_v43 = vcombine.high %v4688_v60, %v4696_v30  ;;  %v4424_v44 = vld [vmem:[%s19280_s9 + $0xa50] sm:$0xff]  ;;  %v14116_v60 = vcombine.low %v4624_v14, %v4632_v56 }
 0x3fc   :  { %10676 = vmatprep.subr.bf16.mxu0 %v13749_v62 }
 0x3fe   :  { %10636 = vmatpush2.bf16.msra.mxu1 %v14514_v31 }
 0x3ff   :  { %10677 = vmatpush2.bf16.msra.mxu0 %v13748_v6  ;;  %10637 = vmatprep.subr.bf16.mxu1 %v14499_v13  ;;  %v4400_v13 = vld [vmem:[%s19280_s9 + $0x990] sm:$0xff] }
 0x400   :  { %10678 = vmatprep.subr.bf16.mxu0 %v13733_v39  ;;  %v4408_v39 = vld [vmem:[%s19280_s9 + $0x9d0] sm:$0xff] }
 0x401   :  { %v13892_v46 = vcombine.low %v4400_v13, %v4408_v39 }
 0x402   :  { %10638 = vmatpush2.bf16.msra.mxu1 %v14498_v37  ;;  %v13893_v37 = vcombine.high %v4400_v13, %v4408_v39 }
 0x403   :  { %10679 = vmatpush2.bf16.msra.mxu0 %v13732_v45  ;;  %10639 = vmatprep.subr.bf16.mxu1 %v14483_v50  ;;  %v14149_v45 = vcombine.high %v4656_v48, %v4664_v32  ;;  %v4384_v50 = vld [vmem:[%s19280_s9 + $0x910] sm:$0xff] }
 0x404   :  { %10680 = vmatprep.subr.bf16.mxu0 %v13717_v10  ;;  %v4392_v10 = vld [vmem:[%s19280_s9 + $0x950] sm:$0xff] }
 0x405   :  { %v4560_v48 = vld [vmem:[%s19280_s9 + $0xe90] sm:$0xff] }
 0x406   :  { %10640 = vmatpush2.bf16.msra.mxu1 %v14482_v51  ;;  %v13877_v51 = vcombine.high %v4384_v50, %v4392_v10  ;;  %v4568_v32 = vld [vmem:[%s19280_s9 + $0xed0] sm:$0xff] }
 0x407   :  { %10681 = vmatpush2.bf16.msra.mxu0 %v13716_v9  ;;  %10691 = vmatprep.subr.bf16.mxu1 %v13957_v55  ;;  %v14133_v9 = vcombine.high %v4640_v49, %v4648_v53  ;;  %v4368_v55 = vld [vmem:[%s19280_s9 + $0x890] sm:$0xff] }
 0x408   :  { %10732 = vmatprep.subr.bf16.mxu0 %v14213_v61  ;;  %v4376_v61 = vld [vmem:[%s19280_s9 + $0x8d0] sm:$0xff] }
 0x409   :  { %10642 = vmatmul.mubr.bf16.vlgmr.msra.gmra.mxu1 %v16427_v0  ;;  %v10438_v59 = vpop.f32.mrf.mxu0  ;;  %v13861_v27 = vcombine.high %v4368_v55, %v4376_v61  ;;  %v4544_v49 = vld [vmem:[%s19280_s9 + $0xe10] sm:$0xff] }
 0x40a   :  { %10683 = vmatmul.mubr.bf16.vlgmr.msra.gmra.mxu0 %v15965_v29  ;;  %v16855_v28 = vadd.f32 %v10438_v59, %v16654_v52  ;;  %10692 = vmatpush1.bf16.msra.mxu1 %v13956_v26  ;;  %v4416_v52 = vld [vmem:[%s19280_s9 + $0xa10] sm:$0xff]  ;;  %v13876_v26 = vcombine.low %v4384_v50, %v4392_v10  ;;  %v14053_v50 = vcombine.high %v4560_v48, %v4568_v32 }
 0x40b   :  { %10723 = vmatprep.mubr.bf16.mxu1 %v16161_v1  ;;  %10733 = vmatpush1.bf16.msra.mxu0 %v14212_v33  ;;  %v10440_v23 = vpop.f32.mrf.mxu0  ;;  %v13909_v31 = vcombine.high %v4416_v52, %v4424_v44  ;;  %v13908_v36 = vcombine.low %v4416_v52, %v4424_v44  ;;  %v14117_v33 = vcombine.high %v4624_v14, %v4632_v56  ;;  %v4616_v59 = vld [vmem:[%s19280_s9 + $0x1050] sm:$0xff] }
 0x40c   :  { %10764 = vmatprep.mubr.bf16.mxu0 %v16293_v4  ;;  %v16860_v34 = vadd.f32 %v10440_v23, %v16658_v42  ;;  %10693 = vmatprep.subr.bf16.mxu1 %v13941_v57  ;;  %v4680_v42 = vld [vmem:[%s19280_s9 + $0x1250] sm:$0xff]  ;;  %v14100_v44 = vcombine.low %v4608_v58, %v4616_v59 }
 0x40d   :  { %10734 = vmatprep.subr.bf16.mxu0 %v14197_v47  ;;  %v10442_v62 = vpop.f32.mrf.mxu0  ;;  %v14165_v6 = vcombine.high %v4672_v25, %v4680_v42  ;;  %v14164_v5 = vcombine.low %v4672_v25, %v4680_v42  ;;  %v4352_v57 = vld [vmem:[%s19280_s9 + $0x810] sm:$0xff]  ;;  %v13860_v47 = vcombine.low %v4368_v55, %v4376_v61 }
 0x40e   :  { %10694 = vmatpush1.bf16.msra.mxu1 %v13940_v63  ;;  %v13845_v30 = vcombine.high %v4352_v57, %v4360_v22  ;;  %v14101_v63 = vcombine.high %v4608_v58, %v4616_v59  ;;  %v4592_v23 = vld [vmem:[%s19280_s9 + $0xf90] sm:$0xff]  ;;  %v13844_v52 = vcombine.low %v4352_v57, %v4360_v22 }
 0x40f   :  { %10735 = vmatpush1.bf16.msra.mxu0 %v14196_v40  ;;  %v10443_v24 = vpop.f32.mrf.mxu0  ;;  %10695 = vmatprep.subr.bf16.mxu1 %v13925_v20  ;;  %v4600_v40 = vld [vmem:[%s19280_s9 + $0xfd0] sm:$0xff] }
 0x410   :  { %10736 = vmatprep.subr.bf16.mxu0 %v14181_v43  ;;  %v4848_v20 = vld [vmem:[%s19280_s9 + $0x1790] sm:$0xff]  ;;  %v14085_v62 = vcombine.high %v4592_v23, %v4600_v40 }
 0x411   :  { %v4856_v43 = vld [vmem:[%s19280_s9 + $0x17d0] sm:$0xff] }
 0x412   :  { %10696 = vmatpush1.bf16.msra.mxu1 %v13924_v21  ;;  %v14341_v25 = vcombine.high %v4848_v20, %v4856_v43  ;;  %v4576_v42 = vld [vmem:[%s19280_s9 + $0xf10] sm:$0xff] }
 0x413   :  { %10737 = vmatpush1.bf16.msra.mxu0 %v14180_v18  ;;  %10697 = vmatprep.subr.bf16.mxu1 %v13909_v31  ;;  %v4584_v21 = vld [vmem:[%s19280_s9 + $0xf50] sm:$0xff]  ;;  %v14084_v31 = vcombine.low %v4592_v23, %v4600_v40 }
 0x414   :  { %10738 = vmatprep.subr.bf16.mxu0 %v14165_v6  ;;  %v4832_v24 = vld [vmem:[%s19280_s9 + $0x1710] sm:$0xff]  ;;  %v14340_v6 = vcombine.low %v4848_v20, %v4856_v43  ;;  %v14069_v13 = vcombine.high %v4576_v42, %v4584_v21 }
 0x415   :  { %v4840_v18 = vld [vmem:[%s19280_s9 + $0x1750] sm:$0xff] }
 0x416   :  { %10698 = vmatpush1.bf16.msra.mxu1 %v13908_v36  ;;  %v14325_v39 = vcombine.high %v4832_v24, %v4840_v18  ;;  %v4816_v36 = vld [vmem:[%s19280_s9 + $0x1690] sm:$0xff] }
 0x417   :  { %10739 = vmatpush1.bf16.msra.mxu0 %v14164_v5  ;;  %10699 = vmatprep.subr.bf16.mxu1 %v13893_v37  ;;  %v4824_v5 = vld [vmem:[%s19280_s9 + $0x16d0] sm:$0xff]  ;;  %v14068_v37 = vcombine.low %v4576_v42, %v4584_v21 }
 0x418   :  { %10740 = vmatprep.subr.bf16.mxu0 %v14149_v45  ;;  %v14324_v45 = vcombine.low %v4832_v24, %v4840_v18  ;;  %v14309_v10 = vcombine.high %v4816_v36, %v4824_v5  ;;  %v4552_v53 = vld [vmem:[%s19280_s9 + $0xe50] sm:$0xff] }
 0x419   :  { %v14037_v55 = vcombine.high %v4544_v49, %v4552_v53  ;;  %v4528_v14 = vld [vmem:[%s19280_s9 + $0xd90] sm:$0xff] }
 0x41a   :  { %10700 = vmatpush1.bf16.msra.mxu1 %v13892_v46  ;;  %v4800_v46 = vld [vmem:[%s19280_s9 + $0x1610] sm:$0xff] }
 0x41b   :  { %10741 = vmatpush1.bf16.msra.mxu0 %v14148_v54  ;;  %10701 = vmatprep.subr.bf16.mxu1 %v13877_v51  ;;  %v4808_v54 = vld [vmem:[%s19280_s9 + $0x1650] sm:$0xff]  ;;  %v14052_v51 = vcombine.low %v4560_v48, %v4568_v32 }
 0x41c   :  { %10742 = vmatprep.subr.bf16.mxu0 %v14133_v9  ;;  %v14308_v9 = vcombine.low %v4816_v36, %v4824_v5  ;;  %v14293_v61 = vcombine.high %v4800_v46, %v4808_v54  ;;  %v4536_v56 = vld [vmem:[%s19280_s9 + $0xdd0] sm:$0xff] }
 0x41d   :  { %v14021_v57 = vcombine.high %v4528_v14, %v4536_v56  ;;  %v4512_v58 = vld [vmem:[%s19280_s9 + $0xd10] sm:$0xff] }
 0x41e   :  { %10702 = vmatpush1.bf16.msra.mxu1 %v13876_v26  ;;  %v4784_v26 = vld [vmem:[%s19280_s9 + $0x1590] sm:$0xff] }
 0x41f   :  { %10743 = vmatpush1.bf16.msra.mxu0 %v14132_v8  ;;  %10703 = vmatprep.subr.bf16.mxu1 %v13861_v27  ;;  %v4792_v8 = vld [vmem:[%s19280_s9 + $0x15d0] sm:$0xff]  ;;  %v14036_v27 = vcombine.low %v4544_v49, %v4552_v53 }
 0x420   :  { %10744 = vmatprep.subr.bf16.mxu0 %v14117_v33  ;;  %v14292_v33 = vcombine.low %v4800_v46, %v4808_v54  ;;  %v14277_v22 = vcombine.high %v4784_v26, %v4792_v8  ;;  %v4520_v59 = vld [vmem:[%s19280_s9 + $0xd50] sm:$0xff] }
 0x421   :  { %v14005_v23 = vcombine.high %v4512_v58, %v4520_v59  ;;  %v4496_v20 = vld [vmem:[%s19280_s9 + $0xc90] sm:$0xff] }
 0x422   :  { %10704 = vmatpush1.bf16.msra.mxu1 %v13860_v47  ;;  %v4768_v47 = vld [vmem:[%s19280_s9 + $0x1510] sm:$0xff] }
 0x423   :  { %10745 = vmatpush1.bf16.msra.mxu0 %v14116_v60  ;;  %10705 = vmatprep.subr.bf16.mxu1 %v13845_v30  ;;  %v4776_v60 = vld [vmem:[%s19280_s9 + $0x1550] sm:$0xff]  ;;  %v14020_v30 = vcombine.low %v4528_v14, %v4536_v56 }
 0x424   :  { %10746 = vmatprep.subr.bf16.mxu0 %v14101_v63  ;;  %v14276_v63 = vcombine.low %v4784_v26, %v4792_v8  ;;  %v14261_v40 = vcombine.high %v4768_v47, %v4776_v60  ;;  %v4504_v43 = vld [vmem:[%s19280_s9 + $0xcd0] sm:$0xff] }
 0x425   :  { %v13989_v42 = vcombine.high %v4496_v20, %v4504_v43  ;;  %v4480_v24 = vld [vmem:[%s19280_s9 + $0xc10] sm:$0xff] }
 0x426   :  { %10706 = vmatpush1.bf16.msra.mxu1 %v13844_v52  ;;  %v4752_v52 = vld [vmem:[%s19280_s9 + $0x1490] sm:$0xff] }
 0x427   :  { %10747 = vmatpush1.bf16.msra.mxu0 %v14100_v44  ;;  %10707 = vmatprep.subr.bf16.mxu1 %v14085_v62  ;;  %v4760_v44 = vld [vmem:[%s19280_s9 + $0x14d0] sm:$0xff]  ;;  %v14004_v62 = vcombine.low %v4512_v58, %v4520_v59 }
 0x428   :  { %10748 = vmatprep.subr.bf16.mxu0 %v14341_v25  ;;  %v14260_v25 = vcombine.low %v4768_v47, %v4776_v60  ;;  %v14245_v21 = vcombine.high %v4752_v52, %v4760_v44  ;;  %v4488_v18 = vld [vmem:[%s19280_s9 + $0xc50] sm:$0xff] }
 0x429   :  { %v13973_v48 = vcombine.high %v4480_v24, %v4488_v18  ;;  %v4976_v36 = vld [vmem:[%s19280_s9 + $0x1b90] sm:$0xff] }
 0x42a   :  { %10708 = vmatpush2.bf16.msra.mxu1 %v14084_v31  ;;  %v4736_v31 = vld [vmem:[%s19280_s9 + $0x1410] sm:$0xff] }
 0x42b   :  { %10749 = vmatpush2.bf16.msra.mxu0 %v14340_v6  ;;  %10709 = vmatprep.subr.bf16.mxu1 %v14069_v13  ;;  %v4744_v6 = vld [vmem:[%s19280_s9 + $0x1450] sm:$0xff]  ;;  %v13988_v13 = vcombine.low %v4496_v20, %v4504_v43 }
 0x42c   :  { %10750 = vmatprep.subr.bf16.mxu0 %v14325_v39  ;;  %v14244_v39 = vcombine.low %v4752_v52, %v4760_v44  ;;  %v14229_v32 = vcombine.high %v4736_v31, %v4744_v6  ;;  %v4984_v5 = vld [vmem:[%s19280_s9 + $0x1bd0] sm:$0xff]  ;;  %v4161_v44 = vld [vmem:[%s19280_s9 + $0x218] sm:$0xff] }
 0x42d   :  { %v14469_v49 = vcombine.high %v4976_v36, %v4984_v5  ;;  %v4960_v46 = vld [vmem:[%s19280_s9 + $0x1b10] sm:$0xff] }
 0x42e   :  { %10710 = vmatpush2.bf16.msra.mxu1 %v14068_v37  ;;  %v4209_v37 = vld [vmem:[%s19280_s9 + $0x398] sm:$0xff]  ;;  %v4968_v54 = vld [vmem:[%s19280_s9 + $0x1b50] sm:$0xff] }
 0x42f   :  { %10751 = vmatpush2.bf16.msra.mxu0 %v14324_v45  ;;  %10711 = vmatprep.subr.bf16.mxu1 %v14053_v50  ;;  %v4217_v45 = vld [vmem:[%s19280_s9 + $0x3d8] sm:$0xff]  ;;  %v13972_v50 = vcombine.low %v4480_v24, %v4488_v18  ;;  %v14453_v14 = vcombine.high %v4960_v46, %v4968_v54  ;;  %v4944_v56 = vld [vmem:[%s19280_s9 + $0x1a90] sm:$0xff]  ;;  %v14452_v59 = vcombine.low %v4960_v46, %v4968_v54 }
 0x430   :  { %10752 = vmatprep.subr.bf16.mxu0 %v14309_v10  ;;  %v14228_v10 = vcombine.low %v4736_v31, %v4744_v6  ;;  %v13703_v53 = vcombine.high %v4209_v37, %v4217_v45  ;;  %v4952_v26 = vld [vmem:[%s19280_s9 + $0x1ad0] sm:$0xff] }
 0x431   :  { %v4936_v20 = vld [vmem:[%s19280_s9 + $0x1a50] sm:$0xff] }
 0x432   :  { %10712 = vmatpush2.bf16.msra.mxu1 %v14052_v51  ;;  %v14468_v51 = vcombine.low %v4976_v36, %v4984_v5  ;;  %v4912_v31 = vld [vmem:[%s19280_s9 + $0x1990] sm:$0xff] }
 0x433   :  { %10753 = vmatpush2.bf16.msra.mxu0 %v14308_v9  ;;  %10713 = vmatprep.subr.bf16.mxu1 %v14037_v55  ;;  %v4193_v9 = vld [vmem:[%s19280_s9 + $0x318] sm:$0xff]  ;;  %v4920_v6 = vld [vmem:[%s19280_s9 + $0x19d0] sm:$0xff] }
 0x434   :  { %10754 = vmatprep.subr.bf16.mxu0 %v14293_v61  ;;  %v4201_v55 = vld [vmem:[%s19280_s9 + $0x358] sm:$0xff]  ;;  %v13702_v61 = vcombine.low %v4209_v37, %v4217_v45  ;;  %v14405_v36 = vcombine.high %v4912_v31, %v4920_v6  ;;  %v4896_v37 = vld [vmem:[%s19280_s9 + $0x1910] sm:$0xff] }
 0x435   :  { %v4904_v45 = vld [vmem:[%s19280_s9 + $0x1950] sm:$0xff] }
 0x436   :  { %10714 = vmatpush2.bf16.msra.mxu1 %v14036_v27  ;;  %v14389_v46 = vcombine.high %v4896_v37, %v4904_v45 }
 0x437   :  { %10755 = vmatpush2.bf16.msra.mxu0 %v14292_v33  ;;  %10715 = vmatprep.subr.bf16.mxu1 %v14021_v57  ;;  %v13687_v33 = vcombine.high %v4193_v9, %v4201_v55  ;;  %v4177_v57 = vld [vmem:[%s19280_s9 + $0x298] sm:$0xff] }
 0x438   :  { %10756 = vmatprep.subr.bf16.mxu0 %v14277_v22  ;;  %v4185_v22 = vld [vmem:[%s19280_s9 + $0x2d8] sm:$0xff] }
 0x43a   :  { %10716 = vmatpush2.bf16.msra.mxu1 %v14020_v30  ;;  %v13686_v30 = vcombine.low %v4193_v9, %v4201_v55  ;;  %v4888_v9 = vld [vmem:[%s19280_s9 + $0x18d0] sm:$0xff]  ;;  %v4113_v55 = vld [vmem:[%s19280_s9 + $0x98] sm:$0xff] }
 0x43b   :  { %10757 = vmatpush2.bf16.msra.mxu0 %v14276_v63  ;;  %10717 = vmatprep.subr.bf16.mxu1 %v14005_v23  ;;  %v14437_v63 = vcombine.high %v4944_v56, %v4952_v26 }
 0x43c   :  { %10758 = vmatprep.subr.bf16.mxu0 %v14261_v40  ;;  %v13671_v40 = vcombine.high %v4177_v57, %v4185_v22 }
 0x43e   :  { %10718 = vmatpush2.bf16.msra.mxu1 %v14004_v62  ;;  %v14436_v62 = vcombine.low %v4944_v56, %v4952_v26 }
 0x43f   :  { %10759 = vmatpush2.bf16.msra.mxu0 %v14260_v25  ;;  %10719 = vmatprep.subr.bf16.mxu1 %v13989_v42 }
 0x440   :  { %10760 = vmatprep.subr.bf16.mxu0 %v14245_v21  ;;  %v13670_v21 = vcombine.low %v4177_v57, %v4185_v22  ;;  %v4872_v57 = vld [vmem:[%s19280_s9 + $0x1850] sm:$0xff]  ;;  %v4097_v22 = vld [vmem:[%s19280_s9 + $0x18] sm:$0xff] }
 0x442   :  { %10720 = vmatpush2.bf16.msra.mxu1 %v13988_v13  ;;  %v4145_v13 = vld [vmem:[%s19280_s9 + $0x198] sm:$0xff] }
 0x443   :  { %10761 = vmatpush2.bf16.msra.mxu0 %v14244_v39  ;;  %10721 = vmatprep.subr.bf16.mxu1 %v13973_v48  ;;  %v4153_v39 = vld [vmem:[%s19280_s9 + $0x1d8] sm:$0xff] }
 0x444   :  { %10762 = vmatprep.subr.bf16.mxu0 %v14229_v32  ;;  %v13639_v5 = vcombine.high %v4145_v13, %v4153_v39 }
 0x446   :  { %10722 = vmatpush2.bf16.msra.mxu1 %v13972_v50  ;;  %v4129_v50 = vld [vmem:[%s19280_s9 + $0x118] sm:$0xff] }
 0x447   :  { %10763 = vmatpush2.bf16.msra.mxu0 %v14228_v10  ;;  %10773 = vmatprep.subr.bf16.mxu1 %v14469_v49  ;;  %v4137_v10 = vld [vmem:[%s19280_s9 + $0x158] sm:$0xff]  ;;  %v14404_v49 = vcombine.low %v4912_v31, %v4920_v6 }
 0x448   :  { %10814 = vmatprep.subr.bf16.mxu0 %v13703_v53  ;;  %v13638_v53 = vcombine.low %v4145_v13, %v4153_v39  ;;  %v13623_v54 = vcombine.high %v4129_v50, %v4137_v10  ;;  %v13622_v56 = vcombine.low %v4129_v50, %v4137_v10 }
 0x449   :  { %v17048_v8 = vpop.f32.mrf.mxu0  ;;  %10724 = vmatmul.mubr.bf16.vlgmr.msra.gmra.mxu1 %v16175_v11  ;;  %v10479_v27 = vpop.f32.mrf.mxu1 }
 0x44a   :  { %10765 = vmatmul.mubr.bf16.vlgmr.msra.gmra.mxu0 %v16295_v12  ;;  %v17059_v58 = vadd.f32 %v10479_v27, %v16855_v28  ;;  %10774 = vmatpush1.bf16.msra.mxu1 %v14468_v51  ;;  %v4928_v28 = vld [vmem:[%s19280_s9 + $0x1a10] sm:$0xff] }
 0x44b   :  { %10805 = vmatprep.mubr.bf16.mxu1 %v16425_v19  ;;  %10815 = vmatpush1.bf16.msra.mxu0 %v13702_v61  ;;  %v17062_v47 = vpop.f32.mrf.mxu0  ;;  %v10481_v60 = vpop.f32.mrf.mxu1  ;;  %v14421_v24 = vcombine.high %v4928_v28, %v4936_v20  ;;  %v14420_v48 = vcombine.low %v4928_v28, %v4936_v20  ;;  %v4880_v51 = vld [vmem:[%s19280_s9 + $0x1890] sm:$0xff]  ;;  %v4121_v61 = vld [vmem:[%s19280_s9 + $0xd8] sm:$0xff] }
 0x44c   :  { %10846 = vmatprep.mubr.bf16.mxu0 %v15958_v17  ;;  %v17066_v23 = vadd.f32 %v10481_v60, %v16860_v34  ;;  %10775 = vmatprep.subr.bf16.mxu1 %v14453_v14  ;;  %v4169_v34 = vld [vmem:[%s19280_s9 + $0x258] sm:$0xff]  ;;  %v14388_v14 = vcombine.low %v4896_v37, %v4904_v45  ;;  %v14373_v26 = vcombine.high %v4880_v51, %v4888_v9  ;;  %v5104_v28 = vld [vmem:[%s19280_s9 + $0x1f90] sm:$0xff]  ;;  %vm11634_vm13 = vcmp.ge.f32.partialorder %v17059_v58, 0.0 }
 0x44d   :  { %v10524_v43 = vpop.f32.mrf.mxu0  ;;  %10816 = vmatprep.subr.bf16.mxu0 %v13687_v33  ;;  %v10483_v52 = vpop.f32.mrf.mxu1  ;;  %v13655_v18 = vcombine.high %v4161_v44, %v4169_v34  ;;  %v13654_v32 = vcombine.low %v4161_v44, %v4169_v34  ;;  %v13607_v27 = vcombine.high %v4113_v55, %v4121_v61  ;;  %v4864_v33 = vld [vmem:[%s19280_s9 + $0x1810] sm:$0xff]  ;;  %v14372_v60 = vcombine.low %v4880_v51, %v4888_v9 }
 0x44e   :  { %10776 = vmatpush1.bf16.msra.mxu1 %v14452_v59  ;;  %v4105_v59 = vld [vmem:[%s19280_s9 + $0x58] sm:$0xff]  ;;  %v5112_v20 = vld [vmem:[%s19280_s9 + $0x1fd0] sm:$0xff]  ;;  %v14356_v44 = vcombine.low %v4864_v33, %v4872_v57  ;;  %vm11635_vm12 = vcmp.ge.f32.partialorder %v17066_v23, 0.0 }
 0x44f   :  { %10817 = vmatpush1.bf16.msra.mxu0 %v13686_v30  ;;  %v10525_v25 = vpop.f32.mrf.mxu0  ;;  %v10484_v42 = vpop.f32.mrf.mxu1  ;;  %10777 = vmatprep.subr.bf16.mxu1 %v14437_v63  ;;  %v13606_v30 = vcombine.low %v4113_v55, %v4121_v61  ;;  %v14357_v63 = vcombine.high %v4864_v33, %v4872_v57  ;;  %v4337_v43 = vld [vmem:[%s19280_s9 + $0x798] sm:$0xff]  ;;  %v13590_v34 = vcombine.low %v4097_v22, %v4105_v59 }
 0x450   :  { %10818 = vmatprep.subr.bf16.mxu0 %v13671_v40  ;;  %v13591_v40 = vcombine.high %v4097_v22, %v4105_v59  ;;  %v4345_v52 = vld [vmem:[%s19280_s9 + $0x7d8] sm:$0xff]  ;;  %v5088_v42 = vld [vmem:[%s19280_s9 + $0x1f10] sm:$0xff]  ;;  %v14596_v31 = vcombine.low %v5104_v28, %v5112_v20 }
 0x451   :  { %v13831_v25 = vcombine.high %v4337_v43, %v4345_v52  ;;  %v13830_v6 = vcombine.low %v4337_v43, %v4345_v52 }
 0x452   :  { %10778 = vmatpush1.bf16.msra.mxu1 %v14436_v62  ;;  %v14597_v62 = vcombine.high %v5104_v28, %v5112_v20 }
 0x453   :  { %10819 = vmatpush1.bf16.msra.mxu0 %v13670_v21  ;;  %10779 = vmatprep.subr.bf16.mxu1 %v14421_v24  ;;  %v5096_v21 = vld [vmem:[%s19280_s9 + $0x1f50] sm:$0xff]  ;;  %v4321_v24 = vld [vmem:[%s19280_s9 + $0x718] sm:$0xff] }
 0x454   :  { %10820 = vmatprep.subr.bf16.mxu0 %v13655_v18  ;;  %v4329_v18 = vld [vmem:[%s19280_s9 + $0x758] sm:$0xff]  ;;  %v14581_v13 = vcombine.high %v5088_v42, %v5096_v21  ;;  %v14580_v37 = vcombine.low %v5088_v42, %v5096_v21 }
 0x455   :  { %v13815_v39 = vcombine.high %v4321_v24, %v4329_v18  ;;  %v13814_v45 = vcombine.low %v4321_v24, %v4329_v18 }
 0x456   :  { %10780 = vmatpush1.bf16.msra.mxu1 %v14420_v48  ;;  %v5072_v48 = vld [vmem:[%s19280_s9 + $0x1e90] sm:$0xff] }
 0x457   :  { %10821 = vmatpush1.bf16.msra.mxu0 %v13654_v32  ;;  %10781 = vmatprep.subr.bf16.mxu1 %v14405_v36  ;;  %v5080_v32 = vld [vmem:[%s19280_s9 + $0x1ed0] sm:$0xff]  ;;  %v4305_v36 = vld [vmem:[%s19280_s9 + $0x698] sm:$0xff] }
 0x458   :  { %10822 = vmatprep.subr.bf16.mxu0 %v13639_v5  ;;  %v4313_v5 = vld [vmem:[%s19280_s9 + $0x6d8] sm:$0xff]  ;;  %v14565_v50 = vcombine.high %v5072_v48, %v5080_v32  ;;  %v14564_v51 = vcombine.low %v5072_v48, %v5080_v32 }
 0x459   :  { %v13799_v10 = vcombine.high %v4305_v36, %v4313_v5  ;;  %v13798_v9 = vcombine.low %v4305_v36, %v4313_v5 }
 0x45a   :  { %10782 = vmatpush1.bf16.msra.mxu1 %v14404_v49  ;;  %v5056_v49 = vld [vmem:[%s19280_s9 + $0x1e10] sm:$0xff] }
 0x45b   :  { %10823 = vmatpush1.bf16.msra.mxu0 %v13638_v53  ;;  %10783 = vmatprep.subr.bf16.mxu1 %v14389_v46  ;;  %v5064_v53 = vld [vmem:[%s19280_s9 + $0x1e50] sm:$0xff]  ;;  %v4289_v46 = vld [vmem:[%s19280_s9 + $0x618] sm:$0xff] }
 0x45c   :  { %10824 = vmatprep.subr.bf16.mxu0 %v13623_v54  ;;  %v4297_v54 = vld [vmem:[%s19280_s9 + $0x658] sm:$0xff]  ;;  %v14549_v55 = vcombine.high %v5056_v49, %v5064_v53  ;;  %v14548_v33 = vcombine.low %v5056_v49, %v5064_v53 }
 0x45d   :  { %v13783_v61 = vcombine.high %v4289_v46, %v4297_v54  ;;  %v13782_v57 = vcombine.low %v4289_v46, %v4297_v54  ;;  %v17239_v54 = vld [vmem:[%s19281_s10] sm:$0xff] }
 0x45e   :  { %10784 = vmatpush1.bf16.msra.mxu1 %v14388_v14  ;;  %v5040_v14 = vld [vmem:[%s19280_s9 + $0x1d90] sm:$0xff] }
 0x45f   :  { %10825 = vmatpush1.bf16.msra.mxu0 %v13622_v56  ;;  %10785 = vmatprep.subr.bf16.mxu1 %v14373_v26  ;;  %v5048_v56 = vld [vmem:[%s19280_s9 + $0x1dd0] sm:$0xff]  ;;  %v4273_v26 = vld [vmem:[%s19280_s9 + $0x598] sm:$0xff] }
 0x460   :  { %10826 = vmatprep.subr.bf16.mxu0 %v13607_v27  ;;  %v4281_v27 = vld [vmem:[%s19280_s9 + $0x5d8] sm:$0xff]  ;;  %v14533_v22 = vcombine.high %v5040_v14, %v5048_v56  ;;  %v14532_v28 = vcombine.low %v5040_v14, %v5048_v56  ;;  %v5137_v14 = vrot.slane %v17239_v54, %v15729_v41 }
 0x461   :  { %v13767_v59 = vcombine.high %v4273_v26, %v4281_v27  ;;  %v13766_v20 = vcombine.low %v4273_v26, %v4281_v27  ;;  %v4705_v26 = vld [vmem:[%s19280_s9 + $0x1318] sm:$0xff] }
 0x462   :  { %10786 = vmatpush1.bf16.msra.mxu1 %v14372_v60  ;;  %v5024_v60 = vld [vmem:[%s19280_s9 + $0x1d10] sm:$0xff]  ;;  %v4713_v27 = vld [vmem:[%s19280_s9 + $0x1358] sm:$0xff] }
 0x463   :  { %10827 = vmatpush1.bf16.msra.mxu0 %v13606_v30  ;;  %10787 = vmatprep.subr.bf16.mxu1 %v14357_v63  ;;  %v5032_v30 = vld [vmem:[%s19280_s9 + $0x1d50] sm:$0xff]  ;;  %v4257_v63 = vld [vmem:[%s19280_s9 + $0x518] sm:$0xff] }
 0x464   :  { %10828 = vmatprep.subr.bf16.mxu0 %v13591_v40  ;;  %v4265_v40 = vld [vmem:[%s19280_s9 + $0x558] sm:$0xff]  ;;  %v14517_v43 = vcombine.high %v5024_v60, %v5032_v30  ;;  %v14516_v42 = vcombine.low %v5024_v60, %v5032_v30 }
 0x465   :  { %v13751_v52 = vcombine.high %v4257_v63, %v4265_v40  ;;  %v13750_v21 = vcombine.low %v4257_v63, %v4265_v40  ;;  %v4441_v60 = vld [vmem:[%s19280_s9 + $0xad8] sm:$0xff]  ;;  %v14199_v40 = vcombine.high %v4705_v26, %v4713_v27 }
 0x466   :  { %10788 = vmatpush1.bf16.msra.mxu1 %v14356_v44  ;;  %v5008_v44 = vld [vmem:[%s19280_s9 + $0x1c90] sm:$0xff] }
 0x467   :  { %10829 = vmatpush1.bf16.msra.mxu0 %v13590_v34  ;;  %10789 = vmatprep.subr.bf16.mxu1 %v14597_v62  ;;  %v5016_v34 = vld [vmem:[%s19280_s9 + $0x1cd0] sm:$0xff]  ;;  %v4241_v62 = vld [vmem:[%s19280_s9 + $0x498] sm:$0xff] }
 0x468   :  { %10830 = vmatprep.subr.bf16.mxu0 %v13831_v25  ;;  %v4249_v25 = vld [vmem:[%s19280_s9 + $0x4d8] sm:$0xff]  ;;  %v14501_v24 = vcombine.high %v5008_v44, %v5016_v34  ;;  %v14500_v48 = vcombine.low %v5008_v44, %v5016_v34 }
 0x469   :  { %v13735_v18 = vcombine.high %v4241_v62, %v4249_v25  ;;  %v13734_v32 = vcombine.low %v4241_v62, %v4249_v25  ;;  %v14198_v62 = vcombine.low %v4705_v26, %v4713_v27  ;;  %v4641_v26 = vld [vmem:[%s19280_s9 + $0x1118] sm:$0xff] }
 0x46a   :  { %10790 = vmatpush2.bf16.msra.mxu1 %v14596_v31  ;;  %v4992_v31 = vld [vmem:[%s19280_s9 + $0x1c10] sm:$0xff]  ;;  %v4649_v27 = vld [vmem:[%s19280_s9 + $0x1158] sm:$0xff] }
 0x46b   :  { %10831 = vmatpush2.bf16.msra.mxu0 %v13830_v6  ;;  %10791 = vmatprep.subr.bf16.mxu1 %v14581_v13  ;;  %v5000_v6 = vld [vmem:[%s19280_s9 + $0x1c50] sm:$0xff]  ;;  %v4225_v13 = vld [vmem:[%s19280_s9 + $0x418] sm:$0xff] }
 0x46c   :  { %10832 = vmatprep.subr.bf16.mxu0 %v13815_v39  ;;  %v4233_v39 = vld [vmem:[%s19280_s9 + $0x458] sm:$0xff]  ;;  %v14485_v36 = vcombine.high %v4992_v31, %v5000_v6  ;;  %v14484_v49 = vcombine.low %v4992_v31, %v5000_v6 }
 0x46d   :  { %v13719_v5 = vcombine.high %v4225_v13, %v4233_v39  ;;  %v13718_v53 = vcombine.low %v4225_v13, %v4233_v39  ;;  %v4673_v13 = vld [vmem:[%s19280_s9 + $0x1218] sm:$0xff] }
 0x46e   :  { %10792 = vmatpush2.bf16.msra.mxu1 %v14580_v37  ;;  %v4465_v37 = vld [vmem:[%s19280_s9 + $0xb98] sm:$0xff] }
 0x46f   :  { %10833 = vmatpush2.bf16.msra.mxu0 %v13814_v45  ;;  %10793 = vmatprep.subr.bf16.mxu1 %v14565_v50  ;;  %v4473_v45 = vld [vmem:[%s19280_s9 + $0xbd8] sm:$0xff] }
 0x470   :  { %10834 = vmatprep.subr.bf16.mxu0 %v13799_v10  ;;  %v4721_v50 = vld [vmem:[%s19280_s9 + $0x1398] sm:$0xff]  ;;  %v13959_v46 = vcombine.high %v4465_v37, %v4473_v45  ;;  %v13958_v56 = vcombine.low %v4465_v37, %v4473_v45 }
 0x471   :  { %v4729_v10 = vld [vmem:[%s19280_s9 + $0x13d8] sm:$0xff] }
 0x472   :  { %10794 = vmatpush2.bf16.msra.mxu1 %v14564_v51  ;;  %v5133_v51 = vrot.slane %v17239_v54, %v15726_v35  ;;  %v4681_v39 = vld [vmem:[%s19280_s9 + $0x1258] sm:$0xff] }
 0x473   :  { %10835 = vmatpush2.bf16.msra.mxu0 %v13798_v9  ;;  %10795 = vmatprep.subr.bf16.mxu1 %v14549_v55  ;;  %v14215_v9 = vcombine.high %v4721_v50, %v4729_v10  ;;  %v4449_v55 = vld [vmem:[%s19280_s9 + $0xb18] sm:$0xff] }
 0x474   :  { %10836 = vmatprep.subr.bf16.mxu0 %v13783_v61  ;;  %v4457_v61 = vld [vmem:[%s19280_s9 + $0xb58] sm:$0xff] }
 0x476   :  { %10796 = vmatpush2.bf16.msra.mxu1 %v14548_v33  ;;  %v14214_v33 = vcombine.low %v4721_v50, %v4729_v10  ;;  %v14167_v50 = vcombine.high %v4673_v13, %v4681_v39  ;;  %v4401_v10 = vld [vmem:[%s19280_s9 + $0x998] sm:$0xff] }
 0x477   :  { %10837 = vmatpush2.bf16.msra.mxu0 %v13782_v57  ;;  %10797 = vmatprep.subr.bf16.mxu1 %v14533_v22  ;;  %v10521_v57 = vadd.f32 %v17048_v8, %v5133_v51  ;;  %v13943_v22 = vcombine.high %v4449_v55, %v4457_v61  ;;  %v4697_v8 = vld [vmem:[%s19280_s9 + $0x12d8] sm:$0xff] }
 0x478   :  { %10838 = vmatprep.subr.bf16.mxu0 %v13767_v59  ;;  %v4433_v59 = vld [vmem:[%s19280_s9 + $0xa98] sm:$0xff] }
 0x479   :  { %v13927_v25 = vcombine.high %v4433_v59, %v4441_v60 }
 0x47a   :  { %10798 = vmatpush2.bf16.msra.mxu1 %v14532_v28  ;;  %v4689_v28 = vld [vmem:[%s19280_s9 + $0x1298] sm:$0xff] }
 0x47b   :  { %10839 = vmatpush2.bf16.msra.mxu0 %v13766_v20  ;;  %10799 = vmatprep.subr.bf16.mxu1 %v14517_v43  ;;  %v10523_v20 = vadd.f32 %v17062_v47, %v5137_v14  ;;  %v4417_v47 = vld [vmem:[%s19280_s9 + $0xa18] sm:$0xff]  ;;  %v14182_v37 = vcombine.low %v4689_v28, %v4697_v8 }
 0x47c   :  { %10840 = vmatprep.subr.bf16.mxu0 %v13751_v52  ;;  %v13942_v52 = vcombine.low %v4449_v55, %v4457_v61  ;;  %v4385_v14 = vld [vmem:[%s19280_s9 + $0x918] sm:$0xff] }
 0x47e   :  { %10800 = vmatpush2.bf16.msra.mxu1 %v14516_v42 }
 0x47f   :  { %10841 = vmatpush2.bf16.msra.mxu0 %v13750_v21  ;;  %10801 = vmatprep.subr.bf16.mxu1 %v14501_v24  ;;  %v14183_v24 = vcombine.high %v4689_v28, %v4697_v8  ;;  %v14134_v8 = vcombine.low %v4641_v26, %v4649_v27 }
 0x480   :  { %10842 = vmatprep.subr.bf16.mxu0 %v13735_v18  ;;  %v4425_v18 = vld [vmem:[%s19280_s9 + $0xa58] sm:$0xff] }
 0x481   :  { %v13911_v45 = vcombine.high %v4417_v47, %v4425_v18  ;;  %v13910_v51 = vcombine.low %v4417_v47, %v4425_v18  ;;  %v4593_v18 = vld [vmem:[%s19280_s9 + $0xf98] sm:$0xff] }
 0x482   :  { %10802 = vmatpush2.bf16.msra.mxu1 %v14500_v48 }
 0x483   :  { %10843 = vmatpush2.bf16.msra.mxu0 %v13734_v32  ;;  %10803 = vmatprep.subr.bf16.mxu1 %v14485_v36  ;;  %v13926_v32 = vcombine.low %v4433_v59, %v4441_v60  ;;  %v14135_v59 = vcombine.high %v4641_v26, %v4649_v27  ;;  %v4369_v60 = vld [vmem:[%s19280_s9 + $0x898] sm:$0xff] }
 0x484   :  { %10844 = vmatprep.subr.bf16.mxu0 %v13719_v5 }
 0x486   :  { %10804 = vmatpush2.bf16.msra.mxu1 %v14484_v49  ;;  %v4409_v49 = vld [vmem:[%s19280_s9 + $0x9d8] sm:$0xff] }
 0x487   :  { %10845 = vmatpush2.bf16.msra.mxu0 %v13718_v53  ;;  %10855 = vmatprep.subr.bf16.mxu1 %v13959_v46  ;;  %v4657_v53 = vld [vmem:[%s19280_s9 + $0x1198] sm:$0xff]  ;;  %v13895_v55 = vcombine.high %v4401_v10, %v4409_v49 }
 0x488   :  { %10896 = vmatprep.subr.bf16.mxu0 %v14215_v9  ;;  %v4665_v46 = vld [vmem:[%s19280_s9 + $0x11d8] sm:$0xff]  ;;  %v14166_v9 = vcombine.low %v4673_v13, %v4681_v39 }
 0x489   :  { %v10561_v30 = vpop.f32.mrf.mxu1  ;;  %v10602_v63 = vpop.f32.mrf.mxu0  ;;  %10806 = vmatmul.mubr.bf16.vlgmr.msra.gmra.mxu1 %v16427_v0  ;;  %v14151_v61 = vcombine.high %v4657_v53, %v4665_v46  ;;  %v4857_v13 = vld [vmem:[%s19280_s9 + $0x17d8] sm:$0xff] }
 0x48a   :  { %v10562_v43 = vadd.f32 %v10561_v30, %v10521_v57  ;;  %10847 = vmatmul.mubr.bf16.vlgmr.msra.gmra.mxu0 %v15965_v29  ;;  %10856 = vmatpush1.bf16.msra.mxu1 %v13958_v56  ;;  %v4393_v56 = vld [vmem:[%s19280_s9 + $0x958] sm:$0xff]  ;;  %v14150_v57 = vcombine.low %v4657_v53, %v4665_v46 }
 0x48b   :  { %10887 = vmatprep.mubr.bf16.mxu1 %v16161_v1  ;;  %10897 = vmatpush1.bf16.msra.mxu0 %v14214_v33  ;;  %v10563_v44 = vpop.f32.mrf.mxu1  ;;  %v10604_v34 = vpop.f32.mrf.mxu0  ;;  %v13894_v33 = vcombine.low %v4401_v10, %v4409_v49  ;;  %v4377_v30 = vld [vmem:[%s19280_s9 + $0x8d8] sm:$0xff]  ;;  %v13878_v28 = vcombine.low %v4385_v14, %v4393_v56 }
 0x48c   :  { %v17274_v42 = vadd.f32 %v10602_v63, %v10562_v43  ;;  %10928 = vmatprep.mubr.bf16.mxu0 %v16293_v4  ;;  %v10564_v21 = vadd.f32 %v10563_v44, %v10523_v20  ;;  %10857 = vmatprep.subr.bf16.mxu1 %v13943_v22  ;;  %v13879_v22 = vcombine.high %v4385_v14, %v4393_v56  ;;  %v4625_v63 = vld [vmem:[%s19280_s9 + $0x1098] sm:$0xff] }
 0x48d   :  { %v10565_v31 = vpop.f32.mrf.mxu1  ;;  %v10606_v6 = vpop.f32.mrf.mxu0  ;;  %10898 = vmatprep.subr.bf16.mxu0 %v14199_v40  ;;  %v4633_v40 = vld [vmem:[%s19280_s9 + $0x10d8] sm:$0xff]  ;;  %v13863_v20 = vcombine.high %v4369_v60, %v4377_v30 }
 0x48e   :  { %v17289_v48 = vadd.f32 %v10604_v34, %v10564_v21  ;;  %10858 = vmatpush1.bf16.msra.mxu1 %v13942_v52  ;;  %v14119_v43 = vcombine.high %v4625_v63, %v4633_v40  ;;  %v4353_v52 = vld [vmem:[%s19280_s9 + $0x818] sm:$0xff]  ;;  %v14118_v21 = vcombine.low %v4625_v63, %v4633_v40 }
 0x48f   :  { %10899 = vmatpush1.bf16.msra.mxu0 %v14198_v62  ;;  %v10566_v36 = vpop.f32.mrf.mxu1  ;;  %v10607_v5 = vpop.f32.mrf.mxu0  ;;  %10859 = vmatprep.subr.bf16.mxu1 %v13927_v25  ;;  %v4361_v44 = vld [vmem:[%s19280_s9 + $0x858] sm:$0xff]  ;;  %v13862_v25 = vcombine.low %v4369_v60, %v4377_v30 }
 0x490   :  { %10900 = vmatprep.subr.bf16.mxu0 %v14183_v24  ;;  %v4609_v34 = vld [vmem:[%s19280_s9 + $0x1018] sm:$0xff]  ;;  %v13847_v24 = vcombine.high %v4353_v52, %v4361_v44  ;;  %v13846_v39 = vcombine.low %v4353_v52, %v4361_v44 }
 0x491   :  { %v4617_v62 = vld [vmem:[%s19280_s9 + $0x1058] sm:$0xff] }
 0x492   :  { %10860 = vmatpush1.bf16.msra.mxu1 %v13926_v32  ;;  %v14103_v47 = vcombine.high %v4609_v34, %v4617_v62  ;;  %v4601_v31 = vld [vmem:[%s19280_s9 + $0xfd8] sm:$0xff]  ;;  %v14102_v32 = vcombine.low %v4609_v34, %v4617_v62 }
 0x493   :  { %10901 = vmatpush1.bf16.msra.mxu0 %v14182_v37  ;;  %10861 = vmatprep.subr.bf16.mxu1 %v13911_v45  ;;  %v4849_v6 = vld [vmem:[%s19280_s9 + $0x1798] sm:$0xff]  ;;  %v14087_v36 = vcombine.high %v4593_v18, %v4601_v31  ;;  %v14086_v49 = vcombine.low %v4593_v18, %v4601_v31 }
 0x494   :  { %10902 = vmatprep.subr.bf16.mxu0 %v14167_v50  ;;  %v14343_v5 = vcombine.high %v4849_v6, %v4857_v13  ;;  %v4577_v37 = vld [vmem:[%s19280_s9 + $0xf18] sm:$0xff]  ;;  %v14342_v53 = vcombine.low %v4849_v6, %v4857_v13 }
 0x495   :  { %v4585_v45 = vld [vmem:[%s19280_s9 + $0xf58] sm:$0xff] }
 0x496   :  { %10862 = vmatpush1.bf16.msra.mxu1 %v13910_v51  ;;  %v4833_v50 = vld [vmem:[%s19280_s9 + $0x1718] sm:$0xff]  ;;  %v14071_v46 = vcombine.high %v4577_v37, %v4585_v45  ;;  %v14070_v56 = vcombine.low %v4577_v37, %v4585_v45 }
 0x497   :  { %10903 = vmatpush1.bf16.msra.mxu0 %v14166_v9  ;;  %10863 = vmatprep.subr.bf16.mxu1 %v13895_v55  ;;  %v4841_v10 = vld [vmem:[%s19280_s9 + $0x1758] sm:$0xff] }
 0x498   :  { %10904 = vmatprep.subr.bf16.mxu0 %v14151_v61  ;;  %v14327_v51 = vcombine.high %v4833_v50, %v4841_v10  ;;  %v4561_v9 = vld [vmem:[%s19280_s9 + $0xe98] sm:$0xff]  ;;  %v14326_v26 = vcombine.low %v4833_v50, %v4841_v10 }
 0x499   :  { %v4569_v55 = vld [vmem:[%s19280_s9 + $0xed8] sm:$0xff] }
 0x49a   :  { %10864 = vmatpush1.bf16.msra.mxu1 %v13894_v33  ;;  %v4817_v61 = vld [vmem:[%s19280_s9 + $0x1698] sm:$0xff]  ;;  %v14055_v27 = vcombine.high %v4561_v9, %v4569_v55  ;;  %v14054_v30 = vcombine.low %v4561_v9, %v4569_v55 }
 0x49b   :  { %10905 = vmatpush1.bf16.msra.mxu0 %v14150_v57  ;;  %10865 = vmatprep.subr.bf16.mxu1 %v13879_v22  ;;  %v4825_v14 = vld [vmem:[%s19280_s9 + $0x16d8] sm:$0xff] }
 0x49c   :  { %10906 = vmatprep.subr.bf16.mxu0 %v14135_v59  ;;  %v14311_v33 = vcombine.high %v4817_v61, %v4825_v14  ;;  %v4545_v57 = vld [vmem:[%s19280_s9 + $0xe18] sm:$0xff]  ;;  %v14310_v63 = vcombine.low %v4817_v61, %v4825_v14 }
 0x49d   :  { %v4553_v22 = vld [vmem:[%s19280_s9 + $0xe58] sm:$0xff] }
 0x49e   :  { %10866 = vmatpush1.bf16.msra.mxu1 %v13878_v28  ;;  %v4801_v59 = vld [vmem:[%s19280_s9 + $0x1618] sm:$0xff]  ;;  %v14039_v40 = vcombine.high %v4545_v57, %v4553_v22  ;;  %v14038_v44 = vcombine.low %v4545_v57, %v4553_v22  ;;  %v4218_v57 = vld [vmem:[%s19280_s9 + $0x3e0] sm:$0xff] }
 0x49f   :  { %10907 = vmatpush1.bf16.msra.mxu0 %v14134_v8  ;;  %10867 = vmatprep.subr.bf16.mxu1 %v13863_v20  ;;  %v4809_v60 = vld [vmem:[%s19280_s9 + $0x1658] sm:$0xff] }
 0x4a0   :  { %10908 = vmatprep.subr.bf16.mxu0 %v14119_v43  ;;  %v14295_v28 = vcombine.high %v4801_v59, %v4809_v60  ;;  %v4529_v8 = vld [vmem:[%s19280_s9 + $0xd98] sm:$0xff]  ;;  %v14294_v34 = vcombine.low %v4801_v59, %v4809_v60 }
 0x4a1   :  { %v4537_v20 = vld [vmem:[%s19280_s9 + $0xdd8] sm:$0xff] }
 0x4a2   :  { %10868 = vmatpush1.bf16.msra.mxu1 %v13862_v25  ;;  %v4785_v43 = vld [vmem:[%s19280_s9 + $0x1598] sm:$0xff]  ;;  %v14023_v62 = vcombine.high %v4529_v8, %v4537_v20  ;;  %v14022_v31 = vcombine.low %v4529_v8, %v4537_v20  ;;  %v4194_v8 = vld [vmem:[%s19280_s9 + $0x320] sm:$0xff] }
 0x4a3   :  { %10909 = vmatpush1.bf16.msra.mxu0 %v14118_v21  ;;  %10869 = vmatprep.subr.bf16.mxu1 %v13847_v24  ;;  %v4793_v52 = vld [vmem:[%s19280_s9 + $0x15d8] sm:$0xff]  ;;  %v4202_v20 = vld [vmem:[%s19280_s9 + $0x360] sm:$0xff] }
 0x4a4   :  { %10910 = vmatprep.subr.bf16.mxu0 %v14103_v47  ;;  %v14279_v25 = vcombine.high %v4785_v43, %v4793_v52  ;;  %v4513_v21 = vld [vmem:[%s19280_s9 + $0xd18] sm:$0xff]  ;;  %v14278_v6 = vcombine.low %v4785_v43, %v4793_v52 }
 0x4a5   :  { %v4521_v24 = vld [vmem:[%s19280_s9 + $0xd58] sm:$0xff] }
 0x4a6   :  { %10870 = vmatpush1.bf16.msra.mxu1 %v13846_v39  ;;  %v4769_v47 = vld [vmem:[%s19280_s9 + $0x1518] sm:$0xff]  ;;  %v14007_v13 = vcombine.high %v4513_v21, %v4521_v24  ;;  %v14006_v45 = vcombine.low %v4513_v21, %v4521_v24  ;;  %v4178_v21 = vld [vmem:[%s19280_s9 + $0x2a0] sm:$0xff] }
 0x4a7   :  { %10911 = vmatpush1.bf16.msra.mxu0 %v14102_v32  ;;  %10871 = vmatprep.subr.bf16.mxu1 %v14087_v36  ;;  %v4777_v18 = vld [vmem:[%s19280_s9 + $0x1558] sm:$0xff]  ;;  %v4186_v24 = vld [vmem:[%s19280_s9 + $0x2e0] sm:$0xff] }
 0x4a8   :  { %10912 = vmatprep.subr.bf16.mxu0 %v14343_v5  ;;  %v14263_v39 = vcombine.high %v4769_v47, %v4777_v18  ;;  %v4497_v32 = vld [vmem:[%s19280_s9 + $0xc98] sm:$0xff]  ;;  %v14262_v50 = vcombine.low %v4769_v47, %v4777_v18 }
 0x4a9   :  { %v4505_v36 = vld [vmem:[%s19280_s9 + $0xcd8] sm:$0xff] }
 0x4aa   :  { %10872 = vmatpush2.bf16.msra.mxu1 %v14086_v49  ;;  %v4753_v5 = vld [vmem:[%s19280_s9 + $0x1498] sm:$0xff]  ;;  %v13991_v10 = vcombine.high %v4497_v32, %v4505_v36  ;;  %v13990_v55 = vcombine.low %v4497_v32, %v4505_v36 }
 0x4ab   :  { %10913 = vmatpush2.bf16.msra.mxu0 %v14342_v53  ;;  %10873 = vmatprep.subr.bf16.mxu1 %v14071_v46  ;;  %v4761_v37 = vld [vmem:[%s19280_s9 + $0x14d8] sm:$0xff] }
 0x4ac   :  { %10914 = vmatprep.subr.bf16.mxu0 %v14327_v51  ;;  %v14247_v49 = vcombine.high %v4753_v5, %v4761_v37  ;;  %v4481_v53 = vld [vmem:[%s19280_s9 + $0xc18] sm:$0xff]  ;;  %v14246_v61 = vcombine.low %v4753_v5, %v4761_v37 }
 0x4ad   :  { %v4489_v46 = vld [vmem:[%s19280_s9 + $0xc58] sm:$0xff] }
 0x4ae   :  { %10874 = vmatpush2.bf16.msra.mxu1 %v14070_v56  ;;  %v4737_v51 = vld [vmem:[%s19280_s9 + $0x1418] sm:$0xff]  ;;  %v13975_v14 = vcombine.high %v4481_v53, %v4489_v46  ;;  %v13974_v22 = vcombine.low %v4481_v53, %v4489_v46  ;;  %v13672_v46 = vcombine.low %v4178_v21, %v4186_v24 }
 0x4af   :  { %10915 = vmatpush2.bf16.msra.mxu0 %v14326_v26  ;;  %10875 = vmatprep.subr.bf16.mxu1 %v14055_v27  ;;  %v4745_v9 = vld [vmem:[%s19280_s9 + $0x1458] sm:$0xff] }
 0x4b0   :  { %10916 = vmatprep.subr.bf16.mxu0 %v14311_v33  ;;  %v14231_v56 = vcombine.high %v4737_v51, %v4745_v9  ;;  %v4977_v26 = vld [vmem:[%s19280_s9 + $0x1b98] sm:$0xff]  ;;  %v4210_v33 = vld [vmem:[%s19280_s9 + $0x3a0] sm:$0xff]  ;;  %v14230_v59 = vcombine.low %v4737_v51, %v4745_v9 }
 0x4b1   :  { %v4985_v27 = vld [vmem:[%s19280_s9 + $0x1bd8] sm:$0xff]  ;;  %v13704_v43 = vcombine.low %v4210_v33, %v4218_v57 }
 0x4b2   :  { %10876 = vmatpush2.bf16.msra.mxu1 %v14054_v30  ;;  %v14471_v60 = vcombine.high %v4977_v26, %v4985_v27  ;;  %v13705_v30 = vcombine.high %v4210_v33, %v4218_v57  ;;  %v4929_v5 = vld [vmem:[%s19280_s9 + $0x1a18] sm:$0xff] }
 0x4b3   :  { %10917 = vmatpush2.bf16.msra.mxu0 %v14310_v63  ;;  %10877 = vmatprep.subr.bf16.mxu1 %v14039_v40  ;;  %v4961_v63 = vld [vmem:[%s19280_s9 + $0x1b18] sm:$0xff] }
 0x4b4   :  { %10918 = vmatprep.subr.bf16.mxu0 %v14295_v28  ;;  %v4969_v40 = vld [vmem:[%s19280_s9 + $0x1b58] sm:$0xff]  ;;  %v14470_v28 = vcombine.low %v4977_v26, %v4985_v27  ;;  %v4154_v26 = vld [vmem:[%s19280_s9 + $0x1e0] sm:$0xff] }
 0x4b5   :  { %v14455_v52 = vcombine.high %v4961_v63, %v4969_v40  ;;  %v4937_v37 = vld [vmem:[%s19280_s9 + $0x1a58] sm:$0xff] }
 0x4b6   :  { %10878 = vmatpush2.bf16.msra.mxu1 %v14038_v44  ;;  %v4945_v44 = vld [vmem:[%s19280_s9 + $0x1a98] sm:$0xff]  ;;  %v14423_v51 = vcombine.high %v4929_v5, %v4937_v37  ;;  %v14422_v27 = vcombine.low %v4929_v5, %v4937_v37 }
 0x4b7   :  { %10919 = vmatpush2.bf16.msra.mxu0 %v14294_v34  ;;  %10879 = vmatprep.subr.bf16.mxu1 %v14023_v62  ;;  %v4953_v34 = vld [vmem:[%s19280_s9 + $0x1ad8] sm:$0xff] }
 0x4b8   :  { %10920 = vmatprep.subr.bf16.mxu0 %v14279_v25  ;;  %v13689_v25 = vcombine.high %v4194_v8, %v4202_v20 }
 0x4ba   :  { %10880 = vmatpush2.bf16.msra.mxu1 %v14022_v31  ;;  %v14454_v31 = vcombine.low %v4961_v63, %v4969_v40  ;;  %v4138_v63 = vld [vmem:[%s19280_s9 + $0x160] sm:$0xff] }
 0x4bb   :  { %10921 = vmatpush2.bf16.msra.mxu0 %v14278_v6  ;;  %10881 = vmatprep.subr.bf16.mxu1 %v14007_v13  ;;  %v13688_v13 = vcombine.low %v4194_v8, %v4202_v20 }
 0x4bc   :  { %10922 = vmatprep.subr.bf16.mxu0 %v14263_v39  ;;  %v14439_v39 = vcombine.high %v4945_v44, %v4953_v34 }
 0x4be   :  { %10882 = vmatpush2.bf16.msra.mxu1 %v14006_v45 }
 0x4bf   :  { %10923 = vmatpush2.bf16.msra.mxu0 %v14262_v50  ;;  %10883 = vmatprep.subr.bf16.mxu1 %v13991_v10  ;;  %v4162_v50 = vld [vmem:[%s19280_s9 + $0x220] sm:$0xff] }
 0x4c0   :  { %10924 = vmatprep.subr.bf16.mxu0 %v14247_v49  ;;  %v14438_v49 = vcombine.low %v4945_v44, %v4953_v34  ;;  %v4114_v44 = vld [vmem:[%s19280_s9 + $0xa0] sm:$0xff] }
 0x4c1   :  { %v4122_v34 = vld [vmem:[%s19280_s9 + $0xe0] sm:$0xff] }
 0x4c2   :  { %10884 = vmatpush2.bf16.msra.mxu1 %v13990_v55  ;;  %v13608_v5 = vcombine.low %v4114_v44, %v4122_v34 }
 0x4c3   :  { %10925 = vmatpush2.bf16.msra.mxu0 %v14246_v61  ;;  %10885 = vmatprep.subr.bf16.mxu1 %v13975_v14  ;;  %v4913_v61 = vld [vmem:[%s19280_s9 + $0x1998] sm:$0xff] }
 0x4c4   :  { %10926 = vmatprep.subr.bf16.mxu0 %v14231_v56  ;;  %v4921_v14 = vld [vmem:[%s19280_s9 + $0x19d8] sm:$0xff]  ;;  %v4146_v56 = vld [vmem:[%s19280_s9 + $0x1a0] sm:$0xff] }
 0x4c5   :  { %v14407_v57 = vcombine.high %v4913_v61, %v4921_v14  ;;  %v14406_v40 = vcombine.low %v4913_v61, %v4921_v14  ;;  %v5097_v61 = vld [vmem:[%s19280_s9 + $0x1f58] sm:$0xff]  ;;  %v4322_v14 = vld [vmem:[%s19280_s9 + $0x720] sm:$0xff] }
 0x4c6   :  { %10886 = vmatpush2.bf16.msra.mxu1 %v13974_v22  ;;  %v13641_v22 = vcombine.high %v4146_v56, %v4154_v26 }
 0x4c7   :  { %10927 = vmatpush2.bf16.msra.mxu0 %v14230_v59  ;;  %10937 = vmatprep.subr.bf16.mxu1 %v14471_v60  ;;  %v4897_v59 = vld [vmem:[%s19280_s9 + $0x1918] sm:$0xff] }
 0x4c8   :  { %10978 = vmatprep.subr.bf16.mxu0 %v13705_v30  ;;  %v4905_v60 = vld [vmem:[%s19280_s9 + $0x1958] sm:$0xff]  ;;  %v4130_v30 = vld [vmem:[%s19280_s9 + $0x120] sm:$0xff] }
 0x4c9   :  { %v10643_v62 = vpop.f32.mrf.mxu1  ;;  %10888 = vmatmul.mubr.bf16.vlgmr.msra.gmra.mxu1 %v16175_v11  ;;  %v14391_v8 = vcombine.high %v4897_v59, %v4905_v60  ;;  %v13625_v20 = vcombine.high %v4130_v30, %v4138_v63 }
 0x4ca   :  { %v17473_v47 = vadd.f32 %v10643_v62, %v17274_v42  ;;  %v17475_v18 = vpop.f32.mrf.mxu0  ;;  %10929 = vmatmul.mubr.bf16.vlgmr.msra.gmra.mxu0 %v16295_v12  ;;  %10938 = vmatpush1.bf16.msra.mxu1 %v14470_v28  ;;  %v13673_v42 = vcombine.high %v4178_v21, %v4186_v24  ;;  %v13640_v28 = vcombine.low %v4146_v56, %v4154_v26  ;;  %v4330_v56 = vld [vmem:[%s19280_s9 + $0x760] sm:$0xff] }
 0x4cb   :  { %10969 = vmatprep.mubr.bf16.mxu1 %v16425_v19  ;;  %10979 = vmatpush1.bf16.msra.mxu0 %v13704_v43  ;;  %v10645_v6 = vpop.f32.mrf.mxu1  ;;  %v4881_v43 = vld [vmem:[%s19280_s9 + $0x1898] sm:$0xff]  ;;  %v14390_v62 = vcombine.low %v4897_v59, %v4905_v60  ;;  %v13609_v24 = vcombine.high %v4114_v44, %v4122_v34  ;;  %v4306_v60 = vld [vmem:[%s19280_s9 + $0x6a0] sm:$0xff] }
 0x4cc   :  { %11010 = vmatprep.mubr.bf16.mxu0 %v15958_v17  ;;  %v17481_v32 = vadd.f32 %v10645_v6, %v17289_v48  ;;  %v17483_v36 = vpop.f32.mrf.mxu0  ;;  %10939 = vmatprep.subr.bf16.mxu1 %v14455_v52  ;;  %v4170_v48 = vld [vmem:[%s19280_s9 + $0x260] sm:$0xff]  ;;  %v4889_v52 = vld [vmem:[%s19280_s9 + $0x18d8] sm:$0xff]  ;;  %vm11636_vm2 = vcmp.ge.f32.partialorder %v17473_v47, 0.0 }
 0x4cd   :  { %v10647_v45 = vpop.f32.mrf.mxu1  ;;  %10980 = vmatprep.subr.bf16.mxu0 %v13689_v25  ;;  %v13657_v55 = vcombine.high %v4162_v50, %v4170_v48  ;;  %v13656_v33 = vcombine.low %v4162_v50, %v4170_v48  ;;  %v13624_v25 = vcombine.low %v4130_v30, %v4138_v63  ;;  %v14375_v21 = vcombine.high %v4881_v43, %v4889_v52  ;;  %v4873_v6 = vld [vmem:[%s19280_s9 + $0x1858] sm:$0xff]  ;;  %v4314_v30 = vld [vmem:[%s19280_s9 + $0x6e0] sm:$0xff] }
 0x4ce   :  { %v10688_v10 = vpop.f32.mrf.mxu0  ;;  %10940 = vmatpush1.bf16.msra.mxu1 %v14454_v31  ;;  %v4865_v31 = vld [vmem:[%s19280_s9 + $0x1818] sm:$0xff]  ;;  %v4298_v44 = vld [vmem:[%s19280_s9 + $0x660] sm:$0xff]  ;;  %vm11637_vm0 = vcmp.ge.f32.partialorder %v17481_v32, 0.0 }
 0x4cf   :  { %10981 = vmatpush1.bf16.msra.mxu0 %v13688_v13  ;;  %v10648_v53 = vpop.f32.mrf.mxu1  ;;  %10941 = vmatprep.subr.bf16.mxu1 %v14439_v39  ;;  %v4098_v13 = vld [vmem:[%s19280_s9 + $0x20] sm:$0xff]  ;;  %v14359_v37 = vcombine.high %v4865_v31, %v4873_v6  ;;  %v5105_v50 = vld [vmem:[%s19280_s9 + $0x1f98] sm:$0xff] }
 0x4d0   :  { %v10689_v9 = vpop.f32.mrf.mxu0  ;;  %10982 = vmatprep.subr.bf16.mxu0 %v13673_v42  ;;  %v4106_v39 = vld [vmem:[%s19280_s9 + $0x60] sm:$0xff]  ;;  %v14374_v42 = vcombine.low %v4881_v43, %v4889_v52  ;;  %v5113_v48 = vld [vmem:[%s19280_s9 + $0x1fd8] sm:$0xff]  ;;  %v14358_v53 = vcombine.low %v4865_v31, %v4873_v6 }
 0x4d1   :  { %v13593_v45 = vcombine.high %v4098_v13, %v4106_v39  ;;  %v4338_v10 = vld [vmem:[%s19280_s9 + $0x7a0] sm:$0xff]  ;;  %v14598_v26 = vcombine.low %v5105_v50, %v5113_v48  ;;  %v5081_v59 = vld [vmem:[%s19280_s9 + $0x1ed8] sm:$0xff] }
 0x4d2   :  { %10942 = vmatpush1.bf16.msra.mxu1 %v14438_v49  ;;  %v4346_v49 = vld [vmem:[%s19280_s9 + $0x7e0] sm:$0xff]  ;;  %v5065_v43 = vld [vmem:[%s19280_s9 + $0x1e58] sm:$0xff] }
 0x4d3   :  { %10983 = vmatpush1.bf16.msra.mxu0 %v13672_v46  ;;  %10943 = vmatprep.subr.bf16.mxu1 %v14423_v51  ;;  %v13592_v46 = vcombine.low %v4098_v13, %v4106_v39  ;;  %v14599_v51 = vcombine.high %v5105_v50, %v5113_v48  ;;  %v13833_v9 = vcombine.high %v4338_v10, %v4346_v49  ;;  %v4290_v52 = vld [vmem:[%s19280_s9 + $0x620] sm:$0xff]  ;;  %v5049_v31 = vld [vmem:[%s19280_s9 + $0x1dd8] sm:$0xff] }
 0x4d4   :  { %10984 = vmatprep.subr.bf16.mxu0 %v13657_v55  ;;  %v5089_v55 = vld [vmem:[%s19280_s9 + $0x1f18] sm:$0xff]  ;;  %v4274_v6 = vld [vmem:[%s19280_s9 + $0x5a0] sm:$0xff] }
 0x4d5   :  { %v14582_v63 = vcombine.low %v5089_v55, %v5097_v61  ;;  %v4282_v13 = vld [vmem:[%s19280_s9 + $0x5e0] sm:$0xff]  ;;  %v5033_v50 = vld [vmem:[%s19280_s9 + $0x1d58] sm:$0xff] }
 0x4d6   :  { %10944 = vmatpush1.bf16.msra.mxu1 %v14422_v27  ;;  %v13832_v27 = vcombine.low %v4338_v10, %v4346_v49  ;;  %v4258_v48 = vld [vmem:[%s19280_s9 + $0x520] sm:$0xff] }
 0x4d7   :  { %10985 = vmatpush1.bf16.msra.mxu0 %v13656_v33  ;;  %10945 = vmatprep.subr.bf16.mxu1 %v14407_v57  ;;  %v14583_v33 = vcombine.high %v5089_v55, %v5097_v61  ;;  %v13817_v57 = vcombine.high %v4322_v14, %v4330_v56  ;;  %v4266_v10 = vld [vmem:[%s19280_s9 + $0x560] sm:$0xff]  ;;  %v5017_v55 = vld [vmem:[%s19280_s9 + $0x1cd8] sm:$0xff] }
 0x4d8   :  { %10986 = vmatprep.subr.bf16.mxu0 %v13641_v22  ;;  %v5073_v22 = vld [vmem:[%s19280_s9 + $0x1e98] sm:$0xff]  ;;  %v4242_v61 = vld [vmem:[%s19280_s9 + $0x4a0] sm:$0xff] }
 0x4d9   :  { %v14566_v34 = vcombine.low %v5073_v22, %v5081_v59 }
 0x4da   :  { %10946 = vmatpush1.bf16.msra.mxu1 %v14406_v40  ;;  %v13816_v40 = vcombine.low %v4322_v14, %v4330_v56  ;;  %v4250_v14 = vld [vmem:[%s19280_s9 + $0x4e0] sm:$0xff] }
 0x4db   :  { %10987 = vmatpush1.bf16.msra.mxu0 %v13640_v28  ;;  %10947 = vmatprep.subr.bf16.mxu1 %v14391_v8  ;;  %v14567_v28 = vcombine.high %v5073_v22, %v5081_v59  ;;  %v13801_v8 = vcombine.high %v4306_v60, %v4314_v30  ;;  %v5001_v22 = vld [vmem:[%s19280_s9 + $0x1c58] sm:$0xff]  ;;  %v4226_v59 = vld [vmem:[%s19280_s9 + $0x420] sm:$0xff] }
 0x4dc   :  { %10988 = vmatprep.subr.bf16.mxu0 %v13625_v20  ;;  %v5057_v20 = vld [vmem:[%s19280_s9 + $0x1e18] sm:$0xff] }
 0x4dd   :  { %v14550_v39 = vcombine.low %v5057_v20, %v5065_v43 }
 0x4de   :  { %10948 = vmatpush1.bf16.msra.mxu1 %v14390_v62  ;;  %v13800_v62 = vcombine.low %v4306_v60, %v4314_v30  ;;  %v4234_v60 = vld [vmem:[%s19280_s9 + $0x460] sm:$0xff] }
 0x4df   :  { %10989 = vmatpush1.bf16.msra.mxu0 %v13624_v25  ;;  %10949 = vmatprep.subr.bf16.mxu1 %v14375_v21  ;;  %v14551_v25 = vcombine.high %v5057_v20, %v5065_v43  ;;  %v13785_v21 = vcombine.high %v4290_v52, %v4298_v44  ;;  %v4474_v20 = vld [vmem:[%s19280_s9 + $0xbe0] sm:$0xff] }
 0x4e0   :  { %10990 = vmatprep.subr.bf16.mxu0 %v13609_v24  ;;  %v5041_v24 = vld [vmem:[%s19280_s9 + $0x1d98] sm:$0xff]  ;;  %v4722_v43 = vld [vmem:[%s19280_s9 + $0x13a0] sm:$0xff] }
 0x4e1   :  { %v14534_v49 = vcombine.low %v5041_v24, %v5049_v31 }
 0x4e2   :  { %10950 = vmatpush1.bf16.msra.mxu1 %v14374_v42  ;;  %v13784_v42 = vcombine.low %v4290_v52, %v4298_v44  ;;  %v4730_v52 = vld [vmem:[%s19280_s9 + $0x13e0] sm:$0xff] }
 0x4e3   :  { %10991 = vmatpush1.bf16.msra.mxu0 %v13608_v5  ;;  %10951 = vmatprep.subr.bf16.mxu1 %v14359_v37  ;;  %v14535_v5 = vcombine.high %v5041_v24, %v5049_v31  ;;  %v13769_v37 = vcombine.high %v4274_v6, %v4282_v13  ;;  %v4450_v24 = vld [vmem:[%s19280_s9 + $0xb20] sm:$0xff] }
 0x4e4   :  { %10992 = vmatprep.subr.bf16.mxu0 %v13593_v45  ;;  %v5025_v45 = vld [vmem:[%s19280_s9 + $0x1d18] sm:$0xff]  ;;  %v4458_v31 = vld [vmem:[%s19280_s9 + $0xb60] sm:$0xff] }
 0x4e5   :  { %v14518_v56 = vcombine.low %v5025_v45, %v5033_v50 }
 0x4e6   :  { %10952 = vmatpush1.bf16.msra.mxu1 %v14358_v53  ;;  %v13768_v53 = vcombine.low %v4274_v6, %v4282_v13  ;;  %v5145_v6 = vrot.slane %v17239_v54, %v16251_v16 }
 0x4e7   :  { %10993 = vmatpush1.bf16.msra.mxu0 %v13592_v46  ;;  %10953 = vmatprep.subr.bf16.mxu1 %v14599_v51  ;;  %v14519_v46 = vcombine.high %v5025_v45, %v5033_v50  ;;  %v13753_v51 = vcombine.high %v4258_v48, %v4266_v10  ;;  %v13945_v45 = vcombine.high %v4450_v24, %v4458_v31  ;;  %v4442_v50 = vld [vmem:[%s19280_s9 + $0xae0] sm:$0xff] }
 0x4e8   :  { %10994 = vmatprep.subr.bf16.mxu0 %v13833_v9  ;;  %v5009_v9 = vld [vmem:[%s19280_s9 + $0x1c98] sm:$0xff] }
 0x4e9   :  { %v14502_v30 = vcombine.low %v5009_v9, %v5017_v55 }
 0x4ea   :  { %10954 = vmatpush2.bf16.msra.mxu1 %v14598_v26  ;;  %v13752_v26 = vcombine.low %v4258_v48, %v4266_v10 }
 0x4eb   :  { %10995 = vmatpush2.bf16.msra.mxu0 %v13832_v27  ;;  %10955 = vmatprep.subr.bf16.mxu1 %v14583_v33  ;;  %v14503_v27 = vcombine.high %v5009_v9, %v5017_v55  ;;  %v13737_v33 = vcombine.high %v4242_v61, %v4250_v14  ;;  %v13944_v9 = vcombine.low %v4450_v24, %v4458_v31 }
 0x4ec   :  { %10996 = vmatprep.subr.bf16.mxu0 %v13817_v57  ;;  %v4993_v57 = vld [vmem:[%s19280_s9 + $0x1c18] sm:$0xff] }
 0x4ed   :  { %v14486_v44 = vcombine.low %v4993_v57, %v5001_v22 }
 0x4ee   :  { %10956 = vmatpush2.bf16.msra.mxu1 %v14582_v63  ;;  %v13736_v63 = vcombine.low %v4242_v61, %v4250_v14 }
 0x4ef   :  { %10997 = vmatpush2.bf16.msra.mxu0 %v13816_v40  ;;  %10957 = vmatprep.subr.bf16.mxu1 %v14567_v28  ;;  %v14487_v40 = vcombine.high %v4993_v57, %v5001_v22  ;;  %v13721_v28 = vcombine.high %v4226_v59, %v4234_v60  ;;  %v4426_v57 = vld [vmem:[%s19280_s9 + $0xa60] sm:$0xff] }
 0x4f0   :  { %10998 = vmatprep.subr.bf16.mxu0 %v13801_v8  ;;  %v4466_v8 = vld [vmem:[%s19280_s9 + $0xba0] sm:$0xff] }
 0x4f1   :  { %v13960_v13 = vcombine.low %v4466_v8, %v4474_v20 }
 0x4f2   :  { %10958 = vmatpush2.bf16.msra.mxu1 %v14566_v34  ;;  %v13720_v34 = vcombine.low %v4226_v59, %v4234_v60  ;;  %v4674_v59 = vld [vmem:[%s19280_s9 + $0x1220] sm:$0xff] }
 0x4f3   :  { %10999 = vmatpush2.bf16.msra.mxu0 %v13800_v62  ;;  %10959 = vmatprep.subr.bf16.mxu1 %v14551_v25  ;;  %v13961_v62 = vcombine.high %v4466_v8, %v4474_v20  ;;  %v5141_v25 = vrot.slane %v17239_v54, %v16248_v2  ;;  %v4434_v54 = vld [vmem:[%s19280_s9 + $0xaa0] sm:$0xff] }
 0x4f4   :  { %11000 = vmatprep.subr.bf16.mxu0 %v13785_v21  ;;  %v14217_v21 = vcombine.high %v4722_v43, %v4730_v52  ;;  %v13929_v14 = vcombine.high %v4434_v54, %v4442_v50  ;;  %v4682_v60 = vld [vmem:[%s19280_s9 + $0x1260] sm:$0xff] }
 0x4f5   :  { %v14168_v24 = vcombine.low %v4674_v59, %v4682_v60 }
 0x4f6   :  { %10960 = vmatpush2.bf16.msra.mxu1 %v14550_v39  ;;  %v4706_v39 = vld [vmem:[%s19280_s9 + $0x1320] sm:$0xff] }
 0x4f7   :  { %11001 = vmatpush2.bf16.msra.mxu0 %v13784_v42  ;;  %10961 = vmatprep.subr.bf16.mxu1 %v14535_v5  ;;  %v4714_v42 = vld [vmem:[%s19280_s9 + $0x1360] sm:$0xff]  ;;  %v14216_v5 = vcombine.low %v4722_v43, %v4730_v52  ;;  %v14169_v52 = vcombine.high %v4674_v59, %v4682_v60 }
 0x4f8   :  { %11002 = vmatprep.subr.bf16.mxu0 %v13769_v37  ;;  %v10685_v37 = vadd.f32 %v17475_v18, %v5141_v25  ;;  %v14201_v10 = vcombine.high %v4706_v39, %v4714_v42  ;;  %v4698_v18 = vld [vmem:[%s19280_s9 + $0x12e0] sm:$0xff]  ;;  %v14200_v61 = vcombine.low %v4706_v39, %v4714_v42 }
 0x4f9   :  { %v4666_v25 = vld [vmem:[%s19280_s9 + $0x11e0] sm:$0xff] }
 0x4fa   :  { %10962 = vmatpush2.bf16.msra.mxu1 %v14534_v49  ;;  %v4690_v49 = vld [vmem:[%s19280_s9 + $0x12a0] sm:$0xff] }
 0x4fb   :  { %11003 = vmatpush2.bf16.msra.mxu0 %v13768_v53  ;;  %10963 = vmatprep.subr.bf16.mxu1 %v14519_v46  ;;  %v10687_v53 = vadd.f32 %v17483_v36, %v5145_v6  ;;  %v14185_v36 = vcombine.high %v4690_v49, %v4698_v18  ;;  %v14184_v8 = vcombine.low %v4690_v49, %v4698_v18  ;;  %v4394_v39 = vld [vmem:[%s19280_s9 + $0x960] sm:$0xff] }
 0x4fc   :  { %11004 = vmatprep.subr.bf16.mxu0 %v13753_v51  ;;  %v4642_v42 = vld [vmem:[%s19280_s9 + $0x1120] sm:$0xff] }
 0x4fd   :  { %v4626_v49 = vld [vmem:[%s19280_s9 + $0x10a0] sm:$0xff] }
 0x4fe   :  { %10964 = vmatpush2.bf16.msra.mxu1 %v14518_v56  ;;  %v4634_v18 = vld [vmem:[%s19280_s9 + $0x10e0] sm:$0xff] }
 0x4ff   :  { %11005 = vmatpush2.bf16.msra.mxu0 %v13752_v26  ;;  %10965 = vmatprep.subr.bf16.mxu1 %v14503_v27  ;;  %v4602_v59 = vld [vmem:[%s19280_s9 + $0xfe0] sm:$0xff] }
 0x500   :  { %11006 = vmatprep.subr.bf16.mxu0 %v13737_v33  ;;  %v4418_v33 = vld [vmem:[%s19280_s9 + $0xa20] sm:$0xff] }
 0x501   :  { %v13913_v20 = vcombine.high %v4418_v33, %v4426_v57  ;;  %v4850_v60 = vld [vmem:[%s19280_s9 + $0x17a0] sm:$0xff] }
 0x502   :  { %10966 = vmatpush2.bf16.msra.mxu1 %v14502_v30 }
 0x503   :  { %11007 = vmatpush2.bf16.msra.mxu0 %v13736_v63  ;;  %10967 = vmatprep.subr.bf16.mxu1 %v14487_v40  ;;  %v13928_v40 = vcombine.low %v4434_v54, %v4442_v50 }
 0x504   :  { %11008 = vmatprep.subr.bf16.mxu0 %v13721_v28 }
 0x506   :  { %10968 = vmatpush2.bf16.msra.mxu1 %v14486_v44  ;;  %v4402_v44 = vld [vmem:[%s19280_s9 + $0x9a0] sm:$0xff] }
 0x507   :  { %11009 = vmatpush2.bf16.msra.mxu0 %v13720_v34  ;;  %11019 = vmatprep.subr.bf16.mxu1 %v13961_v62  ;;  %v4410_v34 = vld [vmem:[%s19280_s9 + $0x9e0] sm:$0xff] }
 0x508   :  { %11060 = vmatprep.subr.bf16.mxu0 %v14217_v21  ;;  %v4658_v62 = vld [vmem:[%s19280_s9 + $0x11a0] sm:$0xff]  ;;  %v13912_v21 = vcombine.low %v4418_v33, %v4426_v57  ;;  %v13897_v31 = vcombine.high %v4402_v44, %v4410_v34 }
 0x509   :  { %v10725_v48 = vpop.f32.mrf.mxu1  ;;  %10970 = vmatmul.mubr.bf16.vlgmr.msra.gmra.mxu1 %v16427_v0  ;;  %v14153_v6 = vcombine.high %v4658_v62, %v4666_v25 }
 0x50a   :  { %v10726_v46 = vadd.f32 %v10725_v48, %v10685_v37  ;;  %v10766_v51 = vpop.f32.mrf.mxu0  ;;  %11011 = vmatmul.mubr.bf16.vlgmr.msra.gmra.mxu0 %v15965_v29  ;;  %11020 = vmatpush1.bf16.msra.mxu1 %v13960_v13  ;;  %v4386_v13 = vld [vmem:[%s19280_s9 + $0x920] sm:$0xff]  ;;  %v13896_v37 = vcombine.low %v4402_v44, %v4410_v34 }
 0x50b   :  { %11051 = vmatprep.mubr.bf16.mxu1 %v16161_v1  ;;  %11061 = vmatpush1.bf16.msra.mxu0 %v14216_v5  ;;  %v10727_v55 = vpop.f32.mrf.mxu1  ;;  %v4650_v5 = vld [vmem:[%s19280_s9 + $0x1160] sm:$0xff]  ;;  %v13881_v54 = vcombine.high %v4386_v13, %v4394_v39 }
 0x50c   :  { %v17686_v56 = vadd.f32 %v10766_v51, %v10726_v46  ;;  %11092 = vmatprep.mubr.bf16.mxu0 %v16293_v4  ;;  %v10728_v26 = vadd.f32 %v10727_v55, %v10687_v53  ;;  %v10768_v27 = vpop.f32.mrf.mxu0  ;;  %11021 = vmatprep.subr.bf16.mxu1 %v13945_v45  ;;  %v14152_v45 = vcombine.low %v4658_v62, %v4666_v25  ;;  %v4370_v48 = vld [vmem:[%s19280_s9 + $0x8a0] sm:$0xff] }
 0x50d   :  { %v10729_v22 = vpop.f32.mrf.mxu1  ;;  %11062 = vmatprep.subr.bf16.mxu0 %v14201_v10  ;;  %v14137_v50 = vcombine.high %v4642_v42, %v4650_v5  ;;  %v4378_v10 = vld [vmem:[%s19280_s9 + $0x8e0] sm:$0xff]  ;;  %v13880_v53 = vcombine.low %v4386_v13, %v4394_v39  ;;  %v14136_v46 = vcombine.low %v4642_v42, %v4650_v5 }
 0x50e   :  { %v17701_v30 = vadd.f32 %v10768_v27, %v10728_v26  ;;  %v10770_v63 = vpop.f32.mrf.mxu0  ;;  %11022 = vmatpush1.bf16.msra.mxu1 %v13944_v9  ;;  %v13865_v51 = vcombine.high %v4370_v48, %v4378_v10  ;;  %v14121_v9 = vcombine.high %v4626_v49, %v4634_v18  ;;  %v4354_v55 = vld [vmem:[%s19280_s9 + $0x820] sm:$0xff]  ;;  %v13864_v27 = vcombine.low %v4370_v48, %v4378_v10 }
 0x50f   :  { %11063 = vmatpush1.bf16.msra.mxu0 %v14200_v61  ;;  %v10730_v28 = vpop.f32.mrf.mxu1  ;;  %11023 = vmatprep.subr.bf16.mxu1 %v13929_v14  ;;  %v4362_v61 = vld [vmem:[%s19280_s9 + $0x860] sm:$0xff] }
 0x510   :  { %v10771_v43 = vpop.f32.mrf.mxu0  ;;  %11064 = vmatprep.subr.bf16.mxu0 %v14185_v36  ;;  %v4610_v14 = vld [vmem:[%s19280_s9 + $0x1020] sm:$0xff]  ;;  %v14120_v36 = vcombine.low %v4626_v49, %v4634_v18  ;;  %v13849_v33 = vcombine.high %v4354_v55, %v4362_v61 }
 0x511   :  { %v4618_v26 = vld [vmem:[%s19280_s9 + $0x1060] sm:$0xff] }
 0x512   :  { %11024 = vmatpush1.bf16.msra.mxu1 %v13928_v40  ;;  %v14105_v57 = vcombine.high %v4610_v14, %v4618_v26  ;;  %v4594_v22 = vld [vmem:[%s19280_s9 + $0xfa0] sm:$0xff]  ;;  %v13848_v40 = vcombine.low %v4354_v55, %v4362_v61  ;;  %v14104_v28 = vcombine.low %v4610_v14, %v4618_v26 }
 0x513   :  { %11065 = vmatpush1.bf16.msra.mxu0 %v14184_v8  ;;  %11025 = vmatprep.subr.bf16.mxu1 %v13913_v20  ;;  %v4858_v63 = vld [vmem:[%s19280_s9 + $0x17e0] sm:$0xff]  ;;  %v14089_v8 = vcombine.high %v4594_v22, %v4602_v59  ;;  %v14088_v62 = vcombine.low %v4594_v22, %v4602_v59 }
 0x514   :  { %11066 = vmatprep.subr.bf16.mxu0 %v14169_v52  ;;  %v14345_v20 = vcombine.high %v4850_v60, %v4858_v63  ;;  %v4578_v43 = vld [vmem:[%s19280_s9 + $0xf20] sm:$0xff]  ;;  %v14344_v25 = vcombine.low %v4850_v60, %v4858_v63 }
 0x515   :  { %v4586_v52 = vld [vmem:[%s19280_s9 + $0xf60] sm:$0xff] }
 0x516   :  { %11026 = vmatpush1.bf16.msra.mxu1 %v13912_v21  ;;  %v4834_v44 = vld [vmem:[%s19280_s9 + $0x1720] sm:$0xff]  ;;  %v14073_v21 = vcombine.high %v4578_v43, %v4586_v52  ;;  %v14072_v42 = vcombine.low %v4578_v43, %v4586_v52 }
 0x517   :  { %11067 = vmatpush1.bf16.msra.mxu0 %v14168_v24  ;;  %11027 = vmatprep.subr.bf16.mxu1 %v13897_v31  ;;  %v4842_v34 = vld [vmem:[%s19280_s9 + $0x1760] sm:$0xff] }
 0x518   :  { %11068 = vmatprep.subr.bf16.mxu0 %v14153_v6  ;;  %v14329_v24 = vcombine.high %v4834_v44, %v4842_v34  ;;  %v4562_v31 = vld [vmem:[%s19280_s9 + $0xea0] sm:$0xff]  ;;  %v14328_v5 = vcombine.low %v4834_v44, %v4842_v34 }
 0x519   :  { %v4570_v6 = vld [vmem:[%s19280_s9 + $0xee0] sm:$0xff] }
 0x51a   :  { %11028 = vmatpush1.bf16.msra.mxu1 %v13896_v37  ;;  %v4818_v13 = vld [vmem:[%s19280_s9 + $0x16a0] sm:$0xff]  ;;  %v14057_v37 = vcombine.high %v4562_v31, %v4570_v6  ;;  %v14056_v49 = vcombine.low %v4562_v31, %v4570_v6 }
 0x51b   :  { %11069 = vmatpush1.bf16.msra.mxu0 %v14152_v45  ;;  %11029 = vmatprep.subr.bf16.mxu1 %v13881_v54  ;;  %v4826_v39 = vld [vmem:[%s19280_s9 + $0x16e0] sm:$0xff] }
 0x51c   :  { %11070 = vmatprep.subr.bf16.mxu0 %v14137_v50  ;;  %v14313_v45 = vcombine.high %v4818_v13, %v4826_v39  ;;  %v4546_v54 = vld [vmem:[%s19280_s9 + $0xe20] sm:$0xff]  ;;  %v14312_v18 = vcombine.low %v4818_v13, %v4826_v39 }
 0x51d   :  { %v4554_v50 = vld [vmem:[%s19280_s9 + $0xe60] sm:$0xff] }
 0x51e   :  { %11030 = vmatpush1.bf16.msra.mxu1 %v13880_v53  ;;  %v4802_v48 = vld [vmem:[%s19280_s9 + $0x1620] sm:$0xff]  ;;  %v14041_v53 = vcombine.high %v4546_v54, %v4554_v50  ;;  %v14040_v14 = vcombine.low %v4546_v54, %v4554_v50  ;;  %v4211_v54 = vld [vmem:[%s19280_s9 + $0x3a8] sm:$0xff] }
 0x51f   :  { %11071 = vmatpush1.bf16.msra.mxu0 %v14136_v46  ;;  %11031 = vmatprep.subr.bf16.mxu1 %v13865_v51  ;;  %v4810_v10 = vld [vmem:[%s19280_s9 + $0x1660] sm:$0xff]  ;;  %v4219_v50 = vld [vmem:[%s19280_s9 + $0x3e8] sm:$0xff] }
 0x520   :  { %11072 = vmatprep.subr.bf16.mxu0 %v14121_v9  ;;  %v14297_v46 = vcombine.high %v4802_v48, %v4810_v10  ;;  %v4530_v51 = vld [vmem:[%s19280_s9 + $0xda0] sm:$0xff]  ;;  %v14296_v26 = vcombine.low %v4802_v48, %v4810_v10 }
 0x521   :  { %v4538_v9 = vld [vmem:[%s19280_s9 + $0xde0] sm:$0xff] }
 0x522   :  { %11032 = vmatpush1.bf16.msra.mxu1 %v13864_v27  ;;  %v4786_v55 = vld [vmem:[%s19280_s9 + $0x15a0] sm:$0xff]  ;;  %v14025_v27 = vcombine.high %v4530_v51, %v4538_v9  ;;  %v14024_v60 = vcombine.low %v4530_v51, %v4538_v9  ;;  %v4195_v9 = vld [vmem:[%s19280_s9 + $0x328] sm:$0xff] }
 0x523   :  { %11073 = vmatpush1.bf16.msra.mxu0 %v14120_v36  ;;  %11033 = vmatprep.subr.bf16.mxu1 %v13849_v33  ;;  %v4794_v61 = vld [vmem:[%s19280_s9 + $0x15e0] sm:$0xff] }
 0x524   :  { %11074 = vmatprep.subr.bf16.mxu0 %v14105_v57  ;;  %v14281_v36 = vcombine.high %v4786_v55, %v4794_v61  ;;  %v4514_v33 = vld [vmem:[%s19280_s9 + $0xd20] sm:$0xff]  ;;  %v14280_v63 = vcombine.low %v4786_v55, %v4794_v61  ;;  %v4203_v55 = vld [vmem:[%s19280_s9 + $0x368] sm:$0xff]  ;;  %v13706_v61 = vcombine.low %v4211_v54, %v4219_v50 }
 0x525   :  { %v4522_v57 = vld [vmem:[%s19280_s9 + $0xd60] sm:$0xff] }
 0x526   :  { %11034 = vmatpush1.bf16.msra.mxu1 %v13848_v40  ;;  %v4770_v22 = vld [vmem:[%s19280_s9 + $0x1520] sm:$0xff]  ;;  %v14009_v40 = vcombine.high %v4514_v33, %v4522_v57  ;;  %v14008_v44 = vcombine.low %v4514_v33, %v4522_v57  ;;  %v13691_v33 = vcombine.high %v4195_v9, %v4203_v55  ;;  %v4179_v57 = vld [vmem:[%s19280_s9 + $0x2a8] sm:$0xff] }
 0x527   :  { %11075 = vmatpush1.bf16.msra.mxu0 %v14104_v28  ;;  %11035 = vmatprep.subr.bf16.mxu1 %v14089_v8  ;;  %v4778_v59 = vld [vmem:[%s19280_s9 + $0x1560] sm:$0xff] }
 0x528   :  { %11076 = vmatprep.subr.bf16.mxu0 %v14345_v20  ;;  %v14265_v28 = vcombine.high %v4770_v22, %v4778_v59  ;;  %v4498_v8 = vld [vmem:[%s19280_s9 + $0xca0] sm:$0xff]  ;;  %v14264_v34 = vcombine.low %v4770_v22, %v4778_v59  ;;  %v4187_v22 = vld [vmem:[%s19280_s9 + $0x2e8] sm:$0xff] }
 0x529   :  { %v4506_v20 = vld [vmem:[%s19280_s9 + $0xce0] sm:$0xff] }
 0x52a   :  { %11036 = vmatpush2.bf16.msra.mxu1 %v14088_v62  ;;  %v4754_v43 = vld [vmem:[%s19280_s9 + $0x14a0] sm:$0xff]  ;;  %v13993_v62 = vcombine.high %v4498_v8, %v4506_v20  ;;  %v13992_v13 = vcombine.low %v4498_v8, %v4506_v20 }
 0x52b   :  { %11077 = vmatpush2.bf16.msra.mxu0 %v14344_v25  ;;  %11037 = vmatprep.subr.bf16.mxu1 %v14073_v21  ;;  %v4762_v52 = vld [vmem:[%s19280_s9 + $0x14e0] sm:$0xff] }
 0x52c   :  { %11078 = vmatprep.subr.bf16.mxu0 %v14329_v24  ;;  %v14249_v25 = vcombine.high %v4754_v43, %v4762_v52  ;;  %v4482_v21 = vld [vmem:[%s19280_s9 + $0xc20] sm:$0xff]  ;;  %v14248_v39 = vcombine.low %v4754_v43, %v4762_v52 }
 0x52d   :  { %v4490_v24 = vld [vmem:[%s19280_s9 + $0xc60] sm:$0xff] }
 0x52e   :  { %11038 = vmatpush2.bf16.msra.mxu1 %v14072_v42  ;;  %v4738_v31 = vld [vmem:[%s19280_s9 + $0x1420] sm:$0xff]  ;;  %v13977_v42 = vcombine.high %v4482_v21, %v4490_v24  ;;  %v13976_v48 = vcombine.low %v4482_v21, %v4490_v24 }
 0x52f   :  { %11079 = vmatpush2.bf16.msra.mxu0 %v14328_v5  ;;  %11039 = vmatprep.subr.bf16.mxu1 %v14057_v37  ;;  %v4746_v6 = vld [vmem:[%s19280_s9 + $0x1460] sm:$0xff] }
 0x530   :  { %11080 = vmatprep.subr.bf16.mxu0 %v14313_v45  ;;  %v14233_v5 = vcombine.high %v4738_v31, %v4746_v6  ;;  %v4978_v37 = vld [vmem:[%s19280_s9 + $0x1ba0] sm:$0xff]  ;;  %v14232_v10 = vcombine.low %v4738_v31, %v4746_v6  ;;  %v13674_v31 = vcombine.low %v4179_v57, %v4187_v22 }
 0x531   :  { %v4986_v45 = vld [vmem:[%s19280_s9 + $0x1be0] sm:$0xff] }
 0x532   :  { %11040 = vmatpush2.bf16.msra.mxu1 %v14056_v49  ;;  %v14473_v49 = vcombine.high %v4978_v37, %v4986_v45  ;;  %v14472_v51 = vcombine.low %v4978_v37, %v4986_v45  ;;  %v4930_v52 = vld [vmem:[%s19280_s9 + $0x1a20] sm:$0xff]  ;;  %v4147_v37 = vld [vmem:[%s19280_s9 + $0x1a8] sm:$0xff] }
 0x533   :  { %11081 = vmatpush2.bf16.msra.mxu0 %v14312_v18  ;;  %11041 = vmatprep.subr.bf16.mxu1 %v14041_v53  ;;  %v13707_v18 = vcombine.high %v4211_v54, %v4219_v50  ;;  %v4962_v53 = vld [vmem:[%s19280_s9 + $0x1b20] sm:$0xff]  ;;  %v4155_v45 = vld [vmem:[%s19280_s9 + $0x1e8] sm:$0xff] }
 0x534   :  { %11082 = vmatprep.subr.bf16.mxu0 %v14297_v46  ;;  %v4970_v46 = vld [vmem:[%s19280_s9 + $0x1b60] sm:$0xff] }
 0x536   :  { %11042 = vmatpush2.bf16.msra.mxu1 %v14040_v14  ;;  %v14457_v14 = vcombine.high %v4962_v53, %v4970_v46 }
 0x537   :  { %11083 = vmatpush2.bf16.msra.mxu0 %v14296_v26  ;;  %11043 = vmatprep.subr.bf16.mxu1 %v14025_v27  ;;  %v4946_v26 = vld [vmem:[%s19280_s9 + $0x1aa0] sm:$0xff] }
 0x538   :  { %11084 = vmatprep.subr.bf16.mxu0 %v14281_v36  ;;  %v4954_v27 = vld [vmem:[%s19280_s9 + $0x1ae0] sm:$0xff] }
 0x539   :  { %v14441_v8 = vcombine.high %v4946_v26, %v4954_v27  ;;  %v14440_v21 = vcombine.low %v4946_v26, %v4954_v27  ;;  %v4890_v26 = vld [vmem:[%s19280_s9 + $0x18e0] sm:$0xff]  ;;  %v4115_v27 = vld [vmem:[%s19280_s9 + $0xa8] sm:$0xff] }
 0x53a   :  { %11044 = vmatpush2.bf16.msra.mxu1 %v14024_v60 }
 0x53b   :  { %11085 = vmatpush2.bf16.msra.mxu0 %v14280_v63  ;;  %11045 = vmatprep.subr.bf16.mxu1 %v14009_v40  ;;  %v14456_v63 = vcombine.low %v4962_v53, %v4970_v46  ;;  %v4131_v53 = vld [vmem:[%s19280_s9 + $0x128] sm:$0xff] }
 0x53c   :  { %11086 = vmatprep.subr.bf16.mxu0 %v14265_v28  ;;  %v13690_v28 = vcombine.low %v4195_v9, %v4203_v55  ;;  %v4139_v46 = vld [vmem:[%s19280_s9 + $0x168] sm:$0xff]  ;;  %v13642_v9 = vcombine.low %v4147_v37, %v4155_v45 }
 0x53e   :  { %11046 = vmatpush2.bf16.msra.mxu1 %v14008_v44  ;;  %v4938_v44 = vld [vmem:[%s19280_s9 + $0x1a60] sm:$0xff] }
 0x53f   :  { %11087 = vmatpush2.bf16.msra.mxu0 %v14264_v34  ;;  %11047 = vmatprep.subr.bf16.mxu1 %v13993_v62  ;;  %v4163_v62 = vld [vmem:[%s19280_s9 + $0x228] sm:$0xff]  ;;  %v14425_v6 = vcombine.high %v4930_v52, %v4938_v44  ;;  %v14424_v54 = vcombine.low %v4930_v52, %v4938_v44 }
 0x540   :  { %11088 = vmatprep.subr.bf16.mxu0 %v14249_v25 }
 0x542   :  { %11048 = vmatpush2.bf16.msra.mxu1 %v13992_v13 }
 0x543   :  { %11089 = vmatpush2.bf16.msra.mxu0 %v14248_v39  ;;  %11049 = vmatprep.subr.bf16.mxu1 %v13977_v42  ;;  %v4914_v42 = vld [vmem:[%s19280_s9 + $0x19a0] sm:$0xff] }
 0x544   :  { %11090 = vmatprep.subr.bf16.mxu0 %v14233_v5  ;;  %v4922_v5 = vld [vmem:[%s19280_s9 + $0x19e0] sm:$0xff] }
 0x546   :  { %11050 = vmatpush2.bf16.msra.mxu1 %v13976_v48  ;;  %v14409_v48 = vcombine.high %v4914_v42, %v4922_v5 }
 0x547   :  { %11091 = vmatpush2.bf16.msra.mxu0 %v14232_v10  ;;  %11101 = vmatprep.subr.bf16.mxu1 %v14473_v49  ;;  %v13643_v10 = vcombine.high %v4147_v37, %v4155_v45  ;;  %v4898_v49 = vld [vmem:[%s19280_s9 + $0x1920] sm:$0xff]  ;;  %v4323_v37 = vld [vmem:[%s19280_s9 + $0x728] sm:$0xff] }
 0x548   :  { %11142 = vmatprep.subr.bf16.mxu0 %v13707_v18  ;;  %v4906_v18 = vld [vmem:[%s19280_s9 + $0x1960] sm:$0xff]  ;;  %v4331_v45 = vld [vmem:[%s19280_s9 + $0x768] sm:$0xff] }
 0x549   :  { %v10807_v36 = vpop.f32.mrf.mxu1  ;;  %11052 = vmatmul.mubr.bf16.vlgmr.msra.gmra.mxu1 %v16175_v11  ;;  %v14393_v55 = vcombine.high %v4898_v49, %v4906_v18 }
 0x54a   :  { %v17885_v59 = vadd.f32 %v10807_v36, %v17686_v56  ;;  %v17887_v60 = vpop.f32.mrf.mxu0  ;;  %11093 = vmatmul.mubr.bf16.vlgmr.msra.gmra.mxu0 %v16295_v12  ;;  %11102 = vmatpush1.bf16.msra.mxu1 %v14472_v51  ;;  %v13675_v56 = vcombine.high %v4179_v57, %v4187_v22  ;;  %v14408_v51 = vcombine.low %v4914_v42, %v4922_v5  ;;  %v4123_v36 = vld [vmem:[%s19280_s9 + $0xe8] sm:$0xff]  ;;  %v5090_v42 = vld [vmem:[%s19280_s9 + $0x1f20] sm:$0xff] }
 0x54b   :  { %11133 = vmatprep.mubr.bf16.mxu1 %v16425_v19  ;;  %11143 = vmatpush1.bf16.msra.mxu0 %v13706_v61  ;;  %v10809_v40 = vpop.f32.mrf.mxu1  ;;  %v13627_v61 = vcombine.high %v4131_v53, %v4139_v46  ;;  %v13626_v57 = vcombine.low %v4131_v53, %v4139_v46  ;;  %v13610_v44 = vcombine.low %v4115_v27, %v4123_v36  ;;  %v5098_v5 = vld [vmem:[%s19280_s9 + $0x1f60] sm:$0xff]  ;;  %v4307_v53 = vld [vmem:[%s19280_s9 + $0x6a8] sm:$0xff] }
 0x54c   :  { %11174 = vmatprep.mubr.bf16.mxu0 %v15958_v17  ;;  %v17893_v20 = vadd.f32 %v10809_v40, %v17701_v30  ;;  %v17895_v43 = vpop.f32.mrf.mxu0  ;;  %11103 = vmatprep.subr.bf16.mxu1 %v14457_v14  ;;  %v4171_v30 = vld [vmem:[%s19280_s9 + $0x268] sm:$0xff]  ;;  %v4882_v14 = vld [vmem:[%s19280_s9 + $0x18a0] sm:$0xff]  ;;  %vm11638_vm15 = vcmp.ge.f32.partialorder %v17885_v59, 0.0 }
 0x54d   :  { %v10811_v34 = vpop.f32.mrf.mxu1  ;;  %11144 = vmatprep.subr.bf16.mxu0 %v13691_v33  ;;  %v13659_v39 = vcombine.high %v4163_v62, %v4171_v30  ;;  %v13658_v50 = vcombine.low %v4163_v62, %v4171_v30  ;;  %v14392_v33 = vcombine.low %v4898_v49, %v4906_v18  ;;  %v14377_v22 = vcombine.high %v4882_v14, %v4890_v26  ;;  %v4866_v40 = vld [vmem:[%s19280_s9 + $0x1820] sm:$0xff]  ;;  %v4315_v46 = vld [vmem:[%s19280_s9 + $0x6e8] sm:$0xff] }
 0x54e   :  { %v10852_v25 = vpop.f32.mrf.mxu0  ;;  %11104 = vmatpush1.bf16.msra.mxu1 %v14456_v63  ;;  %v13611_v63 = vcombine.high %v4115_v27, %v4123_v36  ;;  %v14376_v52 = vcombine.low %v4882_v14, %v4890_v26  ;;  %v5106_v30 = vld [vmem:[%s19280_s9 + $0x1fa0] sm:$0xff]  ;;  %v4291_v27 = vld [vmem:[%s19280_s9 + $0x628] sm:$0xff]  ;;  %vm11639_vm14 = vcmp.ge.f32.partialorder %v17893_v20, 0.0 }
 0x54f   :  { %11145 = vmatpush1.bf16.msra.mxu0 %v13690_v28  ;;  %v10812_v24 = vpop.f32.mrf.mxu1  ;;  %11105 = vmatprep.subr.bf16.mxu1 %v14441_v8  ;;  %v4874_v28 = vld [vmem:[%s19280_s9 + $0x1860] sm:$0xff]  ;;  %v4099_v8 = vld [vmem:[%s19280_s9 + $0x28] sm:$0xff] }
 0x550   :  { %v10853_v13 = vpop.f32.mrf.mxu0  ;;  %11146 = vmatprep.subr.bf16.mxu0 %v13675_v56  ;;  %v4107_v56 = vld [vmem:[%s19280_s9 + $0x68] sm:$0xff]  ;;  %v14361_v34 = vcombine.high %v4866_v40, %v4874_v28  ;;  %v5114_v25 = vld [vmem:[%s19280_s9 + $0x1fe0] sm:$0xff] }
 0x551   :  { %v13595_v62 = vcombine.high %v4099_v8, %v4107_v56  ;;  %v4347_v24 = vld [vmem:[%s19280_s9 + $0x7e8] sm:$0xff]  ;;  %v14601_v13 = vcombine.high %v5106_v30, %v5114_v25  ;;  %v5074_v49 = vld [vmem:[%s19280_s9 + $0x1ea0] sm:$0xff] }
 0x552   :  { %11106 = vmatpush1.bf16.msra.mxu1 %v14440_v21  ;;  %v4339_v21 = vld [vmem:[%s19280_s9 + $0x7a8] sm:$0xff]  ;;  %v5082_v18 = vld [vmem:[%s19280_s9 + $0x1ee0] sm:$0xff] }
 0x553   :  { %11147 = vmatpush1.bf16.msra.mxu0 %v13674_v31  ;;  %11107 = vmatprep.subr.bf16.mxu1 %v14425_v6  ;;  %v14360_v31 = vcombine.low %v4866_v40, %v4874_v28  ;;  %v13594_v6 = vcombine.low %v4099_v8, %v4107_v56  ;;  %v5058_v14 = vld [vmem:[%s19280_s9 + $0x1e20] sm:$0xff]  ;;  %v4299_v36 = vld [vmem:[%s19280_s9 + $0x668] sm:$0xff] }
 0x554   :  { %11148 = vmatprep.subr.bf16.mxu0 %v13659_v39  ;;  %v13835_v39 = vcombine.high %v4339_v21, %v4347_v24  ;;  %v5066_v26 = vld [vmem:[%s19280_s9 + $0x1e60] sm:$0xff]  ;;  %v4275_v8 = vld [vmem:[%s19280_s9 + $0x5a8] sm:$0xff] }
 0x555   :  { %v5042_v40 = vld [vmem:[%s19280_s9 + $0x1da0] sm:$0xff]  ;;  %v4283_v56 = vld [vmem:[%s19280_s9 + $0x5e8] sm:$0xff] }
 0x556   :  { %11108 = vmatpush1.bf16.msra.mxu1 %v14424_v54  ;;  %v14600_v54 = vcombine.low %v5106_v30, %v5114_v25  ;;  %v5050_v28 = vld [vmem:[%s19280_s9 + $0x1de0] sm:$0xff] }
 0x557   :  { %11149 = vmatpush1.bf16.msra.mxu0 %v13658_v50  ;;  %11109 = vmatprep.subr.bf16.mxu1 %v14409_v48  ;;  %v13834_v50 = vcombine.low %v4339_v21, %v4347_v24  ;;  %v14585_v48 = vcombine.high %v5090_v42, %v5098_v5  ;;  %v5026_v30 = vld [vmem:[%s19280_s9 + $0x1d20] sm:$0xff]  ;;  %v4259_v21 = vld [vmem:[%s19280_s9 + $0x528] sm:$0xff] }
 0x558   :  { %11150 = vmatprep.subr.bf16.mxu0 %v13643_v10  ;;  %v13819_v10 = vcombine.high %v4323_v37, %v4331_v45  ;;  %v5034_v25 = vld [vmem:[%s19280_s9 + $0x1d60] sm:$0xff]  ;;  %v4267_v24 = vld [vmem:[%s19280_s9 + $0x568] sm:$0xff] }
 0x55a   :  { %11110 = vmatpush1.bf16.msra.mxu1 %v14408_v51  ;;  %v14584_v51 = vcombine.low %v5090_v42, %v5098_v5  ;;  %v5010_v42 = vld [vmem:[%s19280_s9 + $0x1ca0] sm:$0xff] }
 0x55b   :  { %11151 = vmatpush1.bf16.msra.mxu0 %v13642_v9  ;;  %11111 = vmatprep.subr.bf16.mxu1 %v14393_v55  ;;  %v13818_v9 = vcombine.low %v4323_v37, %v4331_v45  ;;  %v14569_v55 = vcombine.high %v5074_v49, %v5082_v18  ;;  %v5018_v5 = vld [vmem:[%s19280_s9 + $0x1ce0] sm:$0xff]  ;;  %v4243_v37 = vld [vmem:[%s19280_s9 + $0x4a8] sm:$0xff] }
 0x55c   :  { %11152 = vmatprep.subr.bf16.mxu0 %v13627_v61  ;;  %v13803_v61 = vcombine.high %v4307_v53, %v4315_v46  ;;  %v4251_v45 = vld [vmem:[%s19280_s9 + $0x4e8] sm:$0xff] }
 0x55e   :  { %11112 = vmatpush1.bf16.msra.mxu1 %v14392_v33  ;;  %v14568_v33 = vcombine.low %v5074_v49, %v5082_v18  ;;  %v4994_v49 = vld [vmem:[%s19280_s9 + $0x1c20] sm:$0xff] }
 0x55f   :  { %11153 = vmatpush1.bf16.msra.mxu0 %v13626_v57  ;;  %11113 = vmatprep.subr.bf16.mxu1 %v14377_v22  ;;  %v13802_v57 = vcombine.low %v4307_v53, %v4315_v46  ;;  %v14553_v22 = vcombine.high %v5058_v14, %v5066_v26  ;;  %v5002_v18 = vld [vmem:[%s19280_s9 + $0x1c60] sm:$0xff]  ;;  %v4227_v53 = vld [vmem:[%s19280_s9 + $0x428] sm:$0xff] }
 0x560   :  { %11154 = vmatprep.subr.bf16.mxu0 %v13611_v63  ;;  %v13787_v63 = vcombine.high %v4291_v27, %v4299_v36  ;;  %v4235_v46 = vld [vmem:[%s19280_s9 + $0x468] sm:$0xff] }
 0x562   :  { %11114 = vmatpush1.bf16.msra.mxu1 %v14376_v52  ;;  %v14552_v52 = vcombine.low %v5058_v14, %v5066_v26  ;;  %v4467_v14 = vld [vmem:[%s19280_s9 + $0xba8] sm:$0xff] }
 0x563   :  { %11155 = vmatpush1.bf16.msra.mxu0 %v13610_v44  ;;  %11115 = vmatprep.subr.bf16.mxu1 %v14361_v34  ;;  %v13786_v44 = vcombine.low %v4291_v27, %v4299_v36  ;;  %v14537_v34 = vcombine.high %v5042_v40, %v5050_v28  ;;  %v4475_v26 = vld [vmem:[%s19280_s9 + $0xbe8] sm:$0xff] }
 0x564   :  { %11156 = vmatprep.subr.bf16.mxu0 %v13595_v62  ;;  %v13771_v62 = vcombine.high %v4275_v8, %v4283_v56  ;;  %v4723_v27 = vld [vmem:[%s19280_s9 + $0x13a8] sm:$0xff] }
 0x565   :  { %v4731_v36 = vld [vmem:[%s19280_s9 + $0x13e8] sm:$0xff] }
 0x566   :  { %11116 = vmatpush1.bf16.msra.mxu1 %v14360_v31  ;;  %v14536_v31 = vcombine.low %v5042_v40, %v5050_v28  ;;  %v14219_v28 = vcombine.high %v4723_v27, %v4731_v36 }
 0x567   :  { %11157 = vmatpush1.bf16.msra.mxu0 %v13594_v6  ;;  %11117 = vmatprep.subr.bf16.mxu1 %v14601_v13  ;;  %v13770_v6 = vcombine.low %v4275_v8, %v4283_v56  ;;  %v14521_v13 = vcombine.high %v5026_v30, %v5034_v25  ;;  %v4451_v8 = vld [vmem:[%s19280_s9 + $0xb28] sm:$0xff] }
 0x568   :  { %11158 = vmatprep.subr.bf16.mxu0 %v13835_v39  ;;  %v13755_v39 = vcombine.high %v4259_v21, %v4267_v24  ;;  %v4459_v56 = vld [vmem:[%s19280_s9 + $0xb68] sm:$0xff] }
 0x56a   :  { %11118 = vmatpush2.bf16.msra.mxu1 %v14600_v54  ;;  %v14520_v54 = vcombine.low %v5026_v30, %v5034_v25  ;;  %v14218_v30 = vcombine.low %v4723_v27, %v4731_v36 }
 0x56b   :  { %11159 = vmatpush2.bf16.msra.mxu0 %v13834_v50  ;;  %11119 = vmatprep.subr.bf16.mxu1 %v14585_v48  ;;  %v13754_v50 = vcombine.low %v4259_v21, %v4267_v24  ;;  %v14505_v48 = vcombine.high %v5010_v42, %v5018_v5  ;;  %v13947_v21 = vcombine.high %v4451_v8, %v4459_v56  ;;  %v4435_v24 = vld [vmem:[%s19280_s9 + $0xaa8] sm:$0xff] }
 0x56c   :  { %11160 = vmatprep.subr.bf16.mxu0 %v13819_v10  ;;  %v13739_v10 = vcombine.high %v4243_v37, %v4251_v45 }
 0x56e   :  { %11120 = vmatpush2.bf16.msra.mxu1 %v14584_v51  ;;  %v14504_v51 = vcombine.low %v5010_v42, %v5018_v5 }
 0x56f   :  { %11161 = vmatpush2.bf16.msra.mxu0 %v13818_v9  ;;  %11121 = vmatprep.subr.bf16.mxu1 %v14569_v55  ;;  %v13738_v9 = vcombine.low %v4243_v37, %v4251_v45  ;;  %v14489_v55 = vcombine.high %v4994_v49, %v5002_v18  ;;  %v13946_v45 = vcombine.low %v4451_v8, %v4459_v56  ;;  %v4667_v8 = vld [vmem:[%s19280_s9 + $0x11e8] sm:$0xff] }
 0x570   :  { %11162 = vmatprep.subr.bf16.mxu0 %v13803_v61  ;;  %v13723_v61 = vcombine.high %v4227_v53, %v4235_v46 }
 0x572   :  { %11122 = vmatpush2.bf16.msra.mxu1 %v14568_v33  ;;  %v14488_v33 = vcombine.low %v4994_v49, %v5002_v18 }
 0x573   :  { %11163 = vmatpush2.bf16.msra.mxu0 %v13802_v57  ;;  %11123 = vmatprep.subr.bf16.mxu1 %v14553_v22  ;;  %v13722_v57 = vcombine.low %v4227_v53, %v4235_v46  ;;  %v13963_v22 = vcombine.high %v4467_v14, %v4475_v26  ;;  %v4419_v53 = vld [vmem:[%s19280_s9 + $0xa28] sm:$0xff] }
 0x574   :  { %11164 = vmatprep.subr.bf16.mxu0 %v13787_v63  ;;  %v15435_v63 = vld [vmem:[%s19281_s10] sm:$0xff]  ;;  %v4427_v46 = vld [vmem:[%s19280_s9 + $0xa68] sm:$0xff] }
 0x575   :  { %v5149_v40 = vrot.slane %v15435_v63, %v16370_v3  ;;  %v13914_v56 = vcombine.low %v4419_v53, %v4427_v46 }
 0x576   :  { %11124 = vmatpush2.bf16.msra.mxu1 %v14552_v52  ;;  %v5153_v52 = vrot.slane %v15435_v63, %v16373_v38  ;;  %v4403_v63 = vld [vmem:[%s19280_s9 + $0x9a8] sm:$0xff] }
 0x577   :  { %11165 = vmatpush2.bf16.msra.mxu0 %v13786_v44  ;;  %11125 = vmatprep.subr.bf16.mxu1 %v14537_v34  ;;  %v13962_v44 = vcombine.low %v4467_v14, %v4475_v26  ;;  %v4707_v34 = vld [vmem:[%s19280_s9 + $0x1328] sm:$0xff]  ;;  %v10849_v25 = vadd.f32 %v17887_v60, %v5149_v40 }
 0x578   :  { %11166 = vmatprep.subr.bf16.mxu0 %v13771_v62  ;;  %v4715_v62 = vld [vmem:[%s19280_s9 + $0x1368] sm:$0xff]  ;;  %v10851_v42 = vadd.f32 %v17895_v43, %v5153_v52 }
 0x579   :  { %v4699_v60 = vld [vmem:[%s19280_s9 + $0x12e8] sm:$0xff] }
 0x57a   :  { %11126 = vmatpush2.bf16.msra.mxu1 %v14536_v31  ;;  %v4443_v31 = vld [vmem:[%s19280_s9 + $0xae8] sm:$0xff] }
 0x57b   :  { %11167 = vmatpush2.bf16.msra.mxu0 %v13770_v6  ;;  %11127 = vmatprep.subr.bf16.mxu1 %v14521_v13  ;;  %v14203_v13 = vcombine.high %v4707_v34, %v4715_v62  ;;  %v13930_v26 = vcombine.low %v4435_v24, %v4443_v31  ;;  %v4411_v40 = vld [vmem:[%s19280_s9 + $0x9e8] sm:$0xff] }
 0x57c   :  { %11168 = vmatprep.subr.bf16.mxu0 %v13755_v39  ;;  %v4691_v39 = vld [vmem:[%s19280_s9 + $0x12a8] sm:$0xff] }
 0x57d   :  { %v14187_v43 = vcombine.high %v4691_v39, %v4699_v60  ;;  %v14186_v36 = vcombine.low %v4691_v39, %v4699_v60  ;;  %v4371_v39 = vld [vmem:[%s19280_s9 + $0x8a8] sm:$0xff] }
 0x57e   :  { %11128 = vmatpush2.bf16.msra.mxu1 %v14520_v54  ;;  %v4379_v60 = vld [vmem:[%s19280_s9 + $0x8e8] sm:$0xff] }
 0x57f   :  { %11169 = vmatpush2.bf16.msra.mxu0 %v13754_v50  ;;  %11129 = vmatprep.subr.bf16.mxu1 %v14505_v48  ;;  %v14202_v50 = vcombine.low %v4707_v34, %v4715_v62  ;;  %v13931_v48 = vcombine.high %v4435_v24, %v4443_v31  ;;  %v4387_v62 = vld [vmem:[%s19280_s9 + $0x928] sm:$0xff]  ;;  %v13898_v24 = vcombine.low %v4403_v63, %v4411_v40 }
 0x580   :  { %11170 = vmatprep.subr.bf16.mxu0 %v13739_v10 }
 0x582   :  { %11130 = vmatpush2.bf16.msra.mxu1 %v14504_v51 }
 0x583   :  { %11171 = vmatpush2.bf16.msra.mxu0 %v13738_v9  ;;  %11131 = vmatprep.subr.bf16.mxu1 %v14489_v55  ;;  %v4675_v9 = vld [vmem:[%s19280_s9 + $0x1228] sm:$0xff] }
 0x584   :  { %11172 = vmatprep.subr.bf16.mxu0 %v13723_v61  ;;  %v4683_v55 = vld [vmem:[%s19280_s9 + $0x1268] sm:$0xff] }
 0x585   :  { %v14170_v52 = vcombine.low %v4675_v9, %v4683_v55 }
 0x586   :  { %11132 = vmatpush2.bf16.msra.mxu1 %v14488_v33  ;;  %v13915_v33 = vcombine.high %v4419_v53, %v4427_v46  ;;  %v13866_v53 = vcombine.low %v4371_v39, %v4379_v60 }
 0x587   :  { %11173 = vmatpush2.bf16.msra.mxu0 %v13722_v57  ;;  %11183 = vmatprep.subr.bf16.mxu1 %v13963_v22  ;;  %v14171_v22 = vcombine.high %v4675_v9, %v4683_v55  ;;  %v4595_v55 = vld [vmem:[%s19280_s9 + $0xfa8] sm:$0xff] }
 0x588   :  { %11224 = vmatprep.subr.bf16.mxu0 %v14219_v28  ;;  %v4659_v28 = vld [vmem:[%s19280_s9 + $0x11a8] sm:$0xff] }
 0x589   :  { %v10889_v6 = vpop.f32.mrf.mxu1  ;;  %11134 = vmatmul.mubr.bf16.vlgmr.msra.gmra.mxu1 %v16427_v0  ;;  %v14155_v34 = vcombine.high %v4659_v28, %v4667_v8  ;;  %v14154_v31 = vcombine.low %v4659_v28, %v4667_v8  ;;  %v4835_v28 = vld [vmem:[%s19280_s9 + $0x1728] sm:$0xff] }
 0x58a   :  { %v10890_v5 = vadd.f32 %v10889_v6, %v10849_v25  ;;  %v10930_v37 = vpop.f32.mrf.mxu0  ;;  %11175 = vmatmul.mubr.bf16.vlgmr.msra.gmra.mxu0 %v15965_v29  ;;  %11184 = vmatpush1.bf16.msra.mxu1 %v13962_v44  ;;  %v13899_v44 = vcombine.high %v4403_v63, %v4411_v40  ;;  %v4643_v25 = vld [vmem:[%s19280_s9 + $0x1128] sm:$0xff] }
 0x58b   :  { %11215 = vmatprep.mubr.bf16.mxu1 %v16161_v1  ;;  %11225 = vmatpush1.bf16.msra.mxu0 %v14218_v30  ;;  %v10891_v54 = vpop.f32.mrf.mxu1  ;;  %v4395_v30 = vld [vmem:[%s19280_s9 + $0x968] sm:$0xff] }
 0x58c   :  { %v18099_v10 = vadd.f32 %v10930_v37, %v10890_v5  ;;  %11256 = vmatprep.mubr.bf16.mxu0 %v16293_v4  ;;  %v10892_v49 = vadd.f32 %v10891_v54, %v10851_v42  ;;  %v10932_v18 = vpop.f32.mrf.mxu0  ;;  %11185 = vmatprep.subr.bf16.mxu1 %v13947_v21  ;;  %v4651_v21 = vld [vmem:[%s19280_s9 + $0x1168] sm:$0xff]  ;;  %v13883_v6 = vcombine.high %v4387_v62, %v4395_v30 }
 0x58d   :  { %v10893_v51 = vpop.f32.mrf.mxu1  ;;  %11226 = vmatprep.subr.bf16.mxu0 %v14203_v13  ;;  %v14139_v13 = vcombine.high %v4643_v25, %v4651_v21  ;;  %v4627_v42 = vld [vmem:[%s19280_s9 + $0x10a8] sm:$0xff]  ;;  %v13882_v37 = vcombine.low %v4387_v62, %v4395_v30  ;;  %v13867_v54 = vcombine.high %v4371_v39, %v4379_v60 }
 0x58e   :  { %v18114_v61 = vadd.f32 %v10932_v18, %v10892_v49  ;;  %v10934_v14 = vpop.f32.mrf.mxu0  ;;  %11186 = vmatpush1.bf16.msra.mxu1 %v13946_v45  ;;  %v4635_v5 = vld [vmem:[%s19280_s9 + $0x10e8] sm:$0xff]  ;;  %v14138_v45 = vcombine.low %v4643_v25, %v4651_v21 }
 0x58f   :  { %11227 = vmatpush1.bf16.msra.mxu0 %v14202_v50  ;;  %v10894_v27 = vpop.f32.mrf.mxu1  ;;  %11187 = vmatprep.subr.bf16.mxu1 %v13931_v48  ;;  %v14123_v50 = vcombine.high %v4627_v42, %v4635_v5  ;;  %v4355_v48 = vld [vmem:[%s19280_s9 + $0x828] sm:$0xff]  ;;  %v14122_v46 = vcombine.low %v4627_v42, %v4635_v5 }
 0x590   :  { %v10935_v57 = vpop.f32.mrf.mxu0  ;;  %11228 = vmatprep.subr.bf16.mxu0 %v14187_v43  ;;  %v4363_v49 = vld [vmem:[%s19280_s9 + $0x868] sm:$0xff] }
 0x591   :  { %v4611_v18 = vld [vmem:[%s19280_s9 + $0x1028] sm:$0xff]  ;;  %v13851_v51 = vcombine.high %v4355_v48, %v4363_v49 }
 0x592   :  { %11188 = vmatpush1.bf16.msra.mxu1 %v13930_v26  ;;  %v4619_v43 = vld [vmem:[%s19280_s9 + $0x1068] sm:$0xff] }
 0x593   :  { %11229 = vmatpush1.bf16.msra.mxu0 %v14186_v36  ;;  %11189 = vmatprep.subr.bf16.mxu1 %v13915_v33  ;;  %v14107_v9 = vcombine.high %v4611_v18, %v4619_v43  ;;  %v4603_v14 = vld [vmem:[%s19280_s9 + $0xfe8] sm:$0xff]  ;;  %v13850_v36 = vcombine.low %v4355_v48, %v4363_v49  ;;  %v14106_v33 = vcombine.low %v4611_v18, %v4619_v43 }
 0x594   :  { %11230 = vmatprep.subr.bf16.mxu0 %v14171_v22  ;;  %v4851_v26 = vld [vmem:[%s19280_s9 + $0x17a8] sm:$0xff]  ;;  %v14091_v57 = vcombine.high %v4595_v55, %v4603_v14 }
 0x595   :  { %v4859_v27 = vld [vmem:[%s19280_s9 + $0x17e8] sm:$0xff] }
 0x596   :  { %11190 = vmatpush1.bf16.msra.mxu1 %v13914_v56  ;;  %v14347_v22 = vcombine.high %v4851_v26, %v4859_v27  ;;  %v4579_v63 = vld [vmem:[%s19280_s9 + $0xf28] sm:$0xff]  ;;  %v14090_v56 = vcombine.low %v4595_v55, %v4603_v14 }
 0x597   :  { %11231 = vmatpush1.bf16.msra.mxu0 %v14170_v52  ;;  %11191 = vmatprep.subr.bf16.mxu1 %v13899_v44  ;;  %v4587_v40 = vld [vmem:[%s19280_s9 + $0xf68] sm:$0xff]  ;;  %v14346_v52 = vcombine.low %v4851_v26, %v4859_v27 }
 0x598   :  { %11232 = vmatprep.subr.bf16.mxu0 %v14155_v34  ;;  %v4843_v8 = vld [vmem:[%s19280_s9 + $0x1768] sm:$0xff]  ;;  %v14075_v44 = vcombine.high %v4579_v63, %v4587_v40 }
 0x599   :  { %v14331_v34 = vcombine.high %v4835_v28, %v4843_v8  ;;  %v4563_v62 = vld [vmem:[%s19280_s9 + $0xea8] sm:$0xff] }
 0x59a   :  { %11192 = vmatpush1.bf16.msra.mxu1 %v13898_v24  ;;  %v4571_v30 = vld [vmem:[%s19280_s9 + $0xee8] sm:$0xff]  ;;  %v14074_v24 = vcombine.low %v4579_v63, %v4587_v40 }
 0x59b   :  { %11233 = vmatpush1.bf16.msra.mxu0 %v14154_v31  ;;  %11193 = vmatprep.subr.bf16.mxu1 %v13883_v6  ;;  %v4819_v25 = vld [vmem:[%s19280_s9 + $0x16a8] sm:$0xff]  ;;  %v14330_v31 = vcombine.low %v4835_v28, %v4843_v8  ;;  %v14059_v6 = vcombine.high %v4563_v62, %v4571_v30 }
 0x59c   :  { %11234 = vmatprep.subr.bf16.mxu0 %v14139_v13  ;;  %v4827_v21 = vld [vmem:[%s19280_s9 + $0x16e8] sm:$0xff] }
 0x59d   :  { %v14315_v13 = vcombine.high %v4819_v25, %v4827_v21  ;;  %v4547_v39 = vld [vmem:[%s19280_s9 + $0xe28] sm:$0xff] }
 0x59e   :  { %11194 = vmatpush1.bf16.msra.mxu1 %v13882_v37  ;;  %v4555_v60 = vld [vmem:[%s19280_s9 + $0xe68] sm:$0xff]  ;;  %v14058_v37 = vcombine.low %v4563_v62, %v4571_v30 }
 0x59f   :  { %11235 = vmatpush1.bf16.msra.mxu0 %v14138_v45  ;;  %11195 = vmatprep.subr.bf16.mxu1 %v13867_v54  ;;  %v4803_v42 = vld [vmem:[%s19280_s9 + $0x1628] sm:$0xff]  ;;  %v14314_v45 = vcombine.low %v4819_v25, %v4827_v21  ;;  %v14043_v54 = vcombine.high %v4547_v39, %v4555_v60 }
 0x5a0   :  { %11236 = vmatprep.subr.bf16.mxu0 %v14123_v50  ;;  %v4811_v5 = vld [vmem:[%s19280_s9 + $0x1668] sm:$0xff] }
 0x5a1   :  { %v14299_v50 = vcombine.high %v4803_v42, %v4811_v5  ;;  %v4531_v48 = vld [vmem:[%s19280_s9 + $0xda8] sm:$0xff] }
 0x5a2   :  { %11196 = vmatpush1.bf16.msra.mxu1 %v13866_v53  ;;  %v4539_v49 = vld [vmem:[%s19280_s9 + $0xde8] sm:$0xff]  ;;  %v14042_v53 = vcombine.low %v4547_v39, %v4555_v60 }
 0x5a3   :  { %11237 = vmatpush1.bf16.msra.mxu0 %v14122_v46  ;;  %11197 = vmatprep.subr.bf16.mxu1 %v13851_v51  ;;  %v4787_v18 = vld [vmem:[%s19280_s9 + $0x15a8] sm:$0xff]  ;;  %v14298_v46 = vcombine.low %v4803_v42, %v4811_v5  ;;  %v14027_v51 = vcombine.high %v4531_v48, %v4539_v49  ;;  %v4212_v42 = vld [vmem:[%s19280_s9 + $0x3b0] sm:$0xff] }
 0x5a4   :  { %11238 = vmatprep.subr.bf16.mxu0 %v14107_v9  ;;  %v4795_v43 = vld [vmem:[%s19280_s9 + $0x15e8] sm:$0xff]  ;;  %v4220_v5 = vld [vmem:[%s19280_s9 + $0x3f0] sm:$0xff] }
 0x5a5   :  { %v14283_v9 = vcombine.high %v4787_v18, %v4795_v43  ;;  %v4515_v55 = vld [vmem:[%s19280_s9 + $0xd28] sm:$0xff] }
 0x5a6   :  { %11198 = vmatpush1.bf16.msra.mxu1 %v13850_v36  ;;  %v4523_v14 = vld [vmem:[%s19280_s9 + $0xd68] sm:$0xff]  ;;  %v14026_v36 = vcombine.low %v4531_v48, %v4539_v49 }
 0x5a7   :  { %11239 = vmatpush1.bf16.msra.mxu0 %v14106_v33  ;;  %11199 = vmatprep.subr.bf16.mxu1 %v14091_v57  ;;  %v4771_v26 = vld [vmem:[%s19280_s9 + $0x1528] sm:$0xff]  ;;  %v14282_v33 = vcombine.low %v4787_v18, %v4795_v43  ;;  %v14011_v57 = vcombine.high %v4515_v55, %v4523_v14  ;;  %v4196_v43 = vld [vmem:[%s19280_s9 + $0x330] sm:$0xff] }
 0x5a8   :  { %11240 = vmatprep.subr.bf16.mxu0 %v14347_v22  ;;  %v4779_v27 = vld [vmem:[%s19280_s9 + $0x1568] sm:$0xff] }
 0x5a9   :  { %v14267_v22 = vcombine.high %v4771_v26, %v4779_v27  ;;  %v4499_v63 = vld [vmem:[%s19280_s9 + $0xca8] sm:$0xff] }
 0x5aa   :  { %11200 = vmatpush2.bf16.msra.mxu1 %v14090_v56  ;;  %v4507_v40 = vld [vmem:[%s19280_s9 + $0xce8] sm:$0xff]  ;;  %v14010_v56 = vcombine.low %v4515_v55, %v4523_v14 }
 0x5ab   :  { %11241 = vmatpush2.bf16.msra.mxu0 %v14346_v52  ;;  %11201 = vmatprep.subr.bf16.mxu1 %v14075_v44  ;;  %v4755_v28 = vld [vmem:[%s19280_s9 + $0x14a8] sm:$0xff]  ;;  %v14266_v52 = vcombine.low %v4771_v26, %v4779_v27  ;;  %v13995_v44 = vcombine.high %v4499_v63, %v4507_v40  ;;  %v4180_v27 = vld [vmem:[%s19280_s9 + $0x2b0] sm:$0xff] }
 0x5ac   :  { %11242 = vmatprep.subr.bf16.mxu0 %v14331_v34  ;;  %v4763_v8 = vld [vmem:[%s19280_s9 + $0x14e8] sm:$0xff] }
 0x5ad   :  { %v14251_v34 = vcombine.high %v4755_v28, %v4763_v8  ;;  %v4483_v62 = vld [vmem:[%s19280_s9 + $0xc28] sm:$0xff] }
 0x5ae   :  { %11202 = vmatpush2.bf16.msra.mxu1 %v14074_v24  ;;  %v4491_v30 = vld [vmem:[%s19280_s9 + $0xc68] sm:$0xff]  ;;  %v13994_v24 = vcombine.low %v4499_v63, %v4507_v40 }
 0x5af   :  { %11243 = vmatpush2.bf16.msra.mxu0 %v14330_v31  ;;  %11203 = vmatprep.subr.bf16.mxu1 %v14059_v6  ;;  %v4739_v25 = vld [vmem:[%s19280_s9 + $0x1428] sm:$0xff]  ;;  %v14250_v31 = vcombine.low %v4755_v28, %v4763_v8  ;;  %v13979_v6 = vcombine.high %v4483_v62, %v4491_v30 }
 0x5b0   :  { %11244 = vmatprep.subr.bf16.mxu0 %v14315_v13  ;;  %v4747_v21 = vld [vmem:[%s19280_s9 + $0x1468] sm:$0xff] }
 0x5b1   :  { %v14235_v13 = vcombine.high %v4739_v25, %v4747_v21  ;;  %v4979_v39 = vld [vmem:[%s19280_s9 + $0x1ba8] sm:$0xff] }
 0x5b2   :  { %11204 = vmatpush2.bf16.msra.mxu1 %v14058_v37  ;;  %v4987_v60 = vld [vmem:[%s19280_s9 + $0x1be8] sm:$0xff]  ;;  %v13978_v37 = vcombine.low %v4483_v62, %v4491_v30  ;;  %v4164_v62 = vld [vmem:[%s19280_s9 + $0x230] sm:$0xff] }
 0x5b3   :  { %11245 = vmatpush2.bf16.msra.mxu0 %v14314_v45  ;;  %11205 = vmatprep.subr.bf16.mxu1 %v14043_v54  ;;  %v14234_v45 = vcombine.low %v4739_v25, %v4747_v21  ;;  %v14475_v54 = vcombine.high %v4979_v39, %v4987_v60  ;;  %v4963_v48 = vld [vmem:[%s19280_s9 + $0x1b28] sm:$0xff]  ;;  %v14474_v18 = vcombine.low %v4979_v39, %v4987_v60 }
 0x5b4   :  { %11246 = vmatprep.subr.bf16.mxu0 %v14299_v50  ;;  %v13709_v50 = vcombine.high %v4212_v42, %v4220_v5  ;;  %v4971_v49 = vld [vmem:[%s19280_s9 + $0x1b68] sm:$0xff] }
 0x5b5   :  { %v4955_v55 = vld [vmem:[%s19280_s9 + $0x1ae8] sm:$0xff] }
 0x5b6   :  { %11206 = vmatpush2.bf16.msra.mxu1 %v14042_v53  ;;  %v4204_v53 = vld [vmem:[%s19280_s9 + $0x370] sm:$0xff]  ;;  %v4915_v39 = vld [vmem:[%s19280_s9 + $0x19a8] sm:$0xff] }
 0x5b7   :  { %11247 = vmatpush2.bf16.msra.mxu0 %v14298_v46  ;;  %11207 = vmatprep.subr.bf16.mxu1 %v14027_v51  ;;  %v13708_v46 = vcombine.low %v4212_v42, %v4220_v5  ;;  %v14459_v51 = vcombine.high %v4963_v48, %v4971_v49  ;;  %v13693_v26 = vcombine.high %v4196_v43, %v4204_v53  ;;  %v4923_v60 = vld [vmem:[%s19280_s9 + $0x19e8] sm:$0xff]  ;;  %v4148_v42 = vld [vmem:[%s19280_s9 + $0x1b0] sm:$0xff] }
 0x5b8   :  { %11248 = vmatprep.subr.bf16.mxu0 %v14283_v9  ;;  %v4947_v9 = vld [vmem:[%s19280_s9 + $0x1aa8] sm:$0xff]  ;;  %v13692_v40 = vcombine.low %v4196_v43, %v4204_v53  ;;  %v4156_v5 = vld [vmem:[%s19280_s9 + $0x1f0] sm:$0xff]  ;;  %v14410_v53 = vcombine.low %v4915_v39, %v4923_v60 }
 0x5b9   :  { %v14443_v28 = vcombine.high %v4947_v9, %v4955_v55  ;;  %v14442_v25 = vcombine.low %v4947_v9, %v4955_v55  ;;  %v4140_v43 = vld [vmem:[%s19280_s9 + $0x170] sm:$0xff]  ;;  %v4883_v55 = vld [vmem:[%s19280_s9 + $0x18a8] sm:$0xff] }
 0x5ba   :  { %11208 = vmatpush2.bf16.msra.mxu1 %v14026_v36  ;;  %v4188_v36 = vld [vmem:[%s19280_s9 + $0x2f0] sm:$0xff] }
 0x5bb   :  { %11249 = vmatpush2.bf16.msra.mxu0 %v14282_v33  ;;  %11209 = vmatprep.subr.bf16.mxu1 %v14011_v57 }
 0x5bc   :  { %11250 = vmatprep.subr.bf16.mxu0 %v14267_v22  ;;  %v14458_v22 = vcombine.low %v4963_v48, %v4971_v49  ;;  %v4899_v48 = vld [vmem:[%s19280_s9 + $0x1928] sm:$0xff] }
 0x5bd   :  { %v4907_v49 = vld [vmem:[%s19280_s9 + $0x1968] sm:$0xff] }
 0x5be   :  { %11210 = vmatpush2.bf16.msra.mxu1 %v14010_v56 }
 0x5bf   :  { %11251 = vmatpush2.bf16.msra.mxu0 %v14266_v52  ;;  %11211 = vmatprep.subr.bf16.mxu1 %v13995_v44  ;;  %v4931_v52 = vld [vmem:[%s19280_s9 + $0x1a28] sm:$0xff] }
 0x5c0   :  { %11252 = vmatprep.subr.bf16.mxu0 %v14251_v34  ;;  %v4939_v44 = vld [vmem:[%s19280_s9 + $0x1a68] sm:$0xff] }
 0x5c2   :  { %11212 = vmatpush2.bf16.msra.mxu1 %v13994_v24  ;;  %v13676_v24 = vcombine.low %v4180_v27, %v4188_v36 }
 0x5c3   :  { %11253 = vmatpush2.bf16.msra.mxu0 %v14250_v31  ;;  %11213 = vmatprep.subr.bf16.mxu1 %v13979_v6  ;;  %v14427_v31 = vcombine.high %v4931_v52, %v4939_v44 }
 0x5c4   :  { %11254 = vmatprep.subr.bf16.mxu0 %v14235_v13 }
 0x5c6   :  { %11214 = vmatpush2.bf16.msra.mxu1 %v13978_v37  ;;  %v14426_v37 = vcombine.low %v4931_v52, %v4939_v44  ;;  %v4100_v52 = vld [vmem:[%s19280_s9 + $0x30] sm:$0xff] }
 0x5c7   :  { %11255 = vmatpush2.bf16.msra.mxu0 %v14234_v45  ;;  %11265 = vmatprep.subr.bf16.mxu1 %v14475_v54  ;;  %v14411_v54 = vcombine.high %v4915_v39, %v4923_v60  ;;  %v4108_v44 = vld [vmem:[%s19280_s9 + $0x70] sm:$0xff] }
 0x5c8   :  { %11306 = vmatprep.subr.bf16.mxu0 %v13709_v50  ;;  %v13645_v50 = vcombine.high %v4148_v42, %v4156_v5 }
 0x5c9   :  { %v10971_v14 = vpop.f32.mrf.mxu1  ;;  %11216 = vmatmul.mubr.bf16.vlgmr.msra.gmra.mxu1 %v16175_v11 }
 0x5ca   :  { %v18298_v33 = vadd.f32 %v10971_v14, %v18099_v10  ;;  %v18300_v57 = vpop.f32.mrf.mxu0  ;;  %11257 = vmatmul.mubr.bf16.vlgmr.msra.gmra.mxu0 %v16295_v12  ;;  %11266 = vmatpush1.bf16.msra.mxu1 %v14474_v18  ;;  %v13677_v10 = vcombine.high %v4180_v27, %v4188_v36  ;;  %v4132_v18 = vld [vmem:[%s19280_s9 + $0x130] sm:$0xff]  ;;  %v4891_v14 = vld [vmem:[%s19280_s9 + $0x18e8] sm:$0xff]  ;;  %v14394_v36 = vcombine.low %v4899_v48, %v4907_v49 }
 0x5cb   :  { %11297 = vmatprep.mubr.bf16.mxu1 %v16425_v19  ;;  %11307 = vmatpush1.bf16.msra.mxu0 %v13708_v46  ;;  %v10973_v63 = vpop.f32.mrf.mxu1  ;;  %v13644_v46 = vcombine.low %v4148_v42, %v4156_v5  ;;  %v13629_v9 = vcombine.high %v4132_v18, %v4140_v43  ;;  %v4124_v27 = vld [vmem:[%s19280_s9 + $0xf0] sm:$0xff]  ;;  %v5091_v42 = vld [vmem:[%s19280_s9 + $0x1f28] sm:$0xff] }
 0x5cc   :  { %11338 = vmatprep.mubr.bf16.mxu0 %v15958_v17  ;;  %v18306_v8 = vadd.f32 %v10973_v63, %v18114_v61  ;;  %v18308_v56 = vpop.f32.mrf.mxu0  ;;  %11267 = vmatprep.subr.bf16.mxu1 %v14459_v51  ;;  %v4172_v61 = vld [vmem:[%s19280_s9 + $0x270] sm:$0xff]  ;;  %v14395_v51 = vcombine.high %v4899_v48, %v4907_v49  ;;  %v14379_v63 = vcombine.high %v4883_v55, %v4891_v14  ;;  %v5099_v5 = vld [vmem:[%s19280_s9 + $0x1f68] sm:$0xff]  ;;  %vm11640_vm5 = vcmp.ge.f32.partialorder %v18298_v33, 0.0 }
 0x5cd   :  { %v10975_v34 = vpop.f32.mrf.mxu1  ;;  %11308 = vmatprep.subr.bf16.mxu0 %v13693_v26  ;;  %v13661_v13 = vcombine.high %v4164_v62, %v4172_v61  ;;  %v13660_v45 = vcombine.low %v4164_v62, %v4172_v61  ;;  %v4116_v26 = vld [vmem:[%s19280_s9 + $0xb0] sm:$0xff]  ;;  %v14587_v48 = vcombine.high %v5091_v42, %v5099_v5 }
 0x5ce   :  { %v11016_v30 = vpop.f32.mrf.mxu0  ;;  %11268 = vmatpush1.bf16.msra.mxu1 %v14458_v22  ;;  %v13628_v22 = vcombine.low %v4132_v18, %v4140_v43  ;;  %v14378_v34 = vcombine.low %v4883_v55, %v4891_v14  ;;  %v13612_v62 = vcombine.low %v4116_v26, %v4124_v27  ;;  %v5075_v18 = vld [vmem:[%s19280_s9 + $0x1ea8] sm:$0xff]  ;;  %vm11641_vm4 = vcmp.ge.f32.partialorder %v18306_v8, 0.0 }
 0x5cf   :  { %11309 = vmatpush1.bf16.msra.mxu0 %v13692_v40  ;;  %v10976_v21 = vpop.f32.mrf.mxu1  ;;  %11269 = vmatprep.subr.bf16.mxu1 %v14443_v28  ;;  %v13613_v40 = vcombine.high %v4116_v26, %v4124_v27  ;;  %v4867_v28 = vld [vmem:[%s19280_s9 + $0x1828] sm:$0xff]  ;;  %v13597_v30 = vcombine.high %v4100_v52, %v4108_v44 }
 0x5d0   :  { %v11017_v6 = vpop.f32.mrf.mxu0  ;;  %11310 = vmatprep.subr.bf16.mxu0 %v13677_v10  ;;  %v4875_v10 = vld [vmem:[%s19280_s9 + $0x1868] sm:$0xff] }
 0x5d1   :  { %v14363_v61 = vcombine.high %v4867_v28, %v4875_v10  ;;  %v5115_v21 = vld [vmem:[%s19280_s9 + $0x1fe8] sm:$0xff]  ;;  %v14362_v6 = vcombine.low %v4867_v28, %v4875_v10 }
 0x5d2   :  { %11270 = vmatpush1.bf16.msra.mxu1 %v14442_v25  ;;  %v5107_v25 = vld [vmem:[%s19280_s9 + $0x1fa8] sm:$0xff] }
 0x5d3   :  { %11311 = vmatpush1.bf16.msra.mxu0 %v13676_v24  ;;  %11271 = vmatprep.subr.bf16.mxu1 %v14427_v31  ;;  %v4340_v24 = vld [vmem:[%s19280_s9 + $0x7b0] sm:$0xff]  ;;  %v14603_v39 = vcombine.high %v5107_v25, %v5115_v21  ;;  %v5083_v43 = vld [vmem:[%s19280_s9 + $0x1ee8] sm:$0xff] }
 0x5d4   :  { %11312 = vmatprep.subr.bf16.mxu0 %v13661_v13  ;;  %v4348_v31 = vld [vmem:[%s19280_s9 + $0x7f0] sm:$0xff]  ;;  %v13596_v13 = vcombine.low %v4100_v52, %v4108_v44  ;;  %v14571_v55 = vcombine.high %v5075_v18, %v5083_v43  ;;  %v5059_v26 = vld [vmem:[%s19280_s9 + $0x1e28] sm:$0xff] }
 0x5d5   :  { %v13837_v60 = vcombine.high %v4340_v24, %v4348_v31  ;;  %v5067_v27 = vld [vmem:[%s19280_s9 + $0x1e68] sm:$0xff] }
 0x5d6   :  { %11272 = vmatpush1.bf16.msra.mxu1 %v14426_v37  ;;  %v4324_v37 = vld [vmem:[%s19280_s9 + $0x730] sm:$0xff]  ;;  %v14555_v28 = vcombine.high %v5059_v26, %v5067_v27  ;;  %v5043_v52 = vld [vmem:[%s19280_s9 + $0x1da8] sm:$0xff] }
 0x5d7   :  { %11313 = vmatpush1.bf16.msra.mxu0 %v13660_v45  ;;  %11273 = vmatprep.subr.bf16.mxu1 %v14411_v54  ;;  %v4332_v45 = vld [vmem:[%s19280_s9 + $0x770] sm:$0xff]  ;;  %v14602_v54 = vcombine.low %v5107_v25, %v5115_v21  ;;  %v5051_v44 = vld [vmem:[%s19280_s9 + $0x1de8] sm:$0xff] }
 0x5d8   :  { %11314 = vmatprep.subr.bf16.mxu0 %v13645_v50  ;;  %v13836_v50 = vcombine.low %v4340_v24, %v4348_v31  ;;  %v13821_v49 = vcombine.high %v4324_v37, %v4332_v45  ;;  %v14539_v25 = vcombine.high %v5043_v52, %v5051_v44  ;;  %v5027_v24 = vld [vmem:[%s19280_s9 + $0x1d28] sm:$0xff] }
 0x5d9   :  { %v5035_v31 = vld [vmem:[%s19280_s9 + $0x1d68] sm:$0xff] }
 0x5da   :  { %11274 = vmatpush1.bf16.msra.mxu1 %v14410_v53  ;;  %v4308_v53 = vld [vmem:[%s19280_s9 + $0x6b0] sm:$0xff] }
 0x5db   :  { %11315 = vmatpush1.bf16.msra.mxu0 %v13644_v46  ;;  %11275 = vmatprep.subr.bf16.mxu1 %v14395_v51  ;;  %v4316_v46 = vld [vmem:[%s19280_s9 + $0x6f0] sm:$0xff]  ;;  %v14586_v51 = vcombine.low %v5091_v42, %v5099_v5  ;;  %v14523_v42 = vcombine.high %v5027_v24, %v5035_v31 }
 0x5dc   :  { %11316 = vmatprep.subr.bf16.mxu0 %v13629_v9  ;;  %v13820_v9 = vcombine.low %v4324_v37, %v4332_v45  ;;  %v13805_v14 = vcombine.high %v4308_v53, %v4316_v46  ;;  %v5011_v37 = vld [vmem:[%s19280_s9 + $0x1ca8] sm:$0xff] }
 0x5dd   :  { %v5019_v45 = vld [vmem:[%s19280_s9 + $0x1ce8] sm:$0xff] }
 0x5de   :  { %11276 = vmatpush1.bf16.msra.mxu1 %v14394_v36  ;;  %v4292_v36 = vld [vmem:[%s19280_s9 + $0x630] sm:$0xff] }
 0x5df   :  { %11317 = vmatpush1.bf16.msra.mxu0 %v13628_v22  ;;  %11277 = vmatprep.subr.bf16.mxu1 %v14379_v63  ;;  %v4300_v22 = vld [vmem:[%s19280_s9 + $0x670] sm:$0xff]  ;;  %v14570_v63 = vcombine.low %v5075_v18, %v5083_v43  ;;  %v14507_v18 = vcombine.high %v5011_v37, %v5019_v45 }
 0x5e0   :  { %11318 = vmatprep.subr.bf16.mxu0 %v13613_v40  ;;  %v13804_v40 = vcombine.low %v4308_v53, %v4316_v46  ;;  %v13789_v10 = vcombine.high %v4292_v36, %v4300_v22  ;;  %v4995_v53 = vld [vmem:[%s19280_s9 + $0x1c28] sm:$0xff] }
 0x5e1   :  { %v5003_v46 = vld [vmem:[%s19280_s9 + $0x1c68] sm:$0xff] }
 0x5e2   :  { %11278 = vmatpush1.bf16.msra.mxu1 %v14378_v34  ;;  %v4276_v34 = vld [vmem:[%s19280_s9 + $0x5b0] sm:$0xff] }
 0x5e3   :  { %11319 = vmatpush1.bf16.msra.mxu0 %v13612_v62  ;;  %11279 = vmatprep.subr.bf16.mxu1 %v14363_v61  ;;  %v4284_v62 = vld [vmem:[%s19280_s9 + $0x5f0] sm:$0xff]  ;;  %v14554_v61 = vcombine.low %v5059_v26, %v5067_v27  ;;  %v14491_v26 = vcombine.high %v4995_v53, %v5003_v46 }
 0x5e4   :  { %11320 = vmatprep.subr.bf16.mxu0 %v13597_v30  ;;  %v13788_v30 = vcombine.low %v4292_v36, %v4300_v22  ;;  %v13773_v21 = vcombine.high %v4276_v34, %v4284_v62  ;;  %v4468_v36 = vld [vmem:[%s19280_s9 + $0xbb0] sm:$0xff] }
 0x5e5   :  { %v4476_v22 = vld [vmem:[%s19280_s9 + $0xbf0] sm:$0xff] }
 0x5e6   :  { %11280 = vmatpush1.bf16.msra.mxu1 %v14362_v6  ;;  %v4260_v6 = vld [vmem:[%s19280_s9 + $0x530] sm:$0xff] }
 0x5e7   :  { %11321 = vmatpush1.bf16.msra.mxu0 %v13596_v13  ;;  %11281 = vmatprep.subr.bf16.mxu1 %v14603_v39  ;;  %v4268_v13 = vld [vmem:[%s19280_s9 + $0x570] sm:$0xff]  ;;  %v14538_v39 = vcombine.low %v5043_v52, %v5051_v44  ;;  %v13965_v44 = vcombine.high %v4468_v36, %v4476_v22 }
 0x5e8   :  { %11322 = vmatprep.subr.bf16.mxu0 %v13837_v60  ;;  %v13772_v60 = vcombine.low %v4276_v34, %v4284_v62  ;;  %v13757_v5 = vcombine.high %v4260_v6, %v4268_v13 }
 0x5ea   :  { %11282 = vmatpush2.bf16.msra.mxu1 %v14602_v54  ;;  %v4244_v54 = vld [vmem:[%s19280_s9 + $0x4b0] sm:$0xff] }
 0x5eb   :  { %11323 = vmatpush2.bf16.msra.mxu0 %v13836_v50  ;;  %11283 = vmatprep.subr.bf16.mxu1 %v14587_v48  ;;  %v4252_v50 = vld [vmem:[%s19280_s9 + $0x4f0] sm:$0xff]  ;;  %v14522_v48 = vcombine.low %v5027_v24, %v5035_v31 }
 0x5ec   :  { %11324 = vmatprep.subr.bf16.mxu0 %v13821_v49  ;;  %v13756_v49 = vcombine.low %v4260_v6, %v4268_v13  ;;  %v13741_v43 = vcombine.high %v4244_v54, %v4252_v50  ;;  %v4708_v24 = vld [vmem:[%s19280_s9 + $0x1330] sm:$0xff] }
 0x5ee   :  { %11284 = vmatpush2.bf16.msra.mxu1 %v14586_v51  ;;  %v4228_v51 = vld [vmem:[%s19280_s9 + $0x430] sm:$0xff] }
 0x5ef   :  { %11325 = vmatpush2.bf16.msra.mxu0 %v13820_v9  ;;  %11285 = vmatprep.subr.bf16.mxu1 %v14571_v55  ;;  %v4236_v9 = vld [vmem:[%s19280_s9 + $0x470] sm:$0xff]  ;;  %v14506_v55 = vcombine.low %v5011_v37, %v5019_v45 }
 0x5f0   :  { %11326 = vmatprep.subr.bf16.mxu0 %v13805_v14  ;;  %v13740_v14 = vcombine.low %v4244_v54, %v4252_v50  ;;  %v13725_v27 = vcombine.high %v4228_v51, %v4236_v9  ;;  %v13724_v52 = vcombine.low %v4228_v51, %v4236_v9  ;;  %v4420_v51 = vld [vmem:[%s19280_s9 + $0xa30] sm:$0xff] }
 0x5f1   :  { %v4428_v9 = vld [vmem:[%s19280_s9 + $0xa70] sm:$0xff] }
 0x5f2   :  { %11286 = vmatpush2.bf16.msra.mxu1 %v14570_v63  ;;  %v18475_v63 = vld [vmem:[%s19281_s10 + $0x8] sm:$0xff] }
 0x5f3   :  { %11327 = vmatpush2.bf16.msra.mxu0 %v13804_v40  ;;  %11287 = vmatprep.subr.bf16.mxu1 %v14555_v28  ;;  %v4724_v40 = vld [vmem:[%s19280_s9 + $0x13b0] sm:$0xff]  ;;  %v5157_v34 = vrot.slane %v18475_v63, %v15656_v7 }
 0x5f4   :  { %11328 = vmatprep.subr.bf16.mxu0 %v13789_v10  ;;  %v4732_v28 = vld [vmem:[%s19280_s9 + $0x13f0] sm:$0xff]  ;;  %v14490_v10 = vcombine.low %v4995_v53, %v5003_v46 }
 0x5f5   :  { %v14221_v62 = vcombine.high %v4724_v40, %v4732_v28  ;;  %v4716_v7 = vld [vmem:[%s19280_s9 + $0x1370] sm:$0xff]  ;;  %v14220_v31 = vcombine.low %v4724_v40, %v4732_v28  ;;  %v11013_v6 = vadd.f32 %v18300_v57, %v5157_v34 }
 0x5f6   :  { %11288 = vmatpush2.bf16.msra.mxu1 %v14554_v61  ;;  %v4452_v61 = vld [vmem:[%s19280_s9 + $0xb30] sm:$0xff] }
 0x5f7   :  { %11329 = vmatpush2.bf16.msra.mxu0 %v13788_v30  ;;  %11289 = vmatprep.subr.bf16.mxu1 %v14539_v25  ;;  %v4460_v30 = vld [vmem:[%s19280_s9 + $0xb70] sm:$0xff]  ;;  %v5161_v25 = vrot.slane %v18475_v63, %v15664_v15 }
 0x5f8   :  { %11330 = vmatprep.subr.bf16.mxu0 %v13773_v21  ;;  %v13964_v21 = vcombine.low %v4468_v36, %v4476_v22  ;;  %v13949_v13 = vcombine.high %v4452_v61, %v4460_v30  ;;  %v4436_v15 = vld [vmem:[%s19280_s9 + $0xab0] sm:$0xff]  ;;  %v13948_v50 = vcombine.low %v4452_v61, %v4460_v30 }
 0x5f9   :  { %v4700_v57 = vld [vmem:[%s19280_s9 + $0x12f0] sm:$0xff]  ;;  %v11015_v37 = vadd.f32 %v18308_v56, %v5161_v25  ;;  %v13916_v25 = vcombine.low %v4420_v51, %v4428_v9 }
 0x5fa   :  { %11290 = vmatpush2.bf16.msra.mxu1 %v14538_v39  ;;  %v4444_v39 = vld [vmem:[%s19280_s9 + $0xaf0] sm:$0xff] }
 0x5fb   :  { %11331 = vmatpush2.bf16.msra.mxu0 %v13772_v60  ;;  %11291 = vmatprep.subr.bf16.mxu1 %v14523_v42  ;;  %v14205_v42 = vcombine.high %v4708_v24, %v4716_v7  ;;  %v13932_v22 = vcombine.low %v4436_v15, %v4444_v39  ;;  %v4404_v34 = vld [vmem:[%s19280_s9 + $0x9b0] sm:$0xff] }
 0x5fc   :  { %11332 = vmatprep.subr.bf16.mxu0 %v13757_v5  ;;  %v4692_v5 = vld [vmem:[%s19280_s9 + $0x12b0] sm:$0xff] }
 0x5fd   :  { %v14189_v56 = vcombine.high %v4692_v5, %v4700_v57  ;;  %v14188_v28 = vcombine.low %v4692_v5, %v4700_v57  ;;  %v4660_v61 = vld [vmem:[%s19280_s9 + $0x11b0] sm:$0xff] }
 0x5fe   :  { %11292 = vmatpush2.bf16.msra.mxu1 %v14522_v48  ;;  %v4668_v30 = vld [vmem:[%s19280_s9 + $0x11f0] sm:$0xff] }
 0x5ff   :  { %11333 = vmatpush2.bf16.msra.mxu0 %v13756_v49  ;;  %11293 = vmatprep.subr.bf16.mxu1 %v14507_v18  ;;  %v14204_v49 = vcombine.low %v4708_v24, %v4716_v7  ;;  %v13933_v18 = vcombine.high %v4436_v15, %v4444_v39  ;;  %v14157_v7 = vcombine.high %v4660_v61, %v4668_v30  ;;  %v4652_v15 = vld [vmem:[%s19280_s9 + $0x1170] sm:$0xff] }
 0x600   :  { %11334 = vmatprep.subr.bf16.mxu0 %v13741_v43  ;;  %v4372_v57 = vld [vmem:[%s19280_s9 + $0x8b0] sm:$0xff] }
 0x602   :  { %11294 = vmatpush2.bf16.msra.mxu1 %v14506_v55 }
 0x603   :  { %11335 = vmatpush2.bf16.msra.mxu0 %v13740_v14  ;;  %11295 = vmatprep.subr.bf16.mxu1 %v14491_v26  ;;  %v4676_v14 = vld [vmem:[%s19280_s9 + $0x1230] sm:$0xff] }
 0x604   :  { %11336 = vmatprep.subr.bf16.mxu0 %v13725_v27  ;;  %v4684_v26 = vld [vmem:[%s19280_s9 + $0x1270] sm:$0xff] }
 0x606   :  { %11296 = vmatpush2.bf16.msra.mxu1 %v14490_v10  ;;  %v13917_v10 = vcombine.high %v4420_v51, %v4428_v9  ;;  %v4620_v51 = vld [vmem:[%s19280_s9 + $0x1070] sm:$0xff] }
 0x607   :  { %11337 = vmatpush2.bf16.msra.mxu0 %v13724_v52  ;;  %11347 = vmatprep.subr.bf16.mxu1 %v13965_v44  ;;  %v14173_v44 = vcombine.high %v4676_v14, %v4684_v26 }
 0x608   :  { %11388 = vmatprep.subr.bf16.mxu0 %v14221_v62  ;;  %v4412_v62 = vld [vmem:[%s19280_s9 + $0x9f0] sm:$0xff] }
 0x609   :  { %v11053_v60 = vpop.f32.mrf.mxu1  ;;  %11298 = vmatmul.mubr.bf16.vlgmr.msra.gmra.mxu1 %v16427_v0  ;;  %v13901_v24 = vcombine.high %v4404_v34, %v4412_v62  ;;  %v13900_v39 = vcombine.low %v4404_v34, %v4412_v62  ;;  %v4580_v62 = vld [vmem:[%s19280_s9 + $0xf30] sm:$0xff] }
 0x60a   :  { %v11054_v45 = vadd.f32 %v11053_v60, %v11013_v6  ;;  %v11094_v54 = vpop.f32.mrf.mxu0  ;;  %11339 = vmatmul.mubr.bf16.vlgmr.msra.gmra.mxu0 %v15965_v29  ;;  %11348 = vmatpush1.bf16.msra.mxu1 %v13964_v21  ;;  %v14172_v21 = vcombine.low %v4676_v14, %v4684_v26  ;;  %v4396_v6 = vld [vmem:[%s19280_s9 + $0x970] sm:$0xff]  ;;  %v14156_v60 = vcombine.low %v4660_v61, %v4668_v30 }
 0x60b   :  { %11379 = vmatprep.mubr.bf16.mxu1 %v16161_v1  ;;  %11389 = vmatpush1.bf16.msra.mxu0 %v14220_v31  ;;  %v11055_v48 = vpop.f32.mrf.mxu1  ;;  %v4388_v31 = vld [vmem:[%s19280_s9 + $0x930] sm:$0xff] }
 0x60c   :  { %v18516_v43 = vadd.f32 %v11094_v54, %v11054_v45  ;;  %11420 = vmatprep.mubr.bf16.mxu0 %v16293_v4  ;;  %v11056_v53 = vadd.f32 %v11055_v48, %v11015_v37  ;;  %v11096_v46 = vpop.f32.mrf.mxu0  ;;  %11349 = vmatprep.subr.bf16.mxu1 %v13949_v13  ;;  %v4644_v13 = vld [vmem:[%s19280_s9 + $0x1130] sm:$0xff] }
 0x60d   :  { %v11057_v55 = vpop.f32.mrf.mxu1  ;;  %11390 = vmatprep.subr.bf16.mxu0 %v14205_v42  ;;  %v13885_v42 = vcombine.high %v4388_v31, %v4396_v6  ;;  %v14141_v5 = vcombine.high %v4644_v13, %v4652_v15  ;;  %v4380_v37 = vld [vmem:[%s19280_s9 + $0x8f0] sm:$0xff]  ;;  %v14140_v48 = vcombine.low %v4644_v13, %v4652_v15 }
 0x60e   :  { %v18531_v27 = vadd.f32 %v11096_v46, %v11056_v53  ;;  %v11098_v36 = vpop.f32.mrf.mxu0  ;;  %11350 = vmatpush1.bf16.msra.mxu1 %v13948_v50  ;;  %v4628_v45 = vld [vmem:[%s19280_s9 + $0x10b0] sm:$0xff]  ;;  %v13884_v50 = vcombine.low %v4388_v31, %v4396_v6  ;;  %v13868_v9 = vcombine.low %v4372_v57, %v4380_v37 }
 0x60f   :  { %11391 = vmatpush1.bf16.msra.mxu0 %v14204_v49  ;;  %v11058_v40 = vpop.f32.mrf.mxu1  ;;  %11351 = vmatprep.subr.bf16.mxu1 %v13933_v18  ;;  %v4636_v54 = vld [vmem:[%s19280_s9 + $0x10f0] sm:$0xff]  ;;  %v13869_v49 = vcombine.high %v4372_v57, %v4380_v37 }
 0x610   :  { %v11099_v52 = vpop.f32.mrf.mxu0  ;;  %11392 = vmatprep.subr.bf16.mxu0 %v14189_v56  ;;  %v14125_v18 = vcombine.high %v4628_v45, %v4636_v54  ;;  %v4356_v53 = vld [vmem:[%s19280_s9 + $0x830] sm:$0xff]  ;;  %v14124_v55 = vcombine.low %v4628_v45, %v4636_v54 }
 0x611   :  { %v4364_v46 = vld [vmem:[%s19280_s9 + $0x870] sm:$0xff] }
 0x612   :  { %11352 = vmatpush1.bf16.msra.mxu1 %v13932_v22  ;;  %v4612_v56 = vld [vmem:[%s19280_s9 + $0x1030] sm:$0xff]  ;;  %v13853_v14 = vcombine.high %v4356_v53, %v4364_v46 }
 0x613   :  { %11393 = vmatpush1.bf16.msra.mxu0 %v14188_v28  ;;  %11353 = vmatprep.subr.bf16.mxu1 %v13917_v10  ;;  %v14109_v26 = vcombine.high %v4612_v56, %v4620_v51  ;;  %v4596_v36 = vld [vmem:[%s19280_s9 + $0xfb0] sm:$0xff]  ;;  %v13852_v10 = vcombine.low %v4356_v53, %v4364_v46  ;;  %v14108_v52 = vcombine.low %v4612_v56, %v4620_v51 }
 0x614   :  { %11394 = vmatprep.subr.bf16.mxu0 %v14173_v44  ;;  %v4604_v22 = vld [vmem:[%s19280_s9 + $0xff0] sm:$0xff] }
 0x615   :  { %v4852_v40 = vld [vmem:[%s19280_s9 + $0x17b0] sm:$0xff]  ;;  %v14093_v44 = vcombine.high %v4596_v36, %v4604_v22 }
 0x616   :  { %11354 = vmatpush1.bf16.msra.mxu1 %v13916_v25  ;;  %v4860_v28 = vld [vmem:[%s19280_s9 + $0x17f0] sm:$0xff] }
 0x617   :  { %11395 = vmatpush1.bf16.msra.mxu0 %v14172_v21  ;;  %11355 = vmatprep.subr.bf16.mxu1 %v13901_v24  ;;  %v14349_v34 = vcombine.high %v4852_v40, %v4860_v28  ;;  %v4588_v61 = vld [vmem:[%s19280_s9 + $0xf70] sm:$0xff]  ;;  %v14092_v21 = vcombine.low %v4596_v36, %v4604_v22  ;;  %v14348_v24 = vcombine.low %v4852_v40, %v4860_v28 }
 0x618   :  { %11396 = vmatprep.subr.bf16.mxu0 %v14157_v7  ;;  %v4836_v30 = vld [vmem:[%s19280_s9 + $0x1730] sm:$0xff]  ;;  %v14077_v7 = vcombine.high %v4580_v62, %v4588_v61 }
 0x619   :  { %v4844_v25 = vld [vmem:[%s19280_s9 + $0x1770] sm:$0xff] }
 0x61a   :  { %11356 = vmatpush1.bf16.msra.mxu1 %v13900_v39  ;;  %v14333_v31 = vcombine.high %v4836_v30, %v4844_v25  ;;  %v4564_v6 = vld [vmem:[%s19280_s9 + $0xeb0] sm:$0xff] }
 0x61b   :  { %11397 = vmatpush1.bf16.msra.mxu0 %v14156_v60  ;;  %11357 = vmatprep.subr.bf16.mxu1 %v13885_v42  ;;  %v4572_v13 = vld [vmem:[%s19280_s9 + $0xef0] sm:$0xff]  ;;  %v14076_v60 = vcombine.low %v4580_v62, %v4588_v61  ;;  %v14332_v42 = vcombine.low %v4836_v30, %v4844_v25 }
 0x61c   :  { %11398 = vmatprep.subr.bf16.mxu0 %v14141_v5  ;;  %v4820_v15 = vld [vmem:[%s19280_s9 + $0x16b0] sm:$0xff]  ;;  %v14061_v5 = vcombine.high %v4564_v6, %v4572_v13 }
 0x61d   :  { %v4828_v39 = vld [vmem:[%s19280_s9 + $0x16f0] sm:$0xff] }
 0x61e   :  { %11358 = vmatpush1.bf16.msra.mxu1 %v13884_v50  ;;  %v14317_v57 = vcombine.high %v4820_v15, %v4828_v39  ;;  %v4548_v37 = vld [vmem:[%s19280_s9 + $0xe30] sm:$0xff] }
 0x61f   :  { %11399 = vmatpush1.bf16.msra.mxu0 %v14140_v48  ;;  %11359 = vmatprep.subr.bf16.mxu1 %v13869_v49  ;;  %v4556_v45 = vld [vmem:[%s19280_s9 + $0xe70] sm:$0xff]  ;;  %v14060_v48 = vcombine.low %v4564_v6, %v4572_v13  ;;  %v14316_v49 = vcombine.low %v4820_v15, %v4828_v39 }
 0x620   :  { %11400 = vmatprep.subr.bf16.mxu0 %v14125_v18  ;;  %v4804_v54 = vld [vmem:[%s19280_s9 + $0x1630] sm:$0xff]  ;;  %v14045_v18 = vcombine.high %v4548_v37, %v4556_v45 }
 0x621   :  { %v4812_v50 = vld [vmem:[%s19280_s9 + $0x1670] sm:$0xff] }
 0x622   :  { %11360 = vmatpush1.bf16.msra.mxu1 %v13868_v9  ;;  %v14301_v53 = vcombine.high %v4804_v54, %v4812_v50  ;;  %v4532_v46 = vld [vmem:[%s19280_s9 + $0xdb0] sm:$0xff] }
 0x623   :  { %11401 = vmatpush1.bf16.msra.mxu0 %v14124_v55  ;;  %11361 = vmatprep.subr.bf16.mxu1 %v13853_v14  ;;  %v4540_v56 = vld [vmem:[%s19280_s9 + $0xdf0] sm:$0xff]  ;;  %v14044_v55 = vcombine.low %v4548_v37, %v4556_v45  ;;  %v14300_v14 = vcombine.low %v4804_v54, %v4812_v50  ;;  %v4213_v50 = vld [vmem:[%s19280_s9 + $0x3b8] sm:$0xff] }
 0x624   :  { %11402 = vmatprep.subr.bf16.mxu0 %v14109_v26  ;;  %v4788_v51 = vld [vmem:[%s19280_s9 + $0x15b0] sm:$0xff]  ;;  %v14029_v26 = vcombine.high %v4532_v46, %v4540_v56 }
 0x625   :  { %v4796_v9 = vld [vmem:[%s19280_s9 + $0x15f0] sm:$0xff] }
 0x626   :  { %11362 = vmatpush1.bf16.msra.mxu1 %v13852_v10  ;;  %v14285_v36 = vcombine.high %v4788_v51, %v4796_v9  ;;  %v4516_v22 = vld [vmem:[%s19280_s9 + $0xd30] sm:$0xff] }
 0x627   :  { %11403 = vmatpush1.bf16.msra.mxu0 %v14108_v52  ;;  %11363 = vmatprep.subr.bf16.mxu1 %v14093_v44  ;;  %v4524_v40 = vld [vmem:[%s19280_s9 + $0xd70] sm:$0xff]  ;;  %v14028_v52 = vcombine.low %v4532_v46, %v4540_v56  ;;  %v14284_v44 = vcombine.low %v4788_v51, %v4796_v9 }
 0x628   :  { %11404 = vmatprep.subr.bf16.mxu0 %v14349_v34  ;;  %v4772_v28 = vld [vmem:[%s19280_s9 + $0x1530] sm:$0xff]  ;;  %v14013_v34 = vcombine.high %v4516_v22, %v4524_v40 }
 0x629   :  { %v4780_v10 = vld [vmem:[%s19280_s9 + $0x1570] sm:$0xff] }
 0x62a   :  { %11364 = vmatpush2.bf16.msra.mxu1 %v14092_v21  ;;  %v14269_v62 = vcombine.high %v4772_v28, %v4780_v10  ;;  %v4500_v61 = vld [vmem:[%s19280_s9 + $0xcb0] sm:$0xff] }
 0x62b   :  { %11405 = vmatpush2.bf16.msra.mxu0 %v14348_v24  ;;  %11365 = vmatprep.subr.bf16.mxu1 %v14077_v7  ;;  %v4508_v30 = vld [vmem:[%s19280_s9 + $0xcf0] sm:$0xff]  ;;  %v14012_v24 = vcombine.low %v4516_v22, %v4524_v40  ;;  %v14268_v7 = vcombine.low %v4772_v28, %v4780_v10 }
 0x62c   :  { %11406 = vmatprep.subr.bf16.mxu0 %v14333_v31  ;;  %v4756_v25 = vld [vmem:[%s19280_s9 + $0x14b0] sm:$0xff]  ;;  %v13997_v31 = vcombine.high %v4500_v61, %v4508_v30 }
 0x62d   :  { %v4764_v21 = vld [vmem:[%s19280_s9 + $0x14f0] sm:$0xff] }
 0x62e   :  { %11366 = vmatpush2.bf16.msra.mxu1 %v14076_v60  ;;  %v14253_v6 = vcombine.high %v4756_v25, %v4764_v21  ;;  %v4484_v13 = vld [vmem:[%s19280_s9 + $0xc30] sm:$0xff] }
 0x62f   :  { %11407 = vmatpush2.bf16.msra.mxu0 %v14332_v42  ;;  %11367 = vmatprep.subr.bf16.mxu1 %v14061_v5  ;;  %v4492_v15 = vld [vmem:[%s19280_s9 + $0xc70] sm:$0xff]  ;;  %v13996_v42 = vcombine.low %v4500_v61, %v4508_v30  ;;  %v14252_v5 = vcombine.low %v4756_v25, %v4764_v21 }
 0x630   :  { %11408 = vmatprep.subr.bf16.mxu0 %v14317_v57  ;;  %v4740_v39 = vld [vmem:[%s19280_s9 + $0x1430] sm:$0xff]  ;;  %v13981_v57 = vcombine.high %v4484_v13, %v4492_v15 }
 0x631   :  { %v4748_v60 = vld [vmem:[%s19280_s9 + $0x1470] sm:$0xff] }
 0x632   :  { %11368 = vmatpush2.bf16.msra.mxu1 %v14060_v48  ;;  %v14237_v37 = vcombine.high %v4740_v39, %v4748_v60  ;;  %v4980_v45 = vld [vmem:[%s19280_s9 + $0x1bb0] sm:$0xff]  ;;  %v4221_v48 = vld [vmem:[%s19280_s9 + $0x3f8] sm:$0xff] }
 0x633   :  { %11409 = vmatpush2.bf16.msra.mxu0 %v14316_v49  ;;  %11369 = vmatprep.subr.bf16.mxu1 %v14045_v18  ;;  %v4988_v54 = vld [vmem:[%s19280_s9 + $0x1bf0] sm:$0xff]  ;;  %v13980_v49 = vcombine.low %v4484_v13, %v4492_v15  ;;  %v14236_v18 = vcombine.low %v4740_v39, %v4748_v60  ;;  %v13711_v46 = vcombine.high %v4213_v50, %v4221_v48 }
 0x634   :  { %11410 = vmatprep.subr.bf16.mxu0 %v14301_v53  ;;  %v14477_v53 = vcombine.high %v4980_v45, %v4988_v54  ;;  %v4964_v56 = vld [vmem:[%s19280_s9 + $0x1b30] sm:$0xff]  ;;  %v14476_v9 = vcombine.low %v4980_v45, %v4988_v54 }
 0x635   :  { %v4972_v51 = vld [vmem:[%s19280_s9 + $0x1b70] sm:$0xff] }
 0x636   :  { %11370 = vmatpush2.bf16.msra.mxu1 %v14044_v55  ;;  %v4197_v55 = vld [vmem:[%s19280_s9 + $0x338] sm:$0xff]  ;;  %v4948_v22 = vld [vmem:[%s19280_s9 + $0x1ab0] sm:$0xff]  ;;  %v14460_v61 = vcombine.low %v4964_v56, %v4972_v51 }
 0x637   :  { %11411 = vmatpush2.bf16.msra.mxu0 %v14300_v14  ;;  %11371 = vmatprep.subr.bf16.mxu1 %v14029_v26  ;;  %v4205_v14 = vld [vmem:[%s19280_s9 + $0x378] sm:$0xff]  ;;  %v13710_v26 = vcombine.low %v4213_v50, %v4221_v48  ;;  %v4956_v40 = vld [vmem:[%s19280_s9 + $0x1af0] sm:$0xff] }
 0x638   :  { %11412 = vmatprep.subr.bf16.mxu0 %v14285_v36  ;;  %v14461_v36 = vcombine.high %v4964_v56, %v4972_v51  ;;  %v13695_v10 = vcombine.high %v4197_v55, %v4205_v14  ;;  %v13694_v25 = vcombine.low %v4197_v55, %v4205_v14  ;;  %v14445_v21 = vcombine.high %v4948_v22, %v4956_v40  ;;  %v4916_v45 = vld [vmem:[%s19280_s9 + $0x19b0] sm:$0xff]  ;;  %v4149_v50 = vld [vmem:[%s19280_s9 + $0x1b8] sm:$0xff] }
 0x639   :  { %v14444_v39 = vcombine.low %v4948_v22, %v4956_v40  ;;  %v4924_v54 = vld [vmem:[%s19280_s9 + $0x19f0] sm:$0xff]  ;;  %v4157_v48 = vld [vmem:[%s19280_s9 + $0x1f8] sm:$0xff] }
 0x63a   :  { %11372 = vmatpush2.bf16.msra.mxu1 %v14028_v52  ;;  %v4181_v52 = vld [vmem:[%s19280_s9 + $0x2b8] sm:$0xff]  ;;  %v4900_v56 = vld [vmem:[%s19280_s9 + $0x1930] sm:$0xff]  ;;  %v14412_v14 = vcombine.low %v4916_v45, %v4924_v54 }
 0x63b   :  { %11413 = vmatpush2.bf16.msra.mxu0 %v14284_v44  ;;  %11373 = vmatprep.subr.bf16.mxu1 %v14013_v34  ;;  %v4189_v44 = vld [vmem:[%s19280_s9 + $0x2f8] sm:$0xff]  ;;  %v4908_v51 = vld [vmem:[%s19280_s9 + $0x1970] sm:$0xff] }
 0x63c   :  { %11414 = vmatprep.subr.bf16.mxu0 %v14269_v62  ;;  %v4141_v55 = vld [vmem:[%s19280_s9 + $0x178] sm:$0xff]  ;;  %v4884_v40 = vld [vmem:[%s19280_s9 + $0x18b0] sm:$0xff] }
 0x63e   :  { %11374 = vmatpush2.bf16.msra.mxu1 %v14012_v24 }
 0x63f   :  { %11415 = vmatpush2.bf16.msra.mxu0 %v14268_v7  ;;  %11375 = vmatprep.subr.bf16.mxu1 %v13997_v31  ;;  %v4932_v31 = vld [vmem:[%s19280_s9 + $0x1a30] sm:$0xff] }
 0x640   :  { %11416 = vmatprep.subr.bf16.mxu0 %v14253_v6  ;;  %v4940_v6 = vld [vmem:[%s19280_s9 + $0x1a70] sm:$0xff] }
 0x642   :  { %11376 = vmatpush2.bf16.msra.mxu1 %v13996_v42  ;;  %v13678_v42 = vcombine.low %v4181_v52, %v4189_v44 }
 0x643   :  { %11417 = vmatpush2.bf16.msra.mxu0 %v14252_v5  ;;  %11377 = vmatprep.subr.bf16.mxu1 %v13981_v57  ;;  %v14429_v5 = vcombine.high %v4932_v31, %v4940_v6 }
 0x644   :  { %11418 = vmatprep.subr.bf16.mxu0 %v14237_v37 }
 0x646   :  { %11378 = vmatpush2.bf16.msra.mxu1 %v13980_v49  ;;  %v14428_v49 = vcombine.low %v4932_v31, %v4940_v6  ;;  %v4101_v31 = vld [vmem:[%s19280_s9 + $0x38] sm:$0xff] }
 0x647   :  { %11419 = vmatpush2.bf16.msra.mxu0 %v14236_v18  ;;  %11429 = vmatprep.subr.bf16.mxu1 %v14477_v53  ;;  %v14413_v53 = vcombine.high %v4916_v45, %v4924_v54  ;;  %v4109_v6 = vld [vmem:[%s19280_s9 + $0x78] sm:$0xff] }
 0x648   :  { %11470 = vmatprep.subr.bf16.mxu0 %v13711_v46  ;;  %v13647_v46 = vcombine.high %v4149_v50, %v4157_v48 }
 0x649   :  { %v11135_v28 = vpop.f32.mrf.mxu1  ;;  %11380 = vmatmul.mubr.bf16.vlgmr.msra.gmra.mxu1 %v16175_v11 }
 0x64a   :  { %v18715_v34 = vadd.f32 %v11135_v28, %v18516_v43  ;;  %v18717_v62 = vpop.f32.mrf.mxu0  ;;  %11421 = vmatmul.mubr.bf16.vlgmr.msra.gmra.mxu0 %v16295_v12  ;;  %11430 = vmatpush1.bf16.msra.mxu1 %v14476_v9  ;;  %v13679_v43 = vcombine.high %v4181_v52, %v4189_v44  ;;  %v4133_v9 = vld [vmem:[%s19280_s9 + $0x138] sm:$0xff]  ;;  %v4892_v28 = vld [vmem:[%s19280_s9 + $0x18f0] sm:$0xff]  ;;  %v14396_v44 = vcombine.low %v4900_v56, %v4908_v51 }
 0x64b   :  { %11461 = vmatprep.mubr.bf16.mxu1 %v16425_v19  ;;  %11471 = vmatpush1.bf16.msra.mxu0 %v13710_v26  ;;  %v11137_v30 = vpop.f32.mrf.mxu1  ;;  %v13646_v26 = vcombine.low %v4149_v50, %v4157_v48  ;;  %v13631_v22 = vcombine.high %v4133_v9, %v4141_v55  ;;  %v4125_v52 = vld [vmem:[%s19280_s9 + $0xf8] sm:$0xff]  ;;  %v5092_v50 = vld [vmem:[%s19280_s9 + $0x1f30] sm:$0xff] }
 0x64c   :  { %11502 = vmatprep.mubr.bf16.mxu0 %v15958_v17  ;;  %v18723_v24 = vadd.f32 %v11137_v30, %v18531_v27  ;;  %v18725_v7 = vpop.f32.mrf.mxu0  ;;  %11431 = vmatprep.subr.bf16.mxu1 %v14461_v36  ;;  %v4165_v17 = vld [vmem:[%s19280_s9 + $0x238] sm:$0xff]  ;;  %v14397_v36 = vcombine.high %v4900_v56, %v4908_v51  ;;  %v14381_v30 = vcombine.high %v4884_v40, %v4892_v28  ;;  %v5100_v48 = vld [vmem:[%s19280_s9 + $0x1f70] sm:$0xff]  ;;  %vm11642_vm3 = vcmp.ge.f32.partialorder %v18715_v34, 0.0 }
 0x64d   :  { %v11139_v13 = vpop.f32.mrf.mxu1  ;;  %11472 = vmatprep.subr.bf16.mxu0 %v13695_v10  ;;  %v4173_v27 = vld [vmem:[%s19280_s9 + $0x278] sm:$0xff]  ;;  %v14589_v56 = vcombine.high %v5092_v50, %v5100_v48 }
 0x64e   :  { %v11180_v15 = vpop.f32.mrf.mxu0  ;;  %11432 = vmatpush1.bf16.msra.mxu1 %v14460_v61  ;;  %v13663_v37 = vcombine.high %v4165_v17, %v4173_v27  ;;  %v13662_v18 = vcombine.low %v4165_v17, %v4173_v27  ;;  %v4117_v10 = vld [vmem:[%s19280_s9 + $0xb8] sm:$0xff]  ;;  %v13630_v61 = vcombine.low %v4133_v9, %v4141_v55  ;;  %v14380_v13 = vcombine.low %v4884_v40, %v4892_v28  ;;  %v5076_v9 = vld [vmem:[%s19280_s9 + $0x1eb0] sm:$0xff] }
 0x64f   :  { %11473 = vmatpush1.bf16.msra.mxu0 %v13694_v25  ;;  %v11140_v60 = vpop.f32.mrf.mxu1  ;;  %11433 = vmatprep.subr.bf16.mxu1 %v14445_v21  ;;  %v13615_v25 = vcombine.high %v4117_v10, %v4125_v52  ;;  %v4868_v21 = vld [vmem:[%s19280_s9 + $0x1830] sm:$0xff]  ;;  %v13614_v17 = vcombine.low %v4117_v10, %v4125_v52  ;;  %v13599_v15 = vcombine.high %v4101_v31, %v4109_v6  ;;  %vm11643_vm1 = vcmp.ge.f32.partialorder %v18723_v24, 0.0 }
 0x650   :  { %v11181_v57 = vpop.f32.mrf.mxu0  ;;  %11474 = vmatprep.subr.bf16.mxu0 %v13679_v43  ;;  %v4876_v43 = vld [vmem:[%s19280_s9 + $0x1870] sm:$0xff] }
 0x651   :  { %v14365_v27 = vcombine.high %v4868_v21, %v4876_v43  ;;  %v5116_v60 = vld [vmem:[%s19280_s9 + $0x1ff0] sm:$0xff]  ;;  %v14364_v57 = vcombine.low %v4868_v21, %v4876_v43 }
 0x652   :  { %11434 = vmatpush1.bf16.msra.mxu1 %v14444_v39  ;;  %v5108_v39 = vld [vmem:[%s19280_s9 + $0x1fb0] sm:$0xff] }
 0x653   :  { %11475 = vmatpush1.bf16.msra.mxu0 %v13678_v42  ;;  %11435 = vmatprep.subr.bf16.mxu1 %v14429_v5  ;;  %v4341_v42 = vld [vmem:[%s19280_s9 + $0x7b8] sm:$0xff]  ;;  %v14605_v45 = vcombine.high %v5108_v39, %v5116_v60  ;;  %v5084_v55 = vld [vmem:[%s19280_s9 + $0x1ef0] sm:$0xff] }
 0x654   :  { %11476 = vmatprep.subr.bf16.mxu0 %v13663_v37  ;;  %v4349_v5 = vld [vmem:[%s19280_s9 + $0x7f8] sm:$0xff]  ;;  %v13598_v37 = vcombine.low %v4101_v31, %v4109_v6  ;;  %v14573_v40 = vcombine.high %v5076_v9, %v5084_v55  ;;  %v5060_v10 = vld [vmem:[%s19280_s9 + $0x1e30] sm:$0xff] }
 0x655   :  { %v13839_v54 = vcombine.high %v4341_v42, %v4349_v5  ;;  %v5068_v52 = vld [vmem:[%s19280_s9 + $0x1e70] sm:$0xff] }
 0x656   :  { %11436 = vmatpush1.bf16.msra.mxu1 %v14428_v49  ;;  %v4325_v49 = vld [vmem:[%s19280_s9 + $0x738] sm:$0xff]  ;;  %v14557_v21 = vcombine.high %v5060_v10, %v5068_v52  ;;  %v5044_v31 = vld [vmem:[%s19280_s9 + $0x1db0] sm:$0xff] }
 0x657   :  { %11477 = vmatpush1.bf16.msra.mxu0 %v13662_v18  ;;  %11437 = vmatprep.subr.bf16.mxu1 %v14413_v53  ;;  %v4333_v18 = vld [vmem:[%s19280_s9 + $0x778] sm:$0xff]  ;;  %v14604_v53 = vcombine.low %v5108_v39, %v5116_v60  ;;  %v5052_v6 = vld [vmem:[%s19280_s9 + $0x1df0] sm:$0xff] }
 0x658   :  { %11478 = vmatprep.subr.bf16.mxu0 %v13647_v46  ;;  %v13838_v46 = vcombine.low %v4341_v42, %v4349_v5  ;;  %v13823_v51 = vcombine.high %v4325_v49, %v4333_v18  ;;  %v14541_v39 = vcombine.high %v5044_v31, %v5052_v6  ;;  %v5028_v42 = vld [vmem:[%s19280_s9 + $0x1d30] sm:$0xff] }
 0x659   :  { %v5036_v5 = vld [vmem:[%s19280_s9 + $0x1d70] sm:$0xff] }
 0x65a   :  { %11438 = vmatpush1.bf16.msra.mxu1 %v14412_v14  ;;  %v4309_v14 = vld [vmem:[%s19280_s9 + $0x6b8] sm:$0xff] }
 0x65b   :  { %11479 = vmatpush1.bf16.msra.mxu0 %v13646_v26  ;;  %11439 = vmatprep.subr.bf16.mxu1 %v14397_v36  ;;  %v4317_v26 = vld [vmem:[%s19280_s9 + $0x6f8] sm:$0xff]  ;;  %v14588_v36 = vcombine.low %v5092_v50, %v5100_v48  ;;  %v14525_v50 = vcombine.high %v5028_v42, %v5036_v5 }
 0x65c   :  { %11480 = vmatprep.subr.bf16.mxu0 %v13631_v22  ;;  %v13822_v22 = vcombine.low %v4325_v49, %v4333_v18  ;;  %v13807_v28 = vcombine.high %v4309_v14, %v4317_v26  ;;  %v5012_v49 = vld [vmem:[%s19280_s9 + $0x1cb0] sm:$0xff] }
 0x65d   :  { %v5020_v18 = vld [vmem:[%s19280_s9 + $0x1cf0] sm:$0xff] }
 0x65e   :  { %11440 = vmatpush1.bf16.msra.mxu1 %v14396_v44  ;;  %v4293_v44 = vld [vmem:[%s19280_s9 + $0x638] sm:$0xff] }
 0x65f   :  { %11481 = vmatpush1.bf16.msra.mxu0 %v13630_v61  ;;  %11441 = vmatprep.subr.bf16.mxu1 %v14381_v30  ;;  %v4301_v61 = vld [vmem:[%s19280_s9 + $0x678] sm:$0xff]  ;;  %v14572_v30 = vcombine.low %v5076_v9, %v5084_v55  ;;  %v14509_v9 = vcombine.high %v5012_v49, %v5020_v18 }
 0x660   :  { %11482 = vmatprep.subr.bf16.mxu0 %v13615_v25  ;;  %v13806_v25 = vcombine.low %v4309_v14, %v4317_v26  ;;  %v13791_v43 = vcombine.high %v4293_v44, %v4301_v61  ;;  %v4996_v14 = vld [vmem:[%s19280_s9 + $0x1c30] sm:$0xff] }
 0x661   :  { %v5004_v26 = vld [vmem:[%s19280_s9 + $0x1c70] sm:$0xff] }
 0x662   :  { %11442 = vmatpush1.bf16.msra.mxu1 %v14380_v13  ;;  %v4277_v13 = vld [vmem:[%s19280_s9 + $0x5b8] sm:$0xff] }
 0x663   :  { %11483 = vmatpush1.bf16.msra.mxu0 %v13614_v17  ;;  %11443 = vmatprep.subr.bf16.mxu1 %v14365_v27  ;;  %v4285_v17 = vld [vmem:[%s19280_s9 + $0x5f8] sm:$0xff]  ;;  %v14556_v27 = vcombine.low %v5060_v10, %v5068_v52  ;;  %v14493_v10 = vcombine.high %v4996_v14, %v5004_v26 }
 0x664   :  { %11484 = vmatprep.subr.bf16.mxu0 %v13599_v15  ;;  %v13790_v15 = vcombine.low %v4293_v44, %v4301_v61  ;;  %v13775_v60 = vcombine.high %v4277_v13, %v4285_v17  ;;  %v4469_v44 = vld [vmem:[%s19280_s9 + $0xbb8] sm:$0xff] }
 0x665   :  { %v4477_v61 = vld [vmem:[%s19280_s9 + $0xbf8] sm:$0xff] }
 0x666   :  { %11444 = vmatpush1.bf16.msra.mxu1 %v14364_v57  ;;  %v4261_v57 = vld [vmem:[%s19280_s9 + $0x538] sm:$0xff] }
 0x667   :  { %11485 = vmatpush1.bf16.msra.mxu0 %v13598_v37  ;;  %11445 = vmatprep.subr.bf16.mxu1 %v14605_v45  ;;  %v4269_v37 = vld [vmem:[%s19280_s9 + $0x578] sm:$0xff]  ;;  %v14540_v45 = vcombine.low %v5044_v31, %v5052_v6  ;;  %v13967_v31 = vcombine.high %v4469_v44, %v4477_v61  ;;  %v5165_v6 = vrot.slane %v18475_v63, %v15726_v35 }
 0x668   :  { %11486 = vmatprep.subr.bf16.mxu0 %v13839_v54  ;;  %v13774_v54 = vcombine.low %v4277_v13, %v4285_v17  ;;  %v13759_v48 = vcombine.high %v4261_v57, %v4269_v37  ;;  %v4453_v17 = vld [vmem:[%s19280_s9 + $0xb38] sm:$0xff] }
 0x669   :  { %v4717_v35 = vld [vmem:[%s19280_s9 + $0x1378] sm:$0xff] }
 0x66a   :  { %11446 = vmatpush2.bf16.msra.mxu1 %v14604_v53  ;;  %v4245_v53 = vld [vmem:[%s19280_s9 + $0x4b8] sm:$0xff] }
 0x66b   :  { %11487 = vmatpush2.bf16.msra.mxu0 %v13838_v46  ;;  %11447 = vmatprep.subr.bf16.mxu1 %v14589_v56  ;;  %v4253_v46 = vld [vmem:[%s19280_s9 + $0x4f8] sm:$0xff]  ;;  %v14524_v56 = vcombine.low %v5028_v42, %v5036_v5  ;;  %v11177_v5 = vadd.f32 %v18717_v62, %v5165_v6 }
 0x66c   :  { %11488 = vmatprep.subr.bf16.mxu0 %v13823_v51  ;;  %v13758_v51 = vcombine.low %v4261_v57, %v4269_v37  ;;  %v13743_v55 = vcombine.high %v4245_v53, %v4253_v46  ;;  %v4701_v62 = vld [vmem:[%s19280_s9 + $0x12f8] sm:$0xff] }
 0x66e   :  { %11448 = vmatpush2.bf16.msra.mxu1 %v14588_v36  ;;  %v4229_v36 = vld [vmem:[%s19280_s9 + $0x438] sm:$0xff] }
 0x66f   :  { %11489 = vmatpush2.bf16.msra.mxu0 %v13822_v22  ;;  %11449 = vmatprep.subr.bf16.mxu1 %v14573_v40  ;;  %v4237_v22 = vld [vmem:[%s19280_s9 + $0x478] sm:$0xff]  ;;  %v14508_v40 = vcombine.low %v5012_v49, %v5020_v18 }
 0x670   :  { %11490 = vmatprep.subr.bf16.mxu0 %v13807_v28  ;;  %v13742_v28 = vcombine.low %v4245_v53, %v4253_v46  ;;  %v13727_v52 = vcombine.high %v4229_v36, %v4237_v22 }
 0x672   :  { %11450 = vmatpush2.bf16.msra.mxu1 %v14572_v30  ;;  %v4725_v30 = vld [vmem:[%s19280_s9 + $0x13b8] sm:$0xff] }
 0x673   :  { %11491 = vmatpush2.bf16.msra.mxu0 %v13806_v25  ;;  %11451 = vmatprep.subr.bf16.mxu1 %v14557_v21  ;;  %v4733_v25 = vld [vmem:[%s19280_s9 + $0x13f8] sm:$0xff]  ;;  %v14492_v21 = vcombine.low %v4996_v14, %v5004_v26 }
 0x674   :  { %11492 = vmatprep.subr.bf16.mxu0 %v13791_v43  ;;  %v13726_v43 = vcombine.low %v4229_v36, %v4237_v22  ;;  %v14223_v13 = vcombine.high %v4725_v30, %v4733_v25  ;;  %v14222_v42 = vcombine.low %v4725_v30, %v4733_v25  ;;  %v4677_v26 = vld [vmem:[%s19280_s9 + $0x1238] sm:$0xff] }
 0x675   :  { %v4405_v30 = vld [vmem:[%s19280_s9 + $0x9b8] sm:$0xff] }
 0x676   :  { %11452 = vmatpush2.bf16.msra.mxu1 %v14556_v27  ;;  %v4461_v27 = vld [vmem:[%s19280_s9 + $0xb78] sm:$0xff] }
 0x677   :  { %11493 = vmatpush2.bf16.msra.mxu0 %v13790_v15  ;;  %11453 = vmatprep.subr.bf16.mxu1 %v14541_v39  ;;  %v5169_v15 = vrot.slane %v18475_v63, %v15729_v41  ;;  %v13966_v39 = vcombine.low %v4469_v44, %v4477_v61  ;;  %v13951_v57 = vcombine.high %v4453_v17, %v4461_v27  ;;  %v4437_v41 = vld [vmem:[%s19280_s9 + $0xab8] sm:$0xff] }
 0x678   :  { %11494 = vmatprep.subr.bf16.mxu0 %v13775_v60  ;;  %v4709_v60 = vld [vmem:[%s19280_s9 + $0x1338] sm:$0xff]  ;;  %v13950_v18 = vcombine.low %v4453_v17, %v4461_v27 }
 0x679   :  { %v4445_v63 = vld [vmem:[%s19280_s9 + $0xaf8] sm:$0xff]  ;;  %v14206_v46 = vcombine.low %v4709_v60, %v4717_v35 }
 0x67a   :  { %11454 = vmatpush2.bf16.msra.mxu1 %v14540_v45  ;;  %v14207_v45 = vcombine.high %v4709_v60, %v4717_v35  ;;  %v4413_v25 = vld [vmem:[%s19280_s9 + $0x9f8] sm:$0xff] }
 0x67b   :  { %11495 = vmatpush2.bf16.msra.mxu0 %v13774_v54  ;;  %11455 = vmatprep.subr.bf16.mxu1 %v14525_v50  ;;  %v4693_v54 = vld [vmem:[%s19280_s9 + $0x12b8] sm:$0xff]  ;;  %v11179_v50 = vadd.f32 %v18725_v7, %v5169_v15  ;;  %v13902_v35 = vcombine.low %v4405_v30, %v4413_v25 }
 0x67c   :  { %11496 = vmatprep.subr.bf16.mxu0 %v13759_v48  ;;  %v14191_v7 = vcombine.high %v4693_v54, %v4701_v62  ;;  %v4389_v27 = vld [vmem:[%s19280_s9 + $0x938] sm:$0xff] }
 0x67d   :  { %v4397_v15 = vld [vmem:[%s19280_s9 + $0x978] sm:$0xff] }
 0x67e   :  { %11456 = vmatpush2.bf16.msra.mxu1 %v14524_v56  ;;  %v13935_v56 = vcombine.high %v4437_v41, %v4445_v63  ;;  %v4653_v60 = vld [vmem:[%s19280_s9 + $0x1178] sm:$0xff] }
 0x67f   :  { %11497 = vmatpush2.bf16.msra.mxu0 %v13758_v51  ;;  %11457 = vmatprep.subr.bf16.mxu1 %v14509_v9 }
 0x680   :  { %11498 = vmatprep.subr.bf16.mxu0 %v13743_v55 }
 0x682   :  { %11458 = vmatpush2.bf16.msra.mxu1 %v14508_v40  ;;  %v13934_v40 = vcombine.low %v4437_v41, %v4445_v63  ;;  %v4373_v41 = vld [vmem:[%s19280_s9 + $0x8b8] sm:$0xff] }
 0x683   :  { %11499 = vmatpush2.bf16.msra.mxu0 %v13742_v28  ;;  %11459 = vmatprep.subr.bf16.mxu1 %v14493_v10  ;;  %v14190_v10 = vcombine.low %v4693_v54, %v4701_v62  ;;  %v4381_v63 = vld [vmem:[%s19280_s9 + $0x8f8] sm:$0xff]  ;;  %v13886_v54 = vcombine.low %v4389_v27, %v4397_v15 }
 0x684   :  { %11500 = vmatprep.subr.bf16.mxu0 %v13727_v52 }
 0x686   :  { %11460 = vmatpush2.bf16.msra.mxu1 %v14492_v21  ;;  %v4661_v21 = vld [vmem:[%s19280_s9 + $0x11b8] sm:$0xff] }
 0x687   :  { %11501 = vmatpush2.bf16.msra.mxu0 %v13726_v43  ;;  %11511 = vmatprep.subr.bf16.mxu1 %v13967_v31  ;;  %v4669_v43 = vld [vmem:[%s19280_s9 + $0x11f8] sm:$0xff] }
 0x688   :  { %11552 = vmatprep.subr.bf16.mxu0 %v14223_v13  ;;  %v13903_v13 = vcombine.high %v4405_v30, %v4413_v25  ;;  %v14159_v17 = vcombine.high %v4661_v21, %v4669_v43 }
 0x689   :  { %v11217_v37 = vpop.f32.mrf.mxu1  ;;  %11462 = vmatmul.mubr.bf16.vlgmr.msra.gmra.mxu1 %v16427_v0 }
 0x68a   :  { %v11218_v48 = vadd.f32 %v11217_v37, %v11177_v5  ;;  %v11258_v49 = vpop.f32.mrf.mxu0  ;;  %11503 = vmatmul.mubr.bf16.vlgmr.msra.gmra.mxu0 %v15965_v29  ;;  %11512 = vmatpush1.bf16.msra.mxu1 %v13966_v39  ;;  %v4421_v29 = vld [vmem:[%s19280_s9 + $0xa38] sm:$0xff]  ;;  %v13887_v5 = vcombine.high %v4389_v27, %v4397_v15 }
 0x68b   :  { %11543 = vmatprep.mubr.bf16.mxu1 %v16161_v1  ;;  %11553 = vmatpush1.bf16.msra.mxu0 %v14222_v42  ;;  %v11219_v53 = vpop.f32.mrf.mxu1  ;;  %v4429_v1 = vld [vmem:[%s19280_s9 + $0xa78] sm:$0xff]  ;;  %v14158_v42 = vcombine.low %v4661_v21, %v4669_v43 }
 0x68c   :  { %v18928_v51 = vadd.f32 %v11258_v49, %v11218_v48  ;;  %11584 = vmatprep.mubr.bf16.mxu0 %v16293_v4  ;;  %v11220_v9 = vadd.f32 %v11219_v53, %v11179_v50  ;;  %v11260_v55 = vpop.f32.mrf.mxu0  ;;  %11513 = vmatprep.subr.bf16.mxu1 %v13951_v57  ;;  %v4685_v4 = vld [vmem:[%s19280_s9 + $0x1278] sm:$0xff]  ;;  %v13919_v52 = vcombine.high %v4421_v29, %v4429_v1 }
 0x68d   :  { %v11221_v14 = vpop.f32.mrf.mxu1  ;;  %11554 = vmatprep.subr.bf16.mxu0 %v14207_v45  ;;  %v14175_v61 = vcombine.high %v4677_v26, %v4685_v4  ;;  %v13918_v31 = vcombine.low %v4421_v29, %v4429_v1  ;;  %v14174_v6 = vcombine.low %v4677_v26, %v4685_v4  ;;  %v4645_v39 = vld [vmem:[%s19280_s9 + $0x1138] sm:$0xff]  ;;  %v13871_v50 = vcombine.high %v4373_v41, %v4381_v63 }
 0x68e   :  { %v18943_v36 = vadd.f32 %v11260_v55, %v11220_v9  ;;  %v11262_v22 = vpop.f32.mrf.mxu0  ;;  %11514 = vmatpush1.bf16.msra.mxu1 %v13950_v18  ;;  %v14143_v57 = vcombine.high %v4645_v39, %v4653_v60  ;;  %v4629_v37 = vld [vmem:[%s19280_s9 + $0x10b8] sm:$0xff]  ;;  %v14142_v62 = vcombine.low %v4645_v39, %v4653_v60 }
 0x68f   :  { %11555 = vmatpush1.bf16.msra.mxu0 %v14206_v46  ;;  %v11222_v28 = vpop.f32.mrf.mxu1  ;;  %11515 = vmatprep.subr.bf16.mxu1 %v13935_v56  ;;  %v4637_v45 = vld [vmem:[%s19280_s9 + $0x10f8] sm:$0xff]  ;;  %v13870_v56 = vcombine.low %v4373_v41, %v4381_v63 }
 0x690   :  { %v11263_v44 = vpop.f32.mrf.mxu0  ;;  %11556 = vmatprep.subr.bf16.mxu0 %v14191_v7  ;;  %v14127_v48 = vcombine.high %v4629_v37, %v4637_v45  ;;  %v4357_v49 = vld [vmem:[%s19280_s9 + $0x838] sm:$0xff]  ;;  %v14126_v9 = vcombine.low %v4629_v37, %v4637_v45 }
 0x691   :  { %v4365_v18 = vld [vmem:[%s19280_s9 + $0x878] sm:$0xff] }
 0x692   :  { %11516 = vmatpush1.bf16.msra.mxu1 %v13934_v40  ;;  %v4613_v53 = vld [vmem:[%s19280_s9 + $0x1038] sm:$0xff]  ;;  %v13855_v55 = vcombine.high %v4357_v49, %v4365_v18  ;;  %v13854_v4 = vcombine.low %v4357_v49, %v4365_v18 }
 0x693   :  { %11557 = vmatpush1.bf16.msra.mxu0 %v14190_v10  ;;  %11517 = vmatprep.subr.bf16.mxu1 %v13919_v52  ;;  %v4621_v46 = vld [vmem:[%s19280_s9 + $0x1078] sm:$0xff] }
 0x694   :  { %11558 = vmatprep.subr.bf16.mxu0 %v14175_v61  ;;  %v14111_v7 = vcombine.high %v4613_v53, %v4621_v46  ;;  %v4597_v29 = vld [vmem:[%s19280_s9 + $0xfb8] sm:$0xff]  ;;  %v14110_v22 = vcombine.low %v4613_v53, %v4621_v46 }
 0x695   :  { %v4605_v1 = vld [vmem:[%s19280_s9 + $0xff8] sm:$0xff] }
 0x696   :  { %11518 = vmatpush1.bf16.msra.mxu1 %v13918_v31  ;;  %v4853_v14 = vld [vmem:[%s19280_s9 + $0x17b8] sm:$0xff]  ;;  %v14095_v40 = vcombine.high %v4597_v29, %v4605_v1  ;;  %v14094_v30 = vcombine.low %v4597_v29, %v4605_v1 }
 0x697   :  { %11559 = vmatpush1.bf16.msra.mxu0 %v14174_v6  ;;  %11519 = vmatprep.subr.bf16.mxu1 %v13903_v13  ;;  %v4861_v26 = vld [vmem:[%s19280_s9 + $0x17f8] sm:$0xff] }
 0x698   :  { %11560 = vmatprep.subr.bf16.mxu0 %v14159_v17  ;;  %v14351_v28 = vcombine.high %v4853_v14, %v4861_v26  ;;  %v4581_v10 = vld [vmem:[%s19280_s9 + $0xf38] sm:$0xff]  ;;  %v14350_v25 = vcombine.low %v4853_v14, %v4861_v26 }
 0x699   :  { %v4589_v52 = vld [vmem:[%s19280_s9 + $0xf78] sm:$0xff] }
 0x69a   :  { %11520 = vmatpush1.bf16.msra.mxu1 %v13902_v35  ;;  %v4837_v44 = vld [vmem:[%s19280_s9 + $0x1738] sm:$0xff]  ;;  %v14079_v21 = vcombine.high %v4581_v10, %v4589_v52  ;;  %v14078_v27 = vcombine.low %v4581_v10, %v4589_v52 }
 0x69b   :  { %11561 = vmatpush1.bf16.msra.mxu0 %v14158_v42  ;;  %11521 = vmatprep.subr.bf16.mxu1 %v13887_v5  ;;  %v4845_v61 = vld [vmem:[%s19280_s9 + $0x1778] sm:$0xff] }
 0x69c   :  { %11562 = vmatprep.subr.bf16.mxu0 %v14143_v57  ;;  %v14335_v43 = vcombine.high %v4837_v44, %v4845_v61  ;;  %v4565_v31 = vld [vmem:[%s19280_s9 + $0xeb8] sm:$0xff]  ;;  %v14334_v15 = vcombine.low %v4837_v44, %v4845_v61 }
 0x69d   :  { %v4573_v6 = vld [vmem:[%s19280_s9 + $0xef8] sm:$0xff] }
 0x69e   :  { %11522 = vmatpush1.bf16.msra.mxu1 %v13886_v54  ;;  %v4821_v13 = vld [vmem:[%s19280_s9 + $0x16b8] sm:$0xff]  ;;  %v14063_v39 = vcombine.high %v4565_v31, %v4573_v6  ;;  %v14062_v41 = vcombine.low %v4565_v31, %v4573_v6  ;;  %v11651_v6 = vmul.f32 0.01, %v17066_v23 }
 0x69f   :  { %11563 = vmatpush1.bf16.msra.mxu0 %v14142_v62  ;;  %11523 = vmatprep.subr.bf16.mxu1 %v13871_v50  ;;  %v4829_v17 = vld [vmem:[%s19280_s9 + $0x16f8] sm:$0xff] }
 0x6a0   :  { %11564 = vmatprep.subr.bf16.mxu0 %v14127_v48  ;;  %v14319_v60 = vcombine.high %v4821_v13, %v4829_v17  ;;  %v4549_v35 = vld [vmem:[%s19280_s9 + $0xe38] sm:$0xff]  ;;  %v14318_v63 = vcombine.low %v4821_v13, %v4829_v17 }
 0x6a1   :  { %v4557_v42 = vld [vmem:[%s19280_s9 + $0xe78] sm:$0xff] }
 0x6a2   :  { %11524 = vmatpush1.bf16.msra.mxu1 %v13870_v56  ;;  %v4805_v5 = vld [vmem:[%s19280_s9 + $0x1638] sm:$0xff]  ;;  %v14047_v37 = vcombine.high %v4549_v35, %v4557_v42  ;;  %v14046_v49 = vcombine.low %v4549_v35, %v4557_v42 }
 0x6a3   :  { %11565 = vmatpush1.bf16.msra.mxu0 %v14126_v9  ;;  %11525 = vmatprep.subr.bf16.mxu1 %v13855_v55  ;;  %v4813_v57 = vld [vmem:[%s19280_s9 + $0x1678] sm:$0xff] }
 0x6a4   :  { %11566 = vmatprep.subr.bf16.mxu0 %v14111_v7  ;;  %v14303_v45 = vcombine.high %v4805_v5, %v4813_v57  ;;  %v4533_v54 = vld [vmem:[%s19280_s9 + $0xdb8] sm:$0xff]  ;;  %v14302_v18 = vcombine.low %v4805_v5, %v4813_v57  ;;  %v11667_v5 = vsel %vm11635_vm12, %v17066_v23, %v11651_v6 }
 0x6a5   :  { %v4541_v62 = vld [vmem:[%s19280_s9 + $0xdf8] sm:$0xff] }
 0x6a6   :  { %11526 = vmatpush1.bf16.msra.mxu1 %v13854_v4  ;;  %v4789_v50 = vld [vmem:[%s19280_s9 + $0x15b8] sm:$0xff]  ;;  %v14031_v53 = vcombine.high %v4533_v54, %v4541_v62  ;;  %v14030_v29 = vcombine.low %v4533_v54, %v4541_v62 }
 0x6a7   :  { %11567 = vmatpush1.bf16.msra.mxu0 %v14110_v22  ;;  %11527 = vmatprep.subr.bf16.mxu1 %v14095_v40  ;;  %v4797_v48 = vld [vmem:[%s19280_s9 + $0x15f8] sm:$0xff] }
 0x6a8   :  { %11568 = vmatprep.subr.bf16.mxu0 %v14351_v28  ;;  %v14287_v46 = vcombine.high %v4789_v50, %v4797_v48  ;;  %v4517_v56 = vld [vmem:[%s19280_s9 + $0xd38] sm:$0xff]  ;;  %v14286_v1 = vcombine.low %v4789_v50, %v4797_v48 }
 0x6a9   :  { %v4525_v9 = vld [vmem:[%s19280_s9 + $0xd78] sm:$0xff] }
 0x6aa   :  { %11528 = vmatpush2.bf16.msra.mxu1 %v14094_v30  ;;  %v4773_v55 = vld [vmem:[%s19280_s9 + $0x1538] sm:$0xff]  ;;  %v14015_v14 = vcombine.high %v4517_v56, %v4525_v9  ;;  %v14014_v10 = vcombine.low %v4517_v56, %v4525_v9 }
 0x6ab   :  { %11569 = vmatpush2.bf16.msra.mxu0 %v14350_v25  ;;  %11529 = vmatprep.subr.bf16.mxu1 %v14079_v21  ;;  %v4781_v7 = vld [vmem:[%s19280_s9 + $0x1578] sm:$0xff] }
 0x6ac   :  { %11570 = vmatprep.subr.bf16.mxu0 %v14335_v43  ;;  %v14271_v26 = vcombine.high %v4773_v55, %v4781_v7  ;;  %v4501_v4 = vld [vmem:[%s19280_s9 + $0xcb8] sm:$0xff]  ;;  %v14270_v52 = vcombine.low %v4773_v55, %v4781_v7  ;;  %v15309_v55 = vld [vmem:[#allocation6 + $0x30] sm:$0xff]  }
 0x6ad   :  { %v4509_v22 = vld [vmem:[%s19280_s9 + $0xcf8] sm:$0xff] }
 0x6ae   :  { %11530 = vmatpush2.bf16.msra.mxu1 %v14078_v27  ;;  %v4757_v40 = vld [vmem:[%s19280_s9 + $0x14b8] sm:$0xff]  ;;  %v13999_v44 = vcombine.high %v4501_v4, %v4509_v22  ;;  %v13998_v31 = vcombine.low %v4501_v4, %v4509_v22  ;;  %v15311_v4 = vld [vmem:[#allocation6 + $0x28] sm:$0xff]  }
 0x6af   :  { %11571 = vmatpush2.bf16.msra.mxu0 %v14334_v15  ;;  %11531 = vmatprep.subr.bf16.mxu1 %v14063_v39  ;;  %v4765_v28 = vld [vmem:[%s19280_s9 + $0x14f8] sm:$0xff] }
 0x6b0   :  { %11572 = vmatprep.subr.bf16.mxu0 %v14319_v60  ;;  %v14255_v61 = vcombine.high %v4757_v40, %v4765_v28  ;;  %v4485_v30 = vld [vmem:[%s19280_s9 + $0xc38] sm:$0xff]  ;;  %v14254_v13 = vcombine.low %v4757_v40, %v4765_v28  ;;  %v15312_v28 = vld [vmem:[#allocation6 + $0x60] sm:$0xff]  }
 0x6b1   :  { %v4493_v25 = vld [vmem:[%s19280_s9 + $0xc78] sm:$0xff] }
 0x6b2   :  { %11532 = vmatpush2.bf16.msra.mxu1 %v14062_v41  ;;  %v4741_v21 = vld [vmem:[%s19280_s9 + $0x1438] sm:$0xff]  ;;  %v13983_v17 = vcombine.high %v4485_v30, %v4493_v25  ;;  %v13982_v60 = vcombine.low %v4485_v30, %v4493_v25 }
 0x6b3   :  { %11573 = vmatpush2.bf16.msra.mxu0 %v14318_v63  ;;  %11533 = vmatprep.subr.bf16.mxu1 %v14047_v37  ;;  %v4749_v43 = vld [vmem:[%s19280_s9 + $0x1478] sm:$0xff] }
 0x6b4   :  { %11574 = vmatprep.subr.bf16.mxu0 %v14303_v45  ;;  %v14239_v27 = vcombine.high %v4741_v21, %v4749_v43  ;;  %v4981_v15 = vld [vmem:[%s19280_s9 + $0x1bb8] sm:$0xff]  ;;  %v14238_v35 = vcombine.low %v4741_v21, %v4749_v43  ;;  %v11683_v45 = vmul.f32 0.25, %v11667_v5 }
 0x6b5   :  { %v4989_v39 = vld [vmem:[%s19280_s9 + $0x1bf8] sm:$0xff] }
 0x6b6   :  { %11534 = vmatpush2.bf16.msra.mxu1 %v14046_v49  ;;  %v14479_v42 = vcombine.high %v4981_v15, %v4989_v39  ;;  %v15306_v57 = vld [vmem:[#allocation6 + $0x78] sm:$0xff]   ;;  %v14478_v37 = vcombine.low %v4981_v15, %v4989_v39  ;;  %v15308_v49 = vld [vmem:[#allocation6 + $0x70] sm:$0xff]  }
 0x6b7   :  { %11575 = vmatpush2.bf16.msra.mxu0 %v14302_v18  ;;  %11535 = vmatprep.subr.bf16.mxu1 %v14031_v53  ;;  %v4965_v41 = vld [vmem:[%s19280_s9 + $0x1b38] sm:$0xff] }
 0x6b8   :  { %11576 = vmatprep.subr.bf16.mxu0 %v14287_v46  ;;  %v4973_v63 = vld [vmem:[%s19280_s9 + $0x1b78] sm:$0xff]  ;;  %v11699_v46 = vpack.c.bf16 %v11683_v45, %v11683_v45  ;;  %v15319_v45 = vld [vmem:[#allocation6 + $0x8] sm:$0xff]  }
 0x6b9   :  { %v15307_v54 = vld [vmem:[#allocation6 + $0x38] sm:$0xff]   ;;  %v14463_v62 = vcombine.high %v4965_v41, %v4973_v63  ;;  %v14462_v56 = vcombine.low %v4965_v41, %v4973_v63  ;;  %v11650_v41 = vmul.f32 0.01, %v17059_v58  ;;  %v11655_v63 = vmul.f32 0.01, %v17893_v20 }
 0x6ba   :  { %11536 = vmatpush2.bf16.msra.mxu1 %v14030_v29  ;;  %v4949_v23 = vld [vmem:[%s19280_s9 + $0x1ab8] sm:$0xff] }
 0x6bb   :  { %11577 = vmatpush2.bf16.msra.mxu0 %v14286_v1  ;;  %11537 = vmatprep.subr.bf16.mxu1 %v14015_v14  ;;  %v4957_v50 = vld [vmem:[%s19280_s9 + $0x1af8] sm:$0xff] }
 0x6bc   :  { %11578 = vmatprep.subr.bf16.mxu0 %v14271_v26  ;;  %v14447_v7 = vcombine.high %v4949_v23, %v4957_v50  ;;  %v14446_v26 = vcombine.low %v4949_v23, %v4957_v50  ;;  %v15314_v25 = vld [vmem:[#allocation6 + $0x58] sm:$0xff]  }
 0x6bd   :  { %v4901_v21 = vld [vmem:[%s19280_s9 + $0x1938] sm:$0xff] }
 0x6be   :  { %11538 = vmatpush2.bf16.msra.mxu1 %v14014_v10  ;;  %v4917_v10 = vld [vmem:[%s19280_s9 + $0x19b8] sm:$0xff] }
 0x6bf   :  { %11579 = vmatpush2.bf16.msra.mxu0 %v14270_v52  ;;  %11539 = vmatprep.subr.bf16.mxu1 %v13999_v44  ;;  %v4925_v52 = vld [vmem:[%s19280_s9 + $0x19f8] sm:$0xff] }
 0x6c0   :  { %11580 = vmatprep.subr.bf16.mxu0 %v14255_v61  ;;  %v15313_v61 = vld [vmem:[#allocation6 + $0x20] sm:$0xff]   ;;  %v14415_v30 = vcombine.high %v4917_v10, %v4925_v52  ;;  %v4909_v43 = vld [vmem:[%s19280_s9 + $0x1978] sm:$0xff] }
 0x6c1   :  { %v15315_v6 = vld [vmem:[#allocation6 + $0x18] sm:$0xff]   ;;  %v14398_v39 = vcombine.low %v4901_v21, %v4909_v43 }
 0x6c2   :  { %11540 = vmatpush2.bf16.msra.mxu1 %v13998_v31  ;;  %v14414_v31 = vcombine.low %v4917_v10, %v4925_v52  ;;  %v4893_v15 = vld [vmem:[%s19280_s9 + $0x18f8] sm:$0xff]  ;;  %v15326_v52 = vld [vmem:[#allocation6 + $0x168] sm:$0xff]  }
 0x6c3   :  { %11581 = vmatpush2.bf16.msra.mxu0 %v14254_v13  ;;  %11541 = vmatprep.subr.bf16.mxu1 %v13983_v17  ;;  %v14399_v13 = vcombine.high %v4901_v21, %v4909_v43  ;;  %v15316_v17 = vld [vmem:[#allocation6 + $0x50] sm:$0xff]   ;;  %v4869_v5 = vld [vmem:[%s19280_s9 + $0x1838] sm:$0xff]  ;;  %v15328_v43 = vld [vmem:[#allocation6 + $0x160] sm:$0xff]  }
 0x6c4   :  { %11582 = vmatprep.subr.bf16.mxu0 %v14239_v27  ;;  %v4885_v27 = vld [vmem:[%s19280_s9 + $0x18b8] sm:$0xff] }
 0x6c5   :  { %v5109_v23 = vld [vmem:[%s19280_s9 + $0x1fb8] sm:$0xff] }
 0x6c6   :  { %11542 = vmatpush2.bf16.msra.mxu1 %v13982_v60  ;;  %v15317_v60 = vld [vmem:[#allocation6 + $0x10] sm:$0xff]   ;;  %v5117_v50 = vld [vmem:[%s19280_s9 + $0x1ff8] sm:$0xff] }
 0x6c7   :  { %11583 = vmatpush2.bf16.msra.mxu0 %v14238_v35  ;;  %11593 = vmatprep.subr.bf16.mxu1 %v14479_v42  ;;  %v14383_v35 = vcombine.high %v4885_v27, %v4893_v15  ;;  %v15318_v42 = vld [vmem:[#allocation6 + $0x48] sm:$0xff]  }
 0x6c8   :  { %14737 = vmatprep.subr.bf16.mxu0 %v15306_v57  ;;  %v4877_v57 = vld [vmem:[%s19280_s9 + $0x1878] sm:$0xff] }
 0x6c9   :  { %v11299_v48 = vpop.f32.mrf.mxu1  ;;  %11544 = vmatmul.mubr.bf16.vlgmr.msra.gmra.mxu1 %v16175_v11 }
 0x6ca   :  { %v19112_v18 = vadd.f32 %v11299_v48, %v18928_v51  ;;  %v19114_v53 = vpop.f32.mrf.mxu0  ;;  %11585 = vmatmul.mubr.bf16.vlgmr.msra.gmra.mxu0 %v16295_v12  ;;  %11594 = vmatpush1.bf16.msra.mxu1 %v14478_v37  ;;  %v15310_v51 = vld [vmem:[#allocation6 + $0x68] sm:$0xff]   ;;  %v4933_v12 = vld [vmem:[%s19280_s9 + $0x1a38] sm:$0xff]  ;;  %v14382_v37 = vcombine.low %v4885_v27, %v4893_v15  ;;  %v11666_v48 = vsel %vm11634_vm13, %v17059_v58, %v11650_v41 }
 0x6cb   :  { %11625 = vmatprep.mubr.bf16.mxu1 %v16425_v19  ;;  %14738 = vmatpush3.bf16.msra.mxu0 %v15307_v54  ;;  %v11301_v9 = vpop.f32.mrf.mxu1  ;;  %v4941_v19 = vld [vmem:[%s19280_s9 + $0x1a78] sm:$0xff]  ;;  %v14367_v54 = vcombine.high %v4869_v5, %v4877_v57 }
 0x6cc   :  { %12777 = vmatprep.mubr.bf16.mxu0 %v11699_v46  ;;  %v19119_v11 = vadd.f32 %v11301_v9, %v18943_v36  ;;  %v19121_v29 = vpop.f32.mrf.mxu0  ;;  %11595 = vmatprep.subr.bf16.mxu1 %v14463_v62  ;;  %v14431_v22 = vcombine.high %v4933_v12, %v4941_v19  ;;  %v14430_v44 = vcombine.low %v4933_v12, %v4941_v19  ;;  %v15320_v62 = vld [vmem:[#allocation6 + $0x40] sm:$0xff]   ;;  %v5093_v12 = vld [vmem:[%s19280_s9 + $0x1f38] sm:$0xff]  ;;  %vm11644_vm9 = vcmp.ge.f32.partialorder %v19112_v18, 0.0 }
 0x6cd   :  { %v11303_v1 = vpop.f32.mrf.mxu1  ;;  %14739 = vmatprep.subr.bf16.mxu0 %v15308_v49  ;;  %v14366_v49 = vcombine.low %v4869_v5, %v4877_v57  ;;  %v11671_v46 = vsel %vm11639_vm14, %v17893_v20, %v11655_v63  ;;  %v14607_v9 = vcombine.high %v5109_v23, %v5117_v50  ;;  %v5101_v58 = vld [vmem:[%s19280_s9 + $0x1f78] sm:$0xff]  ;;  %v14606_v19 = vcombine.low %v5109_v23, %v5117_v50  ;;  %v15332_v57 = vld [vmem:[#allocation6 + $0x150] sm:$0xff]  }
 0x6ce   :  { %v11344_v14 = vpop.f32.mrf.mxu0  ;;  %11596 = vmatpush1.bf16.msra.mxu1 %v14462_v56  ;;  %v15321_v56 = vld [vmem:[#allocation6] sm:$0xff]   ;;  %v15323_v20 = vld [vmem:[#allocation6 + $0x138] sm:$0xff]   ;;  %vm11645_vm6 = vcmp.ge.f32.partialorder %v19119_v11, 0.0 }
 0x6cf   :  { %14740 = vmatpush3.bf16.msra.mxu0 %v15309_v55  ;;  %v11304_v36 = vpop.f32.mrf.mxu1  ;;  %11597 = vmatprep.subr.bf16.mxu1 %v14447_v7  ;;  %v11682_v55 = vmul.f32 0.25, %v11666_v48  ;;  %v15322_v7 = vld [vmem:[#allocation6 + $0x178] sm:$0xff]   ;;  %v14591_v14 = vcombine.high %v5093_v12, %v5101_v58  ;;  %v11654_v48 = vmul.f32 0.01, %v17885_v59 }
 0x6d0   :  { %v11345_v40 = vpop.f32.mrf.mxu0  ;;  %14741 = vmatprep.subr.bf16.mxu0 %v15310_v51  ;;  %v11687_v51 = vmul.f32 0.25, %v11671_v46  ;;  %v5077_v36 = vld [vmem:[%s19280_s9 + $0x1eb8] sm:$0xff] }
 0x6d1   :  { %v11698_v1 = vpack.c.bf16 %v11682_v55, %v11682_v55  ;;  %v14590_v40 = vcombine.low %v5093_v12, %v5101_v58  ;;  %v15330_v15 = vld [vmem:[#allocation6 + $0x158] sm:$0xff]  }
 0x6d2   :  { %11598 = vmatpush1.bf16.msra.mxu1 %v14446_v26  ;;  %v15324_v26 = vld [vmem:[#allocation6 + $0x170] sm:$0xff]   ;;  %v5013_v41 = vld [vmem:[%s19280_s9 + $0x1cb8] sm:$0xff] }
 0x6d3   :  { %14742 = vmatpush3.bf16.msra.mxu0 %v15311_v4  ;;  %11599 = vmatprep.subr.bf16.mxu1 %v14431_v22  ;;  %v5085_v4 = vld [vmem:[%s19280_s9 + $0x1ef8] sm:$0xff]  ;;  %v11703_v22 = vpack.c.bf16 %v11687_v51, %v11687_v51  ;;  %v11670_v51 = vsel %vm11638_vm15, %v17885_v59, %v11654_v48  ;;  %v15361_v48 = vld [vmem:[#allocation6 + $0x210] sm:$0xff]  }
 0x6d4   :  { %14743 = vmatprep.subr.bf16.mxu0 %v15312_v28  ;;  %v15325_v28 = vld [vmem:[#allocation6 + $0x130] sm:$0xff]   ;;  %v14575_v10 = vcombine.high %v5077_v36, %v5085_v4  ;;  %v5021_v63 = vld [vmem:[%s19280_s9 + $0x1cf8] sm:$0xff] }
 0x6d5   :  { %v4997_v23 = vld [vmem:[%s19280_s9 + $0x1c38] sm:$0xff]  ;;  %v14510_v46 = vcombine.low %v5013_v41, %v5021_v63 }
 0x6d6   :  { %11600 = vmatpush1.bf16.msra.mxu1 %v14430_v44  ;;  %v5061_v44 = vld [vmem:[%s19280_s9 + $0x1e38] sm:$0xff] }
 0x6d7   :  { %14744 = vmatpush3.bf16.msra.mxu0 %v15313_v61  ;;  %11601 = vmatprep.subr.bf16.mxu1 %v14415_v30  ;;  %v5069_v61 = vld [vmem:[%s19280_s9 + $0x1e78] sm:$0xff]  ;;  %v14574_v30 = vcombine.low %v5077_v36, %v5085_v4 }
 0x6d8   :  { %14745 = vmatprep.subr.bf16.mxu0 %v15314_v25  ;;  %v15327_v25 = vld [vmem:[#allocation6 + $0x128] sm:$0xff]   ;;  %v14559_v21 = vcombine.high %v5061_v44, %v5069_v61  ;;  %v5005_v50 = vld [vmem:[%s19280_s9 + $0x1c78] sm:$0xff] }
 0x6d9   :  { %v14495_v55 = vcombine.high %v4997_v23, %v5005_v50  ;;  %v14494_v12 = vcombine.low %v4997_v23, %v5005_v50  ;;  %v15339_v59 = vld [vmem:[#allocation6 + $0x278] sm:$0xff]   ;;  %v15359_v23 = vld [vmem:[#allocation6 + $0x250] sm:$0xff]  }
 0x6da   :  { %11602 = vmatpush1.bf16.msra.mxu1 %v14414_v31  ;;  %v5045_v31 = vld [vmem:[%s19280_s9 + $0x1db8] sm:$0xff]  ;;  %v15360_v50 = vld [vmem:[#allocation6 + $0x90] sm:$0xff]  }
 0x6db   :  { %14746 = vmatpush3.bf16.msra.mxu0 %v15315_v6  ;;  %11603 = vmatprep.subr.bf16.mxu1 %v14399_v13  ;;  %v5053_v6 = vld [vmem:[%s19280_s9 + $0x1df8] sm:$0xff]  ;;  %v14558_v13 = vcombine.low %v5061_v44, %v5069_v61  ;;  %v15343_v61 = vld [vmem:[#allocation6 + $0x270] sm:$0xff]  }
 0x6dc   :  { %14747 = vmatprep.subr.bf16.mxu0 %v15316_v17  ;;  %v15329_v17 = vld [vmem:[#allocation6 + $0x120] sm:$0xff]   ;;  %v14543_v27 = vcombine.high %v5045_v31, %v5053_v6 }
 0x6de   :  { %11604 = vmatpush1.bf16.msra.mxu1 %v14398_v39  ;;  %v5029_v39 = vld [vmem:[%s19280_s9 + $0x1d38] sm:$0xff] }
 0x6df   :  { %14748 = vmatpush3.bf16.msra.mxu0 %v15317_v60  ;;  %11605 = vmatprep.subr.bf16.mxu1 %v14383_v35  ;;  %v5037_v60 = vld [vmem:[%s19280_s9 + $0x1d78] sm:$0xff]  ;;  %v14542_v35 = vcombine.low %v5045_v31, %v5053_v6  ;;  %v15345_v31 = vld [vmem:[#allocation6 + $0x230] sm:$0xff]   ;;  %v15346_v6 = vld [vmem:[#allocation6 + $0xe8] sm:$0xff]  }
 0x6e0   :  { %14749 = vmatprep.subr.bf16.mxu0 %v15318_v42  ;;  %v15331_v42 = vld [vmem:[#allocation6 + $0x118] sm:$0xff]   ;;  %v14527_v5 = vcombine.high %v5029_v39, %v5037_v60 }
 0x6e2   :  { %11606 = vmatpush1.bf16.msra.mxu1 %v14382_v37  ;;  %v14526_v37 = vcombine.low %v5029_v39, %v5037_v60  ;;  %v15349_v60 = vld [vmem:[#allocation6 + $0x228] sm:$0xff]  }
 0x6e3   :  { %14750 = vmatpush3.bf16.msra.mxu0 %v15319_v45  ;;  %11607 = vmatprep.subr.bf16.mxu1 %v14367_v54  ;;  %v15333_v45 = vld [vmem:[#allocation6 + $0x110] sm:$0xff]   ;;  %v14511_v54 = vcombine.high %v5013_v41, %v5021_v63  ;;  %v15353_v41 = vld [vmem:[#allocation6 + $0x220] sm:$0xff]   ;;  %v15354_v63 = vld [vmem:[#allocation6 + $0xd8] sm:$0xff]  }
 0x6e4   :  { %14751 = vmatprep.subr.bf16.mxu0 %v15320_v62  ;;  %v15334_v62 = vld [vmem:[#allocation6 + $0x148] sm:$0xff]  }
 0x6e6   :  { %11608 = vmatpush1.bf16.msra.mxu1 %v14366_v49  ;;  %v11653_v49 = vmul.f32 0.01, %v17481_v32 }
 0x6e7   :  { %14752 = vmatpush3.bf16.msra.mxu0 %v15321_v56  ;;  %11609 = vmatprep.subr.bf16.mxu1 %v14607_v9  ;;  %v11659_v56 = vmul.f32 0.01, %v18723_v24  ;;  %v15335_v9 = vld [vmem:[#allocation6 + $0x108] sm:$0xff]  }
 0x6e8   :  { %14781 = vmatprep.subr.bf16.mxu0 %v15322_v7  ;;  %v15336_v7 = vld [vmem:[#allocation6 + $0x140] sm:$0xff]   ;;  %v11669_v58 = vsel %vm11637_vm0, %v17481_v32, %v11653_v49  ;;  %v15340_v32 = vld [vmem:[#allocation6 + $0xb8] sm:$0xff]   ;;  %v15362_v49 = vld [vmem:[#allocation6 + $0xc8] sm:$0xff]  }
 0x6e9   :  { %v11685_v4 = vmul.f32 0.25, %v11669_v58 }
 0x6ea   :  { %12778 = vmatmul.mubr.bf16.vlgmr.msra.gmra.mxu0 %v11698_v1  ;;  %11610 = vmatpush2.bf16.msra.mxu1 %v14606_v19  ;;  %v15337_v19 = vld [vmem:[#allocation6 + $0x100] sm:$0xff]   ;;  %v11675_v1 = vsel %vm11643_vm1, %v18723_v24, %v11659_v56  ;;  %v15363_v56 = vld [vmem:[#allocation6 + $0x248] sm:$0xff]  }
 0x6eb   :  { %14782 = vmatpush3.bf16.msra.mxu0 %v15323_v20  ;;  %12857 = vmatprep.mubr.bf16.mxu0 %v11703_v22  ;;  %v15338_v20 = vld [vmem:[#allocation6 + $0xf8] sm:$0xff]   ;;  %v11691_v22 = vmul.f32 0.25, %v11675_v1  ;;  %v11701_v44 = vpack.c.bf16 %v11685_v4, %v11685_v4  ;;  %v15368_v1 = vld [vmem:[#allocation6 + $0x80] sm:$0xff]  }
 0x6ec   :  { %11611 = vmatprep.subr.bf16.mxu1 %v14591_v14  ;;  %14783 = vmatprep.subr.bf16.mxu0 %v15324_v26  ;;  %v11686_v14 = vmul.f32 0.25, %v11670_v51  ;;  %v19219_v26 = vld [vmem:[%s19281_s10 + $0x8] sm:$0xff]  ;;  %v15370_v4 = vld [vmem:[#allocation6 + $0x1f8] sm:$0xff]  }
 0x6ed   :  { %v5173_v36 = vrot.slane %v19219_v26, %v16248_v2  ;;  %v15365_v51 = vld [vmem:[#allocation6 + $0x208] sm:$0xff]  }
 0x6ee   :  { %11612 = vmatpush2.bf16.msra.mxu1 %v14590_v40  ;;  %v15341_v40 = vld [vmem:[#allocation6 + $0x238] sm:$0xff]  }
 0x6ef   :  { %14784 = vmatpush3.bf16.msra.mxu0 %v15325_v28  ;;  %11613 = vmatprep.subr.bf16.mxu1 %v14575_v10  ;;  %v11702_v28 = vpack.c.bf16 %v11686_v14, %v11686_v14  ;;  %v11341_v24 = vadd.f32 %v19114_v53, %v5173_v36  ;;  %v15342_v10 = vld [vmem:[#allocation6 + $0xf0] sm:$0xff]  }
 0x6f0   :  { %14785 = vmatprep.subr.bf16.mxu0 %v15326_v52 }
 0x6f2   :  { %11614 = vmatpush2.bf16.msra.mxu1 %v14574_v30 }
 0x6f3   :  { %14786 = vmatpush3.bf16.msra.mxu0 %v15327_v25  ;;  %11615 = vmatprep.subr.bf16.mxu1 %v14559_v21  ;;  %v11707_v25 = vpack.c.bf16 %v11691_v22, %v11691_v22  ;;  %v15344_v21 = vld [vmem:[#allocation6 + $0xb0] sm:$0xff]   ;;  %v15378_v22 = vld [vmem:[#allocation6 + $0x378] sm:$0xff]  }
 0x6f4   :  { %14787 = vmatprep.subr.bf16.mxu0 %v15328_v43 }
 0x6f6   :  { %11616 = vmatpush2.bf16.msra.mxu1 %v14558_v13 }
 0x6f7   :  { %14788 = vmatpush3.bf16.msra.mxu0 %v15329_v17  ;;  %11617 = vmatprep.subr.bf16.mxu1 %v14543_v27 }
 0x6f8   :  { %14789 = vmatprep.subr.bf16.mxu0 %v15330_v15  ;;  %v15348_v15 = vld [vmem:[#allocation6 + $0xa8] sm:$0xff]  }
 0x6fa   :  { %11618 = vmatpush2.bf16.msra.mxu1 %v14542_v35  ;;  %v15350_v35 = vld [vmem:[#allocation6 + $0xe0] sm:$0xff]  }
 0x6fb   :  { %14790 = vmatpush3.bf16.msra.mxu0 %v15331_v42  ;;  %11619 = vmatprep.subr.bf16.mxu1 %v14527_v5  ;;  %v15351_v5 = vld [vmem:[#allocation6 + $0x260] sm:$0xff]  }
 0x6fc   :  { %14791 = vmatprep.subr.bf16.mxu0 %v15332_v57  ;;  %v15352_v57 = vld [vmem:[#allocation6 + $0xa0] sm:$0xff]  }
 0x6fe   :  { %11620 = vmatpush2.bf16.msra.mxu1 %v14526_v37  ;;  %v15355_v37 = vld [vmem:[#allocation6 + $0x258] sm:$0xff]  }
 0x6ff   :  { %14792 = vmatpush3.bf16.msra.mxu0 %v15333_v45  ;;  %11621 = vmatprep.subr.bf16.mxu1 %v14511_v54  ;;  %v15356_v45 = vld [vmem:[#allocation6 + $0x98] sm:$0xff]  }
 0x700   :  { %14793 = vmatprep.subr.bf16.mxu0 %v15334_v62  ;;  %v15357_v54 = vld [vmem:[#allocation6 + $0x218] sm:$0xff]   ;;  %v15358_v62 = vld [vmem:[#allocation6 + $0xd0] sm:$0xff]  }
 0x702   :  { %11622 = vmatpush2.bf16.msra.mxu1 %v14510_v46  ;;  %v11652_v46 = vmul.f32 0.01, %v17473_v47 }
 0x703   :  { %14794 = vmatpush3.bf16.msra.mxu0 %v15335_v9  ;;  %11623 = vmatprep.subr.bf16.mxu1 %v14495_v55  ;;  %v11658_v9 = vmul.f32 0.01, %v18715_v34  ;;  %v11657_v55 = vmul.f32 0.01, %v18306_v8 }
 0x704   :  { %14795 = vmatprep.subr.bf16.mxu0 %v15336_v7  ;;  %v15364_v7 = vld [vmem:[#allocation6 + $0x88] sm:$0xff]   ;;  %v11668_v58 = vsel %vm11636_vm2, %v17473_v47, %v11652_v46  ;;  %v15406_v46 = vld [vmem:[#allocation6 + $0x340] sm:$0xff]  }
 0x705   :  { %v11673_v14 = vsel %vm11641_vm4, %v18306_v8, %v11657_v55  ;;  %v11684_v36 = vmul.f32 0.25, %v11668_v58  ;;  %v15396_v55 = vld [vmem:[#allocation6 + $0x2f8] sm:$0xff]  }
 0x706   :  { %11624 = vmatpush2.bf16.msra.mxu1 %v14494_v12  ;;  %v15366_v12 = vld [vmem:[#allocation6 + $0xc0] sm:$0xff]  }
 0x707   :  { %14796 = vmatpush3.bf16.msra.mxu0 %v15337_v19  ;;  %14759 = vmatprep.subr.bf16.mxu1 %v15338_v20  ;;  %v15367_v19 = vld [vmem:[#allocation6 + $0x240] sm:$0xff]   ;;  %v11674_v20 = vsel %vm11642_vm3, %v18715_v34, %v11658_v9  ;;  %v11700_v47 = vpack.c.bf16 %v11684_v36, %v11684_v36  ;;  %v15401_v36 = vld [vmem:[#allocation6 + $0x2b0] sm:$0xff]  }
 0x708   :  { %14825 = vmatprep.subr.bf16.mxu0 %v15339_v59  ;;  %v15369_v59 = vld [vmem:[#allocation6 + $0x200] sm:$0xff]  }
 0x709   :  { %v11381_v52 = vpop.f32.mrf.mxu1  ;;  %11626 = vmatmul.mubr.bf16.vlgmr.msra.gmra.mxu1 %v16427_v0  ;;  %v15347_v0 = vld [vmem:[#allocation6 + $0x268] sm:$0xff]  }
 0x70a   :  { %v11382_v2 = vadd.f32 %v11381_v52, %v11341_v24  ;;  %v11422_v30 = vpop.f32.mrf.mxu0  ;;  %12858 = vmatmul.mubr.bf16.vlgmr.msra.gmra.mxu0 %v11702_v28  ;;  %14760 = vmatpush3.bf16.msra.mxu1 %v15340_v32  ;;  %v11690_v32 = vmul.f32 0.25, %v11674_v20  ;;  %v15371_v28 = vld [vmem:[#allocation6 + $0x1b8] sm:$0xff]   ;;  %v15372_v24 = vld [vmem:[#allocation6 + $0x1f0] sm:$0xff]  }
 0x70b   :  { %12817 = vmatprep.mubr.bf16.mxu1 %v11701_v44  ;;  %14826 = vmatpush3.bf16.msra.mxu0 %v15341_v40  ;;  %v19225_v43 = vpop.f32.mrf.mxu1  ;;  %v11689_v40 = vmul.f32 0.25, %v11673_v14  ;;  %v15382_v52 = vld [vmem:[#allocation6 + $0x370] sm:$0xff]  }
 0x70c   :  { %v19227_v53 = vadd.f32 %v11422_v30, %v11382_v2  ;;  %12937 = vmatprep.mubr.bf16.mxu0 %v11707_v25  ;;  %v19229_v13 = vpop.f32.mrf.mxu0  ;;  %14761 = vmatprep.subr.bf16.mxu1 %v15342_v10  ;;  %v11706_v34 = vpack.c.bf16 %v11690_v32, %v11690_v32  ;;  %v15379_v10 = vld [vmem:[#allocation6 + $0x338] sm:$0xff]   ;;  %v15373_v44 = vld [vmem:[#allocation6 + $0x1b0] sm:$0xff]   ;;  %v15386_v30 = vld [vmem:[#allocation6 + $0x368] sm:$0xff]  }
 0x70d   :  { %v11385_v17 = vpop.f32.mrf.mxu1  ;;  %14827 = vmatprep.subr.bf16.mxu0 %v15343_v61  ;;  %v11705_v8 = vpack.c.bf16 %v11689_v40, %v11689_v40  ;;  %v15374_v61 = vld [vmem:[#allocation6 + $0x1e8] sm:$0xff]   ;;  %v15383_v2 = vld [vmem:[#allocation6 + $0x330] sm:$0xff]  }
 0x70e   :  { %v11426_v27 = vpop.f32.mrf.mxu0  ;;  %14762 = vmatpush3.bf16.msra.mxu1 %v15344_v21  ;;  %v15375_v25 = vld [vmem:[#allocation6 + $0x1a8] sm:$0xff]   ;;  %v15376_v21 = vld [vmem:[#allocation6 + $0x1e0] sm:$0xff]   ;;  %v15380_v17 = vld [vmem:[#allocation6 + $0x1d8] sm:$0xff]  }
 0x70f   :  { %14828 = vmatpush3.bf16.msra.mxu0 %v15345_v31  ;;  %v11386_v39 = vpop.f32.mrf.mxu1  ;;  %14763 = vmatprep.subr.bf16.mxu1 %v15346_v6  ;;  %v15387_v31 = vld [vmem:[#allocation6 + $0x328] sm:$0xff]   ;;  %v15390_v6 = vld [vmem:[#allocation6 + $0x360] sm:$0xff]  }
 0x710   :  { %v11427_v42 = vpop.f32.mrf.mxu0  ;;  %14829 = vmatprep.subr.bf16.mxu0 %v15347_v0  ;;  %v15377_v0 = vld [vmem:[#allocation6 + $0x1a0] sm:$0xff]   ;;  %v15381_v39 = vld [vmem:[#allocation6 + $0x198] sm:$0xff]  }
 0x711   :  { %v15391_v27 = vld [vmem:[#allocation6 + $0x320] sm:$0xff]   ;;  %v15398_v42 = vld [vmem:[#allocation6 + $0x350] sm:$0xff]  }
 0x712   :  { %14764 = vmatpush3.bf16.msra.mxu1 %v15348_v15  ;;  %v15394_v15 = vld [vmem:[#allocation6 + $0x358] sm:$0xff]  }
 0x713   :  { %14830 = vmatpush3.bf16.msra.mxu0 %v15349_v60  ;;  %14765 = vmatprep.subr.bf16.mxu1 %v15350_v35  ;;  %v15384_v60 = vld [vmem:[#allocation6 + $0x1d0] sm:$0xff]   ;;  %v15395_v35 = vld [vmem:[#allocation6 + $0x318] sm:$0xff]  }
 0x714   :  { %14831 = vmatprep.subr.bf16.mxu0 %v15351_v5  ;;  %v15385_v5 = vld [vmem:[#allocation6 + $0x190] sm:$0xff]  }
 0x716   :  { %14766 = vmatpush3.bf16.msra.mxu1 %v15352_v57  ;;  %v15388_v57 = vld [vmem:[#allocation6 + $0x1c8] sm:$0xff]  }
 0x717   :  { %14832 = vmatpush3.bf16.msra.mxu0 %v15353_v41  ;;  %14767 = vmatprep.subr.bf16.mxu1 %v15354_v63  ;;  %v11656_v41 = vmul.f32 0.01, %v18298_v33  ;;  %v15399_v63 = vld [vmem:[#allocation6 + $0x310] sm:$0xff]  }
 0x718   :  { %14833 = vmatprep.subr.bf16.mxu0 %v15355_v37  ;;  %v11661_v37 = vmul.f32 0.01, %v19119_v11 }
 0x71a   :  { %14768 = vmatpush3.bf16.msra.mxu1 %v15356_v45  ;;  %v15402_v45 = vld [vmem:[#allocation6 + $0x348] sm:$0xff]  }
 0x71b   :  { %14834 = vmatpush3.bf16.msra.mxu0 %v15357_v54  ;;  %14769 = vmatprep.subr.bf16.mxu1 %v15358_v62  ;;  %v15389_v54 = vld [vmem:[#allocation6 + $0x188] sm:$0xff]   ;;  %v15392_v62 = vld [vmem:[#allocation6 + $0x1c0] sm:$0xff]  }
 0x71c   :  { %14835 = vmatprep.subr.bf16.mxu0 %v15359_v23  ;;  %v11672_v23 = vsel %vm11640_vm5, %v18298_v33, %v11656_v41  ;;  %v15420_v41 = vld [vmem:[#allocation6 + $0x3f0] sm:$0xff]  }
 0x71d   :  { %v11688_v9 = vmul.f32 0.25, %v11672_v23  ;;  %v15427_v23 = vld [vmem:[#allocation6 + $0x398] sm:$0xff]  }
 0x71e   :  { %14770 = vmatpush3.bf16.msra.mxu1 %v15360_v50  ;;  %v5177_v50 = vrot.slane %v19219_v26, %v16251_v16  ;;  %v15397_v16 = vld [vmem:[#allocation6 + $0x2b8] sm:$0xff]  }
 0x71f   :  { %14836 = vmatpush3.bf16.msra.mxu0 %v15361_v48  ;;  %14771 = vmatprep.subr.bf16.mxu1 %v15362_v49  ;;  %v15403_v48 = vld [vmem:[#allocation6 + $0x308] sm:$0xff]   ;;  %v11677_v49 = vsel %vm11645_vm6, %v19119_v11, %v11661_v37  ;;  %v11704_v58 = vpack.c.bf16 %v11688_v9, %v11688_v9  ;;  %v15400_v11 = vld [vmem:[#allocation6 + $0x2f0] sm:$0xff]   ;;  %v15433_v9 = vld [vmem:[#allocation6 + $0x380] sm:$0xff]  }
 0x720   :  { %14837 = vmatprep.subr.bf16.mxu0 %v15363_v56  ;;  %v15393_v56 = vld [vmem:[#allocation6 + $0x180] sm:$0xff]   ;;  %v15422_v37 = vld [vmem:[#allocation6 + $0x3e8] sm:$0xff]  }
 0x722   :  { %14772 = vmatpush3.bf16.msra.mxu1 %v15364_v7  ;;  %v11343_v7 = vadd.f32 %v19121_v29, %v5177_v50  ;;  %v15428_v50 = vld [vmem:[#allocation6 + $0x3d0] sm:$0xff]  }
 0x723   :  { %14838 = vmatpush3.bf16.msra.mxu0 %v15365_v51  ;;  %14773 = vmatprep.subr.bf16.mxu1 %v15366_v12  ;;  %v11693_v51 = vmul.f32 0.25, %v11677_v49  ;;  %v15407_v12 = vld [vmem:[#allocation6 + $0x300] sm:$0xff]   ;;  %v15430_v49 = vld [vmem:[#allocation6 + $0x3c8] sm:$0xff]  }
 0x724   :  { %14839 = vmatprep.subr.bf16.mxu0 %v15367_v19  ;;  %v11384_v33 = vadd.f32 %v19225_v43, %v11343_v7  ;;  %v15404_v43 = vld [vmem:[#allocation6 + $0x2e8] sm:$0xff]  }
 0x725   :  { %v11709_v19 = vpack.c.bf16 %v11693_v51, %v11693_v51 }
 0x726   :  { %14774 = vmatpush3.bf16.msra.mxu1 %v15368_v1  ;;  %v11425_v1 = vadd.f32 %v19229_v13, %v11384_v33 }
 0x727   :  { %14840 = vmatpush3.bf16.msra.mxu0 %v15369_v59  ;;  %14803 = vmatprep.subr.bf16.mxu1 %v15370_v4 }
 0x728   :  { %14869 = vmatprep.subr.bf16.mxu0 %v15378_v22 }
 0x729   :  { %12818 = vmatmul.mubr.bf16.vlgmr.msra.gmra.mxu1 %v11700_v47 }
 0x72a   :  { %12938 = vmatmul.mubr.bf16.vlgmr.msra.gmra.mxu0 %v11706_v34  ;;  %14804 = vmatpush3.bf16.msra.mxu1 %v15371_v28  ;;  %v15408_v34 = vld [vmem:[#allocation6 + $0x2e0] sm:$0xff]  }
 0x72b   :  { %12897 = vmatprep.mubr.bf16.mxu1 %v11705_v8  ;;  %14805 = vmatprep.subr.bf16.mxu1 %v15372_v24 }
 0x72c   :  { %14870 = vmatpush3.bf16.msra.mxu0 %v15379_v10 }
 0x72d   :  { %14871 = vmatprep.subr.bf16.mxu0 %v15382_v52 }
 0x72e   :  { %14806 = vmatpush3.bf16.msra.mxu1 %v15373_v44 }
 0x72f   :  { %14807 = vmatprep.subr.bf16.mxu1 %v15374_v61  ;;  %v15409_v61 = vld [vmem:[#allocation6 + $0x2a0] sm:$0xff]  }
 0x730   :  { %14872 = vmatpush3.bf16.msra.mxu0 %v15383_v2 }
 0x731   :  { %14873 = vmatprep.subr.bf16.mxu0 %v15386_v30  ;;  %v15410_v30 = vld [vmem:[#allocation6 + $0x2d8] sm:$0xff]  }
 0x732   :  { %14808 = vmatpush3.bf16.msra.mxu1 %v15375_v25 }
 0x733   :  { %14809 = vmatprep.subr.bf16.mxu1 %v15376_v21  ;;  %v15411_v21 = vld [vmem:[#allocation6 + $0x298] sm:$0xff]  }
 0x734   :  { %14874 = vmatpush3.bf16.msra.mxu0 %v15387_v31  ;;  %v15412_v31 = vld [vmem:[#allocation6 + $0x2d0] sm:$0xff]  }
 0x735   :  { %14875 = vmatprep.subr.bf16.mxu0 %v15390_v6  ;;  %v15413_v6 = vld [vmem:[#allocation6 + $0x290] sm:$0xff]  }
 0x736   :  { %14810 = vmatpush3.bf16.msra.mxu1 %v15377_v0  ;;  %v15414_v0 = vld [vmem:[#allocation6 + $0x2c8] sm:$0xff]  }
 0x737   :  { %14811 = vmatprep.subr.bf16.mxu1 %v15380_v17  ;;  %v11660_v17 = vmul.f32 0.01, %v19112_v18 }
 0x738   :  { %14876 = vmatpush3.bf16.msra.mxu0 %v15391_v27  ;;  %v15415_v27 = vld [vmem:[#allocation6 + $0x288] sm:$0xff]  }
 0x739   :  { %14877 = vmatprep.subr.bf16.mxu0 %v15394_v15  ;;  %v15416_v15 = vld [vmem:[#allocation6 + $0x2c0] sm:$0xff]  }
 0x73a   :  { %14812 = vmatpush3.bf16.msra.mxu1 %v15381_v39  ;;  %v11676_v39 = vsel %vm11644_vm9, %v19112_v18, %v11660_v17  ;;  %v15425_v18 = vld [vmem:[#allocation6 + $0x3a0] sm:$0xff]  }
 0x73b   :  { %14813 = vmatprep.subr.bf16.mxu1 %v15384_v60  ;;  %v15417_v60 = vld [vmem:[#allocation6 + $0x280] sm:$0xff]  }
 0x73c   :  { %14878 = vmatpush3.bf16.msra.mxu0 %v15395_v35  ;;  %v11692_v35 = vmul.f32 0.25, %v11676_v39 }
 0x73d   :  { %14879 = vmatprep.subr.bf16.mxu0 %v15398_v42  ;;  %v15418_v42 = vld [vmem:[#allocation6 + $0x3f8] sm:$0xff]  }
 0x73e   :  { %14814 = vmatpush3.bf16.msra.mxu1 %v15385_v5  ;;  %v15419_v5 = vld [vmem:[#allocation6 + $0x3b8] sm:$0xff]  }
 0x73f   :  { %14815 = vmatprep.subr.bf16.mxu1 %v15388_v57  ;;  %v11708_v57 = vpack.c.bf16 %v11692_v35, %v11692_v35 }
 0x740   :  { %14880 = vmatpush3.bf16.msra.mxu0 %v15399_v63  ;;  %v15421_v63 = vld [vmem:[#allocation6 + $0x3b0] sm:$0xff]  }
 0x741   :  { %14881 = vmatprep.subr.bf16.mxu0 %v15402_v45  ;;  %v15423_v45 = vld [vmem:[#allocation6 + $0x3a8] sm:$0xff]  }
 0x742   :  { %14816 = vmatpush3.bf16.msra.mxu1 %v15389_v54  ;;  %v15424_v54 = vld [vmem:[#allocation6 + $0x3e0] sm:$0xff]  }
 0x743   :  { %14817 = vmatprep.subr.bf16.mxu1 %v15392_v62  ;;  %v15426_v62 = vld [vmem:[#allocation6 + $0x3d8] sm:$0xff]  }
 0x744   :  { %14882 = vmatpush3.bf16.msra.mxu0 %v15403_v48  ;;  %v15429_v48 = vld [vmem:[#allocation6 + $0x390] sm:$0xff]  }
 0x745   :  { %14883 = vmatprep.subr.bf16.mxu0 %v15406_v46  ;;  %v15431_v46 = vld [vmem:[#allocation6 + $0x388] sm:$0xff]  }
 0x746   :  { %14818 = vmatpush3.bf16.msra.mxu1 %v15393_v56  ;;  %v15432_v56 = vld [vmem:[#allocation6 + $0x3c0] sm:$0xff]  }
 0x747   :  { %14847 = vmatprep.subr.bf16.mxu1 %v15396_v55  ;;  %v5181_v55 = vrot.slane %v19219_v26, %v16370_v3  ;;  %v5185_v3 = vrot.slane %v19219_v26, %v16373_v38 }
 0x748   :  { %14884 = vmatpush3.bf16.msra.mxu0 %v15407_v12 }
 0x749   :  { %v11463_v20 = vpop.f32.mrf.mxu1  ;;  %12898 = vmatmul.mubr.bf16.vlgmr.msra.gmra.mxu1 %v11704_v58 }
 0x74a   :  { %v11464_v14 = vadd.f32 %v11463_v20, %v19227_v53  ;;  %v19252_v29 = vpop.f32.mrf.mxu0  ;;  %14848 = vmatpush3.bf16.msra.mxu1 %v15397_v16  ;;  %12977 = vmatprep.mubr.bf16.mxu1 %v11709_v19  ;;  %v15405_v53 = vld [vmem:[#allocation6 + $0x2a8] sm:$0xff]  }
 0x74b   :  { %v11465_v59 = vpop.f32.mrf.mxu1  ;;  %14849 = vmatprep.subr.bf16.mxu1 %v15400_v11  ;;  %v11505_v7 = vadd.f32 %v19252_v29, %v5181_v55 }
 0x74c   :  { %vm11646_vm7 = vcmp.ge.f32.partialorder %v11464_v14, 0.0  ;;  %v11662_v4 = vmul.f32 0.01, %v11464_v14  ;;  %v11466_v32 = vadd.f32 %v11465_v59, %v11425_v1  ;;  %v19254_v22 = vpop.f32.mrf.mxu0 }
 0x74d   :  { %v11467_v40 = vpop.f32.mrf.mxu1  ;;  %v11507_v29 = vadd.f32 %v19254_v22, %v5185_v3 }
 0x74e   :  { %v11678_v28 = vsel %vm11646_vm7, %v11464_v14, %v11662_v4  ;;  %vm11647_vm8 = vcmp.ge.f32.partialorder %v11466_v32, 0.0  ;;  %v11663_v47 = vmul.f32 0.01, %v11466_v32  ;;  %v11508_v13 = vpop.f32.mrf.mxu0  ;;  %14850 = vmatpush3.bf16.msra.mxu1 %v15401_v36 }
 0x74f   :  { %v11468_v24 = vpop.f32.mrf.mxu1  ;;  %14851 = vmatprep.subr.bf16.mxu1 %v15404_v43  ;;  %v11694_v10 = vmul.f32 0.25, %v11678_v28 }
 0x750   :  { %v11509_v8 = vpop.f32.mrf.mxu0  ;;  %v11679_v52 = vsel %vm11647_vm8, %v11466_v32, %v11663_v47 }
 0x751   :  { %v11695_v44 = vmul.f32 0.25, %v11679_v52  ;;  %v11710_v25 = vpack.c.bf16 %v11694_v10, %v11694_v10 }
 0x752   :  { %14852 = vmatpush3.bf16.msra.mxu1 %v15405_v53 }
 0x753   :  { %14853 = vmatprep.subr.bf16.mxu1 %v15408_v34  ;;  %v11711_v2 = vpack.c.bf16 %v11695_v44, %v11695_v44 }
 0x755   :  { %13017 = vmatprep.mubr.bf16.mxu0 %v11711_v2 }
 0x756   :  { %14854 = vmatpush3.bf16.msra.mxu1 %v15409_v61  ;;  %13018 = vmatmul.mubr.bf16.vlgmr.msra.gmra.mxu0 %v11710_v25 }
 0x757   :  { %14855 = vmatprep.subr.bf16.mxu1 %v15410_v30 }
 0x75a   :  { %14856 = vmatpush3.bf16.msra.mxu1 %v15411_v21 }
 0x75b   :  { %14857 = vmatprep.subr.bf16.mxu1 %v15412_v31 }
 0x75e   :  { %14858 = vmatpush3.bf16.msra.mxu1 %v15413_v6 }
 0x75f   :  { %14859 = vmatprep.subr.bf16.mxu1 %v15414_v0  ;;  %v14608_v0 = vld [vmem:[%s19283_s12] ss:$0 sm:$0xff] }
 0x762   :  { %14860 = vmatpush3.bf16.msra.mxu1 %v15415_v27 }
 0x763   :  { %14861 = vmatprep.subr.bf16.mxu1 %v15416_v15 }
 0x766   :  { %14862 = vmatpush3.bf16.msra.mxu1 %v15417_v60 }
 0x767   :  { %14891 = vmatprep.subr.bf16.mxu1 %v15418_v42 }
 0x769   :  { %12978 = vmatmul.mubr.bf16.vlgmr.msra.gmra.mxu1 %v11708_v57 }
 0x76a   :  { %14892 = vmatpush3.bf16.msra.mxu1 %v15419_v5 }
 0x76b   :  { %14893 = vmatprep.subr.bf16.mxu1 %v15420_v41 }
 0x76e   :  { %14894 = vmatpush3.bf16.msra.mxu1 %v15421_v63 }
 0x76f   :  { %14895 = vmatprep.subr.bf16.mxu1 %v15422_v37 }
 0x772   :  { %14896 = vmatpush3.bf16.msra.mxu1 %v15423_v45 }
 0x773   :  { %14897 = vmatprep.subr.bf16.mxu1 %v15424_v54 }
 0x776   :  { %14898 = vmatpush3.bf16.msra.mxu1 %v15425_v18 }
 0x777   :  { %14899 = vmatprep.subr.bf16.mxu1 %v15426_v62 }
 0x77a   :  { %14900 = vmatpush3.bf16.msra.mxu1 %v15427_v23 }
 0x77b   :  { %14901 = vmatprep.subr.bf16.mxu1 %v15428_v50 }
 0x77e   :  { %14902 = vmatpush3.bf16.msra.mxu1 %v15429_v48 }
 0x77f   :  { %14903 = vmatprep.subr.bf16.mxu1 %v15430_v49 }
 0x782   :  { %14904 = vmatpush3.bf16.msra.mxu1 %v15431_v46 }
 0x783   :  { %14905 = vmatprep.subr.bf16.mxu1 %v15432_v56 }
 0x786   :  { %14906 = vmatpush3.bf16.msra.mxu1 %v15433_v9 }
 0x789   :  { %v11545_v51 = vpop.f32.mrf.mxu1 }
 0x78a   :  { %v11546_v12 = vadd.f32 %v11545_v51, %v11505_v7  ;;  %v11586_v33 = vpop.f32.mrf.mxu0 }
 0x78b   :  { %v11547_v16 = vpop.f32.mrf.mxu1 }
 0x78c   :  { %v11587_v58 = vadd.f32 %v11586_v33, %v11546_v12  ;;  %v11588_v11 = vpop.f32.mrf.mxu0  ;;  %v11548_v40 = vadd.f32 %v11547_v16, %v11507_v29 }
 0x78d   :  { %v11549_v19 = vpop.f32.mrf.mxu1 }
 0x78e   :  { %v11590_v20 = vpop.f32.mrf.mxu0  ;;  %v11589_v47 = vadd.f32 %v11588_v11, %v11548_v40 }
 0x78f   :  { %v11550_v1 = vpop.f32.mrf.mxu1 }
 0x790   :  { %v11591_v14 = vpop.f32.mrf.mxu0 }
 0x7aa   :  { %v14753_v36 = vpop.f32.mrf.mxu0 }
 0x7ac   :  { %v14754_v59 = vpop.f32.mrf.mxu0 }
 0x7ad   :  { %v14755_v43 = vadd.f32 %v14754_v59, %v14753_v36 }
 0x7ae   :  { %v14756_v4 = vpop.f32.mrf.mxu0 }
 0x7af   :  { %v12780_v39 = vadd.f32 %v14755_v43, %v14608_v0 }
 0x7b0   :  { %v14757_v32 = vpop.f32.mrf.mxu0 }
 0x7c9   :  { %v11627_v28 = vpop.f32.mrf.mxu1 }
 0x7ca   :  { %v11628_v13 = vadd.f32 %v11627_v28, %v11587_v58  ;;  %v14797_v53 = vpop.f32.mrf.mxu0 }
 0x7cb   :  { %v11629_v24 = vpop.f32.mrf.mxu1 }
 0x7cc   :  { %vm11648_vm10 = vcmp.ge.f32.partialorder %v11628_v13, 0.0  ;;  %v11664_v34 = vmul.f32 0.01, %v11628_v13  ;;  %v11630_v10 = vadd.f32 %v11629_v24, %v11589_v47  ;;  %v14798_v8 = vpop.f32.mrf.mxu0 }
 0x7cd   :  { %v14799_v52 = vadd.f32 %v14798_v8, %v14797_v53  ;;  %v11631_v44 = vpop.f32.mrf.mxu1 }
 0x7ce   :  { %v11680_v61 = vsel %vm11648_vm10, %v11628_v13, %v11664_v34  ;;  %vm11649_vm11 = vcmp.ge.f32.partialorder %v11630_v10, 0.0  ;;  %v11665_v2 = vmul.f32 0.01, %v11630_v10  ;;  %v14800_v30 = vpop.f32.mrf.mxu0 }
 0x7cf   :  { %v11632_v25 = vpop.f32.mrf.mxu1  ;;  %v11696_v38 = vmul.f32 0.25, %v11680_v61 }
 0x7d0   :  { %v14801_v26 = vpop.f32.mrf.mxu0  ;;  %v11681_v22 = vsel %vm11649_vm11, %v11630_v10, %v11665_v2 }
 0x7d1   :  { %v11697_v21 = vmul.f32 0.25, %v11681_v22  ;;  %v11712_v6 = vpack.c.bf16 %v11696_v38, %v11696_v38 }
 0x7d3   :  { %v11713_v31 = vpack.c.bf16 %v11697_v21, %v11697_v21 }
 0x7d5   :  { %13057 = vmatprep.mubr.bf16.mxu1 %v11713_v31 }
 0x7d6   :  { %13058 = vmatmul.mubr.bf16.vlgmr.msra.gmra.mxu1 %v11712_v6 }
 0x7e9   :  { %v14775_v17 = vpop.f32.mrf.mxu1 }
 0x7ea   :  { %v14841_v27 = vpop.f32.mrf.mxu0 }
 0x7eb   :  { %v14776_v15 = vpop.f32.mrf.mxu1 }
 0x7ec   :  { %v14777_v60 = vadd.f32 %v14776_v15, %v14775_v17  ;;  %v14842_v35 = vpop.f32.mrf.mxu0 }
 0x7ed   :  { %v14843_v42 = vadd.f32 %v14842_v35, %v14841_v27  ;;  %v14778_v5 = vpop.f32.mrf.mxu1 }
 0x7ee   :  { %v12820_v57 = vadd.f32 %v14777_v60, %v12780_v39  ;;  %v14844_v41 = vpop.f32.mrf.mxu0 }
 0x7ef   :  { %v14779_v63 = vpop.f32.mrf.mxu1 }
 0x7f0   :  { %v14845_v37 = vpop.f32.mrf.mxu0  ;;  %v12860_v45 = vadd.f32 %v14799_v52, %v12820_v57 }
 0x809   :  { %v14819_v54 = vpop.f32.mrf.mxu1 }
 0x80b   :  { %v14820_v18 = vpop.f32.mrf.mxu1 }
 0x80c   :  { %v14821_v62 = vadd.f32 %v14820_v18, %v14819_v54 }
 0x80d   :  { %v14822_v23 = vpop.f32.mrf.mxu1 }
 0x80e   :  { %v12900_v50 = vadd.f32 %v14821_v62, %v12860_v45 }
 0x80f   :  { %v14823_v48 = vpop.f32.mrf.mxu1 }
 0x810   :  { %v12940_v49 = vadd.f32 %v14843_v42, %v12900_v50 }
 0x816   :  { %v14885_v46 = vpop.f32.mrf.mxu0 }
 0x818   :  { %v14886_v56 = vpop.f32.mrf.mxu0 }
 0x819   :  { %v14887_v9 = vadd.f32 %v14886_v56, %v14885_v46 }
 0x81a   :  { %v14888_v55 = vpop.f32.mrf.mxu0 }
 0x81c   :  { %v14889_v7 = vpop.f32.mrf.mxu0 }
 0x829   :  { %v14863_v51 = vpop.f32.mrf.mxu1 }
 0x82b   :  { %v14864_v12 = vpop.f32.mrf.mxu1 }
 0x82c   :  { %v14865_v33 = vadd.f32 %v14864_v12, %v14863_v51 }
 0x82d   :  { %v14866_v16 = vpop.f32.mrf.mxu1 }
 0x82e   :  { %v12980_v58 = vadd.f32 %v14865_v33, %v12940_v49 }
 0x82f   :  { %v14867_v11 = vpop.f32.mrf.mxu1 }
 0x830   :  { %v13020_v19 = vadd.f32 %v14887_v9, %v12980_v58 }
 0x896   :  { %v14907_v20 = vpop.f32.mrf.mxu1 }
 0x898   :  { %v14908_v1 = vpop.f32.mrf.mxu1 }
 0x899   :  { %v14909_v14 = vadd.f32 %v14908_v1, %v14907_v20 }
 0x89a   :  { %v14910_v36 = vpop.f32.mrf.mxu1 }
 0x89b   :  { %v13060_v59 = vadd.f32 %v14909_v14, %v13020_v19 }
 0x89c   :  { %v14911_v43 = vpop.f32.mrf.mxu1 }
 0x89d   :  { %13065 = vst [vmem:[%s19284_s13] sm:$0xff] %v13060_v59 }
 0x89e   :  { %13070 = vsyncpa [#allocation3], 1 }
 0x89f   :  { %13071 = vsyncpa [#allocation5], 1 }

</bundles_post_ra>
